<compile_context>
chip_gen: v5e
topology: v5e:2x2
jax: 0.10.0
libtpu: 0.0.40
codegen_flags: <defaults>
</compile_context>

<pallas_src>
import functools

import jax
import jax.numpy as jnp
import numpy as np
from jax.experimental import pallas as pl
from jax.experimental.pallas import tpu as pltpu


# ----------------------------- Pallas kernel --------------------------------
def _lstm_fused_kernel(x_ref, wih0_ref, wihr_ref, whh_ref, b_ref, out_ref,
                       pre_scr, hseq_scr, *, num_layers, hidden, seq_len):
    """All layers + all timesteps of the LSTM stack in one invocation.

    x_ref   : (S, Bp, I)           batch-padded, seq-major input sequence
    wih0_ref: (I, 4H)              layer-0 input weights, pre-transposed
    wihr_ref: (max(L-1,1), H, 4H)  layers>=1 input weights, pre-transposed
    whh_ref : (L, H, 4H)           recurrent weights, pre-transposed
    b_ref   : (L, 1, 4H)           fused biases (b_ih + b_hh)
    out_ref : (Bp, H)              final hidden state of the top layer
    pre_scr : (S, Bp, 4H) f32      precomputed input-gate contributions (VMEM)
    hseq_scr: (S, Bp, H)  f32      hidden sequence of the current layer (VMEM)
    """
    H = hidden
    S = seq_len
    Bp = x_ref.shape[1]

    def run_recurrence(layer, write_seq):
        whh_l = whh_ref[layer]                        # (H, 4H), hoisted out of the loop

        def step(t, carry):
            h_prev, c_prev = carry
            # Only this recurrent matmul sits on the sequential critical path.
            gates = pre_scr[t] + jnp.dot(h_prev, whh_l,
                                         preferred_element_type=jnp.float32)
            i_g = jax.nn.sigmoid(gates[:, 0 * H:1 * H])
            f_g = jax.nn.sigmoid(gates[:, 1 * H:2 * H])
            g_g = jnp.tanh(gates[:, 2 * H:3 * H])
            o_g = jax.nn.sigmoid(gates[:, 3 * H:4 * H])
            c_new = f_g * c_prev + i_g * g_g
            h_new = o_g * jnp.tanh(c_new)
            if write_seq:                             # the top layer only needs the final h
                hseq_scr[t] = h_new
            return (h_new, c_new)

        zeros = jnp.zeros((Bp, H), jnp.float32)
        # Short fixed trip-count -> full unroll gives the LLO scheduler visibility.
        h_fin, _ = jax.lax.fori_loop(0, S, step, (zeros, zeros), unroll=True)
        return h_fin

    # Layer 0: precompute x @ W_ih + b for the whole sequence with ONE matmul.
    x_flat = x_ref[...].reshape(S * Bp, x_ref.shape[2]).astype(jnp.float32)
    pre0 = jnp.dot(x_flat, wih0_ref[...],
                   preferred_element_type=jnp.float32) + b_ref[0]
    pre_scr[...] = pre0.reshape(S, Bp, 4 * H)
    h_fin = run_recurrence(0, write_seq=num_layers > 1)

    # Layers 1..L-1: input is the previous layer's hidden sequence (VMEM resident).
    for layer in range(1, num_layers):
        h_flat = hseq_scr[...].reshape(S * Bp, H)
        pre_l = (jnp.dot(h_flat, wihr_ref[layer - 1],
                         preferred_element_type=jnp.float32) + b_ref[layer])
        pre_scr[...] = pre_l.reshape(S, Bp, 4 * H)
        h_fin = run_recurrence(layer, write_seq=layer < num_layers - 1)

    out_ref[...] = h_fin.astype(out_ref.dtype)


# ------------------------------ host wrappers --------------------------------
def prepare_params(params):
    """Hoisted one-time parameter prep: transpose, stack, fuse biases."""
    num_layers = len(params)
    H = params[0][1].shape[1]
    wih0_t = jnp.transpose(params[0][0])                                 # (I, 4H)
    if num_layers > 1:
        wihr_t = jnp.stack([jnp.transpose(p[0]) for p in params[1:]])    # (L-1, H, 4H)
    else:
        wihr_t = jnp.zeros((1, H, 4 * H), jnp.float32)                   # unused dummy
    whh_t = jnp.stack([jnp.transpose(p[1]) for p in params])             # (L, H, 4H)
    bias = jnp.stack([(p[2] + p[3]).reshape(1, 4 * H) for p in params])  # (L, 1, 4H)
    return wih0_t, wihr_t, whh_t, bias


@jax.jit
def lstm_forward(x_bsf, wih0_t, wihr_t, whh_t, bias):
    """Full module forward.  x_bsf: (B, S, I) batch_first.  Returns (B, H)."""
    B, S, I = x_bsf.shape
    num_layers, H, _ = whh_t.shape
    Lr = wihr_t.shape[0]
    Bp = ((B + 7) // 8) * 8                          # pad batch to the 8-sublane granule

    x_sbf = jnp.transpose(x_bsf, (1, 0, 2)).astype(jnp.float32)   # (S, B, I) seq-major
    if Bp != B:
        x_sbf = jnp.pad(x_sbf, ((0, 0), (0, Bp - B), (0, 0)))

    kernel = functools.partial(_lstm_fused_kernel, num_layers=num_layers,
                               hidden=H, seq_len=S)

    out = pl.pallas_call(
        kernel,
        out_shape=jax.ShapeDtypeStruct((Bp, H), jnp.float32),
        grid_spec=pltpu.PrefetchScalarGridSpec(
            num_scalar_prefetch=0,
            grid=(1,),                               # single invocation; loops in-kernel
            in_specs=[
                pl.BlockSpec((S, Bp, I), lambda i: (0, 0, 0)),
                pl.BlockSpec((I, 4 * H), lambda i: (0, 0)),
                pl.BlockSpec((Lr, H, 4 * H), lambda i: (0, 0, 0)),
                pl.BlockSpec((num_layers, H, 4 * H), lambda i: (0, 0, 0)),
                pl.BlockSpec((num_layers, 1, 4 * H), lambda i: (0, 0, 0)),
            ],
            out_specs=pl.BlockSpec((Bp, H), lambda i: (0, 0)),
            scratch_shapes=[
                pltpu.VMEM((S, Bp, 4 * H), jnp.float32),   # precomputed input gates
                pltpu.VMEM((S, Bp, H), jnp.float32),       # inter-layer hidden sequence
            ],
        ),
        compiler_params=pltpu.CompilerParams(
            dimension_semantics=("arbitrary",),
        ),
    )(x_sbf, wih0_t, wihr_t, whh_t, bias)

    return out[:B]                                    # drop padded batch rows


# --------------------------- pure-JAX reference ------------------------------
def _lstm_forward_ref(x_bsf, params):
    h_seq = jnp.transpose(x_bsf, (1, 0, 2))
    for (w_ih, w_hh, b_ih, b_hh) in params:
        H = w_hh.shape[1]
        B = h_seq.shape[1]

        def step(carry, x_t):
            h_prev, c_prev = carry
            gates = x_t @ w_ih.T + h_prev @ w_hh.T + b_ih + b_hh
            i = jax.nn.sigmoid(gates[:, 0 * H:1 * H])
            f = jax.nn.sigmoid(gates[:, 1 * H:2 * H])
            g = jnp.tanh(gates[:, 2 * H:3 * H])
            o = jax.nn.sigmoid(gates[:, 3 * H:4 * H])
            c = f * c_prev + i * g
            h = o * jnp.tanh(c)
            return (h, c), h

        init = (jnp.zeros((B, H), jnp.float32), jnp.zeros((B, H), jnp.float32))
        _, h_seq = jax.lax.scan(step, init, h_seq)
    return h_seq[-1]


# ------------------------------- parameters ----------------------------------
def init_lstm_params(key, input_size, hidden_size, num_layers):
    """PyTorch-style uniform(-1/sqrt(H), 1/sqrt(H)) init, deterministic."""
    k = 1.0 / np.sqrt(hidden_size)
    params = []
    for layer in range(num_layers):
        in_sz = input_size if layer == 0 else hidden_size
        key, k1, k2, k3, k4 = jax.random.split(key, 5)
        w_ih = jax.random.uniform(k1, (4 * hidden_size, in_sz), jnp.float32, -k, k)
        w_hh = jax.random.uniform(k2, (4 * hidden_size, hidden_size), jnp.float32, -k, k)
        b_ih = jax.random.uniform(k3, (4 * hidden_size,), jnp.float32, -k, k)
        b_hh = jax.random.uniform(k4, (4 * hidden_size,), jnp.float32, -k, k)
        params.append((w_ih, w_hh, b_ih, b_hh))
    return params


# ---------------------------------- main --------------------------------------
if __name__ == "__main__":
    # Small shapes consistent with the module (inputsize=20, hiddensize=64, numlayer=5).
    BATCH = 2
    SEQ = 8
    INPUT_SIZE = 20
    HIDDEN_SIZE = 64
    NUM_LAYERS = 5

    key = jax.random.PRNGKey(0)
    key, xkey = jax.random.split(key)
    x = jax.random.normal(xkey, (BATCH, SEQ, INPUT_SIZE), dtype=jnp.float32)

    params = init_lstm_params(key, INPUT_SIZE, HIDDEN_SIZE, NUM_LAYERS)
    wih0_t, wihr_t, whh_t, bias = prepare_params(params)

    out = lstm_forward(x, wih0_t, wihr_t, whh_t, bias)
    out = jax.block_until_ready(out)
    assert out.shape == (BATCH, HIDDEN_SIZE), out.shape

    ref = jax.block_until_ready(_lstm_forward_ref(x, params))
    np.testing.assert_allclose(np.asarray(out), np.asarray(ref), rtol=1e-4, atol=1e-4)

    print("KERNEL_OK")
</pallas_src>

<mosaic_0001>
module attributes {stable_mosaic.version = 11 : i64} {
  func.func @_lstm_fused_kernel(%arg0: i32, %arg1: memref<8x8x20xf32, #tpu.memory_space<vmem>>, %arg2: memref<20x256xf32, #tpu.memory_space<vmem>>, %arg3: memref<4x64x256xf32, #tpu.memory_space<vmem>>, %arg4: memref<5x64x256xf32, #tpu.memory_space<vmem>>, %arg5: memref<5x1x256xf32, #tpu.memory_space<vmem>>, %arg6: memref<8x64xf32, #tpu.memory_space<vmem>>, %arg7: memref<8x8x256xf32, #tpu.memory_space<vmem>>, %arg8: memref<8x8x64xf32, #tpu.memory_space<vmem>>) attributes {dimension_semantics = [#tpu.dimension_semantics<arbitrary>], iteration_bounds = array<i64: 1>, scalar_prefetch = 0 : i64, scratch_operands = 2 : i64, tpu.core_type = #tpu.core_type<tc>, window_params = [{pipeline_mode = #tpu.pipeline_mode<synchronous>, transform_indices = @transform_0, window_bounds = array<i64: 8, 8, 20>}, {pipeline_mode = #tpu.pipeline_mode<synchronous>, transform_indices = @transform_1, window_bounds = array<i64: 20, 256>}, {pipeline_mode = #tpu.pipeline_mode<synchronous>, transform_indices = @transform_2, window_bounds = array<i64: 4, 64, 256>}, {pipeline_mode = #tpu.pipeline_mode<synchronous>, transform_indices = @transform_3, window_bounds = array<i64: 5, 64, 256>}, {pipeline_mode = #tpu.pipeline_mode<synchronous>, transform_indices = @transform_4, window_bounds = array<i64: 5, 1, 256>}, {pipeline_mode = #tpu.pipeline_mode<synchronous>, transform_indices = @transform_5, window_bounds = array<i64: 8, 64>}]} {
    %c0 = arith.constant 0 : index
    %c0_0 = arith.constant 0 : index
    %c0_1 = arith.constant 0 : index
    %0 = vector.load %arg1[%c0, %c0_0, %c0_1] : memref<8x8x20xf32, #tpu.memory_space<vmem>>, vector<8x8x20xf32>
    %1 = vector.shape_cast %0 : vector<8x8x20xf32> to vector<64x20xf32>
    %c0_2 = arith.constant 0 : index
    %c0_3 = arith.constant 0 : index
    %2 = vector.load %arg2[%c0_2, %c0_3] : memref<20x256xf32, #tpu.memory_space<vmem>>, vector<20x256xf32>
    %cst = arith.constant dense<0.000000e+00> : vector<64x256xf32>
    %3 = tpu.matmul %1, %2, %cst {dimension_numbers = #tpu.dot_dimension_numbers<[1], [0], [0], [1], [0, 0, 1, 1], [], []>} : vector<64x20xf32>, vector<20x256xf32>, vector<64x256xf32> -> vector<64x256xf32>
    %c0_4 = arith.constant 0 : index
    %c0_5 = arith.constant 0 : index
    %c0_6 = arith.constant 0 : index
    %4 = vector.load %arg5[%c0_4, %c0_5, %c0_6] : memref<5x1x256xf32, #tpu.memory_space<vmem>>, vector<1x1x256xf32>
    %5 = vector.shape_cast %4 : vector<1x1x256xf32> to vector<1x256xf32>
    %6 = vector.broadcast %5 : vector<1x256xf32> to vector<64x256xf32>
    %7 = arith.addf %3, %6 : vector<64x256xf32>
    %8 = vector.shape_cast %7 : vector<64x256xf32> to vector<8x8x256xf32>
    %c0_7 = arith.constant 0 : index
    %c0_8 = arith.constant 0 : index
    %c0_9 = arith.constant 0 : index
    %9 = vector.load %arg7[%c0_7, %c0_8, %c0_9] : memref<8x8x256xf32, #tpu.memory_space<vmem>>, vector<8x8x256xf32>
    tpu.vector_store %arg7[%c0_7, %c0_8, %c0_9], %8 {strides = array<i32>} : memref<8x8x256xf32, #tpu.memory_space<vmem>>, vector<8x8x256xf32>,
    %c0_10 = arith.constant 0 : index
    %c0_11 = arith.constant 0 : index
    %c0_12 = arith.constant 0 : index
    %10 = vector.load %arg4[%c0_10, %c0_11, %c0_12] : memref<5x64x256xf32, #tpu.memory_space<vmem>>, vector<1x64x256xf32>
    %11 = vector.shape_cast %10 : vector<1x64x256xf32> to vector<64x256xf32>
    %cst_13 = arith.constant 0.000000e+00 : f32
    %12 = vector.broadcast %cst_13 : f32 to vector<8x64xf32>
    %c0_i32 = arith.constant 0 : i32
    %13 = arith.index_cast %c0_i32 : i32 to index
    %c0_14 = arith.constant 0 : index
    %c0_15 = arith.constant 0 : index
    %14 = vector.load %arg7[%13, %c0_14, %c0_15] : memref<8x8x256xf32, #tpu.memory_space<vmem>>, vector<1x8x256xf32>
    %15 = vector.shape_cast %14 : vector<1x8x256xf32> to vector<8x256xf32>
    %cst_16 = arith.constant dense<0.000000e+00> : vector<8x256xf32>
    %16 = tpu.matmul %12, %11, %cst_16 {dimension_numbers = #tpu.dot_dimension_numbers<[1], [0], [0], [1], [0, 0, 1, 1], [], []>} : vector<8x64xf32>, vector<64x256xf32>, vector<8x256xf32> -> vector<8x256xf32>
    %17 = arith.addf %15, %16 : vector<8x256xf32>
    %18 = vector.extract_strided_slice %17 {offsets = [0, 0], sizes = [8, 64], strides = [1, 1]} : vector<8x256xf32> to vector<8x64xf32>
    %19 = arith.negf %18 : vector<8x64xf32>
    %20 = math.exp %19 : vector<8x64xf32>
    %cst_17 = arith.constant 1.000000e+00 : f32
    %21 = vector.broadcast %cst_17 : f32 to vector<8x64xf32>
    %22 = arith.addf %21, %20 : vector<8x64xf32>
    %23 = arith.divf %21, %22 : vector<8x64xf32>
    %24 = vector.extract_strided_slice %17 {offsets = [0, 64], sizes = [8, 64], strides = [1, 1]} : vector<8x256xf32> to vector<8x64xf32>
    %25 = arith.negf %24 : vector<8x64xf32>
    %26 = math.exp %25 : vector<8x64xf32>
    %cst_18 = arith.constant 1.000000e+00 : f32
    %27 = vector.broadcast %cst_18 : f32 to vector<8x64xf32>
    %28 = arith.addf %27, %26 : vector<8x64xf32>
    %29 = arith.divf %27, %28 : vector<8x64xf32>
    %30 = vector.extract_strided_slice %17 {offsets = [0, 128], sizes = [8, 64], strides = [1, 1]} : vector<8x256xf32> to vector<8x64xf32>
    %31 = math.tanh %30 : vector<8x64xf32>
    %32 = vector.extract_strided_slice %17 {offsets = [0, 192], sizes = [8, 64], strides = [1, 1]} : vector<8x256xf32> to vector<8x64xf32>
    %33 = arith.negf %32 : vector<8x64xf32>
    %34 = math.exp %33 : vector<8x64xf32>
    %cst_19 = arith.constant 1.000000e+00 : f32
    %35 = vector.broadcast %cst_19 : f32 to vector<8x64xf32>
    %36 = arith.addf %35, %34 : vector<8x64xf32>
    %37 = arith.divf %35, %36 : vector<8x64xf32>
    %38 = arith.mulf %29, %12 : vector<8x64xf32>
    %39 = arith.mulf %23, %31 : vector<8x64xf32>
    %40 = arith.addf %38, %39 : vector<8x64xf32>
    %41 = math.tanh %40 : vector<8x64xf32>
    %42 = arith.mulf %37, %41 : vector<8x64xf32>
    %43 = arith.index_cast %c0_i32 : i32 to index
    %c0_20 = arith.constant 0 : index
    %c0_21 = arith.constant 0 : index
    %44 = vector.load %arg8[%43, %c0_20, %c0_21] : memref<8x8x64xf32, #tpu.memory_space<vmem>>, vector<1x8x64xf32>
    %45 = vector.shape_cast %44 : vector<1x8x64xf32> to vector<8x64xf32>
    %46 = vector.shape_cast %42 : vector<8x64xf32> to vector<1x8x64xf32>
    tpu.vector_store %arg8[%43, %c0_20, %c0_21], %46 {strides = array<i32>} : memref<8x8x64xf32, #tpu.memory_space<vmem>>, vector<1x8x64xf32>,
    %c1_i32 = arith.constant 1 : i32
    %47 = arith.index_cast %c1_i32 : i32 to index
    %c0_22 = arith.constant 0 : index
    %c0_23 = arith.constant 0 : index
    %48 = vector.load %arg7[%47, %c0_22, %c0_23] : memref<8x8x256xf32, #tpu.memory_space<vmem>>, vector<1x8x256xf32>
    %49 = vector.shape_cast %48 : vector<1x8x256xf32> to vector<8x256xf32>
    %cst_24 = arith.constant dense<0.000000e+00> : vector<8x256xf32>
    %50 = tpu.matmul %42, %11, %cst_24 {dimension_numbers = #tpu.dot_dimension_numbers<[1], [0], [0], [1], [0, 0, 1, 1], [], []>} : vector<8x64xf32>, vector<64x256xf32>, vector<8x256xf32> -> vector<8x256xf32>
    %51 = arith.addf %49, %50 : vector<8x256xf32>
    %52 = vector.extract_strided_slice %51 {offsets = [0, 0], sizes = [8, 64], strides = [1, 1]} : vector<8x256xf32> to vector<8x64xf32>
    %53 = arith.negf %52 : vector<8x64xf32>
    %54 = math.exp %53 : vector<8x64xf32>
    %cst_25 = arith.constant 1.000000e+00 : f32
    %55 = vector.broadcast %cst_25 : f32 to vector<8x64xf32>
    %56 = arith.addf %55, %54 : vector<8x64xf32>
    %57 = arith.divf %55, %56 : vector<8x64xf32>
    %58 = vector.extract_strided_slice %51 {offsets = [0, 64], sizes = [8, 64], strides = [1, 1]} : vector<8x256xf32> to vector<8x64xf32>
    %59 = arith.negf %58 : vector<8x64xf32>
    %60 = math.exp %59 : vector<8x64xf32>
    %cst_26 = arith.constant 1.000000e+00 : f32
    %61 = vector.broadcast %cst_26 : f32 to vector<8x64xf32>
    %62 = arith.addf %61, %60 : vector<8x64xf32>
    %63 = arith.divf %61, %62 : vector<8x64xf32>
    %64 = vector.extract_strided_slice %51 {offsets = [0, 128], sizes = [8, 64], strides = [1, 1]} : vector<8x256xf32> to vector<8x64xf32>
    %65 = math.tanh %64 : vector<8x64xf32>
    %66 = vector.extract_strided_slice %51 {offsets = [0, 192], sizes = [8, 64], strides = [1, 1]} : vector<8x256xf32> to vector<8x64xf32>
    %67 = arith.negf %66 : vector<8x64xf32>
    %68 = math.exp %67 : vector<8x64xf32>
    %cst_27 = arith.constant 1.000000e+00 : f32
    %69 = vector.broadcast %cst_27 : f32 to vector<8x64xf32>
    %70 = arith.addf %69, %68 : vector<8x64xf32>
    %71 = arith.divf %69, %70 : vector<8x64xf32>
    %72 = arith.mulf %63, %40 : vector<8x64xf32>
    %73 = arith.mulf %57, %65 : vector<8x64xf32>
    %74 = arith.addf %72, %73 : vector<8x64xf32>
    %75 = math.tanh %74 : vector<8x64xf32>
    %76 = arith.mulf %71, %75 : vector<8x64xf32>
    %77 = arith.index_cast %c1_i32 : i32 to index
    %c0_28 = arith.constant 0 : index
    %c0_29 = arith.constant 0 : index
    %78 = vector.load %arg8[%77, %c0_28, %c0_29] : memref<8x8x64xf32, #tpu.memory_space<vmem>>, vector<1x8x64xf32>
    %79 = vector.shape_cast %78 : vector<1x8x64xf32> to vector<8x64xf32>
    %80 = vector.shape_cast %76 : vector<8x64xf32> to vector<1x8x64xf32>
    tpu.vector_store %arg8[%77, %c0_28, %c0_29], %80 {strides = array<i32>} : memref<8x8x64xf32, #tpu.memory_space<vmem>>, vector<1x8x64xf32>,
    %c2_i32 = arith.constant 2 : i32
    %81 = arith.index_cast %c2_i32 : i32 to index
    %c0_30 = arith.constant 0 : index
    %c0_31 = arith.constant 0 : index
    %82 = vector.load %arg7[%81, %c0_30, %c0_31] : memref<8x8x256xf32, #tpu.memory_space<vmem>>, vector<1x8x256xf32>
    %83 = vector.shape_cast %82 : vector<1x8x256xf32> to vector<8x256xf32>
    %cst_32 = arith.constant dense<0.000000e+00> : vector<8x256xf32>
    %84 = tpu.matmul %76, %11, %cst_32 {dimension_numbers = #tpu.dot_dimension_numbers<[1], [0], [0], [1], [0, 0, 1, 1], [], []>} : vector<8x64xf32>, vector<64x256xf32>, vector<8x256xf32> -> vector<8x256xf32>
    %85 = arith.addf %83, %84 : vector<8x256xf32>
    %86 = vector.extract_strided_slice %85 {offsets = [0, 0], sizes = [8, 64], strides = [1, 1]} : vector<8x256xf32> to vector<8x64xf32>
    %87 = arith.negf %86 : vector<8x64xf32>
    %88 = math.exp %87 : vector<8x64xf32>
    %cst_33 = arith.constant 1.000000e+00 : f32
    %89 = vector.broadcast %cst_33 : f32 to vector<8x64xf32>
    %90 = arith.addf %89, %88 : vector<8x64xf32>
    %91 = arith.divf %89, %90 : vector<8x64xf32>
    %92 = vector.extract_strided_slice %85 {offsets = [0, 64], sizes = [8, 64], strides = [1, 1]} : vector<8x256xf32> to vector<8x64xf32>
    %93 = arith.negf %92 : vector<8x64xf32>
    %94 = math.exp %93 : vector<8x64xf32>
    %cst_34 = arith.constant 1.000000e+00 : f32
    %95 = vector.broadcast %cst_34 : f32 to vector<8x64xf32>
    %96 = arith.addf %95, %94 : vector<8x64xf32>
    %97 = arith.divf %95, %96 : vector<8x64xf32>
    %98 = vector.extract_strided_slice %85 {offsets = [0, 128], sizes = [8, 64], strides = [1, 1]} : vector<8x256xf32> to vector<8x64xf32>
    %99 = math.tanh %98 : vector<8x64xf32>
    %100 = vector.extract_strided_slice %85 {offsets = [0, 192], sizes = [8, 64], strides = [1, 1]} : vector<8x256xf32> to vector<8x64xf32>
    %101 = arith.negf %100 : vector<8x64xf32>
    %102 = math.exp %101 : vector<8x64xf32>
    %cst_35 = arith.constant 1.000000e+00 : f32
    %103 = vector.broadcast %cst_35 : f32 to vector<8x64xf32>
    %104 = arith.addf %103, %102 : vector<8x64xf32>
    %105 = arith.divf %103, %104 : vector<8x64xf32>
    %106 = arith.mulf %97, %74 : vector<8x64xf32>
    %107 = arith.mulf %91, %99 : vector<8x64xf32>
    %108 = arith.addf %106, %107 : vector<8x64xf32>
    %109 = math.tanh %108 : vector<8x64xf32>
    %110 = arith.mulf %105, %109 : vector<8x64xf32>
    %111 = arith.index_cast %c2_i32 : i32 to index
    %c0_36 = arith.constant 0 : index
    %c0_37 = arith.constant 0 : index
    %112 = vector.load %arg8[%111, %c0_36, %c0_37] : memref<8x8x64xf32, #tpu.memory_space<vmem>>, vector<1x8x64xf32>
    %113 = vector.shape_cast %112 : vector<1x8x64xf32> to vector<8x64xf32>
    %114 = vector.shape_cast %110 : vector<8x64xf32> to vector<1x8x64xf32>
    tpu.vector_store %arg8[%111, %c0_36, %c0_37], %114 {strides = array<i32>} : memref<8x8x64xf32, #tpu.memory_space<vmem>>, vector<1x8x64xf32>,
    %c3_i32 = arith.constant 3 : i32
    %115 = arith.index_cast %c3_i32 : i32 to index
    %c0_38 = arith.constant 0 : index
    %c0_39 = arith.constant 0 : index
    %116 = vector.load %arg7[%115, %c0_38, %c0_39] : memref<8x8x256xf32, #tpu.memory_space<vmem>>, vector<1x8x256xf32>
    %117 = vector.shape_cast %116 : vector<1x8x256xf32> to vector<8x256xf32>
    %cst_40 = arith.constant dense<0.000000e+00> : vector<8x256xf32>
    %118 = tpu.matmul %110, %11, %cst_40 {dimension_numbers = #tpu.dot_dimension_numbers<[1], [0], [0], [1], [0, 0, 1, 1], [], []>} : vector<8x64xf32>, vector<64x256xf32>, vector<8x256xf32> -> vector<8x256xf32>
    %119 = arith.addf %117, %118 : vector<8x256xf32>
    %120 = vector.extract_strided_slice %119 {offsets = [0, 0], sizes = [8, 64], strides = [1, 1]} : vector<8x256xf32> to vector<8x64xf32>
    %121 = arith.negf %120 : vector<8x64xf32>
    %122 = math.exp %121 : vector<8x64xf32>
    %cst_41 = arith.constant 1.000000e+00 : f32
    %123 = vector.broadcast %cst_41 : f32 to vector<8x64xf32>
    %124 = arith.addf %123, %122 : vector<8x64xf32>
    %125 = arith.divf %123, %124 : vector<8x64xf32>
    %126 = vector.extract_strided_slice %119 {offsets = [0, 64], sizes = [8, 64], strides = [1, 1]} : vector<8x256xf32> to vector<8x64xf32>
    %127 = arith.negf %126 : vector<8x64xf32>
    %128 = math.exp %127 : vector<8x64xf32>
    %cst_42 = arith.constant 1.000000e+00 : f32
    %129 = vector.broadcast %cst_42 : f32 to vector<8x64xf32>
    %130 = arith.addf %129, %128 : vector<8x64xf32>
    %131 = arith.divf %129, %130 : vector<8x64xf32>
    %132 = vector.extract_strided_slice %119 {offsets = [0, 128], sizes = [8, 64], strides = [1, 1]} : vector<8x256xf32> to vector<8x64xf32>
    %133 = math.tanh %132 : vector<8x64xf32>
    %134 = vector.extract_strided_slice %119 {offsets = [0, 192], sizes = [8, 64], strides = [1, 1]} : vector<8x256xf32> to vector<8x64xf32>
    %135 = arith.negf %134 : vector<8x64xf32>
    %136 = math.exp %135 : vector<8x64xf32>
    %cst_43 = arith.constant 1.000000e+00 : f32
    %137 = vector.broadcast %cst_43 : f32 to vector<8x64xf32>
    %138 = arith.addf %137, %136 : vector<8x64xf32>
    %139 = arith.divf %137, %138 : vector<8x64xf32>
    %140 = arith.mulf %131, %108 : vector<8x64xf32>
    %141 = arith.mulf %125, %133 : vector<8x64xf32>
    %142 = arith.addf %140, %141 : vector<8x64xf32>
    %143 = math.tanh %142 : vector<8x64xf32>
    %144 = arith.mulf %139, %143 : vector<8x64xf32>
    %145 = arith.index_cast %c3_i32 : i32 to index
    %c0_44 = arith.constant 0 : index
    %c0_45 = arith.constant 0 : index
    %146 = vector.load %arg8[%145, %c0_44, %c0_45] : memref<8x8x64xf32, #tpu.memory_space<vmem>>, vector<1x8x64xf32>
    %147 = vector.shape_cast %146 : vector<1x8x64xf32> to vector<8x64xf32>
    %148 = vector.shape_cast %144 : vector<8x64xf32> to vector<1x8x64xf32>
    tpu.vector_store %arg8[%145, %c0_44, %c0_45], %148 {strides = array<i32>} : memref<8x8x64xf32, #tpu.memory_space<vmem>>, vector<1x8x64xf32>,
    %c4_i32 = arith.constant 4 : i32
    %149 = arith.index_cast %c4_i32 : i32 to index
    %c0_46 = arith.constant 0 : index
    %c0_47 = arith.constant 0 : index
    %150 = vector.load %arg7[%149, %c0_46, %c0_47] : memref<8x8x256xf32, #tpu.memory_space<vmem>>, vector<1x8x256xf32>
    %151 = vector.shape_cast %150 : vector<1x8x256xf32> to vector<8x256xf32>
    %cst_48 = arith.constant dense<0.000000e+00> : vector<8x256xf32>
    %152 = tpu.matmul %144, %11, %cst_48 {dimension_numbers = #tpu.dot_dimension_numbers<[1], [0], [0], [1], [0, 0, 1, 1], [], []>} : vector<8x64xf32>, vector<64x256xf32>, vector<8x256xf32> -> vector<8x256xf32>
    %153 = arith.addf %151, %152 : vector<8x256xf32>
    %154 = vector.extract_strided_slice %153 {offsets = [0, 0], sizes = [8, 64], strides = [1, 1]} : vector<8x256xf32> to vector<8x64xf32>
    %155 = arith.negf %154 : vector<8x64xf32>
    %156 = math.exp %155 : vector<8x64xf32>
    %cst_49 = arith.constant 1.000000e+00 : f32
    %157 = vector.broadcast %cst_49 : f32 to vector<8x64xf32>
    %158 = arith.addf %157, %156 : vector<8x64xf32>
    %159 = arith.divf %157, %158 : vector<8x64xf32>
    %160 = vector.extract_strided_slice %153 {offsets = [0, 64], sizes = [8, 64], strides = [1, 1]} : vector<8x256xf32> to vector<8x64xf32>
    %161 = arith.negf %160 : vector<8x64xf32>
    %162 = math.exp %161 : vector<8x64xf32>
    %cst_50 = arith.constant 1.000000e+00 : f32
    %163 = vector.broadcast %cst_50 : f32 to vector<8x64xf32>
    %164 = arith.addf %163, %162 : vector<8x64xf32>
    %165 = arith.divf %163, %164 : vector<8x64xf32>
    %166 = vector.extract_strided_slice %153 {offsets = [0, 128], sizes = [8, 64], strides = [1, 1]} : vector<8x256xf32> to vector<8x64xf32>
    %167 = math.tanh %166 : vector<8x64xf32>
    %168 = vector.extract_strided_slice %153 {offsets = [0, 192], sizes = [8, 64], strides = [1, 1]} : vector<8x256xf32> to vector<8x64xf32>
    %169 = arith.negf %168 : vector<8x64xf32>
    %170 = math.exp %169 : vector<8x64xf32>
    %cst_51 = arith.constant 1.000000e+00 : f32
    %171 = vector.broadcast %cst_51 : f32 to vector<8x64xf32>
    %172 = arith.addf %171, %170 : vector<8x64xf32>
    %173 = arith.divf %171, %172 : vector<8x64xf32>
    %174 = arith.mulf %165, %142 : vector<8x64xf32>
    %175 = arith.mulf %159, %167 : vector<8x64xf32>
    %176 = arith.addf %174, %175 : vector<8x64xf32>
    %177 = math.tanh %176 : vector<8x64xf32>
    %178 = arith.mulf %173, %177 : vector<8x64xf32>
    %179 = arith.index_cast %c4_i32 : i32 to index
    %c0_52 = arith.constant 0 : index
    %c0_53 = arith.constant 0 : index
    %180 = vector.load %arg8[%179, %c0_52, %c0_53] : memref<8x8x64xf32, #tpu.memory_space<vmem>>, vector<1x8x64xf32>
    %181 = vector.shape_cast %180 : vector<1x8x64xf32> to vector<8x64xf32>
    %182 = vector.shape_cast %178 : vector<8x64xf32> to vector<1x8x64xf32>
    tpu.vector_store %arg8[%179, %c0_52, %c0_53], %182 {strides = array<i32>} : memref<8x8x64xf32, #tpu.memory_space<vmem>>, vector<1x8x64xf32>,
    %c5_i32 = arith.constant 5 : i32
    %183 = arith.index_cast %c5_i32 : i32 to index
    %c0_54 = arith.constant 0 : index
    %c0_55 = arith.constant 0 : index
    %184 = vector.load %arg7[%183, %c0_54, %c0_55] : memref<8x8x256xf32, #tpu.memory_space<vmem>>, vector<1x8x256xf32>
    %185 = vector.shape_cast %184 : vector<1x8x256xf32> to vector<8x256xf32>
    %cst_56 = arith.constant dense<0.000000e+00> : vector<8x256xf32>
    %186 = tpu.matmul %178, %11, %cst_56 {dimension_numbers = #tpu.dot_dimension_numbers<[1], [0], [0], [1], [0, 0, 1, 1], [], []>} : vector<8x64xf32>, vector<64x256xf32>, vector<8x256xf32> -> vector<8x256xf32>
    %187 = arith.addf %185, %186 : vector<8x256xf32>
    %188 = vector.extract_strided_slice %187 {offsets = [0, 0], sizes = [8, 64], strides = [1, 1]} : vector<8x256xf32> to vector<8x64xf32>
    %189 = arith.negf %188 : vector<8x64xf32>
    %190 = math.exp %189 : vector<8x64xf32>
    %cst_57 = arith.constant 1.000000e+00 : f32
    %191 = vector.broadcast %cst_57 : f32 to vector<8x64xf32>
    %192 = arith.addf %191, %190 : vector<8x64xf32>
    %193 = arith.divf %191, %192 : vector<8x64xf32>
    %194 = vector.extract_strided_slice %187 {offsets = [0, 64], sizes = [8, 64], strides = [1, 1]} : vector<8x256xf32> to vector<8x64xf32>
    %195 = arith.negf %194 : vector<8x64xf32>
    %196 = math.exp %195 : vector<8x64xf32>
    %cst_58 = arith.constant 1.000000e+00 : f32
    %197 = vector.broadcast %cst_58 : f32 to vector<8x64xf32>
    %198 = arith.addf %197, %196 : vector<8x64xf32>
    %199 = arith.divf %197, %198 : vector<8x64xf32>
    %200 = vector.extract_strided_slice %187 {offsets = [0, 128], sizes = [8, 64], strides = [1, 1]} : vector<8x256xf32> to vector<8x64xf32>
    %201 = math.tanh %200 : vector<8x64xf32>
    %202 = vector.extract_strided_slice %187 {offsets = [0, 192], sizes = [8, 64], strides = [1, 1]} : vector<8x256xf32> to vector<8x64xf32>
    %203 = arith.negf %202 : vector<8x64xf32>
    %204 = math.exp %203 : vector<8x64xf32>
    %cst_59 = arith.constant 1.000000e+00 : f32
    %205 = vector.broadcast %cst_59 : f32 to vector<8x64xf32>
    %206 = arith.addf %205, %204 : vector<8x64xf32>
    %207 = arith.divf %205, %206 : vector<8x64xf32>
    %208 = arith.mulf %199, %176 : vector<8x64xf32>
    %209 = arith.mulf %193, %201 : vector<8x64xf32>
    %210 = arith.addf %208, %209 : vector<8x64xf32>
    %211 = math.tanh %210 : vector<8x64xf32>
    %212 = arith.mulf %207, %211 : vector<8x64xf32>
    %213 = arith.index_cast %c5_i32 : i32 to index
    %c0_60 = arith.constant 0 : index
    %c0_61 = arith.constant 0 : index
    %214 = vector.load %arg8[%213, %c0_60, %c0_61] : memref<8x8x64xf32, #tpu.memory_space<vmem>>, vector<1x8x64xf32>
    %215 = vector.shape_cast %214 : vector<1x8x64xf32> to vector<8x64xf32>
    %216 = vector.shape_cast %212 : vector<8x64xf32> to vector<1x8x64xf32>
    tpu.vector_store %arg8[%213, %c0_60, %c0_61], %216 {strides = array<i32>} : memref<8x8x64xf32, #tpu.memory_space<vmem>>, vector<1x8x64xf32>,
    %c6_i32 = arith.constant 6 : i32
    %217 = arith.index_cast %c6_i32 : i32 to index
    %c0_62 = arith.constant 0 : index
    %c0_63 = arith.constant 0 : index
    %218 = vector.load %arg7[%217, %c0_62, %c0_63] : memref<8x8x256xf32, #tpu.memory_space<vmem>>, vector<1x8x256xf32>
    %219 = vector.shape_cast %218 : vector<1x8x256xf32> to vector<8x256xf32>
    %cst_64 = arith.constant dense<0.000000e+00> : vector<8x256xf32>
    %220 = tpu.matmul %212, %11, %cst_64 {dimension_numbers = #tpu.dot_dimension_numbers<[1], [0], [0], [1], [0, 0, 1, 1], [], []>} : vector<8x64xf32>, vector<64x256xf32>, vector<8x256xf32> -> vector<8x256xf32>
    %221 = arith.addf %219, %220 : vector<8x256xf32>
    %222 = vector.extract_strided_slice %221 {offsets = [0, 0], sizes = [8, 64], strides = [1, 1]} : vector<8x256xf32> to vector<8x64xf32>
    %223 = arith.negf %222 : vector<8x64xf32>
    %224 = math.exp %223 : vector<8x64xf32>
    %cst_65 = arith.constant 1.000000e+00 : f32
    %225 = vector.broadcast %cst_65 : f32 to vector<8x64xf32>
    %226 = arith.addf %225, %224 : vector<8x64xf32>
    %227 = arith.divf %225, %226 : vector<8x64xf32>
    %228 = vector.extract_strided_slice %221 {offsets = [0, 64], sizes = [8, 64], strides = [1, 1]} : vector<8x256xf32> to vector<8x64xf32>
    %229 = arith.negf %228 : vector<8x64xf32>
    %230 = math.exp %229 : vector<8x64xf32>
    %cst_66 = arith.constant 1.000000e+00 : f32
    %231 = vector.broadcast %cst_66 : f32 to vector<8x64xf32>
    %232 = arith.addf %231, %230 : vector<8x64xf32>
    %233 = arith.divf %231, %232 : vector<8x64xf32>
    %234 = vector.extract_strided_slice %221 {offsets = [0, 128], sizes = [8, 64], strides = [1, 1]} : vector<8x256xf32> to vector<8x64xf32>
    %235 = math.tanh %234 : vector<8x64xf32>
    %236 = vector.extract_strided_slice %221 {offsets = [0, 192], sizes = [8, 64], strides = [1, 1]} : vector<8x256xf32> to vector<8x64xf32>
    %237 = arith.negf %236 : vector<8x64xf32>
    %238 = math.exp %237 : vector<8x64xf32>
    %cst_67 = arith.constant 1.000000e+00 : f32
    %239 = vector.broadcast %cst_67 : f32 to vector<8x64xf32>
    %240 = arith.addf %239, %238 : vector<8x64xf32>
    %241 = arith.divf %239, %240 : vector<8x64xf32>
    %242 = arith.mulf %233, %210 : vector<8x64xf32>
    %243 = arith.mulf %227, %235 : vector<8x64xf32>
    %244 = arith.addf %242, %243 : vector<8x64xf32>
    %245 = math.tanh %244 : vector<8x64xf32>
    %246 = arith.mulf %241, %245 : vector<8x64xf32>
    %247 = arith.index_cast %c6_i32 : i32 to index
    %c0_68 = arith.constant 0 : index
    %c0_69 = arith.constant 0 : index
    %248 = vector.load %arg8[%247, %c0_68, %c0_69] : memref<8x8x64xf32, #tpu.memory_space<vmem>>, vector<1x8x64xf32>
    %249 = vector.shape_cast %248 : vector<1x8x64xf32> to vector<8x64xf32>
    %250 = vector.shape_cast %246 : vector<8x64xf32> to vector<1x8x64xf32>
    tpu.vector_store %arg8[%247, %c0_68, %c0_69], %250 {strides = array<i32>} : memref<8x8x64xf32, #tpu.memory_space<vmem>>, vector<1x8x64xf32>,
    %c7_i32 = arith.constant 7 : i32
    %251 = arith.index_cast %c7_i32 : i32 to index
    %c0_70 = arith.constant 0 : index
    %c0_71 = arith.constant 0 : index
    %252 = vector.load %arg7[%251, %c0_70, %c0_71] : memref<8x8x256xf32, #tpu.memory_space<vmem>>, vector<1x8x256xf32>
    %253 = vector.shape_cast %252 : vector<1x8x256xf32> to vector<8x256xf32>
    %cst_72 = arith.constant dense<0.000000e+00> : vector<8x256xf32>
    %254 = tpu.matmul %246, %11, %cst_72 {dimension_numbers = #tpu.dot_dimension_numbers<[1], [0], [0], [1], [0, 0, 1, 1], [], []>} : vector<8x64xf32>, vector<64x256xf32>, vector<8x256xf32> -> vector<8x256xf32>
    %255 = arith.addf %253, %254 : vector<8x256xf32>
    %256 = vector.extract_strided_slice %255 {offsets = [0, 0], sizes = [8, 64], strides = [1, 1]} : vector<8x256xf32> to vector<8x64xf32>
    %257 = arith.negf %256 : vector<8x64xf32>
    %258 = math.exp %257 : vector<8x64xf32>
    %cst_73 = arith.constant 1.000000e+00 : f32
    %259 = vector.broadcast %cst_73 : f32 to vector<8x64xf32>
    %260 = arith.addf %259, %258 : vector<8x64xf32>
    %261 = arith.divf %259, %260 : vector<8x64xf32>
    %262 = vector.extract_strided_slice %255 {offsets = [0, 64], sizes = [8, 64], strides = [1, 1]} : vector<8x256xf32> to vector<8x64xf32>
    %263 = arith.negf %262 : vector<8x64xf32>
    %264 = math.exp %263 : vector<8x64xf32>
    %cst_74 = arith.constant 1.000000e+00 : f32
    %265 = vector.broadcast %cst_74 : f32 to vector<8x64xf32>
    %266 = arith.addf %265, %264 : vector<8x64xf32>
    %267 = arith.divf %265, %266 : vector<8x64xf32>
    %268 = vector.extract_strided_slice %255 {offsets = [0, 128], sizes = [8, 64], strides = [1, 1]} : vector<8x256xf32> to vector<8x64xf32>
    %269 = math.tanh %268 : vector<8x64xf32>
    %270 = vector.extract_strided_slice %255 {offsets = [0, 192], sizes = [8, 64], strides = [1, 1]} : vector<8x256xf32> to vector<8x64xf32>
    %271 = arith.negf %270 : vector<8x64xf32>
    %272 = math.exp %271 : vector<8x64xf32>
    %cst_75 = arith.constant 1.000000e+00 : f32
    %273 = vector.broadcast %cst_75 : f32 to vector<8x64xf32>
    %274 = arith.addf %273, %272 : vector<8x64xf32>
    %275 = arith.divf %273, %274 : vector<8x64xf32>
    %276 = arith.mulf %267, %244 : vector<8x64xf32>
    %277 = arith.mulf %261, %269 : vector<8x64xf32>
    %278 = arith.addf %276, %277 : vector<8x64xf32>
    %279 = math.tanh %278 : vector<8x64xf32>
    %280 = arith.mulf %275, %279 : vector<8x64xf32>
    %281 = arith.index_cast %c7_i32 : i32 to index
    %c0_76 = arith.constant 0 : index
    %c0_77 = arith.constant 0 : index
    %282 = vector.load %arg8[%281, %c0_76, %c0_77] : memref<8x8x64xf32, #tpu.memory_space<vmem>>, vector<1x8x64xf32>
    %283 = vector.shape_cast %282 : vector<1x8x64xf32> to vector<8x64xf32>
    %284 = vector.shape_cast %280 : vector<8x64xf32> to vector<1x8x64xf32>
    tpu.vector_store %arg8[%281, %c0_76, %c0_77], %284 {strides = array<i32>} : memref<8x8x64xf32, #tpu.memory_space<vmem>>, vector<1x8x64xf32>,
    %c8_i32 = arith.constant 8 : i32
    %c0_78 = arith.constant 0 : index
    %c0_79 = arith.constant 0 : index
    %c0_80 = arith.constant 0 : index
    %285 = vector.load %arg8[%c0_78, %c0_79, %c0_80] : memref<8x8x64xf32, #tpu.memory_space<vmem>>, vector<8x8x64xf32>
    %286 = vector.shape_cast %285 : vector<8x8x64xf32> to vector<64x64xf32>
    %c0_81 = arith.constant 0 : index
    %c0_82 = arith.constant 0 : index
    %c0_83 = arith.constant 0 : index
    %287 = vector.load %arg3[%c0_81, %c0_82, %c0_83] : memref<4x64x256xf32, #tpu.memory_space<vmem>>, vector<1x64x256xf32>
    %288 = vector.shape_cast %287 : vector<1x64x256xf32> to vector<64x256xf32>
    %cst_84 = arith.constant dense<0.000000e+00> : vector<64x256xf32>
    %289 = tpu.matmul %286, %288, %cst_84 {dimension_numbers = #tpu.dot_dimension_numbers<[1], [0], [0], [1], [0, 0, 1, 1], [], []>} : vector<64x64xf32>, vector<64x256xf32>, vector<64x256xf32> -> vector<64x256xf32>
    %c1 = arith.constant 1 : index
    %c0_85 = arith.constant 0 : index
    %c0_86 = arith.constant 0 : index
    %290 = vector.load %arg5[%c1, %c0_85, %c0_86] : memref<5x1x256xf32, #tpu.memory_space<vmem>>, vector<1x1x256xf32>
    %291 = vector.shape_cast %290 : vector<1x1x256xf32> to vector<1x256xf32>
    %292 = vector.broadcast %291 : vector<1x256xf32> to vector<64x256xf32>
    %293 = arith.addf %289, %292 : vector<64x256xf32>
    %294 = vector.shape_cast %293 : vector<64x256xf32> to vector<8x8x256xf32>
    %c0_87 = arith.constant 0 : index
    %c0_88 = arith.constant 0 : index
    %c0_89 = arith.constant 0 : index
    %295 = vector.load %arg7[%c0_87, %c0_88, %c0_89] : memref<8x8x256xf32, #tpu.memory_space<vmem>>, vector<8x8x256xf32>
    tpu.vector_store %arg7[%c0_87, %c0_88, %c0_89], %294 {strides = array<i32>} : memref<8x8x256xf32, #tpu.memory_space<vmem>>, vector<8x8x256xf32>,
    %c1_90 = arith.constant 1 : index
    %c0_91 = arith.constant 0 : index
    %c0_92 = arith.constant 0 : index
    %296 = vector.load %arg4[%c1_90, %c0_91, %c0_92] : memref<5x64x256xf32, #tpu.memory_space<vmem>>, vector<1x64x256xf32>
    %297 = vector.shape_cast %296 : vector<1x64x256xf32> to vector<64x256xf32>
    %cst_93 = arith.constant 0.000000e+00 : f32
    %298 = vector.broadcast %cst_93 : f32 to vector<8x64xf32>
    %c0_i32_94 = arith.constant 0 : i32
    %299 = arith.index_cast %c0_i32_94 : i32 to index
    %c0_95 = arith.constant 0 : index
    %c0_96 = arith.constant 0 : index
    %300 = vector.load %arg7[%299, %c0_95, %c0_96] : memref<8x8x256xf32, #tpu.memory_space<vmem>>, vector<1x8x256xf32>
    %301 = vector.shape_cast %300 : vector<1x8x256xf32> to vector<8x256xf32>
    %cst_97 = arith.constant dense<0.000000e+00> : vector<8x256xf32>
    %302 = tpu.matmul %298, %297, %cst_97 {dimension_numbers = #tpu.dot_dimension_numbers<[1], [0], [0], [1], [0, 0, 1, 1], [], []>} : vector<8x64xf32>, vector<64x256xf32>, vector<8x256xf32> -> vector<8x256xf32>
    %303 = arith.addf %301, %302 : vector<8x256xf32>
    %304 = vector.extract_strided_slice %303 {offsets = [0, 0], sizes = [8, 64], strides = [1, 1]} : vector<8x256xf32> to vector<8x64xf32>
    %305 = arith.negf %304 : vector<8x64xf32>
    %306 = math.exp %305 : vector<8x64xf32>
    %cst_98 = arith.constant 1.000000e+00 : f32
    %307 = vector.broadcast %cst_98 : f32 to vector<8x64xf32>
    %308 = arith.addf %307, %306 : vector<8x64xf32>
    %309 = arith.divf %307, %308 : vector<8x64xf32>
    %310 = vector.extract_strided_slice %303 {offsets = [0, 64], sizes = [8, 64], strides = [1, 1]} : vector<8x256xf32> to vector<8x64xf32>
    %311 = arith.negf %310 : vector<8x64xf32>
    %312 = math.exp %311 : vector<8x64xf32>
    %cst_99 = arith.constant 1.000000e+00 : f32
    %313 = vector.broadcast %cst_99 : f32 to vector<8x64xf32>
    %314 = arith.addf %313, %312 : vector<8x64xf32>
    %315 = arith.divf %313, %314 : vector<8x64xf32>
    %316 = vector.extract_strided_slice %303 {offsets = [0, 128], sizes = [8, 64], strides = [1, 1]} : vector<8x256xf32> to vector<8x64xf32>
    %317 = math.tanh %316 : vector<8x64xf32>
    %318 = vector.extract_strided_slice %303 {offsets = [0, 192], sizes = [8, 64], strides = [1, 1]} : vector<8x256xf32> to vector<8x64xf32>
    %319 = arith.negf %318 : vector<8x64xf32>
    %320 = math.exp %319 : vector<8x64xf32>
    %cst_100 = arith.constant 1.000000e+00 : f32
    %321 = vector.broadcast %cst_100 : f32 to vector<8x64xf32>
    %322 = arith.addf %321, %320 : vector<8x64xf32>
    %323 = arith.divf %321, %322 : vector<8x64xf32>
    %324 = arith.mulf %315, %298 : vector<8x64xf32>
    %325 = arith.mulf %309, %317 : vector<8x64xf32>
    %326 = arith.addf %324, %325 : vector<8x64xf32>
    %327 = math.tanh %326 : vector<8x64xf32>
    %328 = arith.mulf %323, %327 : vector<8x64xf32>
    %329 = arith.index_cast %c0_i32_94 : i32 to index
    %c0_101 = arith.constant 0 : index
    %c0_102 = arith.constant 0 : index
    %330 = vector.load %arg8[%329, %c0_101, %c0_102] : memref<8x8x64xf32, #tpu.memory_space<vmem>>, vector<1x8x64xf32>
    %331 = vector.shape_cast %330 : vector<1x8x64xf32> to vector<8x64xf32>
    %332 = vector.shape_cast %328 : vector<8x64xf32> to vector<1x8x64xf32>
    tpu.vector_store %arg8[%329, %c0_101, %c0_102], %332 {strides = array<i32>} : memref<8x8x64xf32, #tpu.memory_space<vmem>>, vector<1x8x64xf32>,
    %c1_i32_103 = arith.constant 1 : i32
    %333 = arith.index_cast %c1_i32_103 : i32 to index
    %c0_104 = arith.constant 0 : index
    %c0_105 = arith.constant 0 : index
    %334 = vector.load %arg7[%333, %c0_104, %c0_105] : memref<8x8x256xf32, #tpu.memory_space<vmem>>, vector<1x8x256xf32>
    %335 = vector.shape_cast %334 : vector<1x8x256xf32> to vector<8x256xf32>
    %cst_106 = arith.constant dense<0.000000e+00> : vector<8x256xf32>
    %336 = tpu.matmul %328, %297, %cst_106 {dimension_numbers = #tpu.dot_dimension_numbers<[1], [0], [0], [1], [0, 0, 1, 1], [], []>} : vector<8x64xf32>, vector<64x256xf32>, vector<8x256xf32> -> vector<8x256xf32>
    %337 = arith.addf %335, %336 : vector<8x256xf32>
    %338 = vector.extract_strided_slice %337 {offsets = [0, 0], sizes = [8, 64], strides = [1, 1]} : vector<8x256xf32> to vector<8x64xf32>
    %339 = arith.negf %338 : vector<8x64xf32>
    %340 = math.exp %339 : vector<8x64xf32>
    %cst_107 = arith.constant 1.000000e+00 : f32
    %341 = vector.broadcast %cst_107 : f32 to vector<8x64xf32>
    %342 = arith.addf %341, %340 : vector<8x64xf32>
    %343 = arith.divf %341, %342 : vector<8x64xf32>
    %344 = vector.extract_strided_slice %337 {offsets = [0, 64], sizes = [8, 64], strides = [1, 1]} : vector<8x256xf32> to vector<8x64xf32>
    %345 = arith.negf %344 : vector<8x64xf32>
    %346 = math.exp %345 : vector<8x64xf32>
    %cst_108 = arith.constant 1.000000e+00 : f32
    %347 = vector.broadcast %cst_108 : f32 to vector<8x64xf32>
    %348 = arith.addf %347, %346 : vector<8x64xf32>
    %349 = arith.divf %347, %348 : vector<8x64xf32>
    %350 = vector.extract_strided_slice %337 {offsets = [0, 128], sizes = [8, 64], strides = [1, 1]} : vector<8x256xf32> to vector<8x64xf32>
    %351 = math.tanh %350 : vector<8x64xf32>
    %352 = vector.extract_strided_slice %337 {offsets = [0, 192], sizes = [8, 64], strides = [1, 1]} : vector<8x256xf32> to vector<8x64xf32>
    %353 = arith.negf %352 : vector<8x64xf32>
    %354 = math.exp %353 : vector<8x64xf32>
    %cst_109 = arith.constant 1.000000e+00 : f32
    %355 = vector.broadcast %cst_109 : f32 to vector<8x64xf32>
    %356 = arith.addf %355, %354 : vector<8x64xf32>
    %357 = arith.divf %355, %356 : vector<8x64xf32>
    %358 = arith.mulf %349, %326 : vector<8x64xf32>
    %359 = arith.mulf %343, %351 : vector<8x64xf32>
    %360 = arith.addf %358, %359 : vector<8x64xf32>
    %361 = math.tanh %360 : vector<8x64xf32>
    %362 = arith.mulf %357, %361 : vector<8x64xf32>
    %363 = arith.index_cast %c1_i32_103 : i32 to index
    %c0_110 = arith.constant 0 : index
    %c0_111 = arith.constant 0 : index
    %364 = vector.load %arg8[%363, %c0_110, %c0_111] : memref<8x8x64xf32, #tpu.memory_space<vmem>>, vector<1x8x64xf32>
    %365 = vector.shape_cast %364 : vector<1x8x64xf32> to vector<8x64xf32>
    %366 = vector.shape_cast %362 : vector<8x64xf32> to vector<1x8x64xf32>
    tpu.vector_store %arg8[%363, %c0_110, %c0_111], %366 {strides = array<i32>} : memref<8x8x64xf32, #tpu.memory_space<vmem>>, vector<1x8x64xf32>,
    %c2_i32_112 = arith.constant 2 : i32
    %367 = arith.index_cast %c2_i32_112 : i32 to index
    %c0_113 = arith.constant 0 : index
    %c0_114 = arith.constant 0 : index
    %368 = vector.load %arg7[%367, %c0_113, %c0_114] : memref<8x8x256xf32, #tpu.memory_space<vmem>>, vector<1x8x256xf32>
    %369 = vector.shape_cast %368 : vector<1x8x256xf32> to vector<8x256xf32>
    %cst_115 = arith.constant dense<0.000000e+00> : vector<8x256xf32>
    %370 = tpu.matmul %362, %297, %cst_115 {dimension_numbers = #tpu.dot_dimension_numbers<[1], [0], [0], [1], [0, 0, 1, 1], [], []>} : vector<8x64xf32>, vector<64x256xf32>, vector<8x256xf32> -> vector<8x256xf32>
    %371 = arith.addf %369, %370 : vector<8x256xf32>
    %372 = vector.extract_strided_slice %371 {offsets = [0, 0], sizes = [8, 64], strides = [1, 1]} : vector<8x256xf32> to vector<8x64xf32>
    %373 = arith.negf %372 : vector<8x64xf32>
    %374 = math.exp %373 : vector<8x64xf32>
    %cst_116 = arith.constant 1.000000e+00 : f32
    %375 = vector.broadcast %cst_116 : f32 to vector<8x64xf32>
    %376 = arith.addf %375, %374 : vector<8x64xf32>
    %377 = arith.divf %375, %376 : vector<8x64xf32>
    %378 = vector.extract_strided_slice %371 {offsets = [0, 64], sizes = [8, 64], strides = [1, 1]} : vector<8x256xf32> to vector<8x64xf32>
    %379 = arith.negf %378 : vector<8x64xf32>
    %380 = math.exp %379 : vector<8x64xf32>
    %cst_117 = arith.constant 1.000000e+00 : f32
    %381 = vector.broadcast %cst_117 : f32 to vector<8x64xf32>
    %382 = arith.addf %381, %380 : vector<8x64xf32>
    %383 = arith.divf %381, %382 : vector<8x64xf32>
    %384 = vector.extract_strided_slice %371 {offsets = [0, 128], sizes = [8, 64], strides = [1, 1]} : vector<8x256xf32> to vector<8x64xf32>
    %385 = math.tanh %384 : vector<8x64xf32>
    %386 = vector.extract_strided_slice %371 {offsets = [0, 192], sizes = [8, 64], strides = [1, 1]} : vector<8x256xf32> to vector<8x64xf32>
    %387 = arith.negf %386 : vector<8x64xf32>
    %388 = math.exp %387 : vector<8x64xf32>
    %cst_118 = arith.constant 1.000000e+00 : f32
    %389 = vector.broadcast %cst_118 : f32 to vector<8x64xf32>
    %390 = arith.addf %389, %388 : vector<8x64xf32>
    %391 = arith.divf %389, %390 : vector<8x64xf32>
    %392 = arith.mulf %383, %360 : vector<8x64xf32>
    %393 = arith.mulf %377, %385 : vector<8x64xf32>
    %394 = arith.addf %392, %393 : vector<8x64xf32>
    %395 = math.tanh %394 : vector<8x64xf32>
    %396 = arith.mulf %391, %395 : vector<8x64xf32>
    %397 = arith.index_cast %c2_i32_112 : i32 to index
    %c0_119 = arith.constant 0 : index
    %c0_120 = arith.constant 0 : index
    %398 = vector.load %arg8[%397, %c0_119, %c0_120] : memref<8x8x64xf32, #tpu.memory_space<vmem>>, vector<1x8x64xf32>
    %399 = vector.shape_cast %398 : vector<1x8x64xf32> to vector<8x64xf32>
    %400 = vector.shape_cast %396 : vector<8x64xf32> to vector<1x8x64xf32>
    tpu.vector_store %arg8[%397, %c0_119, %c0_120], %400 {strides = array<i32>} : memref<8x8x64xf32, #tpu.memory_space<vmem>>, vector<1x8x64xf32>,
    %c3_i32_121 = arith.constant 3 : i32
    %401 = arith.index_cast %c3_i32_121 : i32 to index
    %c0_122 = arith.constant 0 : index
    %c0_123 = arith.constant 0 : index
    %402 = vector.load %arg7[%401, %c0_122, %c0_123] : memref<8x8x256xf32, #tpu.memory_space<vmem>>, vector<1x8x256xf32>
    %403 = vector.shape_cast %402 : vector<1x8x256xf32> to vector<8x256xf32>
    %cst_124 = arith.constant dense<0.000000e+00> : vector<8x256xf32>
    %404 = tpu.matmul %396, %297, %cst_124 {dimension_numbers = #tpu.dot_dimension_numbers<[1], [0], [0], [1], [0, 0, 1, 1], [], []>} : vector<8x64xf32>, vector<64x256xf32>, vector<8x256xf32> -> vector<8x256xf32>
    %405 = arith.addf %403, %404 : vector<8x256xf32>
    %406 = vector.extract_strided_slice %405 {offsets = [0, 0], sizes = [8, 64], strides = [1, 1]} : vector<8x256xf32> to vector<8x64xf32>
    %407 = arith.negf %406 : vector<8x64xf32>
    %408 = math.exp %407 : vector<8x64xf32>
    %cst_125 = arith.constant 1.000000e+00 : f32
    %409 = vector.broadcast %cst_125 : f32 to vector<8x64xf32>
    %410 = arith.addf %409, %408 : vector<8x64xf32>
    %411 = arith.divf %409, %410 : vector<8x64xf32>
    %412 = vector.extract_strided_slice %405 {offsets = [0, 64], sizes = [8, 64], strides = [1, 1]} : vector<8x256xf32> to vector<8x64xf32>
    %413 = arith.negf %412 : vector<8x64xf32>
    %414 = math.exp %413 : vector<8x64xf32>
    %cst_126 = arith.constant 1.000000e+00 : f32
    %415 = vector.broadcast %cst_126 : f32 to vector<8x64xf32>
    %416 = arith.addf %415, %414 : vector<8x64xf32>
    %417 = arith.divf %415, %416 : vector<8x64xf32>
    %418 = vector.extract_strided_slice %405 {offsets = [0, 128], sizes = [8, 64], strides = [1, 1]} : vector<8x256xf32> to vector<8x64xf32>
    %419 = math.tanh %418 : vector<8x64xf32>
    %420 = vector.extract_strided_slice %405 {offsets = [0, 192], sizes = [8, 64], strides = [1, 1]} : vector<8x256xf32> to vector<8x64xf32>
    %421 = arith.negf %420 : vector<8x64xf32>
    %422 = math.exp %421 : vector<8x64xf32>
    %cst_127 = arith.constant 1.000000e+00 : f32
    %423 = vector.broadcast %cst_127 : f32 to vector<8x64xf32>
    %424 = arith.addf %423, %422 : vector<8x64xf32>
    %425 = arith.divf %423, %424 : vector<8x64xf32>
    %426 = arith.mulf %417, %394 : vector<8x64xf32>
    %427 = arith.mulf %411, %419 : vector<8x64xf32>
    %428 = arith.addf %426, %427 : vector<8x64xf32>
    %429 = math.tanh %428 : vector<8x64xf32>
    %430 = arith.mulf %425, %429 : vector<8x64xf32>
    %431 = arith.index_cast %c3_i32_121 : i32 to index
    %c0_128 = arith.constant 0 : index
    %c0_129 = arith.constant 0 : index
    %432 = vector.load %arg8[%431, %c0_128, %c0_129] : memref<8x8x64xf32, #tpu.memory_space<vmem>>, vector<1x8x64xf32>
    %433 = vector.shape_cast %432 : vector<1x8x64xf32> to vector<8x64xf32>
    %434 = vector.shape_cast %430 : vector<8x64xf32> to vector<1x8x64xf32>
    tpu.vector_store %arg8[%431, %c0_128, %c0_129], %434 {strides = array<i32>} : memref<8x8x64xf32, #tpu.memory_space<vmem>>, vector<1x8x64xf32>,
    %c4_i32_130 = arith.constant 4 : i32
    %435 = arith.index_cast %c4_i32_130 : i32 to index
    %c0_131 = arith.constant 0 : index
    %c0_132 = arith.constant 0 : index
    %436 = vector.load %arg7[%435, %c0_131, %c0_132] : memref<8x8x256xf32, #tpu.memory_space<vmem>>, vector<1x8x256xf32>
    %437 = vector.shape_cast %436 : vector<1x8x256xf32> to vector<8x256xf32>
    %cst_133 = arith.constant dense<0.000000e+00> : vector<8x256xf32>
    %438 = tpu.matmul %430, %297, %cst_133 {dimension_numbers = #tpu.dot_dimension_numbers<[1], [0], [0], [1], [0, 0, 1, 1], [], []>} : vector<8x64xf32>, vector<64x256xf32>, vector<8x256xf32> -> vector<8x256xf32>
    %439 = arith.addf %437, %438 : vector<8x256xf32>
    %440 = vector.extract_strided_slice %439 {offsets = [0, 0], sizes = [8, 64], strides = [1, 1]} : vector<8x256xf32> to vector<8x64xf32>
    %441 = arith.negf %440 : vector<8x64xf32>
    %442 = math.exp %441 : vector<8x64xf32>
    %cst_134 = arith.constant 1.000000e+00 : f32
    %443 = vector.broadcast %cst_134 : f32 to vector<8x64xf32>
    %444 = arith.addf %443, %442 : vector<8x64xf32>
    %445 = arith.divf %443, %444 : vector<8x64xf32>
    %446 = vector.extract_strided_slice %439 {offsets = [0, 64], sizes = [8, 64], strides = [1, 1]} : vector<8x256xf32> to vector<8x64xf32>
    %447 = arith.negf %446 : vector<8x64xf32>
    %448 = math.exp %447 : vector<8x64xf32>
    %cst_135 = arith.constant 1.000000e+00 : f32
    %449 = vector.broadcast %cst_135 : f32 to vector<8x64xf32>
    %450 = arith.addf %449, %448 : vector<8x64xf32>
    %451 = arith.divf %449, %450 : vector<8x64xf32>
    %452 = vector.extract_strided_slice %439 {offsets = [0, 128], sizes = [8, 64], strides = [1, 1]} : vector<8x256xf32> to vector<8x64xf32>
    %453 = math.tanh %452 : vector<8x64xf32>
    %454 = vector.extract_strided_slice %439 {offsets = [0, 192], sizes = [8, 64], strides = [1, 1]} : vector<8x256xf32> to vector<8x64xf32>
    %455 = arith.negf %454 : vector<8x64xf32>
    %456 = math.exp %455 : vector<8x64xf32>
    %cst_136 = arith.constant 1.000000e+00 : f32
    %457 = vector.broadcast %cst_136 : f32 to vector<8x64xf32>
    %458 = arith.addf %457, %456 : vector<8x64xf32>
    %459 = arith.divf %457, %458 : vector<8x64xf32>
    %460 = arith.mulf %451, %428 : vector<8x64xf32>
    %461 = arith.mulf %445, %453 : vector<8x64xf32>
    %462 = arith.addf %460, %461 : vector<8x64xf32>
    %463 = math.tanh %462 : vector<8x64xf32>
    %464 = arith.mulf %459, %463 : vector<8x64xf32>
    %465 = arith.index_cast %c4_i32_130 : i32 to index
    %c0_137 = arith.constant 0 : index
    %c0_138 = arith.constant 0 : index
    %466 = vector.load %arg8[%465, %c0_137, %c0_138] : memref<8x8x64xf32, #tpu.memory_space<vmem>>, vector<1x8x64xf32>
    %467 = vector.shape_cast %466 : vector<1x8x64xf32> to vector<8x64xf32>
    %468 = vector.shape_cast %464 : vector<8x64xf32> to vector<1x8x64xf32>
    tpu.vector_store %arg8[%465, %c0_137, %c0_138], %468 {strides = array<i32>} : memref<8x8x64xf32, #tpu.memory_space<vmem>>, vector<1x8x64xf32>,
    %c5_i32_139 = arith.constant 5 : i32
    %469 = arith.index_cast %c5_i32_139 : i32 to index
    %c0_140 = arith.constant 0 : index
    %c0_141 = arith.constant 0 : index
    %470 = vector.load %arg7[%469, %c0_140, %c0_141] : memref<8x8x256xf32, #tpu.memory_space<vmem>>, vector<1x8x256xf32>
    %471 = vector.shape_cast %470 : vector<1x8x256xf32> to vector<8x256xf32>
    %cst_142 = arith.constant dense<0.000000e+00> : vector<8x256xf32>
    %472 = tpu.matmul %464, %297, %cst_142 {dimension_numbers = #tpu.dot_dimension_numbers<[1], [0], [0], [1], [0, 0, 1, 1], [], []>} : vector<8x64xf32>, vector<64x256xf32>, vector<8x256xf32> -> vector<8x256xf32>
    %473 = arith.addf %471, %472 : vector<8x256xf32>
    %474 = vector.extract_strided_slice %473 {offsets = [0, 0], sizes = [8, 64], strides = [1, 1]} : vector<8x256xf32> to vector<8x64xf32>
    %475 = arith.negf %474 : vector<8x64xf32>
    %476 = math.exp %475 : vector<8x64xf32>
    %cst_143 = arith.constant 1.000000e+00 : f32
    %477 = vector.broadcast %cst_143 : f32 to vector<8x64xf32>
    %478 = arith.addf %477, %476 : vector<8x64xf32>
    %479 = arith.divf %477, %478 : vector<8x64xf32>
    %480 = vector.extract_strided_slice %473 {offsets = [0, 64], sizes = [8, 64], strides = [1, 1]} : vector<8x256xf32> to vector<8x64xf32>
    %481 = arith.negf %480 : vector<8x64xf32>
    %482 = math.exp %481 : vector<8x64xf32>
    %cst_144 = arith.constant 1.000000e+00 : f32
    %483 = vector.broadcast %cst_144 : f32 to vector<8x64xf32>
    %484 = arith.addf %483, %482 : vector<8x64xf32>
    %485 = arith.divf %483, %484 : vector<8x64xf32>
    %486 = vector.extract_strided_slice %473 {offsets = [0, 128], sizes = [8, 64], strides = [1, 1]} : vector<8x256xf32> to vector<8x64xf32>
    %487 = math.tanh %486 : vector<8x64xf32>
    %488 = vector.extract_strided_slice %473 {offsets = [0, 192], sizes = [8, 64], strides = [1, 1]} : vector<8x256xf32> to vector<8x64xf32>
    %489 = arith.negf %488 : vector<8x64xf32>
    %490 = math.exp %489 : vector<8x64xf32>
    %cst_145 = arith.constant 1.000000e+00 : f32
    %491 = vector.broadcast %cst_145 : f32 to vector<8x64xf32>
    %492 = arith.addf %491, %490 : vector<8x64xf32>
    %493 = arith.divf %491, %492 : vector<8x64xf32>
    %494 = arith.mulf %485, %462 : vector<8x64xf32>
    %495 = arith.mulf %479, %487 : vector<8x64xf32>
    %496 = arith.addf %494, %495 : vector<8x64xf32>
    %497 = math.tanh %496 : vector<8x64xf32>
    %498 = arith.mulf %493, %497 : vector<8x64xf32>
    %499 = arith.index_cast %c5_i32_139 : i32 to index
    %c0_146 = arith.constant 0 : index
    %c0_147 = arith.constant 0 : index
    %500 = vector.load %arg8[%499, %c0_146, %c0_147] : memref<8x8x64xf32, #tpu.memory_space<vmem>>, vector<1x8x64xf32>
    %501 = vector.shape_cast %500 : vector<1x8x64xf32> to vector<8x64xf32>
    %502 = vector.shape_cast %498 : vector<8x64xf32> to vector<1x8x64xf32>
    tpu.vector_store %arg8[%499, %c0_146, %c0_147], %502 {strides = array<i32>} : memref<8x8x64xf32, #tpu.memory_space<vmem>>, vector<1x8x64xf32>,
    %c6_i32_148 = arith.constant 6 : i32
    %503 = arith.index_cast %c6_i32_148 : i32 to index
    %c0_149 = arith.constant 0 : index
    %c0_150 = arith.constant 0 : index
    %504 = vector.load %arg7[%503, %c0_149, %c0_150] : memref<8x8x256xf32, #tpu.memory_space<vmem>>, vector<1x8x256xf32>
    %505 = vector.shape_cast %504 : vector<1x8x256xf32> to vector<8x256xf32>
    %cst_151 = arith.constant dense<0.000000e+00> : vector<8x256xf32>
    %506 = tpu.matmul %498, %297, %cst_151 {dimension_numbers = #tpu.dot_dimension_numbers<[1], [0], [0], [1], [0, 0, 1, 1], [], []>} : vector<8x64xf32>, vector<64x256xf32>, vector<8x256xf32> -> vector<8x256xf32>
    %507 = arith.addf %505, %506 : vector<8x256xf32>
    %508 = vector.extract_strided_slice %507 {offsets = [0, 0], sizes = [8, 64], strides = [1, 1]} : vector<8x256xf32> to vector<8x64xf32>
    %509 = arith.negf %508 : vector<8x64xf32>
    %510 = math.exp %509 : vector<8x64xf32>
    %cst_152 = arith.constant 1.000000e+00 : f32
    %511 = vector.broadcast %cst_152 : f32 to vector<8x64xf32>
    %512 = arith.addf %511, %510 : vector<8x64xf32>
    %513 = arith.divf %511, %512 : vector<8x64xf32>
    %514 = vector.extract_strided_slice %507 {offsets = [0, 64], sizes = [8, 64], strides = [1, 1]} : vector<8x256xf32> to vector<8x64xf32>
    %515 = arith.negf %514 : vector<8x64xf32>
    %516 = math.exp %515 : vector<8x64xf32>
    %cst_153 = arith.constant 1.000000e+00 : f32
    %517 = vector.broadcast %cst_153 : f32 to vector<8x64xf32>
    %518 = arith.addf %517, %516 : vector<8x64xf32>
    %519 = arith.divf %517, %518 : vector<8x64xf32>
    %520 = vector.extract_strided_slice %507 {offsets = [0, 128], sizes = [8, 64], strides = [1, 1]} : vector<8x256xf32> to vector<8x64xf32>
    %521 = math.tanh %520 : vector<8x64xf32>
    %522 = vector.extract_strided_slice %507 {offsets = [0, 192], sizes = [8, 64], strides = [1, 1]} : vector<8x256xf32> to vector<8x64xf32>
    %523 = arith.negf %522 : vector<8x64xf32>
    %524 = math.exp %523 : vector<8x64xf32>
    %cst_154 = arith.constant 1.000000e+00 : f32
    %525 = vector.broadcast %cst_154 : f32 to vector<8x64xf32>
    %526 = arith.addf %525, %524 : vector<8x64xf32>
    %527 = arith.divf %525, %526 : vector<8x64xf32>
    %528 = arith.mulf %519, %496 : vector<8x64xf32>
    %529 = arith.mulf %513, %521 : vector<8x64xf32>
    %530 = arith.addf %528, %529 : vector<8x64xf32>
    %531 = math.tanh %530 : vector<8x64xf32>
    %532 = arith.mulf %527, %531 : vector<8x64xf32>
    %533 = arith.index_cast %c6_i32_148 : i32 to index
    %c0_155 = arith.constant 0 : index
    %c0_156 = arith.constant 0 : index
    %534 = vector.load %arg8[%533, %c0_155, %c0_156] : memref<8x8x64xf32, #tpu.memory_space<vmem>>, vector<1x8x64xf32>
    %535 = vector.shape_cast %534 : vector<1x8x64xf32> to vector<8x64xf32>
    %536 = vector.shape_cast %532 : vector<8x64xf32> to vector<1x8x64xf32>
    tpu.vector_store %arg8[%533, %c0_155, %c0_156], %536 {strides = array<i32>} : memref<8x8x64xf32, #tpu.memory_space<vmem>>, vector<1x8x64xf32>,
    %c7_i32_157 = arith.constant 7 : i32
    %537 = arith.index_cast %c7_i32_157 : i32 to index
    %c0_158 = arith.constant 0 : index
    %c0_159 = arith.constant 0 : index
    %538 = vector.load %arg7[%537, %c0_158, %c0_159] : memref<8x8x256xf32, #tpu.memory_space<vmem>>, vector<1x8x256xf32>
    %539 = vector.shape_cast %538 : vector<1x8x256xf32> to vector<8x256xf32>
    %cst_160 = arith.constant dense<0.000000e+00> : vector<8x256xf32>
    %540 = tpu.matmul %532, %297, %cst_160 {dimension_numbers = #tpu.dot_dimension_numbers<[1], [0], [0], [1], [0, 0, 1, 1], [], []>} : vector<8x64xf32>, vector<64x256xf32>, vector<8x256xf32> -> vector<8x256xf32>
    %541 = arith.addf %539, %540 : vector<8x256xf32>
    %542 = vector.extract_strided_slice %541 {offsets = [0, 0], sizes = [8, 64], strides = [1, 1]} : vector<8x256xf32> to vector<8x64xf32>
    %543 = arith.negf %542 : vector<8x64xf32>
    %544 = math.exp %543 : vector<8x64xf32>
    %cst_161 = arith.constant 1.000000e+00 : f32
    %545 = vector.broadcast %cst_161 : f32 to vector<8x64xf32>
    %546 = arith.addf %545, %544 : vector<8x64xf32>
    %547 = arith.divf %545, %546 : vector<8x64xf32>
    %548 = vector.extract_strided_slice %541 {offsets = [0, 64], sizes = [8, 64], strides = [1, 1]} : vector<8x256xf32> to vector<8x64xf32>
    %549 = arith.negf %548 : vector<8x64xf32>
    %550 = math.exp %549 : vector<8x64xf32>
    %cst_162 = arith.constant 1.000000e+00 : f32
    %551 = vector.broadcast %cst_162 : f32 to vector<8x64xf32>
    %552 = arith.addf %551, %550 : vector<8x64xf32>
    %553 = arith.divf %551, %552 : vector<8x64xf32>
    %554 = vector.extract_strided_slice %541 {offsets = [0, 128], sizes = [8, 64], strides = [1, 1]} : vector<8x256xf32> to vector<8x64xf32>
    %555 = math.tanh %554 : vector<8x64xf32>
    %556 = vector.extract_strided_slice %541 {offsets = [0, 192], sizes = [8, 64], strides = [1, 1]} : vector<8x256xf32> to vector<8x64xf32>
    %557 = arith.negf %556 : vector<8x64xf32>
    %558 = math.exp %557 : vector<8x64xf32>
    %cst_163 = arith.constant 1.000000e+00 : f32
    %559 = vector.broadcast %cst_163 : f32 to vector<8x64xf32>
    %560 = arith.addf %559, %558 : vector<8x64xf32>
    %561 = arith.divf %559, %560 : vector<8x64xf32>
    %562 = arith.mulf %553, %530 : vector<8x64xf32>
    %563 = arith.mulf %547, %555 : vector<8x64xf32>
    %564 = arith.addf %562, %563 : vector<8x64xf32>
    %565 = math.tanh %564 : vector<8x64xf32>
    %566 = arith.mulf %561, %565 : vector<8x64xf32>
    %567 = arith.index_cast %c7_i32_157 : i32 to index
    %c0_164 = arith.constant 0 : index
    %c0_165 = arith.constant 0 : index
    %568 = vector.load %arg8[%567, %c0_164, %c0_165] : memref<8x8x64xf32, #tpu.memory_space<vmem>>, vector<1x8x64xf32>
    %569 = vector.shape_cast %568 : vector<1x8x64xf32> to vector<8x64xf32>
    %570 = vector.shape_cast %566 : vector<8x64xf32> to vector<1x8x64xf32>
    tpu.vector_store %arg8[%567, %c0_164, %c0_165], %570 {strides = array<i32>} : memref<8x8x64xf32, #tpu.memory_space<vmem>>, vector<1x8x64xf32>,
    %c8_i32_166 = arith.constant 8 : i32
    %c0_167 = arith.constant 0 : index
    %c0_168 = arith.constant 0 : index
    %c0_169 = arith.constant 0 : index
    %571 = vector.load %arg8[%c0_167, %c0_168, %c0_169] : memref<8x8x64xf32, #tpu.memory_space<vmem>>, vector<8x8x64xf32>
    %572 = vector.shape_cast %571 : vector<8x8x64xf32> to vector<64x64xf32>
    %c1_170 = arith.constant 1 : index
    %c0_171 = arith.constant 0 : index
    %c0_172 = arith.constant 0 : index
    %573 = vector.load %arg3[%c1_170, %c0_171, %c0_172] : memref<4x64x256xf32, #tpu.memory_space<vmem>>, vector<1x64x256xf32>
    %574 = vector.shape_cast %573 : vector<1x64x256xf32> to vector<64x256xf32>
    %cst_173 = arith.constant dense<0.000000e+00> : vector<64x256xf32>
    %575 = tpu.matmul %572, %574, %cst_173 {dimension_numbers = #tpu.dot_dimension_numbers<[1], [0], [0], [1], [0, 0, 1, 1], [], []>} : vector<64x64xf32>, vector<64x256xf32>, vector<64x256xf32> -> vector<64x256xf32>
    %c2 = arith.constant 2 : index
    %c0_174 = arith.constant 0 : index
    %c0_175 = arith.constant 0 : index
    %576 = vector.load %arg5[%c2, %c0_174, %c0_175] : memref<5x1x256xf32, #tpu.memory_space<vmem>>, vector<1x1x256xf32>
    %577 = vector.shape_cast %576 : vector<1x1x256xf32> to vector<1x256xf32>
    %578 = vector.broadcast %577 : vector<1x256xf32> to vector<64x256xf32>
    %579 = arith.addf %575, %578 : vector<64x256xf32>
    %580 = vector.shape_cast %579 : vector<64x256xf32> to vector<8x8x256xf32>
    %c0_176 = arith.constant 0 : index
    %c0_177 = arith.constant 0 : index
    %c0_178 = arith.constant 0 : index
    %581 = vector.load %arg7[%c0_176, %c0_177, %c0_178] : memref<8x8x256xf32, #tpu.memory_space<vmem>>, vector<8x8x256xf32>
    tpu.vector_store %arg7[%c0_176, %c0_177, %c0_178], %580 {strides = array<i32>} : memref<8x8x256xf32, #tpu.memory_space<vmem>>, vector<8x8x256xf32>,
    %c2_179 = arith.constant 2 : index
    %c0_180 = arith.constant 0 : index
    %c0_181 = arith.constant 0 : index
    %582 = vector.load %arg4[%c2_179, %c0_180, %c0_181] : memref<5x64x256xf32, #tpu.memory_space<vmem>>, vector<1x64x256xf32>
    %583 = vector.shape_cast %582 : vector<1x64x256xf32> to vector<64x256xf32>
    %cst_182 = arith.constant 0.000000e+00 : f32
    %584 = vector.broadcast %cst_182 : f32 to vector<8x64xf32>
    %c0_i32_183 = arith.constant 0 : i32
    %585 = arith.index_cast %c0_i32_183 : i32 to index
    %c0_184 = arith.constant 0 : index
    %c0_185 = arith.constant 0 : index
    %586 = vector.load %arg7[%585, %c0_184, %c0_185] : memref<8x8x256xf32, #tpu.memory_space<vmem>>, vector<1x8x256xf32>
    %587 = vector.shape_cast %586 : vector<1x8x256xf32> to vector<8x256xf32>
    %cst_186 = arith.constant dense<0.000000e+00> : vector<8x256xf32>
    %588 = tpu.matmul %584, %583, %cst_186 {dimension_numbers = #tpu.dot_dimension_numbers<[1], [0], [0], [1], [0, 0, 1, 1], [], []>} : vector<8x64xf32>, vector<64x256xf32>, vector<8x256xf32> -> vector<8x256xf32>
    %589 = arith.addf %587, %588 : vector<8x256xf32>
    %590 = vector.extract_strided_slice %589 {offsets = [0, 0], sizes = [8, 64], strides = [1, 1]} : vector<8x256xf32> to vector<8x64xf32>
    %591 = arith.negf %590 : vector<8x64xf32>
    %592 = math.exp %591 : vector<8x64xf32>
    %cst_187 = arith.constant 1.000000e+00 : f32
    %593 = vector.broadcast %cst_187 : f32 to vector<8x64xf32>
    %594 = arith.addf %593, %592 : vector<8x64xf32>
    %595 = arith.divf %593, %594 : vector<8x64xf32>
    %596 = vector.extract_strided_slice %589 {offsets = [0, 64], sizes = [8, 64], strides = [1, 1]} : vector<8x256xf32> to vector<8x64xf32>
    %597 = arith.negf %596 : vector<8x64xf32>
    %598 = math.exp %597 : vector<8x64xf32>
    %cst_188 = arith.constant 1.000000e+00 : f32
    %599 = vector.broadcast %cst_188 : f32 to vector<8x64xf32>
    %600 = arith.addf %599, %598 : vector<8x64xf32>
    %601 = arith.divf %599, %600 : vector<8x64xf32>
    %602 = vector.extract_strided_slice %589 {offsets = [0, 128], sizes = [8, 64], strides = [1, 1]} : vector<8x256xf32> to vector<8x64xf32>
    %603 = math.tanh %602 : vector<8x64xf32>
    %604 = vector.extract_strided_slice %589 {offsets = [0, 192], sizes = [8, 64], strides = [1, 1]} : vector<8x256xf32> to vector<8x64xf32>
    %605 = arith.negf %604 : vector<8x64xf32>
    %606 = math.exp %605 : vector<8x64xf32>
    %cst_189 = arith.constant 1.000000e+00 : f32
    %607 = vector.broadcast %cst_189 : f32 to vector<8x64xf32>
    %608 = arith.addf %607, %606 : vector<8x64xf32>
    %609 = arith.divf %607, %608 : vector<8x64xf32>
    %610 = arith.mulf %601, %584 : vector<8x64xf32>
    %611 = arith.mulf %595, %603 : vector<8x64xf32>
    %612 = arith.addf %610, %611 : vector<8x64xf32>
    %613 = math.tanh %612 : vector<8x64xf32>
    %614 = arith.mulf %609, %613 : vector<8x64xf32>
    %615 = arith.index_cast %c0_i32_183 : i32 to index
    %c0_190 = arith.constant 0 : index
    %c0_191 = arith.constant 0 : index
    %616 = vector.load %arg8[%615, %c0_190, %c0_191] : memref<8x8x64xf32, #tpu.memory_space<vmem>>, vector<1x8x64xf32>
    %617 = vector.shape_cast %616 : vector<1x8x64xf32> to vector<8x64xf32>
    %618 = vector.shape_cast %614 : vector<8x64xf32> to vector<1x8x64xf32>
    tpu.vector_store %arg8[%615, %c0_190, %c0_191], %618 {strides = array<i32>} : memref<8x8x64xf32, #tpu.memory_space<vmem>>, vector<1x8x64xf32>,
    %c1_i32_192 = arith.constant 1 : i32
    %619 = arith.index_cast %c1_i32_192 : i32 to index
    %c0_193 = arith.constant 0 : index
    %c0_194 = arith.constant 0 : index
    %620 = vector.load %arg7[%619, %c0_193, %c0_194] : memref<8x8x256xf32, #tpu.memory_space<vmem>>, vector<1x8x256xf32>
    %621 = vector.shape_cast %620 : vector<1x8x256xf32> to vector<8x256xf32>
    %cst_195 = arith.constant dense<0.000000e+00> : vector<8x256xf32>
    %622 = tpu.matmul %614, %583, %cst_195 {dimension_numbers = #tpu.dot_dimension_numbers<[1], [0], [0], [1], [0, 0, 1, 1], [], []>} : vector<8x64xf32>, vector<64x256xf32>, vector<8x256xf32> -> vector<8x256xf32>
    %623 = arith.addf %621, %622 : vector<8x256xf32>
    %624 = vector.extract_strided_slice %623 {offsets = [0, 0], sizes = [8, 64], strides = [1, 1]} : vector<8x256xf32> to vector<8x64xf32>
    %625 = arith.negf %624 : vector<8x64xf32>
    %626 = math.exp %625 : vector<8x64xf32>
    %cst_196 = arith.constant 1.000000e+00 : f32
    %627 = vector.broadcast %cst_196 : f32 to vector<8x64xf32>
    %628 = arith.addf %627, %626 : vector<8x64xf32>
    %629 = arith.divf %627, %628 : vector<8x64xf32>
    %630 = vector.extract_strided_slice %623 {offsets = [0, 64], sizes = [8, 64], strides = [1, 1]} : vector<8x256xf32> to vector<8x64xf32>
    %631 = arith.negf %630 : vector<8x64xf32>
    %632 = math.exp %631 : vector<8x64xf32>
    %cst_197 = arith.constant 1.000000e+00 : f32
    %633 = vector.broadcast %cst_197 : f32 to vector<8x64xf32>
    %634 = arith.addf %633, %632 : vector<8x64xf32>
    %635 = arith.divf %633, %634 : vector<8x64xf32>
    %636 = vector.extract_strided_slice %623 {offsets = [0, 128], sizes = [8, 64], strides = [1, 1]} : vector<8x256xf32> to vector<8x64xf32>
    %637 = math.tanh %636 : vector<8x64xf32>
    %638 = vector.extract_strided_slice %623 {offsets = [0, 192], sizes = [8, 64], strides = [1, 1]} : vector<8x256xf32> to vector<8x64xf32>
    %639 = arith.negf %638 : vector<8x64xf32>
    %640 = math.exp %639 : vector<8x64xf32>
    %cst_198 = arith.constant 1.000000e+00 : f32
    %641 = vector.broadcast %cst_198 : f32 to vector<8x64xf32>
    %642 = arith.addf %641, %640 : vector<8x64xf32>
    %643 = arith.divf %641, %642 : vector<8x64xf32>
    %644 = arith.mulf %635, %612 : vector<8x64xf32>
    %645 = arith.mulf %629, %637 : vector<8x64xf32>
    %646 = arith.addf %644, %645 : vector<8x64xf32>
    %647 = math.tanh %646 : vector<8x64xf32>
    %648 = arith.mulf %643, %647 : vector<8x64xf32>
    %649 = arith.index_cast %c1_i32_192 : i32 to index
    %c0_199 = arith.constant 0 : index
    %c0_200 = arith.constant 0 : index
    %650 = vector.load %arg8[%649, %c0_199, %c0_200] : memref<8x8x64xf32, #tpu.memory_space<vmem>>, vector<1x8x64xf32>
    %651 = vector.shape_cast %650 : vector<1x8x64xf32> to vector<8x64xf32>
    %652 = vector.shape_cast %648 : vector<8x64xf32> to vector<1x8x64xf32>
    tpu.vector_store %arg8[%649, %c0_199, %c0_200], %652 {strides = array<i32>} : memref<8x8x64xf32, #tpu.memory_space<vmem>>, vector<1x8x64xf32>,
    %c2_i32_201 = arith.constant 2 : i32
    %653 = arith.index_cast %c2_i32_201 : i32 to index
    %c0_202 = arith.constant 0 : index
    %c0_203 = arith.constant 0 : index
    %654 = vector.load %arg7[%653, %c0_202, %c0_203] : memref<8x8x256xf32, #tpu.memory_space<vmem>>, vector<1x8x256xf32>
    %655 = vector.shape_cast %654 : vector<1x8x256xf32> to vector<8x256xf32>
    %cst_204 = arith.constant dense<0.000000e+00> : vector<8x256xf32>
    %656 = tpu.matmul %648, %583, %cst_204 {dimension_numbers = #tpu.dot_dimension_numbers<[1], [0], [0], [1], [0, 0, 1, 1], [], []>} : vector<8x64xf32>, vector<64x256xf32>, vector<8x256xf32> -> vector<8x256xf32>
    %657 = arith.addf %655, %656 : vector<8x256xf32>
    %658 = vector.extract_strided_slice %657 {offsets = [0, 0], sizes = [8, 64], strides = [1, 1]} : vector<8x256xf32> to vector<8x64xf32>
    %659 = arith.negf %658 : vector<8x64xf32>
    %660 = math.exp %659 : vector<8x64xf32>
    %cst_205 = arith.constant 1.000000e+00 : f32
    %661 = vector.broadcast %cst_205 : f32 to vector<8x64xf32>
    %662 = arith.addf %661, %660 : vector<8x64xf32>
    %663 = arith.divf %661, %662 : vector<8x64xf32>
    %664 = vector.extract_strided_slice %657 {offsets = [0, 64], sizes = [8, 64], strides = [1, 1]} : vector<8x256xf32> to vector<8x64xf32>
    %665 = arith.negf %664 : vector<8x64xf32>
    %666 = math.exp %665 : vector<8x64xf32>
    %cst_206 = arith.constant 1.000000e+00 : f32
    %667 = vector.broadcast %cst_206 : f32 to vector<8x64xf32>
    %668 = arith.addf %667, %666 : vector<8x64xf32>
    %669 = arith.divf %667, %668 : vector<8x64xf32>
    %670 = vector.extract_strided_slice %657 {offsets = [0, 128], sizes = [8, 64], strides = [1, 1]} : vector<8x256xf32> to vector<8x64xf32>
    %671 = math.tanh %670 : vector<8x64xf32>
    %672 = vector.extract_strided_slice %657 {offsets = [0, 192], sizes = [8, 64], strides = [1, 1]} : vector<8x256xf32> to vector<8x64xf32>
    %673 = arith.negf %672 : vector<8x64xf32>
    %674 = math.exp %673 : vector<8x64xf32>
    %cst_207 = arith.constant 1.000000e+00 : f32
    %675 = vector.broadcast %cst_207 : f32 to vector<8x64xf32>
    %676 = arith.addf %675, %674 : vector<8x64xf32>
    %677 = arith.divf %675, %676 : vector<8x64xf32>
    %678 = arith.mulf %669, %646 : vector<8x64xf32>
    %679 = arith.mulf %663, %671 : vector<8x64xf32>
    %680 = arith.addf %678, %679 : vector<8x64xf32>
    %681 = math.tanh %680 : vector<8x64xf32>
    %682 = arith.mulf %677, %681 : vector<8x64xf32>
    %683 = arith.index_cast %c2_i32_201 : i32 to index
    %c0_208 = arith.constant 0 : index
    %c0_209 = arith.constant 0 : index
    %684 = vector.load %arg8[%683, %c0_208, %c0_209] : memref<8x8x64xf32, #tpu.memory_space<vmem>>, vector<1x8x64xf32>
    %685 = vector.shape_cast %684 : vector<1x8x64xf32> to vector<8x64xf32>
    %686 = vector.shape_cast %682 : vector<8x64xf32> to vector<1x8x64xf32>
    tpu.vector_store %arg8[%683, %c0_208, %c0_209], %686 {strides = array<i32>} : memref<8x8x64xf32, #tpu.memory_space<vmem>>, vector<1x8x64xf32>,
    %c3_i32_210 = arith.constant 3 : i32
    %687 = arith.index_cast %c3_i32_210 : i32 to index
    %c0_211 = arith.constant 0 : index
    %c0_212 = arith.constant 0 : index
    %688 = vector.load %arg7[%687, %c0_211, %c0_212] : memref<8x8x256xf32, #tpu.memory_space<vmem>>, vector<1x8x256xf32>
    %689 = vector.shape_cast %688 : vector<1x8x256xf32> to vector<8x256xf32>
    %cst_213 = arith.constant dense<0.000000e+00> : vector<8x256xf32>
    %690 = tpu.matmul %682, %583, %cst_213 {dimension_numbers = #tpu.dot_dimension_numbers<[1], [0], [0], [1], [0, 0, 1, 1], [], []>} : vector<8x64xf32>, vector<64x256xf32>, vector<8x256xf32> -> vector<8x256xf32>
    %691 = arith.addf %689, %690 : vector<8x256xf32>
    %692 = vector.extract_strided_slice %691 {offsets = [0, 0], sizes = [8, 64], strides = [1, 1]} : vector<8x256xf32> to vector<8x64xf32>
    %693 = arith.negf %692 : vector<8x64xf32>
    %694 = math.exp %693 : vector<8x64xf32>
    %cst_214 = arith.constant 1.000000e+00 : f32
    %695 = vector.broadcast %cst_214 : f32 to vector<8x64xf32>
    %696 = arith.addf %695, %694 : vector<8x64xf32>
    %697 = arith.divf %695, %696 : vector<8x64xf32>
    %698 = vector.extract_strided_slice %691 {offsets = [0, 64], sizes = [8, 64], strides = [1, 1]} : vector<8x256xf32> to vector<8x64xf32>
    %699 = arith.negf %698 : vector<8x64xf32>
    %700 = math.exp %699 : vector<8x64xf32>
    %cst_215 = arith.constant 1.000000e+00 : f32
    %701 = vector.broadcast %cst_215 : f32 to vector<8x64xf32>
    %702 = arith.addf %701, %700 : vector<8x64xf32>
    %703 = arith.divf %701, %702 : vector<8x64xf32>
    %704 = vector.extract_strided_slice %691 {offsets = [0, 128], sizes = [8, 64], strides = [1, 1]} : vector<8x256xf32> to vector<8x64xf32>
    %705 = math.tanh %704 : vector<8x64xf32>
    %706 = vector.extract_strided_slice %691 {offsets = [0, 192], sizes = [8, 64], strides = [1, 1]} : vector<8x256xf32> to vector<8x64xf32>
    %707 = arith.negf %706 : vector<8x64xf32>
    %708 = math.exp %707 : vector<8x64xf32>
    %cst_216 = arith.constant 1.000000e+00 : f32
    %709 = vector.broadcast %cst_216 : f32 to vector<8x64xf32>
    %710 = arith.addf %709, %708 : vector<8x64xf32>
    %711 = arith.divf %709, %710 : vector<8x64xf32>
    %712 = arith.mulf %703, %680 : vector<8x64xf32>
    %713 = arith.mulf %697, %705 : vector<8x64xf32>
    %714 = arith.addf %712, %713 : vector<8x64xf32>
    %715 = math.tanh %714 : vector<8x64xf32>
    %716 = arith.mulf %711, %715 : vector<8x64xf32>
    %717 = arith.index_cast %c3_i32_210 : i32 to index
    %c0_217 = arith.constant 0 : index
    %c0_218 = arith.constant 0 : index
    %718 = vector.load %arg8[%717, %c0_217, %c0_218] : memref<8x8x64xf32, #tpu.memory_space<vmem>>, vector<1x8x64xf32>
    %719 = vector.shape_cast %718 : vector<1x8x64xf32> to vector<8x64xf32>
    %720 = vector.shape_cast %716 : vector<8x64xf32> to vector<1x8x64xf32>
    tpu.vector_store %arg8[%717, %c0_217, %c0_218], %720 {strides = array<i32>} : memref<8x8x64xf32, #tpu.memory_space<vmem>>, vector<1x8x64xf32>,
    %c4_i32_219 = arith.constant 4 : i32
    %721 = arith.index_cast %c4_i32_219 : i32 to index
    %c0_220 = arith.constant 0 : index
    %c0_221 = arith.constant 0 : index
    %722 = vector.load %arg7[%721, %c0_220, %c0_221] : memref<8x8x256xf32, #tpu.memory_space<vmem>>, vector<1x8x256xf32>
    %723 = vector.shape_cast %722 : vector<1x8x256xf32> to vector<8x256xf32>
    %cst_222 = arith.constant dense<0.000000e+00> : vector<8x256xf32>
    %724 = tpu.matmul %716, %583, %cst_222 {dimension_numbers = #tpu.dot_dimension_numbers<[1], [0], [0], [1], [0, 0, 1, 1], [], []>} : vector<8x64xf32>, vector<64x256xf32>, vector<8x256xf32> -> vector<8x256xf32>
    %725 = arith.addf %723, %724 : vector<8x256xf32>
    %726 = vector.extract_strided_slice %725 {offsets = [0, 0], sizes = [8, 64], strides = [1, 1]} : vector<8x256xf32> to vector<8x64xf32>
    %727 = arith.negf %726 : vector<8x64xf32>
    %728 = math.exp %727 : vector<8x64xf32>
    %cst_223 = arith.constant 1.000000e+00 : f32
    %729 = vector.broadcast %cst_223 : f32 to vector<8x64xf32>
    %730 = arith.addf %729, %728 : vector<8x64xf32>
    %731 = arith.divf %729, %730 : vector<8x64xf32>
    %732 = vector.extract_strided_slice %725 {offsets = [0, 64], sizes = [8, 64], strides = [1, 1]} : vector<8x256xf32> to vector<8x64xf32>
    %733 = arith.negf %732 : vector<8x64xf32>
    %734 = math.exp %733 : vector<8x64xf32>
    %cst_224 = arith.constant 1.000000e+00 : f32
    %735 = vector.broadcast %cst_224 : f32 to vector<8x64xf32>
    %736 = arith.addf %735, %734 : vector<8x64xf32>
    %737 = arith.divf %735, %736 : vector<8x64xf32>
    %738 = vector.extract_strided_slice %725 {offsets = [0, 128], sizes = [8, 64], strides = [1, 1]} : vector<8x256xf32> to vector<8x64xf32>
    %739 = math.tanh %738 : vector<8x64xf32>
    %740 = vector.extract_strided_slice %725 {offsets = [0, 192], sizes = [8, 64], strides = [1, 1]} : vector<8x256xf32> to vector<8x64xf32>
    %741 = arith.negf %740 : vector<8x64xf32>
    %742 = math.exp %741 : vector<8x64xf32>
    %cst_225 = arith.constant 1.000000e+00 : f32
    %743 = vector.broadcast %cst_225 : f32 to vector<8x64xf32>
    %744 = arith.addf %743, %742 : vector<8x64xf32>
    %745 = arith.divf %743, %744 : vector<8x64xf32>
    %746 = arith.mulf %737, %714 : vector<8x64xf32>
    %747 = arith.mulf %731, %739 : vector<8x64xf32>
    %748 = arith.addf %746, %747 : vector<8x64xf32>
    %749 = math.tanh %748 : vector<8x64xf32>
    %750 = arith.mulf %745, %749 : vector<8x64xf32>
    %751 = arith.index_cast %c4_i32_219 : i32 to index
    %c0_226 = arith.constant 0 : index
    %c0_227 = arith.constant 0 : index
    %752 = vector.load %arg8[%751, %c0_226, %c0_227] : memref<8x8x64xf32, #tpu.memory_space<vmem>>, vector<1x8x64xf32>
    %753 = vector.shape_cast %752 : vector<1x8x64xf32> to vector<8x64xf32>
    %754 = vector.shape_cast %750 : vector<8x64xf32> to vector<1x8x64xf32>
    tpu.vector_store %arg8[%751, %c0_226, %c0_227], %754 {strides = array<i32>} : memref<8x8x64xf32, #tpu.memory_space<vmem>>, vector<1x8x64xf32>,
    %c5_i32_228 = arith.constant 5 : i32
    %755 = arith.index_cast %c5_i32_228 : i32 to index
    %c0_229 = arith.constant 0 : index
    %c0_230 = arith.constant 0 : index
    %756 = vector.load %arg7[%755, %c0_229, %c0_230] : memref<8x8x256xf32, #tpu.memory_space<vmem>>, vector<1x8x256xf32>
    %757 = vector.shape_cast %756 : vector<1x8x256xf32> to vector<8x256xf32>
    %cst_231 = arith.constant dense<0.000000e+00> : vector<8x256xf32>
    %758 = tpu.matmul %750, %583, %cst_231 {dimension_numbers = #tpu.dot_dimension_numbers<[1], [0], [0], [1], [0, 0, 1, 1], [], []>} : vector<8x64xf32>, vector<64x256xf32>, vector<8x256xf32> -> vector<8x256xf32>
    %759 = arith.addf %757, %758 : vector<8x256xf32>
    %760 = vector.extract_strided_slice %759 {offsets = [0, 0], sizes = [8, 64], strides = [1, 1]} : vector<8x256xf32> to vector<8x64xf32>
    %761 = arith.negf %760 : vector<8x64xf32>
    %762 = math.exp %761 : vector<8x64xf32>
    %cst_232 = arith.constant 1.000000e+00 : f32
    %763 = vector.broadcast %cst_232 : f32 to vector<8x64xf32>
    %764 = arith.addf %763, %762 : vector<8x64xf32>
    %765 = arith.divf %763, %764 : vector<8x64xf32>
    %766 = vector.extract_strided_slice %759 {offsets = [0, 64], sizes = [8, 64], strides = [1, 1]} : vector<8x256xf32> to vector<8x64xf32>
    %767 = arith.negf %766 : vector<8x64xf32>
    %768 = math.exp %767 : vector<8x64xf32>
    %cst_233 = arith.constant 1.000000e+00 : f32
    %769 = vector.broadcast %cst_233 : f32 to vector<8x64xf32>
    %770 = arith.addf %769, %768 : vector<8x64xf32>
    %771 = arith.divf %769, %770 : vector<8x64xf32>
    %772 = vector.extract_strided_slice %759 {offsets = [0, 128], sizes = [8, 64], strides = [1, 1]} : vector<8x256xf32> to vector<8x64xf32>
    %773 = math.tanh %772 : vector<8x64xf32>
    %774 = vector.extract_strided_slice %759 {offsets = [0, 192], sizes = [8, 64], strides = [1, 1]} : vector<8x256xf32> to vector<8x64xf32>
    %775 = arith.negf %774 : vector<8x64xf32>
    %776 = math.exp %775 : vector<8x64xf32>
    %cst_234 = arith.constant 1.000000e+00 : f32
    %777 = vector.broadcast %cst_234 : f32 to vector<8x64xf32>
    %778 = arith.addf %777, %776 : vector<8x64xf32>
    %779 = arith.divf %777, %778 : vector<8x64xf32>
    %780 = arith.mulf %771, %748 : vector<8x64xf32>
    %781 = arith.mulf %765, %773 : vector<8x64xf32>
    %782 = arith.addf %780, %781 : vector<8x64xf32>
    %783 = math.tanh %782 : vector<8x64xf32>
    %784 = arith.mulf %779, %783 : vector<8x64xf32>
    %785 = arith.index_cast %c5_i32_228 : i32 to index
    %c0_235 = arith.constant 0 : index
    %c0_236 = arith.constant 0 : index
    %786 = vector.load %arg8[%785, %c0_235, %c0_236] : memref<8x8x64xf32, #tpu.memory_space<vmem>>, vector<1x8x64xf32>
    %787 = vector.shape_cast %786 : vector<1x8x64xf32> to vector<8x64xf32>
    %788 = vector.shape_cast %784 : vector<8x64xf32> to vector<1x8x64xf32>
    tpu.vector_store %arg8[%785, %c0_235, %c0_236], %788 {strides = array<i32>} : memref<8x8x64xf32, #tpu.memory_space<vmem>>, vector<1x8x64xf32>,
    %c6_i32_237 = arith.constant 6 : i32
    %789 = arith.index_cast %c6_i32_237 : i32 to index
    %c0_238 = arith.constant 0 : index
    %c0_239 = arith.constant 0 : index
    %790 = vector.load %arg7[%789, %c0_238, %c0_239] : memref<8x8x256xf32, #tpu.memory_space<vmem>>, vector<1x8x256xf32>
    %791 = vector.shape_cast %790 : vector<1x8x256xf32> to vector<8x256xf32>
    %cst_240 = arith.constant dense<0.000000e+00> : vector<8x256xf32>
    %792 = tpu.matmul %784, %583, %cst_240 {dimension_numbers = #tpu.dot_dimension_numbers<[1], [0], [0], [1], [0, 0, 1, 1], [], []>} : vector<8x64xf32>, vector<64x256xf32>, vector<8x256xf32> -> vector<8x256xf32>
    %793 = arith.addf %791, %792 : vector<8x256xf32>
    %794 = vector.extract_strided_slice %793 {offsets = [0, 0], sizes = [8, 64], strides = [1, 1]} : vector<8x256xf32> to vector<8x64xf32>
    %795 = arith.negf %794 : vector<8x64xf32>
    %796 = math.exp %795 : vector<8x64xf32>
    %cst_241 = arith.constant 1.000000e+00 : f32
    %797 = vector.broadcast %cst_241 : f32 to vector<8x64xf32>
    %798 = arith.addf %797, %796 : vector<8x64xf32>
    %799 = arith.divf %797, %798 : vector<8x64xf32>
    %800 = vector.extract_strided_slice %793 {offsets = [0, 64], sizes = [8, 64], strides = [1, 1]} : vector<8x256xf32> to vector<8x64xf32>
    %801 = arith.negf %800 : vector<8x64xf32>
    %802 = math.exp %801 : vector<8x64xf32>
    %cst_242 = arith.constant 1.000000e+00 : f32
    %803 = vector.broadcast %cst_242 : f32 to vector<8x64xf32>
    %804 = arith.addf %803, %802 : vector<8x64xf32>
    %805 = arith.divf %803, %804 : vector<8x64xf32>
    %806 = vector.extract_strided_slice %793 {offsets = [0, 128], sizes = [8, 64], strides = [1, 1]} : vector<8x256xf32> to vector<8x64xf32>
    %807 = math.tanh %806 : vector<8x64xf32>
    %808 = vector.extract_strided_slice %793 {offsets = [0, 192], sizes = [8, 64], strides = [1, 1]} : vector<8x256xf32> to vector<8x64xf32>
    %809 = arith.negf %808 : vector<8x64xf32>
    %810 = math.exp %809 : vector<8x64xf32>
    %cst_243 = arith.constant 1.000000e+00 : f32
    %811 = vector.broadcast %cst_243 : f32 to vector<8x64xf32>
    %812 = arith.addf %811, %810 : vector<8x64xf32>
    %813 = arith.divf %811, %812 : vector<8x64xf32>
    %814 = arith.mulf %805, %782 : vector<8x64xf32>
    %815 = arith.mulf %799, %807 : vector<8x64xf32>
    %816 = arith.addf %814, %815 : vector<8x64xf32>
    %817 = math.tanh %816 : vector<8x64xf32>
    %818 = arith.mulf %813, %817 : vector<8x64xf32>
    %819 = arith.index_cast %c6_i32_237 : i32 to index
    %c0_244 = arith.constant 0 : index
    %c0_245 = arith.constant 0 : index
    %820 = vector.load %arg8[%819, %c0_244, %c0_245] : memref<8x8x64xf32, #tpu.memory_space<vmem>>, vector<1x8x64xf32>
    %821 = vector.shape_cast %820 : vector<1x8x64xf32> to vector<8x64xf32>
    %822 = vector.shape_cast %818 : vector<8x64xf32> to vector<1x8x64xf32>
    tpu.vector_store %arg8[%819, %c0_244, %c0_245], %822 {strides = array<i32>} : memref<8x8x64xf32, #tpu.memory_space<vmem>>, vector<1x8x64xf32>,
    %c7_i32_246 = arith.constant 7 : i32
    %823 = arith.index_cast %c7_i32_246 : i32 to index
    %c0_247 = arith.constant 0 : index
    %c0_248 = arith.constant 0 : index
    %824 = vector.load %arg7[%823, %c0_247, %c0_248] : memref<8x8x256xf32, #tpu.memory_space<vmem>>, vector<1x8x256xf32>
    %825 = vector.shape_cast %824 : vector<1x8x256xf32> to vector<8x256xf32>
    %cst_249 = arith.constant dense<0.000000e+00> : vector<8x256xf32>
    %826 = tpu.matmul %818, %583, %cst_249 {dimension_numbers = #tpu.dot_dimension_numbers<[1], [0], [0], [1], [0, 0, 1, 1], [], []>} : vector<8x64xf32>, vector<64x256xf32>, vector<8x256xf32> -> vector<8x256xf32>
    %827 = arith.addf %825, %826 : vector<8x256xf32>
    %828 = vector.extract_strided_slice %827 {offsets = [0, 0], sizes = [8, 64], strides = [1, 1]} : vector<8x256xf32> to vector<8x64xf32>
    %829 = arith.negf %828 : vector<8x64xf32>
    %830 = math.exp %829 : vector<8x64xf32>
    %cst_250 = arith.constant 1.000000e+00 : f32
    %831 = vector.broadcast %cst_250 : f32 to vector<8x64xf32>
    %832 = arith.addf %831, %830 : vector<8x64xf32>
    %833 = arith.divf %831, %832 : vector<8x64xf32>
    %834 = vector.extract_strided_slice %827 {offsets = [0, 64], sizes = [8, 64], strides = [1, 1]} : vector<8x256xf32> to vector<8x64xf32>
    %835 = arith.negf %834 : vector<8x64xf32>
    %836 = math.exp %835 : vector<8x64xf32>
    %cst_251 = arith.constant 1.000000e+00 : f32
    %837 = vector.broadcast %cst_251 : f32 to vector<8x64xf32>
    %838 = arith.addf %837, %836 : vector<8x64xf32>
    %839 = arith.divf %837, %838 : vector<8x64xf32>
    %840 = vector.extract_strided_slice %827 {offsets = [0, 128], sizes = [8, 64], strides = [1, 1]} : vector<8x256xf32> to vector<8x64xf32>
    %841 = math.tanh %840 : vector<8x64xf32>
    %842 = vector.extract_strided_slice %827 {offsets = [0, 192], sizes = [8, 64], strides = [1, 1]} : vector<8x256xf32> to vector<8x64xf32>
    %843 = arith.negf %842 : vector<8x64xf32>
    %844 = math.exp %843 : vector<8x64xf32>
    %cst_252 = arith.constant 1.000000e+00 : f32
    %845 = vector.broadcast %cst_252 : f32 to vector<8x64xf32>
    %846 = arith.addf %845, %844 : vector<8x64xf32>
    %847 = arith.divf %845, %846 : vector<8x64xf32>
    %848 = arith.mulf %839, %816 : vector<8x64xf32>
    %849 = arith.mulf %833, %841 : vector<8x64xf32>
    %850 = arith.addf %848, %849 : vector<8x64xf32>
    %851 = math.tanh %850 : vector<8x64xf32>
    %852 = arith.mulf %847, %851 : vector<8x64xf32>
    %853 = arith.index_cast %c7_i32_246 : i32 to index
    %c0_253 = arith.constant 0 : index
    %c0_254 = arith.constant 0 : index
    %854 = vector.load %arg8[%853, %c0_253, %c0_254] : memref<8x8x64xf32, #tpu.memory_space<vmem>>, vector<1x8x64xf32>
    %855 = vector.shape_cast %854 : vector<1x8x64xf32> to vector<8x64xf32>
    %856 = vector.shape_cast %852 : vector<8x64xf32> to vector<1x8x64xf32>
    tpu.vector_store %arg8[%853, %c0_253, %c0_254], %856 {strides = array<i32>} : memref<8x8x64xf32, #tpu.memory_space<vmem>>, vector<1x8x64xf32>,
    %c8_i32_255 = arith.constant 8 : i32
    %c0_256 = arith.constant 0 : index
    %c0_257 = arith.constant 0 : index
    %c0_258 = arith.constant 0 : index
    %857 = vector.load %arg8[%c0_256, %c0_257, %c0_258] : memref<8x8x64xf32, #tpu.memory_space<vmem>>, vector<8x8x64xf32>
    %858 = vector.shape_cast %857 : vector<8x8x64xf32> to vector<64x64xf32>
    %c2_259 = arith.constant 2 : index
    %c0_260 = arith.constant 0 : index
    %c0_261 = arith.constant 0 : index
    %859 = vector.load %arg3[%c2_259, %c0_260, %c0_261] : memref<4x64x256xf32, #tpu.memory_space<vmem>>, vector<1x64x256xf32>
    %860 = vector.shape_cast %859 : vector<1x64x256xf32> to vector<64x256xf32>
    %cst_262 = arith.constant dense<0.000000e+00> : vector<64x256xf32>
    %861 = tpu.matmul %858, %860, %cst_262 {dimension_numbers = #tpu.dot_dimension_numbers<[1], [0], [0], [1], [0, 0, 1, 1], [], []>} : vector<64x64xf32>, vector<64x256xf32>, vector<64x256xf32> -> vector<64x256xf32>
    %c3 = arith.constant 3 : index
    %c0_263 = arith.constant 0 : index
    %c0_264 = arith.constant 0 : index
    %862 = vector.load %arg5[%c3, %c0_263, %c0_264] : memref<5x1x256xf32, #tpu.memory_space<vmem>>, vector<1x1x256xf32>
    %863 = vector.shape_cast %862 : vector<1x1x256xf32> to vector<1x256xf32>
    %864 = vector.broadcast %863 : vector<1x256xf32> to vector<64x256xf32>
    %865 = arith.addf %861, %864 : vector<64x256xf32>
    %866 = vector.shape_cast %865 : vector<64x256xf32> to vector<8x8x256xf32>
    %c0_265 = arith.constant 0 : index
    %c0_266 = arith.constant 0 : index
    %c0_267 = arith.constant 0 : index
    %867 = vector.load %arg7[%c0_265, %c0_266, %c0_267] : memref<8x8x256xf32, #tpu.memory_space<vmem>>, vector<8x8x256xf32>
    tpu.vector_store %arg7[%c0_265, %c0_266, %c0_267], %866 {strides = array<i32>} : memref<8x8x256xf32, #tpu.memory_space<vmem>>, vector<8x8x256xf32>,
    %c3_268 = arith.constant 3 : index
    %c0_269 = arith.constant 0 : index
    %c0_270 = arith.constant 0 : index
    %868 = vector.load %arg4[%c3_268, %c0_269, %c0_270] : memref<5x64x256xf32, #tpu.memory_space<vmem>>, vector<1x64x256xf32>
    %869 = vector.shape_cast %868 : vector<1x64x256xf32> to vector<64x256xf32>
    %cst_271 = arith.constant 0.000000e+00 : f32
    %870 = vector.broadcast %cst_271 : f32 to vector<8x64xf32>
    %c0_i32_272 = arith.constant 0 : i32
    %871 = arith.index_cast %c0_i32_272 : i32 to index
    %c0_273 = arith.constant 0 : index
    %c0_274 = arith.constant 0 : index
    %872 = vector.load %arg7[%871, %c0_273, %c0_274] : memref<8x8x256xf32, #tpu.memory_space<vmem>>, vector<1x8x256xf32>
    %873 = vector.shape_cast %872 : vector<1x8x256xf32> to vector<8x256xf32>
    %cst_275 = arith.constant dense<0.000000e+00> : vector<8x256xf32>
    %874 = tpu.matmul %870, %869, %cst_275 {dimension_numbers = #tpu.dot_dimension_numbers<[1], [0], [0], [1], [0, 0, 1, 1], [], []>} : vector<8x64xf32>, vector<64x256xf32>, vector<8x256xf32> -> vector<8x256xf32>
    %875 = arith.addf %873, %874 : vector<8x256xf32>
    %876 = vector.extract_strided_slice %875 {offsets = [0, 0], sizes = [8, 64], strides = [1, 1]} : vector<8x256xf32> to vector<8x64xf32>
    %877 = arith.negf %876 : vector<8x64xf32>
    %878 = math.exp %877 : vector<8x64xf32>
    %cst_276 = arith.constant 1.000000e+00 : f32
    %879 = vector.broadcast %cst_276 : f32 to vector<8x64xf32>
    %880 = arith.addf %879, %878 : vector<8x64xf32>
    %881 = arith.divf %879, %880 : vector<8x64xf32>
    %882 = vector.extract_strided_slice %875 {offsets = [0, 64], sizes = [8, 64], strides = [1, 1]} : vector<8x256xf32> to vector<8x64xf32>
    %883 = arith.negf %882 : vector<8x64xf32>
    %884 = math.exp %883 : vector<8x64xf32>
    %cst_277 = arith.constant 1.000000e+00 : f32
    %885 = vector.broadcast %cst_277 : f32 to vector<8x64xf32>
    %886 = arith.addf %885, %884 : vector<8x64xf32>
    %887 = arith.divf %885, %886 : vector<8x64xf32>
    %888 = vector.extract_strided_slice %875 {offsets = [0, 128], sizes = [8, 64], strides = [1, 1]} : vector<8x256xf32> to vector<8x64xf32>
    %889 = math.tanh %888 : vector<8x64xf32>
    %890 = vector.extract_strided_slice %875 {offsets = [0, 192], sizes = [8, 64], strides = [1, 1]} : vector<8x256xf32> to vector<8x64xf32>
    %891 = arith.negf %890 : vector<8x64xf32>
    %892 = math.exp %891 : vector<8x64xf32>
    %cst_278 = arith.constant 1.000000e+00 : f32
    %893 = vector.broadcast %cst_278 : f32 to vector<8x64xf32>
    %894 = arith.addf %893, %892 : vector<8x64xf32>
    %895 = arith.divf %893, %894 : vector<8x64xf32>
    %896 = arith.mulf %887, %870 : vector<8x64xf32>
    %897 = arith.mulf %881, %889 : vector<8x64xf32>
    %898 = arith.addf %896, %897 : vector<8x64xf32>
    %899 = math.tanh %898 : vector<8x64xf32>
    %900 = arith.mulf %895, %899 : vector<8x64xf32>
    %901 = arith.index_cast %c0_i32_272 : i32 to index
    %c0_279 = arith.constant 0 : index
    %c0_280 = arith.constant 0 : index
    %902 = vector.load %arg8[%901, %c0_279, %c0_280] : memref<8x8x64xf32, #tpu.memory_space<vmem>>, vector<1x8x64xf32>
    %903 = vector.shape_cast %902 : vector<1x8x64xf32> to vector<8x64xf32>
    %904 = vector.shape_cast %900 : vector<8x64xf32> to vector<1x8x64xf32>
    tpu.vector_store %arg8[%901, %c0_279, %c0_280], %904 {strides = array<i32>} : memref<8x8x64xf32, #tpu.memory_space<vmem>>, vector<1x8x64xf32>,
    %c1_i32_281 = arith.constant 1 : i32
    %905 = arith.index_cast %c1_i32_281 : i32 to index
    %c0_282 = arith.constant 0 : index
    %c0_283 = arith.constant 0 : index
    %906 = vector.load %arg7[%905, %c0_282, %c0_283] : memref<8x8x256xf32, #tpu.memory_space<vmem>>, vector<1x8x256xf32>
    %907 = vector.shape_cast %906 : vector<1x8x256xf32> to vector<8x256xf32>
    %cst_284 = arith.constant dense<0.000000e+00> : vector<8x256xf32>
    %908 = tpu.matmul %900, %869, %cst_284 {dimension_numbers = #tpu.dot_dimension_numbers<[1], [0], [0], [1], [0, 0, 1, 1], [], []>} : vector<8x64xf32>, vector<64x256xf32>, vector<8x256xf32> -> vector<8x256xf32>
    %909 = arith.addf %907, %908 : vector<8x256xf32>
    %910 = vector.extract_strided_slice %909 {offsets = [0, 0], sizes = [8, 64], strides = [1, 1]} : vector<8x256xf32> to vector<8x64xf32>
    %911 = arith.negf %910 : vector<8x64xf32>
    %912 = math.exp %911 : vector<8x64xf32>
    %cst_285 = arith.constant 1.000000e+00 : f32
    %913 = vector.broadcast %cst_285 : f32 to vector<8x64xf32>
    %914 = arith.addf %913, %912 : vector<8x64xf32>
    %915 = arith.divf %913, %914 : vector<8x64xf32>
    %916 = vector.extract_strided_slice %909 {offsets = [0, 64], sizes = [8, 64], strides = [1, 1]} : vector<8x256xf32> to vector<8x64xf32>
    %917 = arith.negf %916 : vector<8x64xf32>
    %918 = math.exp %917 : vector<8x64xf32>
    %cst_286 = arith.constant 1.000000e+00 : f32
    %919 = vector.broadcast %cst_286 : f32 to vector<8x64xf32>
    %920 = arith.addf %919, %918 : vector<8x64xf32>
    %921 = arith.divf %919, %920 : vector<8x64xf32>
    %922 = vector.extract_strided_slice %909 {offsets = [0, 128], sizes = [8, 64], strides = [1, 1]} : vector<8x256xf32> to vector<8x64xf32>
    %923 = math.tanh %922 : vector<8x64xf32>
    %924 = vector.extract_strided_slice %909 {offsets = [0, 192], sizes = [8, 64], strides = [1, 1]} : vector<8x256xf32> to vector<8x64xf32>
    %925 = arith.negf %924 : vector<8x64xf32>
    %926 = math.exp %925 : vector<8x64xf32>
    %cst_287 = arith.constant 1.000000e+00 : f32
    %927 = vector.broadcast %cst_287 : f32 to vector<8x64xf32>
    %928 = arith.addf %927, %926 : vector<8x64xf32>
    %929 = arith.divf %927, %928 : vector<8x64xf32>
    %930 = arith.mulf %921, %898 : vector<8x64xf32>
    %931 = arith.mulf %915, %923 : vector<8x64xf32>
    %932 = arith.addf %930, %931 : vector<8x64xf32>
    %933 = math.tanh %932 : vector<8x64xf32>
    %934 = arith.mulf %929, %933 : vector<8x64xf32>
    %935 = arith.index_cast %c1_i32_281 : i32 to index
    %c0_288 = arith.constant 0 : index
    %c0_289 = arith.constant 0 : index
    %936 = vector.load %arg8[%935, %c0_288, %c0_289] : memref<8x8x64xf32, #tpu.memory_space<vmem>>, vector<1x8x64xf32>
    %937 = vector.shape_cast %936 : vector<1x8x64xf32> to vector<8x64xf32>
    %938 = vector.shape_cast %934 : vector<8x64xf32> to vector<1x8x64xf32>
    tpu.vector_store %arg8[%935, %c0_288, %c0_289], %938 {strides = array<i32>} : memref<8x8x64xf32, #tpu.memory_space<vmem>>, vector<1x8x64xf32>,
    %c2_i32_290 = arith.constant 2 : i32
    %939 = arith.index_cast %c2_i32_290 : i32 to index
    %c0_291 = arith.constant 0 : index
    %c0_292 = arith.constant 0 : index
    %940 = vector.load %arg7[%939, %c0_291, %c0_292] : memref<8x8x256xf32, #tpu.memory_space<vmem>>, vector<1x8x256xf32>
    %941 = vector.shape_cast %940 : vector<1x8x256xf32> to vector<8x256xf32>
    %cst_293 = arith.constant dense<0.000000e+00> : vector<8x256xf32>
    %942 = tpu.matmul %934, %869, %cst_293 {dimension_numbers = #tpu.dot_dimension_numbers<[1], [0], [0], [1], [0, 0, 1, 1], [], []>} : vector<8x64xf32>, vector<64x256xf32>, vector<8x256xf32> -> vector<8x256xf32>
    %943 = arith.addf %941, %942 : vector<8x256xf32>
    %944 = vector.extract_strided_slice %943 {offsets = [0, 0], sizes = [8, 64], strides = [1, 1]} : vector<8x256xf32> to vector<8x64xf32>
    %945 = arith.negf %944 : vector<8x64xf32>
    %946 = math.exp %945 : vector<8x64xf32>
    %cst_294 = arith.constant 1.000000e+00 : f32
    %947 = vector.broadcast %cst_294 : f32 to vector<8x64xf32>
    %948 = arith.addf %947, %946 : vector<8x64xf32>
    %949 = arith.divf %947, %948 : vector<8x64xf32>
    %950 = vector.extract_strided_slice %943 {offsets = [0, 64], sizes = [8, 64], strides = [1, 1]} : vector<8x256xf32> to vector<8x64xf32>
    %951 = arith.negf %950 : vector<8x64xf32>
    %952 = math.exp %951 : vector<8x64xf32>
    %cst_295 = arith.constant 1.000000e+00 : f32
    %953 = vector.broadcast %cst_295 : f32 to vector<8x64xf32>
    %954 = arith.addf %953, %952 : vector<8x64xf32>
    %955 = arith.divf %953, %954 : vector<8x64xf32>
    %956 = vector.extract_strided_slice %943 {offsets = [0, 128], sizes = [8, 64], strides = [1, 1]} : vector<8x256xf32> to vector<8x64xf32>
    %957 = math.tanh %956 : vector<8x64xf32>
    %958 = vector.extract_strided_slice %943 {offsets = [0, 192], sizes = [8, 64], strides = [1, 1]} : vector<8x256xf32> to vector<8x64xf32>
    %959 = arith.negf %958 : vector<8x64xf32>
    %960 = math.exp %959 : vector<8x64xf32>
    %cst_296 = arith.constant 1.000000e+00 : f32
    %961 = vector.broadcast %cst_296 : f32 to vector<8x64xf32>
    %962 = arith.addf %961, %960 : vector<8x64xf32>
    %963 = arith.divf %961, %962 : vector<8x64xf32>
    %964 = arith.mulf %955, %932 : vector<8x64xf32>
    %965 = arith.mulf %949, %957 : vector<8x64xf32>
    %966 = arith.addf %964, %965 : vector<8x64xf32>
    %967 = math.tanh %966 : vector<8x64xf32>
    %968 = arith.mulf %963, %967 : vector<8x64xf32>
    %969 = arith.index_cast %c2_i32_290 : i32 to index
    %c0_297 = arith.constant 0 : index
    %c0_298 = arith.constant 0 : index
    %970 = vector.load %arg8[%969, %c0_297, %c0_298] : memref<8x8x64xf32, #tpu.memory_space<vmem>>, vector<1x8x64xf32>
    %971 = vector.shape_cast %970 : vector<1x8x64xf32> to vector<8x64xf32>
    %972 = vector.shape_cast %968 : vector<8x64xf32> to vector<1x8x64xf32>
    tpu.vector_store %arg8[%969, %c0_297, %c0_298], %972 {strides = array<i32>} : memref<8x8x64xf32, #tpu.memory_space<vmem>>, vector<1x8x64xf32>,
    %c3_i32_299 = arith.constant 3 : i32
    %973 = arith.index_cast %c3_i32_299 : i32 to index
    %c0_300 = arith.constant 0 : index
    %c0_301 = arith.constant 0 : index
    %974 = vector.load %arg7[%973, %c0_300, %c0_301] : memref<8x8x256xf32, #tpu.memory_space<vmem>>, vector<1x8x256xf32>
    %975 = vector.shape_cast %974 : vector<1x8x256xf32> to vector<8x256xf32>
    %cst_302 = arith.constant dense<0.000000e+00> : vector<8x256xf32>
    %976 = tpu.matmul %968, %869, %cst_302 {dimension_numbers = #tpu.dot_dimension_numbers<[1], [0], [0], [1], [0, 0, 1, 1], [], []>} : vector<8x64xf32>, vector<64x256xf32>, vector<8x256xf32> -> vector<8x256xf32>
    %977 = arith.addf %975, %976 : vector<8x256xf32>
    %978 = vector.extract_strided_slice %977 {offsets = [0, 0], sizes = [8, 64], strides = [1, 1]} : vector<8x256xf32> to vector<8x64xf32>
    %979 = arith.negf %978 : vector<8x64xf32>
    %980 = math.exp %979 : vector<8x64xf32>
    %cst_303 = arith.constant 1.000000e+00 : f32
    %981 = vector.broadcast %cst_303 : f32 to vector<8x64xf32>
    %982 = arith.addf %981, %980 : vector<8x64xf32>
    %983 = arith.divf %981, %982 : vector<8x64xf32>
    %984 = vector.extract_strided_slice %977 {offsets = [0, 64], sizes = [8, 64], strides = [1, 1]} : vector<8x256xf32> to vector<8x64xf32>
    %985 = arith.negf %984 : vector<8x64xf32>
    %986 = math.exp %985 : vector<8x64xf32>
    %cst_304 = arith.constant 1.000000e+00 : f32
    %987 = vector.broadcast %cst_304 : f32 to vector<8x64xf32>
    %988 = arith.addf %987, %986 : vector<8x64xf32>
    %989 = arith.divf %987, %988 : vector<8x64xf32>
    %990 = vector.extract_strided_slice %977 {offsets = [0, 128], sizes = [8, 64], strides = [1, 1]} : vector<8x256xf32> to vector<8x64xf32>
    %991 = math.tanh %990 : vector<8x64xf32>
    %992 = vector.extract_strided_slice %977 {offsets = [0, 192], sizes = [8, 64], strides = [1, 1]} : vector<8x256xf32> to vector<8x64xf32>
    %993 = arith.negf %992 : vector<8x64xf32>
    %994 = math.exp %993 : vector<8x64xf32>
    %cst_305 = arith.constant 1.000000e+00 : f32
    %995 = vector.broadcast %cst_305 : f32 to vector<8x64xf32>
    %996 = arith.addf %995, %994 : vector<8x64xf32>
    %997 = arith.divf %995, %996 : vector<8x64xf32>
    %998 = arith.mulf %989, %966 : vector<8x64xf32>
    %999 = arith.mulf %983, %991 : vector<8x64xf32>
    %1000 = arith.addf %998, %999 : vector<8x64xf32>
    %1001 = math.tanh %1000 : vector<8x64xf32>
    %1002 = arith.mulf %997, %1001 : vector<8x64xf32>
    %1003 = arith.index_cast %c3_i32_299 : i32 to index
    %c0_306 = arith.constant 0 : index
    %c0_307 = arith.constant 0 : index
    %1004 = vector.load %arg8[%1003, %c0_306, %c0_307] : memref<8x8x64xf32, #tpu.memory_space<vmem>>, vector<1x8x64xf32>
    %1005 = vector.shape_cast %1004 : vector<1x8x64xf32> to vector<8x64xf32>
    %1006 = vector.shape_cast %1002 : vector<8x64xf32> to vector<1x8x64xf32>
    tpu.vector_store %arg8[%1003, %c0_306, %c0_307], %1006 {strides = array<i32>} : memref<8x8x64xf32, #tpu.memory_space<vmem>>, vector<1x8x64xf32>,
    %c4_i32_308 = arith.constant 4 : i32
    %1007 = arith.index_cast %c4_i32_308 : i32 to index
    %c0_309 = arith.constant 0 : index
    %c0_310 = arith.constant 0 : index
    %1008 = vector.load %arg7[%1007, %c0_309, %c0_310] : memref<8x8x256xf32, #tpu.memory_space<vmem>>, vector<1x8x256xf32>
    %1009 = vector.shape_cast %1008 : vector<1x8x256xf32> to vector<8x256xf32>
    %cst_311 = arith.constant dense<0.000000e+00> : vector<8x256xf32>
    %1010 = tpu.matmul %1002, %869, %cst_311 {dimension_numbers = #tpu.dot_dimension_numbers<[1], [0], [0], [1], [0, 0, 1, 1], [], []>} : vector<8x64xf32>, vector<64x256xf32>, vector<8x256xf32> -> vector<8x256xf32>
    %1011 = arith.addf %1009, %1010 : vector<8x256xf32>
    %1012 = vector.extract_strided_slice %1011 {offsets = [0, 0], sizes = [8, 64], strides = [1, 1]} : vector<8x256xf32> to vector<8x64xf32>
    %1013 = arith.negf %1012 : vector<8x64xf32>
    %1014 = math.exp %1013 : vector<8x64xf32>
    %cst_312 = arith.constant 1.000000e+00 : f32
    %1015 = vector.broadcast %cst_312 : f32 to vector<8x64xf32>
    %1016 = arith.addf %1015, %1014 : vector<8x64xf32>
    %1017 = arith.divf %1015, %1016 : vector<8x64xf32>
    %1018 = vector.extract_strided_slice %1011 {offsets = [0, 64], sizes = [8, 64], strides = [1, 1]} : vector<8x256xf32> to vector<8x64xf32>
    %1019 = arith.negf %1018 : vector<8x64xf32>
    %1020 = math.exp %1019 : vector<8x64xf32>
    %cst_313 = arith.constant 1.000000e+00 : f32
    %1021 = vector.broadcast %cst_313 : f32 to vector<8x64xf32>
    %1022 = arith.addf %1021, %1020 : vector<8x64xf32>
    %1023 = arith.divf %1021, %1022 : vector<8x64xf32>
    %1024 = vector.extract_strided_slice %1011 {offsets = [0, 128], sizes = [8, 64], strides = [1, 1]} : vector<8x256xf32> to vector<8x64xf32>
    %1025 = math.tanh %1024 : vector<8x64xf32>
    %1026 = vector.extract_strided_slice %1011 {offsets = [0, 192], sizes = [8, 64], strides = [1, 1]} : vector<8x256xf32> to vector<8x64xf32>
    %1027 = arith.negf %1026 : vector<8x64xf32>
    %1028 = math.exp %1027 : vector<8x64xf32>
    %cst_314 = arith.constant 1.000000e+00 : f32
    %1029 = vector.broadcast %cst_314 : f32 to vector<8x64xf32>
    %1030 = arith.addf %1029, %1028 : vector<8x64xf32>
    %1031 = arith.divf %1029, %1030 : vector<8x64xf32>
    %1032 = arith.mulf %1023, %1000 : vector<8x64xf32>
    %1033 = arith.mulf %1017, %1025 : vector<8x64xf32>
    %1034 = arith.addf %1032, %1033 : vector<8x64xf32>
    %1035 = math.tanh %1034 : vector<8x64xf32>
    %1036 = arith.mulf %1031, %1035 : vector<8x64xf32>
    %1037 = arith.index_cast %c4_i32_308 : i32 to index
    %c0_315 = arith.constant 0 : index
    %c0_316 = arith.constant 0 : index
    %1038 = vector.load %arg8[%1037, %c0_315, %c0_316] : memref<8x8x64xf32, #tpu.memory_space<vmem>>, vector<1x8x64xf32>
    %1039 = vector.shape_cast %1038 : vector<1x8x64xf32> to vector<8x64xf32>
    %1040 = vector.shape_cast %1036 : vector<8x64xf32> to vector<1x8x64xf32>
    tpu.vector_store %arg8[%1037, %c0_315, %c0_316], %1040 {strides = array<i32>} : memref<8x8x64xf32, #tpu.memory_space<vmem>>, vector<1x8x64xf32>,
    %c5_i32_317 = arith.constant 5 : i32
    %1041 = arith.index_cast %c5_i32_317 : i32 to index
    %c0_318 = arith.constant 0 : index
    %c0_319 = arith.constant 0 : index
    %1042 = vector.load %arg7[%1041, %c0_318, %c0_319] : memref<8x8x256xf32, #tpu.memory_space<vmem>>, vector<1x8x256xf32>
    %1043 = vector.shape_cast %1042 : vector<1x8x256xf32> to vector<8x256xf32>
    %cst_320 = arith.constant dense<0.000000e+00> : vector<8x256xf32>
    %1044 = tpu.matmul %1036, %869, %cst_320 {dimension_numbers = #tpu.dot_dimension_numbers<[1], [0], [0], [1], [0, 0, 1, 1], [], []>} : vector<8x64xf32>, vector<64x256xf32>, vector<8x256xf32> -> vector<8x256xf32>
    %1045 = arith.addf %1043, %1044 : vector<8x256xf32>
    %1046 = vector.extract_strided_slice %1045 {offsets = [0, 0], sizes = [8, 64], strides = [1, 1]} : vector<8x256xf32> to vector<8x64xf32>
    %1047 = arith.negf %1046 : vector<8x64xf32>
    %1048 = math.exp %1047 : vector<8x64xf32>
    %cst_321 = arith.constant 1.000000e+00 : f32
    %1049 = vector.broadcast %cst_321 : f32 to vector<8x64xf32>
    %1050 = arith.addf %1049, %1048 : vector<8x64xf32>
    %1051 = arith.divf %1049, %1050 : vector<8x64xf32>
    %1052 = vector.extract_strided_slice %1045 {offsets = [0, 64], sizes = [8, 64], strides = [1, 1]} : vector<8x256xf32> to vector<8x64xf32>
    %1053 = arith.negf %1052 : vector<8x64xf32>
    %1054 = math.exp %1053 : vector<8x64xf32>
    %cst_322 = arith.constant 1.000000e+00 : f32
    %1055 = vector.broadcast %cst_322 : f32 to vector<8x64xf32>
    %1056 = arith.addf %1055, %1054 : vector<8x64xf32>
    %1057 = arith.divf %1055, %1056 : vector<8x64xf32>
    %1058 = vector.extract_strided_slice %1045 {offsets = [0, 128], sizes = [8, 64], strides = [1, 1]} : vector<8x256xf32> to vector<8x64xf32>
    %1059 = math.tanh %1058 : vector<8x64xf32>
    %1060 = vector.extract_strided_slice %1045 {offsets = [0, 192], sizes = [8, 64], strides = [1, 1]} : vector<8x256xf32> to vector<8x64xf32>
    %1061 = arith.negf %1060 : vector<8x64xf32>
    %1062 = math.exp %1061 : vector<8x64xf32>
    %cst_323 = arith.constant 1.000000e+00 : f32
    %1063 = vector.broadcast %cst_323 : f32 to vector<8x64xf32>
    %1064 = arith.addf %1063, %1062 : vector<8x64xf32>
    %1065 = arith.divf %1063, %1064 : vector<8x64xf32>
    %1066 = arith.mulf %1057, %1034 : vector<8x64xf32>
    %1067 = arith.mulf %1051, %1059 : vector<8x64xf32>
    %1068 = arith.addf %1066, %1067 : vector<8x64xf32>
    %1069 = math.tanh %1068 : vector<8x64xf32>
    %1070 = arith.mulf %1065, %1069 : vector<8x64xf32>
    %1071 = arith.index_cast %c5_i32_317 : i32 to index
    %c0_324 = arith.constant 0 : index
    %c0_325 = arith.constant 0 : index
    %1072 = vector.load %arg8[%1071, %c0_324, %c0_325] : memref<8x8x64xf32, #tpu.memory_space<vmem>>, vector<1x8x64xf32>
    %1073 = vector.shape_cast %1072 : vector<1x8x64xf32> to vector<8x64xf32>
    %1074 = vector.shape_cast %1070 : vector<8x64xf32> to vector<1x8x64xf32>
    tpu.vector_store %arg8[%1071, %c0_324, %c0_325], %1074 {strides = array<i32>} : memref<8x8x64xf32, #tpu.memory_space<vmem>>, vector<1x8x64xf32>,
    %c6_i32_326 = arith.constant 6 : i32
    %1075 = arith.index_cast %c6_i32_326 : i32 to index
    %c0_327 = arith.constant 0 : index
    %c0_328 = arith.constant 0 : index
    %1076 = vector.load %arg7[%1075, %c0_327, %c0_328] : memref<8x8x256xf32, #tpu.memory_space<vmem>>, vector<1x8x256xf32>
    %1077 = vector.shape_cast %1076 : vector<1x8x256xf32> to vector<8x256xf32>
    %cst_329 = arith.constant dense<0.000000e+00> : vector<8x256xf32>
    %1078 = tpu.matmul %1070, %869, %cst_329 {dimension_numbers = #tpu.dot_dimension_numbers<[1], [0], [0], [1], [0, 0, 1, 1], [], []>} : vector<8x64xf32>, vector<64x256xf32>, vector<8x256xf32> -> vector<8x256xf32>
    %1079 = arith.addf %1077, %1078 : vector<8x256xf32>
    %1080 = vector.extract_strided_slice %1079 {offsets = [0, 0], sizes = [8, 64], strides = [1, 1]} : vector<8x256xf32> to vector<8x64xf32>
    %1081 = arith.negf %1080 : vector<8x64xf32>
    %1082 = math.exp %1081 : vector<8x64xf32>
    %cst_330 = arith.constant 1.000000e+00 : f32
    %1083 = vector.broadcast %cst_330 : f32 to vector<8x64xf32>
    %1084 = arith.addf %1083, %1082 : vector<8x64xf32>
    %1085 = arith.divf %1083, %1084 : vector<8x64xf32>
    %1086 = vector.extract_strided_slice %1079 {offsets = [0, 64], sizes = [8, 64], strides = [1, 1]} : vector<8x256xf32> to vector<8x64xf32>
    %1087 = arith.negf %1086 : vector<8x64xf32>
    %1088 = math.exp %1087 : vector<8x64xf32>
    %cst_331 = arith.constant 1.000000e+00 : f32
    %1089 = vector.broadcast %cst_331 : f32 to vector<8x64xf32>
    %1090 = arith.addf %1089, %1088 : vector<8x64xf32>
    %1091 = arith.divf %1089, %1090 : vector<8x64xf32>
    %1092 = vector.extract_strided_slice %1079 {offsets = [0, 128], sizes = [8, 64], strides = [1, 1]} : vector<8x256xf32> to vector<8x64xf32>
    %1093 = math.tanh %1092 : vector<8x64xf32>
    %1094 = vector.extract_strided_slice %1079 {offsets = [0, 192], sizes = [8, 64], strides = [1, 1]} : vector<8x256xf32> to vector<8x64xf32>
    %1095 = arith.negf %1094 : vector<8x64xf32>
    %1096 = math.exp %1095 : vector<8x64xf32>
    %cst_332 = arith.constant 1.000000e+00 : f32
    %1097 = vector.broadcast %cst_332 : f32 to vector<8x64xf32>
    %1098 = arith.addf %1097, %1096 : vector<8x64xf32>
    %1099 = arith.divf %1097, %1098 : vector<8x64xf32>
    %1100 = arith.mulf %1091, %1068 : vector<8x64xf32>
    %1101 = arith.mulf %1085, %1093 : vector<8x64xf32>
    %1102 = arith.addf %1100, %1101 : vector<8x64xf32>
    %1103 = math.tanh %1102 : vector<8x64xf32>
    %1104 = arith.mulf %1099, %1103 : vector<8x64xf32>
    %1105 = arith.index_cast %c6_i32_326 : i32 to index
    %c0_333 = arith.constant 0 : index
    %c0_334 = arith.constant 0 : index
    %1106 = vector.load %arg8[%1105, %c0_333, %c0_334] : memref<8x8x64xf32, #tpu.memory_space<vmem>>, vector<1x8x64xf32>
    %1107 = vector.shape_cast %1106 : vector<1x8x64xf32> to vector<8x64xf32>
    %1108 = vector.shape_cast %1104 : vector<8x64xf32> to vector<1x8x64xf32>
    tpu.vector_store %arg8[%1105, %c0_333, %c0_334], %1108 {strides = array<i32>} : memref<8x8x64xf32, #tpu.memory_space<vmem>>, vector<1x8x64xf32>,
    %c7_i32_335 = arith.constant 7 : i32
    %1109 = arith.index_cast %c7_i32_335 : i32 to index
    %c0_336 = arith.constant 0 : index
    %c0_337 = arith.constant 0 : index
    %1110 = vector.load %arg7[%1109, %c0_336, %c0_337] : memref<8x8x256xf32, #tpu.memory_space<vmem>>, vector<1x8x256xf32>
    %1111 = vector.shape_cast %1110 : vector<1x8x256xf32> to vector<8x256xf32>
    %cst_338 = arith.constant dense<0.000000e+00> : vector<8x256xf32>
    %1112 = tpu.matmul %1104, %869, %cst_338 {dimension_numbers = #tpu.dot_dimension_numbers<[1], [0], [0], [1], [0, 0, 1, 1], [], []>} : vector<8x64xf32>, vector<64x256xf32>, vector<8x256xf32> -> vector<8x256xf32>
    %1113 = arith.addf %1111, %1112 : vector<8x256xf32>
    %1114 = vector.extract_strided_slice %1113 {offsets = [0, 0], sizes = [8, 64], strides = [1, 1]} : vector<8x256xf32> to vector<8x64xf32>
    %1115 = arith.negf %1114 : vector<8x64xf32>
    %1116 = math.exp %1115 : vector<8x64xf32>
    %cst_339 = arith.constant 1.000000e+00 : f32
    %1117 = vector.broadcast %cst_339 : f32 to vector<8x64xf32>
    %1118 = arith.addf %1117, %1116 : vector<8x64xf32>
    %1119 = arith.divf %1117, %1118 : vector<8x64xf32>
    %1120 = vector.extract_strided_slice %1113 {offsets = [0, 64], sizes = [8, 64], strides = [1, 1]} : vector<8x256xf32> to vector<8x64xf32>
    %1121 = arith.negf %1120 : vector<8x64xf32>
    %1122 = math.exp %1121 : vector<8x64xf32>
    %cst_340 = arith.constant 1.000000e+00 : f32
    %1123 = vector.broadcast %cst_340 : f32 to vector<8x64xf32>
    %1124 = arith.addf %1123, %1122 : vector<8x64xf32>
    %1125 = arith.divf %1123, %1124 : vector<8x64xf32>
    %1126 = vector.extract_strided_slice %1113 {offsets = [0, 128], sizes = [8, 64], strides = [1, 1]} : vector<8x256xf32> to vector<8x64xf32>
    %1127 = math.tanh %1126 : vector<8x64xf32>
    %1128 = vector.extract_strided_slice %1113 {offsets = [0, 192], sizes = [8, 64], strides = [1, 1]} : vector<8x256xf32> to vector<8x64xf32>
    %1129 = arith.negf %1128 : vector<8x64xf32>
    %1130 = math.exp %1129 : vector<8x64xf32>
    %cst_341 = arith.constant 1.000000e+00 : f32
    %1131 = vector.broadcast %cst_341 : f32 to vector<8x64xf32>
    %1132 = arith.addf %1131, %1130 : vector<8x64xf32>
    %1133 = arith.divf %1131, %1132 : vector<8x64xf32>
    %1134 = arith.mulf %1125, %1102 : vector<8x64xf32>
    %1135 = arith.mulf %1119, %1127 : vector<8x64xf32>
    %1136 = arith.addf %1134, %1135 : vector<8x64xf32>
    %1137 = math.tanh %1136 : vector<8x64xf32>
    %1138 = arith.mulf %1133, %1137 : vector<8x64xf32>
    %1139 = arith.index_cast %c7_i32_335 : i32 to index
    %c0_342 = arith.constant 0 : index
    %c0_343 = arith.constant 0 : index
    %1140 = vector.load %arg8[%1139, %c0_342, %c0_343] : memref<8x8x64xf32, #tpu.memory_space<vmem>>, vector<1x8x64xf32>
    %1141 = vector.shape_cast %1140 : vector<1x8x64xf32> to vector<8x64xf32>
    %1142 = vector.shape_cast %1138 : vector<8x64xf32> to vector<1x8x64xf32>
    tpu.vector_store %arg8[%1139, %c0_342, %c0_343], %1142 {strides = array<i32>} : memref<8x8x64xf32, #tpu.memory_space<vmem>>, vector<1x8x64xf32>,
    %c8_i32_344 = arith.constant 8 : i32
    %c0_345 = arith.constant 0 : index
    %c0_346 = arith.constant 0 : index
    %c0_347 = arith.constant 0 : index
    %1143 = vector.load %arg8[%c0_345, %c0_346, %c0_347] : memref<8x8x64xf32, #tpu.memory_space<vmem>>, vector<8x8x64xf32>
    %1144 = vector.shape_cast %1143 : vector<8x8x64xf32> to vector<64x64xf32>
    %c3_348 = arith.constant 3 : index
    %c0_349 = arith.constant 0 : index
    %c0_350 = arith.constant 0 : index
    %1145 = vector.load %arg3[%c3_348, %c0_349, %c0_350] : memref<4x64x256xf32, #tpu.memory_space<vmem>>, vector<1x64x256xf32>
    %1146 = vector.shape_cast %1145 : vector<1x64x256xf32> to vector<64x256xf32>
    %cst_351 = arith.constant dense<0.000000e+00> : vector<64x256xf32>
    %1147 = tpu.matmul %1144, %1146, %cst_351 {dimension_numbers = #tpu.dot_dimension_numbers<[1], [0], [0], [1], [0, 0, 1, 1], [], []>} : vector<64x64xf32>, vector<64x256xf32>, vector<64x256xf32> -> vector<64x256xf32>
    %c4 = arith.constant 4 : index
    %c0_352 = arith.constant 0 : index
    %c0_353 = arith.constant 0 : index
    %1148 = vector.load %arg5[%c4, %c0_352, %c0_353] : memref<5x1x256xf32, #tpu.memory_space<vmem>>, vector<1x1x256xf32>
    %1149 = vector.shape_cast %1148 : vector<1x1x256xf32> to vector<1x256xf32>
    %1150 = vector.broadcast %1149 : vector<1x256xf32> to vector<64x256xf32>
    %1151 = arith.addf %1147, %1150 : vector<64x256xf32>
    %1152 = vector.shape_cast %1151 : vector<64x256xf32> to vector<8x8x256xf32>
    %c0_354 = arith.constant 0 : index
    %c0_355 = arith.constant 0 : index
    %c0_356 = arith.constant 0 : index
    %1153 = vector.load %arg7[%c0_354, %c0_355, %c0_356] : memref<8x8x256xf32, #tpu.memory_space<vmem>>, vector<8x8x256xf32>
    tpu.vector_store %arg7[%c0_354, %c0_355, %c0_356], %1152 {strides = array<i32>} : memref<8x8x256xf32, #tpu.memory_space<vmem>>, vector<8x8x256xf32>,
    %c4_357 = arith.constant 4 : index
    %c0_358 = arith.constant 0 : index
    %c0_359 = arith.constant 0 : index
    %1154 = vector.load %arg4[%c4_357, %c0_358, %c0_359] : memref<5x64x256xf32, #tpu.memory_space<vmem>>, vector<1x64x256xf32>
    %1155 = vector.shape_cast %1154 : vector<1x64x256xf32> to vector<64x256xf32>
    %cst_360 = arith.constant 0.000000e+00 : f32
    %1156 = vector.broadcast %cst_360 : f32 to vector<8x64xf32>
    %c0_i32_361 = arith.constant 0 : i32
    %1157 = arith.index_cast %c0_i32_361 : i32 to index
    %c0_362 = arith.constant 0 : index
    %c0_363 = arith.constant 0 : index
    %1158 = vector.load %arg7[%1157, %c0_362, %c0_363] : memref<8x8x256xf32, #tpu.memory_space<vmem>>, vector<1x8x256xf32>
    %1159 = vector.shape_cast %1158 : vector<1x8x256xf32> to vector<8x256xf32>
    %cst_364 = arith.constant dense<0.000000e+00> : vector<8x256xf32>
    %1160 = tpu.matmul %1156, %1155, %cst_364 {dimension_numbers = #tpu.dot_dimension_numbers<[1], [0], [0], [1], [0, 0, 1, 1], [], []>} : vector<8x64xf32>, vector<64x256xf32>, vector<8x256xf32> -> vector<8x256xf32>
    %1161 = arith.addf %1159, %1160 : vector<8x256xf32>
    %1162 = vector.extract_strided_slice %1161 {offsets = [0, 0], sizes = [8, 64], strides = [1, 1]} : vector<8x256xf32> to vector<8x64xf32>
    %1163 = arith.negf %1162 : vector<8x64xf32>
    %1164 = math.exp %1163 : vector<8x64xf32>
    %cst_365 = arith.constant 1.000000e+00 : f32
    %1165 = vector.broadcast %cst_365 : f32 to vector<8x64xf32>
    %1166 = arith.addf %1165, %1164 : vector<8x64xf32>
    %1167 = arith.divf %1165, %1166 : vector<8x64xf32>
    %1168 = vector.extract_strided_slice %1161 {offsets = [0, 64], sizes = [8, 64], strides = [1, 1]} : vector<8x256xf32> to vector<8x64xf32>
    %1169 = arith.negf %1168 : vector<8x64xf32>
    %1170 = math.exp %1169 : vector<8x64xf32>
    %cst_366 = arith.constant 1.000000e+00 : f32
    %1171 = vector.broadcast %cst_366 : f32 to vector<8x64xf32>
    %1172 = arith.addf %1171, %1170 : vector<8x64xf32>
    %1173 = arith.divf %1171, %1172 : vector<8x64xf32>
    %1174 = vector.extract_strided_slice %1161 {offsets = [0, 128], sizes = [8, 64], strides = [1, 1]} : vector<8x256xf32> to vector<8x64xf32>
    %1175 = math.tanh %1174 : vector<8x64xf32>
    %1176 = vector.extract_strided_slice %1161 {offsets = [0, 192], sizes = [8, 64], strides = [1, 1]} : vector<8x256xf32> to vector<8x64xf32>
    %1177 = arith.negf %1176 : vector<8x64xf32>
    %1178 = math.exp %1177 : vector<8x64xf32>
    %cst_367 = arith.constant 1.000000e+00 : f32
    %1179 = vector.broadcast %cst_367 : f32 to vector<8x64xf32>
    %1180 = arith.addf %1179, %1178 : vector<8x64xf32>
    %1181 = arith.divf %1179, %1180 : vector<8x64xf32>
    %1182 = arith.mulf %1173, %1156 : vector<8x64xf32>
    %1183 = arith.mulf %1167, %1175 : vector<8x64xf32>
    %1184 = arith.addf %1182, %1183 : vector<8x64xf32>
    %1185 = math.tanh %1184 : vector<8x64xf32>
    %1186 = arith.mulf %1181, %1185 : vector<8x64xf32>
    %c1_i32_368 = arith.constant 1 : i32
    %1187 = arith.index_cast %c1_i32_368 : i32 to index
    %c0_369 = arith.constant 0 : index
    %c0_370 = arith.constant 0 : index
    %1188 = vector.load %arg7[%1187, %c0_369, %c0_370] : memref<8x8x256xf32, #tpu.memory_space<vmem>>, vector<1x8x256xf32>
    %1189 = vector.shape_cast %1188 : vector<1x8x256xf32> to vector<8x256xf32>
    %cst_371 = arith.constant dense<0.000000e+00> : vector<8x256xf32>
    %1190 = tpu.matmul %1186, %1155, %cst_371 {dimension_numbers = #tpu.dot_dimension_numbers<[1], [0], [0], [1], [0, 0, 1, 1], [], []>} : vector<8x64xf32>, vector<64x256xf32>, vector<8x256xf32> -> vector<8x256xf32>
    %1191 = arith.addf %1189, %1190 : vector<8x256xf32>
    %1192 = vector.extract_strided_slice %1191 {offsets = [0, 0], sizes = [8, 64], strides = [1, 1]} : vector<8x256xf32> to vector<8x64xf32>
    %1193 = arith.negf %1192 : vector<8x64xf32>
    %1194 = math.exp %1193 : vector<8x64xf32>
    %cst_372 = arith.constant 1.000000e+00 : f32
    %1195 = vector.broadcast %cst_372 : f32 to vector<8x64xf32>
    %1196 = arith.addf %1195, %1194 : vector<8x64xf32>
    %1197 = arith.divf %1195, %1196 : vector<8x64xf32>
    %1198 = vector.extract_strided_slice %1191 {offsets = [0, 64], sizes = [8, 64], strides = [1, 1]} : vector<8x256xf32> to vector<8x64xf32>
    %1199 = arith.negf %1198 : vector<8x64xf32>
    %1200 = math.exp %1199 : vector<8x64xf32>
    %cst_373 = arith.constant 1.000000e+00 : f32
    %1201 = vector.broadcast %cst_373 : f32 to vector<8x64xf32>
    %1202 = arith.addf %1201, %1200 : vector<8x64xf32>
    %1203 = arith.divf %1201, %1202 : vector<8x64xf32>
    %1204 = vector.extract_strided_slice %1191 {offsets = [0, 128], sizes = [8, 64], strides = [1, 1]} : vector<8x256xf32> to vector<8x64xf32>
    %1205 = math.tanh %1204 : vector<8x64xf32>
    %1206 = vector.extract_strided_slice %1191 {offsets = [0, 192], sizes = [8, 64], strides = [1, 1]} : vector<8x256xf32> to vector<8x64xf32>
    %1207 = arith.negf %1206 : vector<8x64xf32>
    %1208 = math.exp %1207 : vector<8x64xf32>
    %cst_374 = arith.constant 1.000000e+00 : f32
    %1209 = vector.broadcast %cst_374 : f32 to vector<8x64xf32>
    %1210 = arith.addf %1209, %1208 : vector<8x64xf32>
    %1211 = arith.divf %1209, %1210 : vector<8x64xf32>
    %1212 = arith.mulf %1203, %1184 : vector<8x64xf32>
    %1213 = arith.mulf %1197, %1205 : vector<8x64xf32>
    %1214 = arith.addf %1212, %1213 : vector<8x64xf32>
    %1215 = math.tanh %1214 : vector<8x64xf32>
    %1216 = arith.mulf %1211, %1215 : vector<8x64xf32>
    %c2_i32_375 = arith.constant 2 : i32
    %1217 = arith.index_cast %c2_i32_375 : i32 to index
    %c0_376 = arith.constant 0 : index
    %c0_377 = arith.constant 0 : index
    %1218 = vector.load %arg7[%1217, %c0_376, %c0_377] : memref<8x8x256xf32, #tpu.memory_space<vmem>>, vector<1x8x256xf32>
    %1219 = vector.shape_cast %1218 : vector<1x8x256xf32> to vector<8x256xf32>
    %cst_378 = arith.constant dense<0.000000e+00> : vector<8x256xf32>
    %1220 = tpu.matmul %1216, %1155, %cst_378 {dimension_numbers = #tpu.dot_dimension_numbers<[1], [0], [0], [1], [0, 0, 1, 1], [], []>} : vector<8x64xf32>, vector<64x256xf32>, vector<8x256xf32> -> vector<8x256xf32>
    %1221 = arith.addf %1219, %1220 : vector<8x256xf32>
    %1222 = vector.extract_strided_slice %1221 {offsets = [0, 0], sizes = [8, 64], strides = [1, 1]} : vector<8x256xf32> to vector<8x64xf32>
    %1223 = arith.negf %1222 : vector<8x64xf32>
    %1224 = math.exp %1223 : vector<8x64xf32>
    %cst_379 = arith.constant 1.000000e+00 : f32
    %1225 = vector.broadcast %cst_379 : f32 to vector<8x64xf32>
    %1226 = arith.addf %1225, %1224 : vector<8x64xf32>
    %1227 = arith.divf %1225, %1226 : vector<8x64xf32>
    %1228 = vector.extract_strided_slice %1221 {offsets = [0, 64], sizes = [8, 64], strides = [1, 1]} : vector<8x256xf32> to vector<8x64xf32>
    %1229 = arith.negf %1228 : vector<8x64xf32>
    %1230 = math.exp %1229 : vector<8x64xf32>
    %cst_380 = arith.constant 1.000000e+00 : f32
    %1231 = vector.broadcast %cst_380 : f32 to vector<8x64xf32>
    %1232 = arith.addf %1231, %1230 : vector<8x64xf32>
    %1233 = arith.divf %1231, %1232 : vector<8x64xf32>
    %1234 = vector.extract_strided_slice %1221 {offsets = [0, 128], sizes = [8, 64], strides = [1, 1]} : vector<8x256xf32> to vector<8x64xf32>
    %1235 = math.tanh %1234 : vector<8x64xf32>
    %1236 = vector.extract_strided_slice %1221 {offsets = [0, 192], sizes = [8, 64], strides = [1, 1]} : vector<8x256xf32> to vector<8x64xf32>
    %1237 = arith.negf %1236 : vector<8x64xf32>
    %1238 = math.exp %1237 : vector<8x64xf32>
    %cst_381 = arith.constant 1.000000e+00 : f32
    %1239 = vector.broadcast %cst_381 : f32 to vector<8x64xf32>
    %1240 = arith.addf %1239, %1238 : vector<8x64xf32>
    %1241 = arith.divf %1239, %1240 : vector<8x64xf32>
    %1242 = arith.mulf %1233, %1214 : vector<8x64xf32>
    %1243 = arith.mulf %1227, %1235 : vector<8x64xf32>
    %1244 = arith.addf %1242, %1243 : vector<8x64xf32>
    %1245 = math.tanh %1244 : vector<8x64xf32>
    %1246 = arith.mulf %1241, %1245 : vector<8x64xf32>
    %c3_i32_382 = arith.constant 3 : i32
    %1247 = arith.index_cast %c3_i32_382 : i32 to index
    %c0_383 = arith.constant 0 : index
    %c0_384 = arith.constant 0 : index
    %1248 = vector.load %arg7[%1247, %c0_383, %c0_384] : memref<8x8x256xf32, #tpu.memory_space<vmem>>, vector<1x8x256xf32>
    %1249 = vector.shape_cast %1248 : vector<1x8x256xf32> to vector<8x256xf32>
    %cst_385 = arith.constant dense<0.000000e+00> : vector<8x256xf32>
    %1250 = tpu.matmul %1246, %1155, %cst_385 {dimension_numbers = #tpu.dot_dimension_numbers<[1], [0], [0], [1], [0, 0, 1, 1], [], []>} : vector<8x64xf32>, vector<64x256xf32>, vector<8x256xf32> -> vector<8x256xf32>
    %1251 = arith.addf %1249, %1250 : vector<8x256xf32>
    %1252 = vector.extract_strided_slice %1251 {offsets = [0, 0], sizes = [8, 64], strides = [1, 1]} : vector<8x256xf32> to vector<8x64xf32>
    %1253 = arith.negf %1252 : vector<8x64xf32>
    %1254 = math.exp %1253 : vector<8x64xf32>
    %cst_386 = arith.constant 1.000000e+00 : f32
    %1255 = vector.broadcast %cst_386 : f32 to vector<8x64xf32>
    %1256 = arith.addf %1255, %1254 : vector<8x64xf32>
    %1257 = arith.divf %1255, %1256 : vector<8x64xf32>
    %1258 = vector.extract_strided_slice %1251 {offsets = [0, 64], sizes = [8, 64], strides = [1, 1]} : vector<8x256xf32> to vector<8x64xf32>
    %1259 = arith.negf %1258 : vector<8x64xf32>
    %1260 = math.exp %1259 : vector<8x64xf32>
    %cst_387 = arith.constant 1.000000e+00 : f32
    %1261 = vector.broadcast %cst_387 : f32 to vector<8x64xf32>
    %1262 = arith.addf %1261, %1260 : vector<8x64xf32>
    %1263 = arith.divf %1261, %1262 : vector<8x64xf32>
    %1264 = vector.extract_strided_slice %1251 {offsets = [0, 128], sizes = [8, 64], strides = [1, 1]} : vector<8x256xf32> to vector<8x64xf32>
    %1265 = math.tanh %1264 : vector<8x64xf32>
    %1266 = vector.extract_strided_slice %1251 {offsets = [0, 192], sizes = [8, 64], strides = [1, 1]} : vector<8x256xf32> to vector<8x64xf32>
    %1267 = arith.negf %1266 : vector<8x64xf32>
    %1268 = math.exp %1267 : vector<8x64xf32>
    %cst_388 = arith.constant 1.000000e+00 : f32
    %1269 = vector.broadcast %cst_388 : f32 to vector<8x64xf32>
    %1270 = arith.addf %1269, %1268 : vector<8x64xf32>
    %1271 = arith.divf %1269, %1270 : vector<8x64xf32>
    %1272 = arith.mulf %1263, %1244 : vector<8x64xf32>
    %1273 = arith.mulf %1257, %1265 : vector<8x64xf32>
    %1274 = arith.addf %1272, %1273 : vector<8x64xf32>
    %1275 = math.tanh %1274 : vector<8x64xf32>
    %1276 = arith.mulf %1271, %1275 : vector<8x64xf32>
    %c4_i32_389 = arith.constant 4 : i32
    %1277 = arith.index_cast %c4_i32_389 : i32 to index
    %c0_390 = arith.constant 0 : index
    %c0_391 = arith.constant 0 : index
    %1278 = vector.load %arg7[%1277, %c0_390, %c0_391] : memref<8x8x256xf32, #tpu.memory_space<vmem>>, vector<1x8x256xf32>
    %1279 = vector.shape_cast %1278 : vector<1x8x256xf32> to vector<8x256xf32>
    %cst_392 = arith.constant dense<0.000000e+00> : vector<8x256xf32>
    %1280 = tpu.matmul %1276, %1155, %cst_392 {dimension_numbers = #tpu.dot_dimension_numbers<[1], [0], [0], [1], [0, 0, 1, 1], [], []>} : vector<8x64xf32>, vector<64x256xf32>, vector<8x256xf32> -> vector<8x256xf32>
    %1281 = arith.addf %1279, %1280 : vector<8x256xf32>
    %1282 = vector.extract_strided_slice %1281 {offsets = [0, 0], sizes = [8, 64], strides = [1, 1]} : vector<8x256xf32> to vector<8x64xf32>
    %1283 = arith.negf %1282 : vector<8x64xf32>
    %1284 = math.exp %1283 : vector<8x64xf32>
    %cst_393 = arith.constant 1.000000e+00 : f32
    %1285 = vector.broadcast %cst_393 : f32 to vector<8x64xf32>
    %1286 = arith.addf %1285, %1284 : vector<8x64xf32>
    %1287 = arith.divf %1285, %1286 : vector<8x64xf32>
    %1288 = vector.extract_strided_slice %1281 {offsets = [0, 64], sizes = [8, 64], strides = [1, 1]} : vector<8x256xf32> to vector<8x64xf32>
    %1289 = arith.negf %1288 : vector<8x64xf32>
    %1290 = math.exp %1289 : vector<8x64xf32>
    %cst_394 = arith.constant 1.000000e+00 : f32
    %1291 = vector.broadcast %cst_394 : f32 to vector<8x64xf32>
    %1292 = arith.addf %1291, %1290 : vector<8x64xf32>
    %1293 = arith.divf %1291, %1292 : vector<8x64xf32>
    %1294 = vector.extract_strided_slice %1281 {offsets = [0, 128], sizes = [8, 64], strides = [1, 1]} : vector<8x256xf32> to vector<8x64xf32>
    %1295 = math.tanh %1294 : vector<8x64xf32>
    %1296 = vector.extract_strided_slice %1281 {offsets = [0, 192], sizes = [8, 64], strides = [1, 1]} : vector<8x256xf32> to vector<8x64xf32>
    %1297 = arith.negf %1296 : vector<8x64xf32>
    %1298 = math.exp %1297 : vector<8x64xf32>
    %cst_395 = arith.constant 1.000000e+00 : f32
    %1299 = vector.broadcast %cst_395 : f32 to vector<8x64xf32>
    %1300 = arith.addf %1299, %1298 : vector<8x64xf32>
    %1301 = arith.divf %1299, %1300 : vector<8x64xf32>
    %1302 = arith.mulf %1293, %1274 : vector<8x64xf32>
    %1303 = arith.mulf %1287, %1295 : vector<8x64xf32>
    %1304 = arith.addf %1302, %1303 : vector<8x64xf32>
    %1305 = math.tanh %1304 : vector<8x64xf32>
    %1306 = arith.mulf %1301, %1305 : vector<8x64xf32>
    %c5_i32_396 = arith.constant 5 : i32
    %1307 = arith.index_cast %c5_i32_396 : i32 to index
    %c0_397 = arith.constant 0 : index
    %c0_398 = arith.constant 0 : index
    %1308 = vector.load %arg7[%1307, %c0_397, %c0_398] : memref<8x8x256xf32, #tpu.memory_space<vmem>>, vector<1x8x256xf32>
    %1309 = vector.shape_cast %1308 : vector<1x8x256xf32> to vector<8x256xf32>
    %cst_399 = arith.constant dense<0.000000e+00> : vector<8x256xf32>
    %1310 = tpu.matmul %1306, %1155, %cst_399 {dimension_numbers = #tpu.dot_dimension_numbers<[1], [0], [0], [1], [0, 0, 1, 1], [], []>} : vector<8x64xf32>, vector<64x256xf32>, vector<8x256xf32> -> vector<8x256xf32>
    %1311 = arith.addf %1309, %1310 : vector<8x256xf32>
    %1312 = vector.extract_strided_slice %1311 {offsets = [0, 0], sizes = [8, 64], strides = [1, 1]} : vector<8x256xf32> to vector<8x64xf32>
    %1313 = arith.negf %1312 : vector<8x64xf32>
    %1314 = math.exp %1313 : vector<8x64xf32>
    %cst_400 = arith.constant 1.000000e+00 : f32
    %1315 = vector.broadcast %cst_400 : f32 to vector<8x64xf32>
    %1316 = arith.addf %1315, %1314 : vector<8x64xf32>
    %1317 = arith.divf %1315, %1316 : vector<8x64xf32>
    %1318 = vector.extract_strided_slice %1311 {offsets = [0, 64], sizes = [8, 64], strides = [1, 1]} : vector<8x256xf32> to vector<8x64xf32>
    %1319 = arith.negf %1318 : vector<8x64xf32>
    %1320 = math.exp %1319 : vector<8x64xf32>
    %cst_401 = arith.constant 1.000000e+00 : f32
    %1321 = vector.broadcast %cst_401 : f32 to vector<8x64xf32>
    %1322 = arith.addf %1321, %1320 : vector<8x64xf32>
    %1323 = arith.divf %1321, %1322 : vector<8x64xf32>
    %1324 = vector.extract_strided_slice %1311 {offsets = [0, 128], sizes = [8, 64], strides = [1, 1]} : vector<8x256xf32> to vector<8x64xf32>
    %1325 = math.tanh %1324 : vector<8x64xf32>
    %1326 = vector.extract_strided_slice %1311 {offsets = [0, 192], sizes = [8, 64], strides = [1, 1]} : vector<8x256xf32> to vector<8x64xf32>
    %1327 = arith.negf %1326 : vector<8x64xf32>
    %1328 = math.exp %1327 : vector<8x64xf32>
    %cst_402 = arith.constant 1.000000e+00 : f32
    %1329 = vector.broadcast %cst_402 : f32 to vector<8x64xf32>
    %1330 = arith.addf %1329, %1328 : vector<8x64xf32>
    %1331 = arith.divf %1329, %1330 : vector<8x64xf32>
    %1332 = arith.mulf %1323, %1304 : vector<8x64xf32>
    %1333 = arith.mulf %1317, %1325 : vector<8x64xf32>
    %1334 = arith.addf %1332, %1333 : vector<8x64xf32>
    %1335 = math.tanh %1334 : vector<8x64xf32>
    %1336 = arith.mulf %1331, %1335 : vector<8x64xf32>
    %c6_i32_403 = arith.constant 6 : i32
    %1337 = arith.index_cast %c6_i32_403 : i32 to index
    %c0_404 = arith.constant 0 : index
    %c0_405 = arith.constant 0 : index
    %1338 = vector.load %arg7[%1337, %c0_404, %c0_405] : memref<8x8x256xf32, #tpu.memory_space<vmem>>, vector<1x8x256xf32>
    %1339 = vector.shape_cast %1338 : vector<1x8x256xf32> to vector<8x256xf32>
    %cst_406 = arith.constant dense<0.000000e+00> : vector<8x256xf32>
    %1340 = tpu.matmul %1336, %1155, %cst_406 {dimension_numbers = #tpu.dot_dimension_numbers<[1], [0], [0], [1], [0, 0, 1, 1], [], []>} : vector<8x64xf32>, vector<64x256xf32>, vector<8x256xf32> -> vector<8x256xf32>
    %1341 = arith.addf %1339, %1340 : vector<8x256xf32>
    %1342 = vector.extract_strided_slice %1341 {offsets = [0, 0], sizes = [8, 64], strides = [1, 1]} : vector<8x256xf32> to vector<8x64xf32>
    %1343 = arith.negf %1342 : vector<8x64xf32>
    %1344 = math.exp %1343 : vector<8x64xf32>
    %cst_407 = arith.constant 1.000000e+00 : f32
    %1345 = vector.broadcast %cst_407 : f32 to vector<8x64xf32>
    %1346 = arith.addf %1345, %1344 : vector<8x64xf32>
    %1347 = arith.divf %1345, %1346 : vector<8x64xf32>
    %1348 = vector.extract_strided_slice %1341 {offsets = [0, 64], sizes = [8, 64], strides = [1, 1]} : vector<8x256xf32> to vector<8x64xf32>
    %1349 = arith.negf %1348 : vector<8x64xf32>
    %1350 = math.exp %1349 : vector<8x64xf32>
    %cst_408 = arith.constant 1.000000e+00 : f32
    %1351 = vector.broadcast %cst_408 : f32 to vector<8x64xf32>
    %1352 = arith.addf %1351, %1350 : vector<8x64xf32>
    %1353 = arith.divf %1351, %1352 : vector<8x64xf32>
    %1354 = vector.extract_strided_slice %1341 {offsets = [0, 128], sizes = [8, 64], strides = [1, 1]} : vector<8x256xf32> to vector<8x64xf32>
    %1355 = math.tanh %1354 : vector<8x64xf32>
    %1356 = vector.extract_strided_slice %1341 {offsets = [0, 192], sizes = [8, 64], strides = [1, 1]} : vector<8x256xf32> to vector<8x64xf32>
    %1357 = arith.negf %1356 : vector<8x64xf32>
    %1358 = math.exp %1357 : vector<8x64xf32>
    %cst_409 = arith.constant 1.000000e+00 : f32
    %1359 = vector.broadcast %cst_409 : f32 to vector<8x64xf32>
    %1360 = arith.addf %1359, %1358 : vector<8x64xf32>
    %1361 = arith.divf %1359, %1360 : vector<8x64xf32>
    %1362 = arith.mulf %1353, %1334 : vector<8x64xf32>
    %1363 = arith.mulf %1347, %1355 : vector<8x64xf32>
    %1364 = arith.addf %1362, %1363 : vector<8x64xf32>
    %1365 = math.tanh %1364 : vector<8x64xf32>
    %1366 = arith.mulf %1361, %1365 : vector<8x64xf32>
    %c7_i32_410 = arith.constant 7 : i32
    %1367 = arith.index_cast %c7_i32_410 : i32 to index
    %c0_411 = arith.constant 0 : index
    %c0_412 = arith.constant 0 : index
    %1368 = vector.load %arg7[%1367, %c0_411, %c0_412] : memref<8x8x256xf32, #tpu.memory_space<vmem>>, vector<1x8x256xf32>
    %1369 = vector.shape_cast %1368 : vector<1x8x256xf32> to vector<8x256xf32>
    %cst_413 = arith.constant dense<0.000000e+00> : vector<8x256xf32>
    %1370 = tpu.matmul %1366, %1155, %cst_413 {dimension_numbers = #tpu.dot_dimension_numbers<[1], [0], [0], [1], [0, 0, 1, 1], [], []>} : vector<8x64xf32>, vector<64x256xf32>, vector<8x256xf32> -> vector<8x256xf32>
    %1371 = arith.addf %1369, %1370 : vector<8x256xf32>
    %1372 = vector.extract_strided_slice %1371 {offsets = [0, 0], sizes = [8, 64], strides = [1, 1]} : vector<8x256xf32> to vector<8x64xf32>
    %1373 = arith.negf %1372 : vector<8x64xf32>
    %1374 = math.exp %1373 : vector<8x64xf32>
    %cst_414 = arith.constant 1.000000e+00 : f32
    %1375 = vector.broadcast %cst_414 : f32 to vector<8x64xf32>
    %1376 = arith.addf %1375, %1374 : vector<8x64xf32>
    %1377 = arith.divf %1375, %1376 : vector<8x64xf32>
    %1378 = vector.extract_strided_slice %1371 {offsets = [0, 64], sizes = [8, 64], strides = [1, 1]} : vector<8x256xf32> to vector<8x64xf32>
    %1379 = arith.negf %1378 : vector<8x64xf32>
    %1380 = math.exp %1379 : vector<8x64xf32>
    %cst_415 = arith.constant 1.000000e+00 : f32
    %1381 = vector.broadcast %cst_415 : f32 to vector<8x64xf32>
    %1382 = arith.addf %1381, %1380 : vector<8x64xf32>
    %1383 = arith.divf %1381, %1382 : vector<8x64xf32>
    %1384 = vector.extract_strided_slice %1371 {offsets = [0, 128], sizes = [8, 64], strides = [1, 1]} : vector<8x256xf32> to vector<8x64xf32>
    %1385 = math.tanh %1384 : vector<8x64xf32>
    %1386 = vector.extract_strided_slice %1371 {offsets = [0, 192], sizes = [8, 64], strides = [1, 1]} : vector<8x256xf32> to vector<8x64xf32>
    %1387 = arith.negf %1386 : vector<8x64xf32>
    %1388 = math.exp %1387 : vector<8x64xf32>
    %cst_416 = arith.constant 1.000000e+00 : f32
    %1389 = vector.broadcast %cst_416 : f32 to vector<8x64xf32>
    %1390 = arith.addf %1389, %1388 : vector<8x64xf32>
    %1391 = arith.divf %1389, %1390 : vector<8x64xf32>
    %1392 = arith.mulf %1383, %1364 : vector<8x64xf32>
    %1393 = arith.mulf %1377, %1385 : vector<8x64xf32>
    %1394 = arith.addf %1392, %1393 : vector<8x64xf32>
    %1395 = math.tanh %1394 : vector<8x64xf32>
    %1396 = arith.mulf %1391, %1395 : vector<8x64xf32>
    %c8_i32_417 = arith.constant 8 : i32
    %c0_418 = arith.constant 0 : index
    %c0_419 = arith.constant 0 : index
    %1397 = vector.load %arg6[%c0_418, %c0_419] : memref<8x64xf32, #tpu.memory_space<vmem>>, vector<8x64xf32>
    tpu.vector_store %arg6[%c0_418, %c0_419], %1396 {strides = array<i32>} : memref<8x64xf32, #tpu.memory_space<vmem>>, vector<8x64xf32>,
    return
  }
  func.func @transform_0(%arg0: i32) -> (i32, i32, i32) {
    %c0_i32 = arith.constant 0 : i32
    %c0_i32_0 = arith.constant 0 : i32
    %c0_i32_1 = arith.constant 0 : i32
    %c0_i32_2 = arith.constant 0 : i32
    return %c0_i32, %c0_i32_0, %c0_i32_1 : i32, i32, i32
  }
  func.func @transform_1(%arg0: i32) -> (i32, i32) {
    %c0_i32 = arith.constant 0 : i32
    %c0_i32_0 = arith.constant 0 : i32
    %c0_i32_1 = arith.constant 0 : i32
    return %c0_i32, %c0_i32_0 : i32, i32
  }
  func.func @transform_2(%arg0: i32) -> (i32, i32, i32) {
    %c0_i32 = arith.constant 0 : i32
    %c0_i32_0 = arith.constant 0 : i32
    %c0_i32_1 = arith.constant 0 : i32
    %c0_i32_2 = arith.constant 0 : i32
    return %c0_i32, %c0_i32_0, %c0_i32_1 : i32, i32, i32
  }
  func.func @transform_3(%arg0: i32) -> (i32, i32, i32) {
    %c0_i32 = arith.constant 0 : i32
    %c0_i32_0 = arith.constant 0 : i32
    %c0_i32_1 = arith.constant 0 : i32
    %c0_i32_2 = arith.constant 0 : i32
    return %c0_i32, %c0_i32_0, %c0_i32_1 : i32, i32, i32
  }
  func.func @transform_4(%arg0: i32) -> (i32, i32, i32) {
    %c0_i32 = arith.constant 0 : i32
    %c0_i32_0 = arith.constant 0 : i32
    %c0_i32_1 = arith.constant 0 : i32
    %c0_i32_2 = arith.constant 0 : i32
    return %c0_i32, %c0_i32_0, %c0_i32_1 : i32, i32, i32
  }
  func.func @transform_5(%arg0: i32) -> (i32, i32) {
    %c0_i32 = arith.constant 0 : i32
    %c0_i32_0 = arith.constant 0 : i32
    %c0_i32_1 = arith.constant 0 : i32
    return %c0_i32, %c0_i32_0 : i32, i32
  }
}

</mosaic_0001>

<bundles_post_ra>
// kernel: lstm_forward.1
= control target key start
LH: loop header
LB: loop body
LE: loop exit
PB: predicated region body
PF: predicated region fallthrough
CT: control target
= control target key end

     0   :  { %10 = vsyncpa [#allocation5], 0  ;;  %s7169_s0 = inlined_call_operand.vmem [shape: f32[8,8,20], index: 0, kind: input, shape index: {}]   ;;  %s7170_s1 = inlined_call_operand.vmem [shape: f32[20,256], index: 1, kind: input, shape index: {}]   ;;  %s7171_s2 = inlined_call_operand.hbm [shape: f32[4,64,256], index: 2, kind: input, shape index: {}]   ;;  %s7172_s3 = inlined_call_operand.hbm [shape: f32[5,64,256], index: 3, kind: input, shape index: {}]   ;;  %s7173_s4 = inlined_call_operand.vmem [shape: f32[5,1,256], index: 4, kind: input, shape index: {}]   ;;  %s7174_s5 = inlined_call_operand.vmem [shape: f32[8,64], index: 5, kind: output, shape index: {}]  }
   0x1   :  { %s20_s20 = sshll.u32 %s7171_s2, 4  ;;  %s21_s20 = int_to_ptr.hbm [resolvable:$true] %s20_s20 }
   0x2   :  { %11 = vsyncpa [#allocation7], 0  ;;  %s5635_s21 = smov [#allocation4]   ;;  %s33_s25 = sshll.u32 %s7172_s3, 4  ;;  %s34_s25 = int_to_ptr.hbm [resolvable:$true] %s33_s25 }
   0x3   :  { %s22_s22 = sshll.u32 %s5635_s21, 4  ;;  %s5636_s26 = smov 256   ;;  %s23_s22 = int_to_ptr.vmem [resolvable:$true] %s22_s22 }
   0x4   :  { %s5637_s27 = smov 16   ;;  %s5638_s28 = smov [#allocation6]  }
   0x5   :  { %28 = dma.hbm_to_vmem [thread:$0]  %s21_s20, 8192, %s23_s22, [#allocation5], %s5636_s26, %s5636_s26, %s5637_s27  }
   0x6   :  { %s35_s29 = sshll.u32 %s5638_s28, 4  ;;  %s36_s29 = int_to_ptr.vmem [resolvable:$true] %s35_s29 }
   0x7   :  { %41 = dma.hbm_to_vmem [thread:$0]  %s34_s25, 10240, %s36_s29, [#allocation7], %s5636_s26, %s5636_s26, %s5637_s27  }
   0x8   :  { %5631 = dma.done.wait [#allocation5], 8192  }
   0x9   :  { %5632 = vsyncadd [#allocation5], 4294959104 }
   0xa   :  { %5633 = dma.done.wait [#allocation7], 10240  }
   0xb   :  { %5634 = vsyncadd [#allocation7], 4294957056  ;;  %v5677_v0 = vld [vmem:[#allocation6 + $0x70] sm:$0xff]  ;;  %v5679_v1 = vld [vmem:[#allocation6 + $0x60] sm:$0xff]  ;;  %vm97_vm0 = vcmask 1043456   ;;  %vm72_vm1 = vcmask 162816  }
   0xc   :  { %232 = vmatpush.msra.mxu2 %v5677_v0  ;;  %v5682_v2 = vld [vmem:[#allocation6 + $0x78] sm:$0xff]  ;;  %v5684_v3 = vld [vmem:[#allocation6 + $0x50] sm:$0xff]  ;;  %v5687_v4 = vld [vmem:[#allocation6 + $0x68] sm:$0xff]  ;;  %v5639_v23 = vmov 0.0   ;;  %s5640_s18 = smov 64   ;;  %vm220_vm10 = vcmask 523264  }
   0xd   :  { %252 = vmatpush.msra.mxu3 %v5682_v2  ;;  %v5690_v5 = vld [vmem:[#allocation6 + $0x58] sm:$0xff]  ;;  %v64_v6 = vld [vmem:[%s7170_s1 + $0x20] sm:$0xf]  ;;  %v62_v8 = vld [vmem:[%s7170_s1 + $0x10] sm:$0xff] }
   0xe   :  { %233 = vmatpush.msra.mxu2 %v5679_v1  ;;  %v5695_v7 = vld [vmem:[#allocation6 + $0x40] sm:$0xff]  ;;  %4861 = vmatpush.msk.msra.mxu0 %vm97_vm0, %v64_v6  ;;  %v5703_v9 = vld [vmem:[#allocation6 + $0x48] sm:$0xff]  ;;  %v5708_v11 = vld [vmem:[#allocation6 + $0x30] sm:$0xff] }
   0xf   :  { %253 = vmatpush.msra.mxu3 %v5687_v4  ;;  %v60_v10 = vld [vmem:[%s7170_s1] sm:$0xff]  ;;  %v65_v13 = vld [vmem:[%s7170_s1 + $0x28] sm:$0xf]  ;;  %v5718_v14 = vld [vmem:[#allocation6 + $0x38] sm:$0xff] }
  0x10   :  { %234 = vmatpush.msra.mxu2 %v5684_v3  ;;  %118 = vmatpush.msra.mxu0 %v62_v8  ;;  %v52_v12 = vld [vmem:[%s7169_s0] sm:$0xff]  ;;  %v63_v15 = vld [vmem:[%s7170_s1 + $0x18] sm:$0xff]  ;;  %v5728_v17 = vld [vmem:[#allocation6 + $0x28] sm:$0xff] }
  0x11   :  { %254 = vmatpush.msra.mxu3 %v5690_v5  ;;  %4870 = vmatpush.msk.msra.mxu1 %vm97_vm0, %v65_v13  ;;  %v5724_v16 = vld [vmem:[#allocation6 + $0x20] sm:$0xff]  ;;  %v61_v18 = vld [vmem:[%s7170_s1 + $0x8] sm:$0xff]  ;;  %v5734_v19 = vld [vmem:[#allocation6 + $0x10] sm:$0xff] }
  0x12   :  { %235 = vmatpush.msra.mxu2 %v5695_v7  ;;  %119 = vmatpush.msra.mxu0 %v60_v10  ;;  %v5738_v20 = vld [vmem:[#allocation6 + $0x18] sm:$0xff]  ;;  %v5741_v21 = vld [vmem:[#allocation6] sm:$0xff]  ;;  %v5745_v22 = vld [vmem:[#allocation6 + $0x8] sm:$0xff] }
  0x13   :  { %255 = vmatpush.msra.mxu3 %v5703_v9  ;;  %4862 = vmatmul.msk.f32.vlgmr.msra.gmra.mxu0 %vm72_vm1, %v52_v12  ;;  %v66_v24 = vld [vmem:[%s7173_s4] sm:$0x3]  ;;  %v53_v13 = vld [vmem:[%s7169_s0 + $0x8] sm:$0xff] }
  0x14   :  { %236 = vmatpush.msra.mxu2 %v5708_v11  ;;  %159 = vmatpush.msra.mxu1 %v63_v15  ;;  %v5819_v25 = vperm.slane %v66_v24, 0  ;;  %v5822_v33 = vperm.slane %v66_v24, 1 }
  0x15   :  { %256 = vmatpush.msra.mxu3 %v5718_v14  ;;  %635 = vmatpush.msrb.mxu0 %v5677_v0 }
  0x16   :  { %237 = vmatpush.msra.mxu2 %v5724_v16  ;;  %160 = vmatpush.msra.mxu1 %v61_v18 }
  0x17   :  { %257 = vmatpush.msra.mxu3 %v5728_v17  ;;  %4871 = vmatmul.msk.f32.vlgmr.msra.gmra.mxu1 %vm72_vm1, %v52_v12 }
  0x18   :  { %238 = vmatpush.msra.mxu2 %v5734_v19  ;;  %636 = vmatpush.msrb.mxu0 %v5679_v1 }
  0x19   :  { %258 = vmatpush.msra.mxu3 %v5738_v20  ;;  %655 = vmatpush.msrb.mxu1 %v5682_v2 }
  0x1a   :  { %239 = vmatpush.msra.mxu2 %v5741_v21  ;;  %637 = vmatpush.msrb.mxu0 %v5684_v3 }
  0x1b   :  { %240 = vmatmul.f32.vlgmr.msra.gmra.mxu2 %v5639_v23  ;;  %259 = vmatpush.msra.mxu3 %v5745_v22 }
  0x1c   :  { %260 = vmatmul.f32.vlgmr.msra.gmra.mxu3 %v5639_v23  ;;  %332 = vmatpush.msrb.mxu2 %v5677_v0 }
  0x1d   :  { %352 = vmatpush.msrb.mxu3 %v5682_v2  ;;  %656 = vmatpush.msrb.mxu1 %v5687_v4 }
  0x1e   :  { %333 = vmatpush.msrb.mxu2 %v5679_v1  ;;  %638 = vmatpush.msrb.mxu0 %v5695_v7 }
  0x1f   :  { %353 = vmatpush.msrb.mxu3 %v5687_v4  ;;  %657 = vmatpush.msrb.mxu1 %v5690_v5 }
  0x20   :  { %334 = vmatpush.msrb.mxu2 %v5684_v3  ;;  %639 = vmatpush.msrb.mxu0 %v5708_v11 }
  0x21   :  { %354 = vmatpush.msrb.mxu3 %v5690_v5  ;;  %658 = vmatpush.msrb.mxu1 %v5703_v9 }
  0x22   :  { %335 = vmatpush.msrb.mxu2 %v5695_v7  ;;  %640 = vmatpush.msrb.mxu0 %v5724_v16 }
  0x23   :  { %355 = vmatpush.msrb.mxu3 %v5703_v9  ;;  %659 = vmatpush.msrb.mxu1 %v5718_v14 }
  0x24   :  { %336 = vmatpush.msrb.mxu2 %v5708_v11  ;;  %641 = vmatpush.msrb.mxu0 %v5734_v19 }
  0x25   :  { %356 = vmatpush.msrb.mxu3 %v5718_v14  ;;  %660 = vmatpush.msrb.mxu1 %v5728_v17 }
  0x26   :  { %337 = vmatpush.msrb.mxu2 %v5724_v16  ;;  %642 = vmatpush.msrb.mxu0 %v5741_v21 }
  0x27   :  { %357 = vmatpush.msrb.mxu3 %v5728_v17  ;;  %661 = vmatpush.msrb.mxu1 %v5738_v20 }
  0x28   :  { %338 = vmatpush.msrb.mxu2 %v5734_v19  ;;  %837 = vmatpush.msra.mxu0 %v5677_v0 }
  0x29   :  { %358 = vmatpush.msrb.mxu3 %v5738_v20  ;;  %662 = vmatpush.msrb.mxu1 %v5745_v22 }
  0x2a   :  { %339 = vmatpush.msrb.mxu2 %v5741_v21  ;;  %838 = vmatpush.msra.mxu0 %v5679_v1 }
  0x2b   :  { %359 = vmatpush.msrb.mxu3 %v5745_v22  ;;  %857 = vmatpush.msra.mxu1 %v5682_v2 }
  0x2c   :  { %433 = vmatpush.msra.mxu2 %v5677_v0  ;;  %839 = vmatpush.msra.mxu0 %v5684_v3 }
  0x2d   :  { %453 = vmatpush.msra.mxu3 %v5682_v2  ;;  %858 = vmatpush.msra.mxu1 %v5687_v4 }
  0x2e   :  { %434 = vmatpush.msra.mxu2 %v5679_v1  ;;  %840 = vmatpush.msra.mxu0 %v5695_v7 }
  0x2f   :  { %454 = vmatpush.msra.mxu3 %v5687_v4  ;;  %859 = vmatpush.msra.mxu1 %v5690_v5 }
  0x30   :  { %435 = vmatpush.msra.mxu2 %v5684_v3  ;;  %841 = vmatpush.msra.mxu0 %v5708_v11 }
  0x31   :  { %455 = vmatpush.msra.mxu3 %v5690_v5  ;;  %860 = vmatpush.msra.mxu1 %v5703_v9 }
  0x32   :  { %436 = vmatpush.msra.mxu2 %v5695_v7  ;;  %842 = vmatpush.msra.mxu0 %v5724_v16 }
  0x33   :  { %456 = vmatpush.msra.mxu3 %v5703_v9  ;;  %861 = vmatpush.msra.mxu1 %v5718_v14 }
  0x34   :  { %437 = vmatpush.msra.mxu2 %v5708_v11  ;;  %843 = vmatpush.msra.mxu0 %v5734_v19 }
  0x35   :  { %457 = vmatpush.msra.mxu3 %v5718_v14  ;;  %862 = vmatpush.msra.mxu1 %v5728_v17 }
  0x36   :  { %438 = vmatpush.msra.mxu2 %v5724_v16  ;;  %844 = vmatpush.msra.mxu0 %v5741_v21 }
  0x37   :  { %458 = vmatpush.msra.mxu3 %v5728_v17  ;;  %863 = vmatpush.msra.mxu1 %v5738_v20 }
  0x38   :  { %439 = vmatpush.msra.mxu2 %v5734_v19  ;;  %4863 = vmatmul.msk.f32.gmra.mxu0 %vm72_vm1, %v53_v13 }
  0x39   :  { %459 = vmatpush.msra.mxu3 %v5738_v20  ;;  %864 = vmatpush.msra.mxu1 %v5745_v22 }
  0x3a   :  { %440 = vmatpush.msra.mxu2 %v5741_v21  ;;  %4872 = vmatmul.msk.f32.gmra.mxu1 %vm72_vm1, %v53_v13 }
  0x3b   :  { %460 = vmatpush.msra.mxu3 %v5745_v22 }
  0x90   :  { %v121_v26 = vpop.f32.mrf.mxu0 }
  0x91   :  { %v122_v27 = vadd.f32 %v121_v26, %v5819_v25 }
  0x94   :  { %v162_v34 = vpop.f32.mrf.mxu1 }
  0x95   :  { %v163_v35 = vadd.f32 %v162_v34, %v5822_v33 }
  0x9e   :  { %v241_v28 = vpop.f32.mrf.mxu2 }
  0x9f   :  { %v264_v29 = vadd.f32 %v241_v28, %v122_v27  ;;  %v261_v36 = vpop.f32.mrf.mxu3 }
  0xa0   :  { %v265_v38 = vadd.f32 %v261_v36, %v163_v35 }
  0xa1   :  { %v4879_v30 = vmul.f32 -1.442695, %v264_v29 }
  0xa2   :  { %v4880_v50 = vmul.f32 -1.442695, %v265_v38 }
  0xa3   :  { %5103 = vpow2.f32 %v4879_v30 }
  0xa9   :  { %v5104_v31 = vpop.eup %5103 }
  0xaa   :  { %v269_v32 = vadd.f32 1.0, %v5104_v31 }
  0xac   :  { %5105 = vrcp.f32 %v269_v32  ;;  %v281_v41 = vand.u32 2147483648, %v269_v32  ;;  %v279_v43 = vand.u32 2147483647, %v269_v32  ;;  %vm275_vm3 = vweird.f32 %v269_v32 }
  0xad   :  { %5107 = vtanh.f32 %v265_v38 }
  0xae   :  { %v282_v46 = vor.u32 1.1754944e-38, %v281_v41  ;;  %vm280_vm5 = vcmp.eq.f32.partialorder %v279_v43, 8.507059e+37  ;;  %5109 = vpow2.f32 %v4880_v50 }
  0xb2   :  { %v5106_v37 = vpop.eup %5105 }
  0xb3   :  { %v271_v39 = vmul.f32 %v5106_v37, %v269_v32  ;;  %vm276_vm2 = vweird.f32 %v5106_v37  ;;  %v5108_v45 = vpop.eup %5107 }
  0xb4   :  { %vm277_vm4 = vmor %vm275_vm3, %vm276_vm2  ;;  %v5110_v51 = vpop.eup %5109 }
  0xb5   :  { %v272_v40 = vsub.f32 1.0, %v271_v39  ;;  %v289_v52 = vadd.f32 1.0, %v5110_v51  ;;  %v124_v18 = vpop.f32.mrf.mxu0 }
  0xb6   :  { %v125_v24 = vadd.f32 %v124_v18, %v5819_v25 }
  0xb7   :  { %v273_v42 = vmul.f32 %v5106_v37, %v272_v40  ;;  %5111 = vrcp.f32 %v289_v52  ;;  %vm295_vm6 = vweird.f32 %v289_v52  ;;  %v301_v60 = vand.u32 2147483648, %v289_v52  ;;  %v165_v31 = vpop.f32.mrf.mxu1 }
  0xb8   :  { %v299_v62 = vand.u32 2147483647, %v289_v52  ;;  %v166_v32 = vadd.f32 %v165_v31, %v5822_v33 }
  0xb9   :  { %v274_v44 = vadd.f32 %v5106_v37, %v273_v42  ;;  %v302_v63 = vor.u32 1.1754944e-38, %v301_v60 }
  0xba   :  { %vm300_vm9 = vcmp.eq.f32.partialorder %v299_v62, 8.507059e+37 }
  0xbb   :  { %v278_v47 = vsel %vm277_vm4, %v5106_v37, %v274_v44 }
  0xbc   :  { %v283_v48 = vsel %vm280_vm5, %v282_v46, %v278_v47 }
  0xbd   :  { %v306_v49 = vmul.f32 %v5108_v45, %v283_v48  ;;  %v5112_v53 = vpop.eup %5111  ;;  %v305_v57 = vmul.f32 0.0, %v283_v48 }
  0xbe   :  { %v291_v54 = vmul.f32 %v5112_v53, %v289_v52  ;;  %vm296_vm7 = vweird.f32 %v5112_v53 }
  0xbf   :  { %308 = vrot.lane.b32.xlu0 %v306_v49, %s5640_s18  ;;  %vm297_vm8 = vmor %vm295_vm6, %vm296_vm7 }
  0xc0   :  { %v292_v55 = vsub.f32 1.0, %v291_v54 }
  0xc2   :  { %v293_v56 = vmul.f32 %v5112_v53, %v292_v55 }
  0xc4   :  { %v294_v61 = vadd.f32 %v5112_v53, %v293_v56 }
  0xc6   :  { %v298_v6 = vsel %vm297_vm8, %v5112_v53, %v294_v61 }
  0xc7   :  { %v303_v10 = vsel %vm300_vm9, %v302_v63, %v298_v6 }
 0x131   :  { %v309_v58 = vpop.permute.xlu0 %308 }
 0x132   :  { %v5826_v59 = vadd.f32 %v309_v58, %v305_v57 }
 0x134   :  { %5113 = vtanh.f32 %v5826_v59 }
 0x13a   :  { %v5114_v8 = vpop.eup %5113 }
 0x13b   :  { %v313_v12 = vmul.f32 %v5114_v8, %v303_v10 }
 0x13d   :  { %315 = vrot.lane.b32.xlu0 %v313_v12, %s5640_s18 }
 0x1af   :  { %v316_v15 = vpop.permute.xlu0 %315 }
 0x1b0   :  { %318 = vst.msk [vmem:[#allocation3] sm:$0xff] %vm220_vm10, %v316_v15  ;;  %4881 = vmatmul.msk.f32.vlgmr.msrb.gmra.mxu2 %vm220_vm10, %v316_v15  ;;  %4882 = vmatmul.msk.f32.vlgmr.msrb.gmra.mxu3 %vm220_vm10, %v316_v15 }
 0x1b1   :  { %534 = vmatpush.msrb.mxu2 %v5677_v0  ;;  %554 = vmatpush.msrb.mxu3 %v5682_v2 }
 0x1b3   :  { %535 = vmatpush.msrb.mxu2 %v5679_v1  ;;  %555 = vmatpush.msrb.mxu3 %v5687_v4 }
 0x1b5   :  { %536 = vmatpush.msrb.mxu2 %v5684_v3  ;;  %556 = vmatpush.msrb.mxu3 %v5690_v5 }
 0x1b7   :  { %537 = vmatpush.msrb.mxu2 %v5695_v7  ;;  %557 = vmatpush.msrb.mxu3 %v5703_v9 }
 0x1b9   :  { %538 = vmatpush.msrb.mxu2 %v5708_v11  ;;  %558 = vmatpush.msrb.mxu3 %v5718_v14 }
 0x1bb   :  { %539 = vmatpush.msrb.mxu2 %v5724_v16  ;;  %559 = vmatpush.msrb.mxu3 %v5728_v17 }
 0x1bd   :  { %540 = vmatpush.msrb.mxu2 %v5734_v19  ;;  %560 = vmatpush.msrb.mxu3 %v5738_v20 }
 0x1bf   :  { %541 = vmatpush.msrb.mxu2 %v5741_v21  ;;  %561 = vmatpush.msrb.mxu3 %v5745_v22 }
 0x233   :  { %v341_v26 = vpop.f32.mrf.mxu2  ;;  %v361_v34 = vpop.f32.mrf.mxu3 }
 0x234   :  { %v364_v27 = vadd.f32 %v341_v26, %v125_v24  ;;  %v365_v36 = vadd.f32 %v361_v34, %v166_v32 }
 0x236   :  { %v4883_v28 = vmul.f32 -1.442695, %v364_v27  ;;  %v4884_v48 = vmul.f32 -1.442695, %v365_v36 }
 0x238   :  { %5115 = vpow2.f32 %v4883_v28 }
 0x23e   :  { %v5116_v29 = vpop.eup %5115 }
 0x23f   :  { %v369_v30 = vadd.f32 1.0, %v5116_v29 }
 0x241   :  { %5117 = vrcp.f32 %v369_v30  ;;  %v381_v39 = vand.u32 2147483648, %v369_v30  ;;  %v379_v41 = vand.u32 2147483647, %v369_v30  ;;  %vm375_vm12 = vweird.f32 %v369_v30 }
 0x242   :  { %5119 = vtanh.f32 %v365_v36 }
 0x243   :  { %v382_v43 = vor.u32 1.1754944e-38, %v381_v39  ;;  %vm380_vm14 = vcmp.eq.f32.partialorder %v379_v41, 8.507059e+37  ;;  %5121 = vpow2.f32 %v4884_v48 }
 0x247   :  { %v5118_v35 = vpop.eup %5117 }
 0x248   :  { %v371_v37 = vmul.f32 %v5118_v35, %v369_v30  ;;  %vm376_vm11 = vweird.f32 %v5118_v35  ;;  %v5120_v45 = vpop.eup %5119 }
 0x249   :  { %vm377_vm13 = vmor %vm375_vm12, %vm376_vm11  ;;  %v5122_v49 = vpop.eup %5121 }
 0x24a   :  { %v372_v38 = vsub.f32 1.0, %v371_v37  ;;  %v389_v50 = vadd.f32 1.0, %v5122_v49 }
 0x24c   :  { %v373_v40 = vmul.f32 %v5118_v35, %v372_v38  ;;  %5123 = vrcp.f32 %v389_v50  ;;  %v401_v60 = vand.u32 2147483648, %v389_v50  ;;  %vm395_vm0 = vweird.f32 %v389_v50 }
 0x24d   :  { %v399_v61 = vand.u32 2147483647, %v389_v50 }
 0x24e   :  { %v374_v42 = vadd.f32 %v5118_v35, %v373_v40  ;;  %v402_v63 = vor.u32 1.1754944e-38, %v401_v60 }
 0x24f   :  { %vm400_vm3 = vcmp.eq.f32.partialorder %v399_v61, 8.507059e+37 }
 0x250   :  { %v378_v44 = vsel %vm377_vm13, %v5118_v35, %v374_v42 }
 0x251   :  { %v383_v46 = vsel %vm380_vm14, %v382_v43, %v378_v44 }
 0x252   :  { %v406_v47 = vmul.f32 %v5120_v45, %v383_v46  ;;  %v5124_v51 = vpop.eup %5123  ;;  %v405_v55 = vmul.f32 %v383_v46, %v5826_v59  ;;  %v54_v59 = vld [vmem:[%s7169_s0 + $0x10] sm:$0xff] }
 0x253   :  { %v391_v52 = vmul.f32 %v5124_v51, %v389_v50  ;;  %vm396_vm15 = vweird.f32 %v5124_v51  ;;  %4864 = vmatmul.msk.f32.gmra.mxu0 %vm72_vm1, %v54_v59  ;;  %4873 = vmatmul.msk.f32.gmra.mxu1 %vm72_vm1, %v54_v59 }
 0x254   :  { %408 = vrot.lane.b32.xlu1 %v406_v47, %s5640_s18  ;;  %vm397_vm2 = vmor %vm395_vm0, %vm396_vm15 }
 0x255   :  { %v392_v53 = vsub.f32 1.0, %v391_v52 }
 0x257   :  { %v393_v54 = vmul.f32 %v5124_v51, %v392_v53 }
 0x259   :  { %v394_v58 = vadd.f32 %v5124_v51, %v393_v54 }
 0x25b   :  { %v398_v62 = vsel %vm397_vm2, %v5124_v51, %v394_v58 }
 0x25c   :  { %v403_v8 = vsel %vm400_vm3, %v402_v63, %v398_v62 }
 0x2c6   :  { %v409_v56 = vpop.permute.xlu1 %408 }
 0x2c7   :  { %v5858_v57 = vadd.f32 %v409_v56, %v405_v55 }
 0x2c9   :  { %5125 = vtanh.f32 %v5858_v57 }
 0x2cf   :  { %v5126_v6 = vpop.eup %5125 }
 0x2d0   :  { %v413_v10 = vmul.f32 %v5126_v6, %v403_v8  ;;  %v127_v13 = vpop.f32.mrf.mxu0  ;;  %v168_v29 = vpop.f32.mrf.mxu1 }
 0x2d1   :  { %v128_v15 = vadd.f32 %v127_v13, %v5819_v25  ;;  %v169_v30 = vadd.f32 %v168_v29, %v5822_v33 }
 0x2d2   :  { %415 = vrot.lane.b32.xlu1 %v413_v10, %s5640_s18 }
 0x344   :  { %v416_v12 = vpop.permute.xlu1 %415 }
 0x345   :  { %419 = vst.msk [vmem:[#allocation3 + $0x8] sm:$0xff] %vm220_vm10, %v416_v12  ;;  %4885 = vmatmul.msk.f32.vlgmr.msra.gmra.mxu2 %vm220_vm10, %v416_v12  ;;  %4886 = vmatmul.msk.f32.vlgmr.msra.gmra.mxu3 %vm220_vm10, %v416_v12 }
 0x346   :  { %736 = vmatpush.msra.mxu2 %v5677_v0  ;;  %756 = vmatpush.msra.mxu3 %v5682_v2 }
 0x348   :  { %737 = vmatpush.msra.mxu2 %v5679_v1  ;;  %757 = vmatpush.msra.mxu3 %v5687_v4 }
 0x34a   :  { %738 = vmatpush.msra.mxu2 %v5684_v3  ;;  %758 = vmatpush.msra.mxu3 %v5690_v5 }
 0x34c   :  { %739 = vmatpush.msra.mxu2 %v5695_v7  ;;  %759 = vmatpush.msra.mxu3 %v5703_v9 }
 0x34e   :  { %740 = vmatpush.msra.mxu2 %v5708_v11  ;;  %760 = vmatpush.msra.mxu3 %v5718_v14 }
 0x350   :  { %741 = vmatpush.msra.mxu2 %v5724_v16  ;;  %761 = vmatpush.msra.mxu3 %v5728_v17 }
 0x352   :  { %742 = vmatpush.msra.mxu2 %v5734_v19  ;;  %762 = vmatpush.msra.mxu3 %v5738_v20 }
 0x354   :  { %743 = vmatpush.msra.mxu2 %v5741_v21  ;;  %763 = vmatpush.msra.mxu3 %v5745_v22 }
 0x3c8   :  { %v442_v18 = vpop.f32.mrf.mxu2  ;;  %v462_v31 = vpop.f32.mrf.mxu3 }
 0x3c9   :  { %v465_v24 = vadd.f32 %v442_v18, %v128_v15  ;;  %v466_v34 = vadd.f32 %v462_v31, %v169_v30  ;;  %v56_v30 = vld [vmem:[%s7169_s0 + $0x20] sm:$0xff]  ;;  %v57_v31 = vld [vmem:[%s7169_s0 + $0x28] sm:$0xff] }
 0x3cb   :  { %v4887_v26 = vmul.f32 -1.442695, %v465_v24  ;;  %v4888_v46 = vmul.f32 -1.442695, %v466_v34 }
 0x3cd   :  { %5127 = vpow2.f32 %v4887_v26 }
 0x3d3   :  { %v5128_v27 = vpop.eup %5127 }
 0x3d4   :  { %v470_v28 = vadd.f32 1.0, %v5128_v27 }
 0x3d6   :  { %5129 = vrcp.f32 %v470_v28  ;;  %v482_v37 = vand.u32 2147483648, %v470_v28  ;;  %v480_v39 = vand.u32 2147483647, %v470_v28  ;;  %vm476_vm5 = vweird.f32 %v470_v28 }
 0x3d7   :  { %5131 = vtanh.f32 %v466_v34 }
 0x3d8   :  { %v483_v41 = vor.u32 1.1754944e-38, %v482_v37  ;;  %vm481_vm7 = vcmp.eq.f32.partialorder %v480_v39, 8.507059e+37  ;;  %5133 = vpow2.f32 %v4888_v46 }
 0x3dc   :  { %v5130_v32 = vpop.eup %5129 }
 0x3dd   :  { %v472_v35 = vmul.f32 %v5130_v32, %v470_v28  ;;  %vm477_vm4 = vweird.f32 %v5130_v32  ;;  %v5132_v43 = vpop.eup %5131 }
 0x3de   :  { %vm478_vm6 = vmor %vm476_vm5, %vm477_vm4  ;;  %v5134_v47 = vpop.eup %5133 }
 0x3df   :  { %v473_v36 = vsub.f32 1.0, %v472_v35  ;;  %v490_v48 = vadd.f32 1.0, %v5134_v47 }
 0x3e1   :  { %v474_v38 = vmul.f32 %v5130_v32, %v473_v36  ;;  %5135 = vrcp.f32 %v490_v48  ;;  %v502_v58 = vand.u32 2147483648, %v490_v48  ;;  %vm496_vm9 = vweird.f32 %v490_v48  ;;  %v58_v36 = vld [vmem:[%s7169_s0 + $0x30] sm:$0xff] }
 0x3e2   :  { %v500_v60 = vand.u32 2147483647, %v490_v48 }
 0x3e3   :  { %v475_v40 = vadd.f32 %v5130_v32, %v474_v38  ;;  %v503_v62 = vor.u32 1.1754944e-38, %v502_v58 }
 0x3e4   :  { %vm501_vm12 = vcmp.eq.f32.partialorder %v500_v60, 8.507059e+37 }
 0x3e5   :  { %v479_v42 = vsel %vm478_vm6, %v5130_v32, %v475_v40 }
 0x3e6   :  { %v484_v44 = vsel %vm481_vm7, %v483_v41, %v479_v42  ;;  %v59_v42 = vld [vmem:[%s7169_s0 + $0x38] sm:$0xff] }
 0x3e7   :  { %v507_v45 = vmul.f32 %v5132_v43, %v484_v44  ;;  %v5136_v49 = vpop.eup %5135  ;;  %v506_v53 = vmul.f32 %v484_v44, %v5858_v57  ;;  %v55_v57 = vld [vmem:[%s7169_s0 + $0x18] sm:$0xff] }
 0x3e8   :  { %v492_v50 = vmul.f32 %v5136_v49, %v490_v48  ;;  %vm497_vm8 = vweird.f32 %v5136_v49  ;;  %4865 = vmatmul.msk.f32.gmra.mxu0 %vm72_vm1, %v55_v57  ;;  %4874 = vmatmul.msk.f32.gmra.mxu1 %vm72_vm1, %v55_v57 }
 0x3e9   :  { %509 = vrot.lane.b32.xlu2 %v507_v45, %s5640_s18  ;;  %vm498_vm11 = vmor %vm496_vm9, %vm497_vm8 }
 0x3ea   :  { %v493_v51 = vsub.f32 1.0, %v492_v50 }
 0x3ec   :  { %v494_v52 = vmul.f32 %v5136_v49, %v493_v51 }
 0x3ee   :  { %v495_v56 = vadd.f32 %v5136_v49, %v494_v52 }
 0x3f0   :  { %v499_v61 = vsel %vm498_vm11, %v5136_v49, %v495_v56  ;;  %4866 = vmatmul.msk.f32.gmra.mxu0 %vm72_vm1, %v56_v30  ;;  %4875 = vmatmul.msk.f32.gmra.mxu1 %vm72_vm1, %v56_v30 }
 0x3f1   :  { %v504_v6 = vsel %vm501_vm12, %v503_v62, %v499_v61 }
 0x3f8   :  { %4867 = vmatmul.msk.f32.gmra.mxu0 %vm72_vm1, %v57_v31  ;;  %4876 = vmatmul.msk.f32.gmra.mxu1 %vm72_vm1, %v57_v31 }
 0x400   :  { %4868 = vmatmul.msk.f32.gmra.mxu0 %vm72_vm1, %v58_v36  ;;  %4877 = vmatmul.msk.f32.gmra.mxu1 %vm72_vm1, %v58_v36 }
 0x408   :  { %4869 = vmatmul.msk.f32.gmra.mxu0 %vm72_vm1, %v59_v42  ;;  %4878 = vmatmul.msk.f32.gmra.mxu1 %vm72_vm1, %v59_v42 }
 0x443   :  { %v510_v54 = vpop.permute.xlu2 %509 }
 0x444   :  { %v5890_v55 = vadd.f32 %v510_v54, %v506_v53 }
 0x446   :  { %5137 = vtanh.f32 %v5890_v55 }
 0x44c   :  { %v5138_v63 = vpop.eup %5137 }
 0x44d   :  { %v514_v8 = vmul.f32 %v5138_v63, %v504_v6 }
 0x44f   :  { %516 = vrot.lane.b32.xlu2 %v514_v8, %s5640_s18 }
 0x4a9   :  { %v517_v10 = vpop.permute.xlu2 %516 }
 0x4aa   :  { %520 = vst.msk [vmem:[#allocation3 + $0x10] sm:$0xff] %vm220_vm10, %v517_v10  ;;  %4889 = vmatmul.msk.f32.vlgmr.msrb.gmra.mxu2 %vm220_vm10, %v517_v10  ;;  %4890 = vmatmul.msk.f32.vlgmr.msrb.gmra.mxu3 %vm220_vm10, %v517_v10 }
 0x4ab   :  { %938 = vmatpush.msrb.mxu2 %v5677_v0  ;;  %958 = vmatpush.msrb.mxu3 %v5682_v2  ;;  %v130_v0 = vpop.f32.mrf.mxu0 }
 0x4ad   :  { %939 = vmatpush.msrb.mxu2 %v5679_v1  ;;  %959 = vmatpush.msrb.mxu3 %v5687_v4  ;;  %v131_v1 = vadd.f32 %v130_v0, %v5819_v25 }
 0x4af   :  { %940 = vmatpush.msrb.mxu2 %v5684_v3  ;;  %960 = vmatpush.msrb.mxu3 %v5690_v5 }
 0x4b1   :  { %941 = vmatpush.msrb.mxu2 %v5695_v7  ;;  %961 = vmatpush.msrb.mxu3 %v5703_v9  ;;  %v171_v9 = vpop.f32.mrf.mxu1 }
 0x4b3   :  { %942 = vmatpush.msrb.mxu2 %v5708_v11  ;;  %962 = vmatpush.msrb.mxu3 %v5718_v14  ;;  %v172_v11 = vadd.f32 %v171_v9, %v5822_v33  ;;  %v133_v51 = vpop.f32.mrf.mxu0 }
 0x4b4   :  { %v134_v60 = vadd.f32 %v133_v51, %v5819_v25 }
 0x4b5   :  { %943 = vmatpush.msrb.mxu2 %v5724_v16  ;;  %963 = vmatpush.msrb.mxu3 %v5728_v17 }
 0x4b7   :  { %944 = vmatpush.msrb.mxu2 %v5734_v19  ;;  %964 = vmatpush.msrb.mxu3 %v5738_v20 }
 0x4b9   :  { %945 = vmatpush.msrb.mxu2 %v5741_v21  ;;  %965 = vmatpush.msrb.mxu3 %v5745_v22  ;;  %v174_v53 = vpop.f32.mrf.mxu1 }
 0x4ba   :  { %v175_v0 = vadd.f32 %v174_v53, %v5822_v33 }
 0x4bb   :  { %v5949_v52 = vpop.f32.mrf.mxu0 }
 0x4c3   :  { %v5951_v54 = vpop.f32.mrf.mxu0 }
 0x4cb   :  { %v5955_v56 = vpop.f32.mrf.mxu0 }
 0x52d   :  { %v543_v2 = vpop.f32.mrf.mxu2  ;;  %v563_v14 = vpop.f32.mrf.mxu3 }
 0x52e   :  { %v566_v3 = vadd.f32 %v543_v2, %v131_v1  ;;  %v567_v17 = vadd.f32 %v563_v14, %v172_v11 }
 0x530   :  { %v4891_v4 = vmul.f32 -1.442695, %v566_v3  ;;  %v4892_v27 = vmul.f32 -1.442695, %v567_v17 }
 0x532   :  { %5139 = vpow2.f32 %v4891_v4 }
 0x538   :  { %v5140_v5 = vpop.eup %5139 }
 0x539   :  { %v571_v7 = vadd.f32 1.0, %v5140_v5 }
 0x53b   :  { %5141 = vrcp.f32 %v571_v7  ;;  %v583_v21 = vand.u32 2147483648, %v571_v7  ;;  %v581_v59 = vand.u32 2147483647, %v571_v7  ;;  %vm577_vm14 = vweird.f32 %v571_v7 }
 0x53c   :  { %5143 = vtanh.f32 %v567_v17 }
 0x53d   :  { %v584_v13 = vor.u32 1.1754944e-38, %v583_v21  ;;  %vm582_vm0 = vcmp.eq.f32.partialorder %v581_v59, 8.507059e+37  ;;  %5145 = vpow2.f32 %v4892_v27 }
 0x541   :  { %v5142_v16 = vpop.eup %5141 }
 0x542   :  { %v573_v19 = vmul.f32 %v5142_v16, %v571_v7  ;;  %vm578_vm13 = vweird.f32 %v5142_v16  ;;  %v5144_v18 = vpop.eup %5143 }
 0x543   :  { %vm579_vm15 = vmor %vm577_vm14, %vm578_vm13  ;;  %v5146_v28 = vpop.eup %5145 }
 0x544   :  { %v574_v20 = vsub.f32 1.0, %v573_v19  ;;  %v591_v29 = vadd.f32 1.0, %v5146_v28 }
 0x546   :  { %v575_v22 = vmul.f32 %v5142_v16, %v574_v20  ;;  %5147 = vrcp.f32 %v591_v29  ;;  %v603_v43 = vand.u32 2147483648, %v591_v29  ;;  %vm597_vm3 = vweird.f32 %v591_v29 }
 0x547   :  { %v601_v44 = vand.u32 2147483647, %v591_v29 }
 0x548   :  { %v576_v12 = vadd.f32 %v5142_v16, %v575_v22  ;;  %v604_v46 = vor.u32 1.1754944e-38, %v603_v43 }
 0x549   :  { %vm602_vm5 = vcmp.eq.f32.partialorder %v601_v44, 8.507059e+37 }
 0x54a   :  { %v580_v15 = vsel %vm579_vm15, %v5142_v16, %v576_v12 }
 0x54b   :  { %v585_v24 = vsel %vm582_vm0, %v584_v13, %v580_v15 }
 0x54c   :  { %v608_v26 = vmul.f32 %v5144_v18, %v585_v24  ;;  %v5148_v32 = vpop.eup %5147  ;;  %v607_v38 = vmul.f32 %v585_v24, %v5890_v55  ;;  %v5953_v55 = vpop.f32.mrf.mxu1 }
 0x54d   :  { %v593_v34 = vmul.f32 %v5148_v32, %v591_v29  ;;  %vm598_vm2 = vweird.f32 %v5148_v32 }
 0x54e   :  { %610 = vrot.lane.b32.xlu0 %v608_v26, %s5640_s18  ;;  %vm599_vm4 = vmor %vm597_vm3, %vm598_vm2 }
 0x54f   :  { %v594_v35 = vsub.f32 1.0, %v593_v34 }
 0x551   :  { %v595_v37 = vmul.f32 %v5148_v32, %v594_v35 }
 0x553   :  { %v596_v41 = vadd.f32 %v5148_v32, %v595_v37 }
 0x554   :  { %v5957_v58 = vpop.f32.mrf.mxu1 }
 0x555   :  { %v600_v45 = vsel %vm599_vm4, %v5148_v32, %v596_v41 }
 0x556   :  { %v605_v48 = vsel %vm602_vm5, %v604_v46, %v600_v45  ;;  %v178_v45 = vadd.f32 %v5953_v55, %v5822_v33 }
 0x55c   :  { %v5960_v6 = vpop.f32.mrf.mxu1 }
 0x5c0   :  { %v611_v39 = vpop.permute.xlu0 %610 }
 0x5c1   :  { %v5937_v40 = vadd.f32 %v611_v39, %v607_v38  ;;  %v137_v38 = vadd.f32 %v5949_v52, %v5819_v25 }
 0x5c3   :  { %5149 = vtanh.f32 %v5937_v40 }
 0x5c9   :  { %v5150_v47 = vpop.eup %5149 }
 0x5ca   :  { %v615_v49 = vmul.f32 %v5150_v47, %v605_v48 }
 0x5cc   :  { %617 = vrot.lane.b32.xlu1 %v615_v49, %s5640_s18 }
 0x63e   :  { %v618_v50 = vpop.permute.xlu1 %617 }
 0x63f   :  { %621 = vst.msk [vmem:[#allocation3 + $0x18] sm:$0xff] %vm220_vm10, %v618_v50  ;;  %4893 = vmatmul.msk.f32.vlgmr.msrb.gmra.mxu0 %vm220_vm10, %v618_v50  ;;  %4894 = vmatmul.msk.f32.vlgmr.msrb.gmra.mxu1 %vm220_vm10, %v618_v50 }
 0x6bc   :  { %v644_v61 = vpop.f32.mrf.mxu0  ;;  %v664_v10 = vpop.f32.mrf.mxu1 }
 0x6bd   :  { %v667_v62 = vadd.f32 %v644_v61, %v134_v60  ;;  %v668_v2 = vadd.f32 %v664_v10, %v175_v0  ;;  %v1048_v0 = vld [vmem:[#allocation4 + $0x70] sm:$0xff] }
 0x6be   :  { %1089 = vmatpush.msrb.mxu0 %v1048_v0 }
 0x6bf   :  { %v4895_v63 = vmul.f32 -1.442695, %v667_v62  ;;  %v4896_v21 = vmul.f32 -1.442695, %v668_v2 }
 0x6c1   :  { %5151 = vpow2.f32 %v4895_v63 }
 0x6c7   :  { %v5152_v8 = vpop.eup %5151 }
 0x6c8   :  { %v672_v57 = vadd.f32 1.0, %v5152_v8 }
 0x6ca   :  { %5153 = vrcp.f32 %v672_v57  ;;  %v684_v5 = vand.u32 2147483648, %v672_v57  ;;  %v682_v9 = vand.u32 2147483647, %v672_v57  ;;  %vm678_vm6 = vweird.f32 %v672_v57 }
 0x6cb   :  { %5155 = vtanh.f32 %v668_v2  ;;  %v1046_v2 = vld [vmem:[#allocation4 + $0x60] sm:$0xff] }
 0x6cc   :  { %v685_v14 = vor.u32 1.1754944e-38, %v684_v5  ;;  %vm683_vm8 = vcmp.eq.f32.partialorder %v682_v9, 8.507059e+37  ;;  %5157 = vpow2.f32 %v4896_v21  ;;  %v1045_v5 = vld [vmem:[#allocation4 + $0x58] sm:$0xff]  ;;  %1090 = vmatpush.msrb.mxu0 %v1046_v2  ;;  %v1043_v9 = vld [vmem:[#allocation4 + $0x48] sm:$0xff] }
 0x6d0   :  { %v5154_v1 = vpop.eup %5153 }
 0x6d1   :  { %v674_v3 = vmul.f32 %v5154_v1, %v672_v57  ;;  %vm679_vm1 = vweird.f32 %v5154_v1  ;;  %v5156_v17 = vpop.eup %5155 }
 0x6d2   :  { %vm680_vm7 = vmor %vm678_vm6, %vm679_vm1  ;;  %v5158_v22 = vpop.eup %5157 }
 0x6d3   :  { %v675_v4 = vsub.f32 1.0, %v674_v3  ;;  %v692_v59 = vadd.f32 1.0, %v5158_v22  ;;  %v1047_v3 = vld [vmem:[#allocation4 + $0x68] sm:$0xff] }
 0x6d5   :  { %v676_v7 = vmul.f32 %v5154_v1, %v675_v4  ;;  %5159 = vrcp.f32 %v692_v59  ;;  %v704_v29 = vand.u32 2147483648, %v692_v59  ;;  %vm698_vm11 = vweird.f32 %v692_v59  ;;  %v1044_v4 = vld [vmem:[#allocation4 + $0x50] sm:$0xff] }
 0x6d6   :  { %v702_v30 = vand.u32 2147483647, %v692_v59  ;;  %1091 = vmatpush.msrb.mxu0 %v1044_v4  ;;  %v6004_v4 = vld [vmem:[#allocation6 + $0xf8] sm:$0xff] }
 0x6d7   :  { %v677_v11 = vadd.f32 %v5154_v1, %v676_v7  ;;  %v705_v32 = vor.u32 1.1754944e-38, %v704_v29  ;;  %v1042_v7 = vld [vmem:[#allocation4 + $0x40] sm:$0xff] }
 0x6d8   :  { %vm703_vm13 = vcmp.eq.f32.partialorder %v702_v30, 8.507059e+37  ;;  %1092 = vmatpush.msrb.mxu0 %v1042_v7  ;;  %v1038_v29 = vld [vmem:[#allocation4 + $0x20] sm:$0xff]  ;;  %v1039_v30 = vld [vmem:[#allocation4 + $0x28] sm:$0xff] }
 0x6d9   :  { %v681_v16 = vsel %vm680_vm7, %v5154_v1, %v677_v11  ;;  %v1049_v1 = vld [vmem:[#allocation4 + $0x78] sm:$0xff]  ;;  %v6010_v7 = vld [vmem:[#allocation6 + $0xe8] sm:$0xff] }
 0x6da   :  { %v686_v19 = vsel %vm683_vm8, %v685_v14, %v681_v16  ;;  %1130 = vmatpush.msrb.mxu1 %v1049_v1 }
 0x6db   :  { %v709_v20 = vmul.f32 %v5156_v17, %v686_v19  ;;  %v5160_v12 = vpop.eup %5159  ;;  %v708_v24 = vmul.f32 %v686_v19, %v5937_v40 }
 0x6dc   :  { %v694_v13 = vmul.f32 %v5160_v12, %v692_v59  ;;  %vm699_vm9 = vweird.f32 %v5160_v12  ;;  %1131 = vmatpush.msrb.mxu1 %v1047_v3  ;;  %v6002_v3 = vld [vmem:[#allocation6 + $0xf0] sm:$0xff] }
 0x6dd   :  { %711 = vrot.lane.b32.xlu2 %v709_v20, %s5640_s18  ;;  %vm700_vm12 = vmor %vm698_vm11, %vm699_vm9 }
 0x6de   :  { %v695_v15 = vsub.f32 1.0, %v694_v13  ;;  %1132 = vmatpush.msrb.mxu1 %v1045_v5  ;;  %v6006_v5 = vld [vmem:[#allocation6 + $0xe0] sm:$0xff] }
 0x6e0   :  { %v696_v18 = vmul.f32 %v5160_v12, %v695_v15  ;;  %1133 = vmatpush.msrb.mxu1 %v1043_v9  ;;  %v6012_v9 = vld [vmem:[#allocation6 + $0xd0] sm:$0xff] }
 0x6e2   :  { %v697_v28 = vadd.f32 %v5160_v12, %v696_v18 }
 0x6e4   :  { %v701_v31 = vsel %vm700_vm12, %v5160_v12, %v697_v28  ;;  %v1041_v28 = vld [vmem:[#allocation4 + $0x38] sm:$0xff] }
 0x6e5   :  { %v706_v35 = vsel %vm703_vm13, %v705_v32, %v701_v31  ;;  %1134 = vmatpush.msrb.mxu1 %v1041_v28  ;;  %v1036_v31 = vld [vmem:[#allocation4 + $0x10] sm:$0xff]  ;;  %v1037_v32 = vld [vmem:[#allocation4 + $0x18] sm:$0xff] }
 0x6e7   :  { %1135 = vmatpush.msrb.mxu1 %v1039_v30 }
 0x6e9   :  { %1136 = vmatpush.msrb.mxu1 %v1037_v32  ;;  %v6043_v32 = vld [vmem:[#allocation6 + $0xa0] sm:$0xff] }
 0x737   :  { %v712_v26 = vpop.permute.xlu2 %711 }
 0x738   :  { %v5965_v27 = vadd.f32 %v712_v26, %v708_v24 }
 0x73a   :  { %5161 = vtanh.f32 %v5965_v27 }
 0x740   :  { %v5162_v34 = vpop.eup %5161 }
 0x741   :  { %v716_v36 = vmul.f32 %v5162_v34, %v706_v35  ;;  %v1034_v34 = vld [vmem:[#allocation4] sm:$0xff]  ;;  %v1035_v35 = vld [vmem:[#allocation4 + $0x8] sm:$0xff] }
 0x742   :  { %1137 = vmatpush.msrb.mxu1 %v1035_v35  ;;  %v6049_v35 = vld [vmem:[#allocation6 + $0x90] sm:$0xff] }
 0x743   :  { %718 = vrot.lane.b32.xlu0 %v716_v36, %s5640_s18 }
 0x7b5   :  { %v719_v37 = vpop.permute.xlu0 %718 }
 0x7b6   :  { %722 = vst.msk [vmem:[#allocation3 + $0x20] sm:$0xff] %vm220_vm10, %v719_v37  ;;  %4897 = vmatmul.msk.f32.vlgmr.msra.gmra.mxu2 %vm220_vm10, %v719_v37  ;;  %4898 = vmatmul.msk.f32.vlgmr.msra.gmra.mxu3 %vm220_vm10, %v719_v37  ;;  %v1026_v37 = vld [vmem:[#allocation3] sm:$0xff] }
 0x7b7   :  { %1206 = vmatpush.msra.mxu2 %v6002_v3  ;;  %1226 = vmatpush.msra.mxu3 %v6004_v4 }
 0x7b9   :  { %1207 = vmatpush.msra.mxu2 %v6006_v5  ;;  %1227 = vmatpush.msra.mxu3 %v6010_v7 }
 0x7bb   :  { %1208 = vmatpush.msra.mxu2 %v6012_v9 }
 0x839   :  { %v745_v39 = vpop.f32.mrf.mxu2  ;;  %v765_v44 = vpop.f32.mrf.mxu3 }
 0x83a   :  { %v768_v40 = vadd.f32 %v745_v39, %v137_v38  ;;  %v769_v47 = vadd.f32 %v765_v44, %v178_v45  ;;  %v1027_v38 = vld [vmem:[#allocation3 + $0x8] sm:$0xff]  ;;  %v1028_v39 = vld [vmem:[#allocation3 + $0x10] sm:$0xff] }
 0x83c   :  { %v4899_v41 = vmul.f32 -1.442695, %v768_v40  ;;  %v4900_v55 = vmul.f32 -1.442695, %v769_v47  ;;  %v1029_v40 = vld [vmem:[#allocation3 + $0x18] sm:$0xff] }
 0x83e   :  { %5163 = vpow2.f32 %v4899_v41  ;;  %v1030_v41 = vld [vmem:[#allocation3 + $0x20] sm:$0xff] }
 0x844   :  { %v5164_v42 = vpop.eup %5163 }
 0x845   :  { %v773_v43 = vadd.f32 1.0, %v5164_v42 }
 0x847   :  { %5165 = vrcp.f32 %v773_v43  ;;  %v785_v50 = vand.u32 2147483648, %v773_v43  ;;  %v783_v52 = vand.u32 2147483647, %v773_v43  ;;  %vm779_vm15 = vweird.f32 %v773_v43 }
 0x848   :  { %5167 = vtanh.f32 %v769_v47 }
 0x849   :  { %v786_v60 = vor.u32 1.1754944e-38, %v785_v50  ;;  %vm784_vm2 = vcmp.eq.f32.partialorder %v783_v52, 8.507059e+37  ;;  %5169 = vpow2.f32 %v4900_v55  ;;  %v181_v50 = vadd.f32 %v5957_v58, %v5822_v33 }
 0x84d   :  { %v5166_v46 = vpop.eup %5165 }
 0x84e   :  { %v775_v48 = vmul.f32 %v5166_v46, %v773_v43  ;;  %vm780_vm14 = vweird.f32 %v5166_v46  ;;  %v5168_v62 = vpop.eup %5167  ;;  %v140_v43 = vadd.f32 %v5951_v54, %v5819_v25 }
 0x84f   :  { %vm781_vm0 = vmor %vm779_vm15, %vm780_vm14  ;;  %v5170_v57 = vpop.eup %5169 }
 0x850   :  { %v776_v49 = vsub.f32 1.0, %v775_v48  ;;  %v793_v10 = vadd.f32 1.0, %v5170_v57 }
 0x852   :  { %v777_v51 = vmul.f32 %v5166_v46, %v776_v49  ;;  %5171 = vrcp.f32 %v793_v10  ;;  %v805_v59 = vand.u32 2147483648, %v793_v10  ;;  %vm799_vm4 = vweird.f32 %v793_v10 }
 0x853   :  { %v803_v12 = vand.u32 2147483647, %v793_v10 }
 0x854   :  { %v778_v53 = vadd.f32 %v5166_v46, %v777_v51  ;;  %v806_v15 = vor.u32 1.1754944e-38, %v805_v59 }
 0x855   :  { %vm804_vm1 = vcmp.eq.f32.partialorder %v803_v12, 8.507059e+37 }
 0x856   :  { %v782_v61 = vsel %vm781_vm0, %v5166_v46, %v778_v53 }
 0x857   :  { %v787_v63 = vsel %vm784_vm2, %v786_v60, %v782_v61 }
 0x858   :  { %v810_v8 = vmul.f32 %v5168_v62, %v787_v63  ;;  %v5172_v11 = vpop.eup %5171  ;;  %v809_v19 = vmul.f32 %v787_v63, %v5965_v27  ;;  %v1040_v27 = vld [vmem:[#allocation4 + $0x30] sm:$0xff] }
 0x859   :  { %v795_v14 = vmul.f32 %v5172_v11, %v793_v10  ;;  %vm800_vm3 = vweird.f32 %v5172_v11  ;;  %1093 = vmatpush.msrb.mxu0 %v1040_v27 }
 0x85a   :  { %812 = vrot.lane.b32.xlu1 %v810_v8, %s5640_s18  ;;  %vm801_vm5 = vmor %vm799_vm4, %vm800_vm3 }
 0x85b   :  { %v796_v16 = vsub.f32 1.0, %v795_v14  ;;  %1094 = vmatpush.msrb.mxu0 %v1038_v29  ;;  %v6020_v14 = vld [vmem:[#allocation6 + $0xc0] sm:$0xff] }
 0x85c   :  { %1209 = vmatpush.msra.mxu2 %v6020_v14 }
 0x85d   :  { %v797_v17 = vmul.f32 %v5172_v11, %v796_v16  ;;  %1095 = vmatpush.msrb.mxu0 %v1036_v31  ;;  %v6022_v16 = vld [vmem:[#allocation6 + $0xc8] sm:$0xff]  ;;  %v6041_v31 = vld [vmem:[#allocation6 + $0xb8] sm:$0xff] }
 0x85f   :  { %v798_v22 = vadd.f32 %v5172_v11, %v797_v17  ;;  %1096 = vmatpush.msrb.mxu0 %v1034_v34  ;;  %v6047_v34 = vld [vmem:[#allocation6 + $0xa8] sm:$0xff] }
 0x861   :  { %v802_v13 = vsel %vm801_vm5, %v5172_v11, %v798_v22  ;;  %v6014_v11 = vld [vmem:[#allocation6 + $0xd8] sm:$0xff] }
 0x862   :  { %v807_v24 = vsel %vm804_vm1, %v806_v15, %v802_v13  ;;  %1228 = vmatpush.msra.mxu3 %v6014_v11 }
 0x864   :  { %1229 = vmatpush.msra.mxu3 %v6022_v16 }
 0x866   :  { %1230 = vmatpush.msra.mxu3 %v6041_v31 }
 0x868   :  { %1231 = vmatpush.msra.mxu3 %v6047_v34 }
 0x8cc   :  { %v813_v20 = vpop.permute.xlu1 %812 }
 0x8cd   :  { %v5978_v21 = vadd.f32 %v813_v20, %v809_v19 }
 0x8cf   :  { %5173 = vtanh.f32 %v5978_v21 }
 0x8d5   :  { %v5174_v18 = vpop.eup %5173 }
 0x8d6   :  { %v817_v26 = vmul.f32 %v5174_v18, %v807_v24 }
 0x8d8   :  { %819 = vrot.lane.b32.xlu2 %v817_v26, %s5640_s18 }
 0x932   :  { %v820_v36 = vpop.permute.xlu2 %819 }
 0x933   :  { %823 = vst.msk [vmem:[#allocation3 + $0x28] sm:$0xff] %vm220_vm10, %v820_v36  ;;  %4901 = vmatmul.msk.f32.vlgmr.msra.gmra.mxu0 %vm220_vm10, %v820_v36  ;;  %4902 = vmatmul.msk.f32.vlgmr.msra.gmra.mxu1 %vm220_vm10, %v820_v36  ;;  %v6051_v36 = vld [vmem:[#allocation6 + $0x98] sm:$0xff] }
 0x934   :  { %1602 = vmatpush.msra.mxu0 %v6002_v3  ;;  %1622 = vmatpush.msra.mxu1 %v6004_v4 }
 0x935   :  { %1232 = vmatpush.msra.mxu3 %v6051_v36 }
 0x936   :  { %1603 = vmatpush.msra.mxu0 %v6006_v5  ;;  %1623 = vmatpush.msra.mxu1 %v6010_v7 }
 0x938   :  { %1604 = vmatpush.msra.mxu0 %v6012_v9  ;;  %1624 = vmatpush.msra.mxu1 %v6014_v11 }
 0x93a   :  { %v1031_v42 = vld [vmem:[#allocation3 + $0x28] sm:$0xff]  ;;  %1605 = vmatpush.msra.mxu0 %v6020_v14  ;;  %1625 = vmatpush.msra.mxu1 %v6022_v16 }
 0x93b   :  { %4910 = vmatmul.msk.f32.vlgmr.msrb.gmra.mxu0 %vm220_vm10, %v1026_v37  ;;  %4918 = vmatmul.msk.f32.vlgmr.msrb.gmra.mxu1 %vm220_vm10, %v1026_v37  ;;  %v6057_v37 = vld [vmem:[#allocation6 + $0x80] sm:$0xff] }
 0x93c   :  { %1626 = vmatpush.msra.mxu1 %v6041_v31 }
 0x93e   :  { %1627 = vmatpush.msra.mxu1 %v6047_v34 }
 0x940   :  { %1628 = vmatpush.msra.mxu1 %v6051_v36 }
 0x943   :  { %4911 = vmatmul.msk.f32.gmra.mxu0 %vm220_vm10, %v1027_v38  ;;  %4919 = vmatmul.msk.f32.gmra.mxu1 %vm220_vm10, %v1027_v38  ;;  %v6059_v38 = vld [vmem:[#allocation6 + $0x88] sm:$0xff] }
 0x944   :  { %1233 = vmatpush.msra.mxu3 %v6059_v38  ;;  %1629 = vmatpush.msra.mxu1 %v6059_v38 }
 0x946   :  { %1820 = vmatpush.msrb.mxu1 %v6004_v4 }
 0x948   :  { %1821 = vmatpush.msrb.mxu1 %v6010_v7 }
 0x94a   :  { %1822 = vmatpush.msrb.mxu1 %v6014_v11 }
 0x94b   :  { %4912 = vmatmul.msk.f32.gmra.mxu0 %vm220_vm10, %v1028_v39  ;;  %4920 = vmatmul.msk.f32.gmra.mxu1 %vm220_vm10, %v1028_v39 }
 0x94c   :  { %1823 = vmatpush.msrb.mxu1 %v6022_v16 }
 0x94e   :  { %1824 = vmatpush.msrb.mxu1 %v6041_v31 }
 0x950   :  { %1825 = vmatpush.msrb.mxu1 %v6047_v34 }
 0x952   :  { %1826 = vmatpush.msrb.mxu1 %v6051_v36 }
 0x953   :  { %4913 = vmatmul.msk.f32.gmra.mxu0 %vm220_vm10, %v1029_v40  ;;  %4921 = vmatmul.msk.f32.gmra.mxu1 %vm220_vm10, %v1029_v40 }
 0x954   :  { %1827 = vmatpush.msrb.mxu1 %v6059_v38 }
 0x95b   :  { %4914 = vmatmul.msk.f32.gmra.mxu0 %vm220_vm10, %v1030_v41  ;;  %4922 = vmatmul.msk.f32.gmra.mxu1 %vm220_vm10, %v1030_v41 }
 0x963   :  { %4915 = vmatmul.msk.f32.gmra.mxu0 %vm220_vm10, %v1031_v42  ;;  %4923 = vmatmul.msk.f32.gmra.mxu1 %vm220_vm10, %v1031_v42  ;;  %v4909_v42 = vld [vmem:[%s7173_s4 + $0x2] sm:$0x3] }
 0x9b0   :  { %v846_v44 = vpop.f32.mrf.mxu0  ;;  %v866_v49 = vpop.f32.mrf.mxu1 }
 0x9b1   :  { %v869_v45 = vadd.f32 %v846_v44, %v140_v43  ;;  %v870_v52 = vadd.f32 %v866_v49, %v181_v50  ;;  %v6131_v43 = vperm.slane %v4909_v42, 0 }
 0x9b3   :  { %v4903_v46 = vmul.f32 -1.442695, %v869_v45  ;;  %v4904_v58 = vmul.f32 -1.442695, %v870_v52 }
 0x9b5   :  { %5175 = vpow2.f32 %v4903_v46 }
 0x9b8   :  { %v1098_v44 = vpop.f32.mrf.mxu0 }
 0x9b9   :  { %v1099_v45 = vadd.f32 %v1098_v44, %v6131_v43 }
 0x9bb   :  { %v5176_v47 = vpop.eup %5175 }
 0x9bc   :  { %v874_v48 = vadd.f32 1.0, %v5176_v47 }
 0x9be   :  { %5177 = vrcp.f32 %v874_v48  ;;  %v886_v61 = vand.u32 2147483648, %v874_v48  ;;  %v884_v54 = vand.u32 2147483647, %v874_v48  ;;  %vm880_vm7 = vweird.f32 %v874_v48 }
 0x9bf   :  { %5179 = vtanh.f32 %v870_v52  ;;  %v6136_v52 = vperm.slane %v4909_v42, 1 }
 0x9c0   :  { %v887_v8 = vor.u32 1.1754944e-38, %v886_v61  ;;  %vm885_vm9 = vcmp.eq.f32.partialorder %v884_v54, 8.507059e+37  ;;  %5181 = vpow2.f32 %v4904_v58 }
 0x9c4   :  { %v5178_v51 = vpop.eup %5177 }
 0x9c5   :  { %v876_v53 = vmul.f32 %v5178_v51, %v874_v48  ;;  %vm881_vm6 = vweird.f32 %v5178_v51  ;;  %v5180_v57 = vpop.eup %5179 }
 0x9c6   :  { %vm882_vm8 = vmor %vm880_vm7, %vm881_vm6  ;;  %v5182_v1 = vpop.eup %5181 }
 0x9c7   :  { %v877_v60 = vsub.f32 1.0, %v876_v53  ;;  %v894_v2 = vadd.f32 1.0, %v5182_v1  ;;  %v1139_v53 = vpop.f32.mrf.mxu1 }
 0x9c8   :  { %v1140_v61 = vadd.f32 %v1139_v53, %v6136_v52 }
 0x9c9   :  { %v878_v62 = vmul.f32 %v5178_v51, %v877_v60  ;;  %5183 = vrcp.f32 %v894_v2  ;;  %v906_v18 = vand.u32 2147483648, %v894_v2  ;;  %vm900_vm12 = vweird.f32 %v894_v2 }
 0x9ca   :  { %v904_v24 = vand.u32 2147483647, %v894_v2 }
 0x9cb   :  { %v879_v63 = vadd.f32 %v5178_v51, %v878_v62  ;;  %v907_v27 = vor.u32 1.1754944e-38, %v906_v18 }
 0x9cc   :  { %vm905_vm14 = vcmp.eq.f32.partialorder %v904_v24, 8.507059e+37 }
 0x9cd   :  { %v883_v55 = vsel %vm882_vm8, %v5178_v51, %v879_v63 }
 0x9ce   :  { %v888_v10 = vsel %vm885_vm9, %v887_v8, %v883_v55 }
 0x9cf   :  { %v911_v0 = vmul.f32 %v5180_v57, %v888_v10  ;;  %v5184_v17 = vpop.eup %5183  ;;  %v910_v59 = vmul.f32 %v888_v10, %v5978_v21  ;;  %v6039_v21 = vld [vmem:[#allocation6 + $0xb0] sm:$0xff] }
 0x9d0   :  { %v896_v19 = vmul.f32 %v5184_v17, %v894_v2  ;;  %vm901_vm11 = vweird.f32 %v5184_v17  ;;  %1210 = vmatpush.msra.mxu2 %v6039_v21  ;;  %1606 = vmatpush.msra.mxu0 %v6039_v21 }
 0x9d1   :  { %913 = vrot.lane.b32.xlu0 %v911_v0, %s5640_s18  ;;  %vm902_vm13 = vmor %vm900_vm12, %vm901_vm11 }
 0x9d2   :  { %v897_v20 = vsub.f32 1.0, %v896_v19  ;;  %1211 = vmatpush.msra.mxu2 %v6043_v32  ;;  %1607 = vmatpush.msra.mxu0 %v6043_v32 }
 0x9d4   :  { %v898_v22 = vmul.f32 %v5184_v17, %v897_v20  ;;  %1212 = vmatpush.msra.mxu2 %v6049_v35  ;;  %1608 = vmatpush.msra.mxu0 %v6049_v35 }
 0x9d6   :  { %v899_v15 = vadd.f32 %v5184_v17, %v898_v22  ;;  %1213 = vmatpush.msra.mxu2 %v6057_v37  ;;  %1609 = vmatpush.msra.mxu0 %v6057_v37 }
 0x9d8   :  { %v903_v26 = vsel %vm902_vm13, %v5184_v17, %v899_v15  ;;  %1800 = vmatpush.msrb.mxu0 %v6002_v3 }
 0x9d9   :  { %v908_v29 = vsel %vm905_vm14, %v907_v27, %v903_v26 }
 0x9da   :  { %1801 = vmatpush.msrb.mxu0 %v6006_v5 }
 0x9dc   :  { %1802 = vmatpush.msrb.mxu0 %v6012_v9 }
 0x9de   :  { %1803 = vmatpush.msrb.mxu0 %v6020_v14 }
 0x9e0   :  { %1804 = vmatpush.msrb.mxu0 %v6039_v21 }
 0x9e2   :  { %1805 = vmatpush.msrb.mxu0 %v6043_v32 }
 0x9e4   :  { %1806 = vmatpush.msrb.mxu0 %v6049_v35 }
 0x9e6   :  { %1807 = vmatpush.msrb.mxu0 %v6057_v37 }
 0xa43   :  { %v914_v12 = vpop.permute.xlu0 %913 }
 0xa44   :  { %v6035_v13 = vadd.f32 %v914_v12, %v910_v59 }
 0xa46   :  { %5185 = vtanh.f32 %v6035_v13 }
 0xa4c   :  { %v5186_v28 = vpop.eup %5185 }
 0xa4d   :  { %v918_v30 = vmul.f32 %v5186_v28, %v908_v29 }
 0xa4f   :  { %920 = vrot.lane.b32.xlu1 %v918_v30, %s5640_s18 }
 0xac1   :  { %v921_v39 = vpop.permute.xlu1 %920 }
 0xac2   :  { %924 = vst.msk [vmem:[#allocation3 + $0x30] sm:$0xff] %vm220_vm10, %v921_v39  ;;  %4905 = vmatmul.msk.f32.vlgmr.msrb.gmra.mxu2 %vm220_vm10, %v921_v39  ;;  %4906 = vmatmul.msk.f32.vlgmr.msrb.gmra.mxu3 %vm220_vm10, %v921_v39 }
 0xac3   :  { %1305 = vmatpush.msrb.mxu2 %v6002_v3  ;;  %1325 = vmatpush.msrb.mxu3 %v6004_v4 }
 0xac5   :  { %1306 = vmatpush.msrb.mxu2 %v6006_v5  ;;  %1326 = vmatpush.msrb.mxu3 %v6010_v7 }
 0xac7   :  { %1307 = vmatpush.msrb.mxu2 %v6012_v9  ;;  %1327 = vmatpush.msrb.mxu3 %v6014_v11 }
 0xac9   :  { %v1032_v40 = vld [vmem:[#allocation3 + $0x30] sm:$0xff]  ;;  %1308 = vmatpush.msrb.mxu2 %v6020_v14  ;;  %1328 = vmatpush.msrb.mxu3 %v6022_v16 }
 0xaca   :  { %4916 = vmatmul.msk.f32.gmra.mxu0 %vm220_vm10, %v1032_v40  ;;  %4924 = vmatmul.msk.f32.gmra.mxu1 %vm220_vm10, %v1032_v40 }
 0xacb   :  { %1214 = vmatmul.f32.vlgmr.msra.gmra.mxu2 %v5639_v23  ;;  %1234 = vmatmul.f32.vlgmr.msra.gmra.mxu3 %v5639_v23 }
 0xacc   :  { %1309 = vmatpush.msrb.mxu2 %v6039_v21  ;;  %1329 = vmatpush.msrb.mxu3 %v6041_v31 }
 0xace   :  { %1310 = vmatpush.msrb.mxu2 %v6043_v32  ;;  %1330 = vmatpush.msrb.mxu3 %v6047_v34 }
 0xad0   :  { %1311 = vmatpush.msrb.mxu2 %v6049_v35  ;;  %1331 = vmatpush.msrb.mxu3 %v6051_v36 }
 0xad2   :  { %1312 = vmatpush.msrb.mxu2 %v6057_v37  ;;  %1332 = vmatpush.msrb.mxu3 %v6059_v38 }
 0xad4   :  { %1404 = vmatpush.msra.mxu2 %v6002_v3  ;;  %1424 = vmatpush.msra.mxu3 %v6004_v4 }
 0xad6   :  { %1405 = vmatpush.msra.mxu2 %v6006_v5  ;;  %1425 = vmatpush.msra.mxu3 %v6010_v7 }
 0xad8   :  { %1406 = vmatpush.msra.mxu2 %v6012_v9  ;;  %1426 = vmatpush.msra.mxu3 %v6014_v11 }
 0xada   :  { %1407 = vmatpush.msra.mxu2 %v6020_v14  ;;  %1427 = vmatpush.msra.mxu3 %v6022_v16 }
 0xadc   :  { %1408 = vmatpush.msra.mxu2 %v6039_v21  ;;  %1428 = vmatpush.msra.mxu3 %v6041_v31 }
 0xade   :  { %1409 = vmatpush.msra.mxu2 %v6043_v32  ;;  %1429 = vmatpush.msra.mxu3 %v6047_v34 }
 0xae0   :  { %1410 = vmatpush.msra.mxu2 %v6049_v35  ;;  %1430 = vmatpush.msra.mxu3 %v6051_v36 }
 0xae2   :  { %1411 = vmatpush.msra.mxu2 %v6057_v37  ;;  %1431 = vmatpush.msra.mxu3 %v6059_v38 }
 0xb45   :  { %v6126_v41 = vpop.f32.mrf.mxu2  ;;  %v6134_v49 = vpop.f32.mrf.mxu3 }
 0xb4e   :  { %v1215_v46 = vpop.f32.mrf.mxu2  ;;  %v1235_v60 = vpop.f32.mrf.mxu3 }
 0xb4f   :  { %v1238_v47 = vadd.f32 %v1215_v46, %v1099_v45  ;;  %v1239_v54 = vadd.f32 %v1235_v60, %v1140_v61 }
 0xb51   :  { %v4926_v48 = vmul.f32 -1.442695, %v1238_v47  ;;  %v4927_v20 = vmul.f32 -1.442695, %v1239_v54 }
 0xb53   :  { %5187 = vpow2.f32 %v4926_v48  ;;  %v1101_v48 = vpop.f32.mrf.mxu0 }
 0xb59   :  { %v5188_v50 = vpop.eup %5187 }
 0xb5a   :  { %v1243_v51 = vadd.f32 1.0, %v5188_v50  ;;  %v1102_v50 = vadd.f32 %v1101_v48, %v6131_v43 }
 0xb5c   :  { %5189 = vrcp.f32 %v1243_v51  ;;  %v1255_v55 = vand.u32 2147483648, %v1243_v51  ;;  %v1253_v10 = vand.u32 2147483647, %v1243_v51  ;;  %vm1249_vm0 = vweird.f32 %v1243_v51 }
 0xb5d   :  { %5191 = vtanh.f32 %v1239_v54  ;;  %v1142_v54 = vpop.f32.mrf.mxu1 }
 0xb5e   :  { %v1256_v58 = vor.u32 1.1754944e-38, %v1255_v55  ;;  %vm1254_vm3 = vcmp.eq.f32.partialorder %v1253_v10, 8.507059e+37  ;;  %5193 = vpow2.f32 %v4927_v20 }
 0xb62   :  { %v5190_v62 = vpop.eup %5189 }
 0xb63   :  { %v1245_v63 = vmul.f32 %v5190_v62, %v1243_v51  ;;  %vm1250_vm15 = vweird.f32 %v5190_v62  ;;  %v5192_v2 = vpop.eup %5191 }
 0xb64   :  { %vm1251_vm2 = vmor %vm1249_vm0, %vm1250_vm15  ;;  %v5194_v22 = vpop.eup %5193 }
 0xb65   :  { %v1246_v8 = vsub.f32 1.0, %v1245_v63  ;;  %v1263_v59 = vadd.f32 1.0, %v5194_v22 }
 0xb67   :  { %v1247_v57 = vmul.f32 %v5190_v62, %v1246_v8  ;;  %5195 = vrcp.f32 %v1263_v59  ;;  %v1275_v30 = vand.u32 2147483648, %v1263_v59  ;;  %vm1269_vm5 = vweird.f32 %v1263_v59 }
 0xb68   :  { %v1273_v39 = vand.u32 2147483647, %v1263_v59  ;;  %v1143_v8 = vadd.f32 %v1142_v54, %v6136_v52 }
 0xb69   :  { %v1248_v0 = vadd.f32 %v5190_v62, %v1247_v57  ;;  %v1276_v42 = vor.u32 1.1754944e-38, %v1275_v30 }
 0xb6a   :  { %vm1274_vm6 = vcmp.eq.f32.partialorder %v1273_v39, 8.507059e+37 }
 0xb6b   :  { %v1252_v1 = vsel %vm1251_vm2, %v5190_v62, %v1248_v0 }
 0xb6c   :  { %v1257_v17 = vsel %vm1254_vm3, %v1256_v58, %v1252_v1 }
 0xb6d   :  { %v1280_v19 = vmul.f32 %v5192_v2, %v1257_v17  ;;  %v5196_v12 = vpop.eup %5195  ;;  %v1279_v26 = vmul.f32 0.0, %v1257_v17 }
 0xb6e   :  { %v1265_v15 = vmul.f32 %v5196_v12, %v1263_v59  ;;  %vm1270_vm4 = vweird.f32 %v5196_v12 }
 0xb6f   :  { %1282 = vrot.lane.b32.xlu2 %v1280_v19, %s5640_s18  ;;  %vm1271_vm1 = vmor %vm1269_vm5, %vm1270_vm4 }
 0xb70   :  { %v1266_v18 = vsub.f32 1.0, %v1265_v15  ;;  %v143_v15 = vadd.f32 %v5955_v56, %v5819_v25 }
 0xb72   :  { %v1267_v24 = vmul.f32 %v5196_v12, %v1266_v18 }
 0xb74   :  { %v1268_v29 = vadd.f32 %v5196_v12, %v1267_v24  ;;  %v970_v24 = vadd.f32 %v6126_v41, %v143_v15 }
 0xb76   :  { %v1272_v40 = vsel %vm1271_vm1, %v5196_v12, %v1268_v29 }
 0xb77   :  { %v1277_v45 = vsel %vm1274_vm6, %v1276_v42, %v1272_v40 }
 0xbc9   :  { %v1283_v27 = vpop.permute.xlu2 %1282 }
 0xbca   :  { %v6140_v28 = vadd.f32 %v1283_v27, %v1279_v26  ;;  %v4907_v26 = vmul.f32 -1.442695, %v970_v24 }
 0xbcc   :  { %5197 = vtanh.f32 %v6140_v28 }
 0xbd2   :  { %v5198_v44 = vpop.eup %5197 }
 0xbd3   :  { %v1287_v46 = vmul.f32 %v5198_v44, %v1277_v45 }
 0xbd5   :  { %1289 = vrot.lane.b32.xlu0 %v1287_v46, %s5640_s18 }
 0xc47   :  { %v1290_v47 = vpop.permute.xlu0 %1289 }
 0xc48   :  { %1292 = vst.msk [vmem:[#allocation3] sm:$0xff] %vm220_vm10, %v1290_v47  ;;  %4928 = vmatmul.msk.f32.vlgmr.msrb.gmra.mxu2 %vm220_vm10, %v1290_v47  ;;  %4929 = vmatmul.msk.f32.vlgmr.msrb.gmra.mxu3 %vm220_vm10, %v1290_v47 }
 0xc49   :  { %1503 = vmatpush.msrb.mxu2 %v6002_v3  ;;  %1523 = vmatpush.msrb.mxu3 %v6004_v4 }
 0xc4b   :  { %1504 = vmatpush.msrb.mxu2 %v6006_v5  ;;  %1524 = vmatpush.msrb.mxu3 %v6010_v7 }
 0xc4d   :  { %1505 = vmatpush.msrb.mxu2 %v6012_v9  ;;  %1525 = vmatpush.msrb.mxu3 %v6014_v11 }
 0xc4f   :  { %1506 = vmatpush.msrb.mxu2 %v6020_v14  ;;  %1526 = vmatpush.msrb.mxu3 %v6022_v16 }
 0xc51   :  { %1507 = vmatpush.msrb.mxu2 %v6039_v21  ;;  %1527 = vmatpush.msrb.mxu3 %v6041_v31 }
 0xc53   :  { %1508 = vmatpush.msrb.mxu2 %v6043_v32  ;;  %1528 = vmatpush.msrb.mxu3 %v6047_v34 }
 0xc55   :  { %1509 = vmatpush.msrb.mxu2 %v6049_v35  ;;  %1529 = vmatpush.msrb.mxu3 %v6051_v36 }
 0xc57   :  { %1510 = vmatpush.msrb.mxu2 %v6057_v37  ;;  %1530 = vmatpush.msrb.mxu3 %v6059_v38 }
 0xccb   :  { %v1314_v51 = vpop.f32.mrf.mxu2  ;;  %v1334_v63 = vpop.f32.mrf.mxu3 }
 0xccc   :  { %v1337_v53 = vadd.f32 %v1314_v51, %v1102_v50  ;;  %v1338_v57 = vadd.f32 %v1334_v63, %v1143_v8 }
 0xcce   :  { %v4930_v60 = vmul.f32 -1.442695, %v1337_v53  ;;  %v4931_v18 = vmul.f32 -1.442695, %v1338_v57 }
 0xcd0   :  { %5199 = vpow2.f32 %v4930_v60 }
 0xcd6   :  { %v5200_v61 = vpop.eup %5199 }
 0xcd7   :  { %v1342_v62 = vadd.f32 1.0, %v5200_v61  ;;  %v184_v61 = vadd.f32 %v5960_v6, %v5822_v33 }
 0xcd9   :  { %5201 = vrcp.f32 %v1342_v62  ;;  %v1354_v58 = vand.u32 2147483648, %v1342_v62  ;;  %v1352_v2 = vand.u32 2147483647, %v1342_v62  ;;  %vm1348_vm8 = vweird.f32 %v1342_v62 }
 0xcda   :  { %5203 = vtanh.f32 %v1338_v57  ;;  %v971_v54 = vadd.f32 %v6134_v49, %v184_v61 }
 0xcdb   :  { %v1355_v19 = vor.u32 1.1754944e-38, %v1354_v58  ;;  %vm1353_vm11 = vcmp.eq.f32.partialorder %v1352_v2, 8.507059e+37  ;;  %5205 = vpow2.f32 %v4931_v18 }
 0xcdc   :  { %5207 = vpow2.f32 %v4907_v26  ;;  %v4908_v2 = vmul.f32 -1.442695, %v971_v54 }
 0xcdf   :  { %v5202_v55 = vpop.eup %5201 }
 0xce0   :  { %v1344_v10 = vmul.f32 %v5202_v55, %v1342_v62  ;;  %vm1349_vm7 = vweird.f32 %v5202_v55  ;;  %v5204_v22 = vpop.eup %5203 }
 0xce1   :  { %vm1350_vm9 = vmor %vm1348_vm8, %vm1349_vm7  ;;  %v5206_v27 = vpop.eup %5205 }
 0xce2   :  { %v1345_v0 = vsub.f32 1.0, %v1344_v10  ;;  %v1362_v29 = vadd.f32 1.0, %v5206_v27  ;;  %v5208_v30 = vpop.eup %5207 }
 0xce3   :  { %v975_v39 = vadd.f32 1.0, %v5208_v30 }
 0xce4   :  { %v1346_v1 = vmul.f32 %v5202_v55, %v1345_v0  ;;  %5209 = vrcp.f32 %v1362_v29  ;;  %v1374_v51 = vand.u32 2147483648, %v1362_v29  ;;  %vm1368_vm13 = vweird.f32 %v1362_v29 }
 0xce5   :  { %5211 = vrcp.f32 %v975_v39  ;;  %v1372_v53 = vand.u32 2147483647, %v1362_v29  ;;  %v987_v57 = vand.u32 2147483648, %v975_v39  ;;  %vm981_vm2 = vweird.f32 %v975_v39 }
 0xce6   :  { %v1347_v17 = vadd.f32 %v5202_v55, %v1346_v1  ;;  %v985_v0 = vand.u32 2147483647, %v975_v39 }
 0xce7   :  { %vm1373_vm15 = vcmp.eq.f32.partialorder %v1372_v53, 8.507059e+37  ;;  %v988_v33 = vor.u32 1.1754944e-38, %v987_v57 }
 0xce8   :  { %v1351_v20 = vsel %vm1350_vm9, %v5202_v55, %v1347_v17  ;;  %vm986_vm4 = vcmp.eq.f32.partialorder %v985_v0, 8.507059e+37 }
 0xce9   :  { %v1356_v59 = vsel %vm1353_vm11, %v1355_v19, %v1351_v20 }
 0xcea   :  { %v1379_v12 = vmul.f32 %v5204_v22, %v1356_v59  ;;  %v5210_v40 = vpop.eup %5209  ;;  %v1378_v25 = vmul.f32 %v1356_v59, %v6140_v28  ;;  %v1375_v28 = vor.u32 1.1754944e-38, %v1374_v51  ;;  %v1145_v51 = vpop.f32.mrf.mxu1 }
 0xceb   :  { %v1364_v42 = vmul.f32 %v5210_v40, %v1362_v29  ;;  %v5212_v44 = vpop.eup %5211  ;;  %vm1369_vm12 = vweird.f32 %v5210_v40 }
 0xcec   :  { %1381 = vrot.lane.b32.xlu1 %v1379_v12, %s5640_s18  ;;  %v977_v46 = vmul.f32 %v5212_v44, %v975_v39  ;;  %vm1370_vm14 = vmor %vm1368_vm13, %vm1369_vm12  ;;  %vm982_vm0 = vweird.f32 %v5212_v44 }
 0xced   :  { %v1365_v45 = vsub.f32 1.0, %v1364_v42  ;;  %vm983_vm3 = vmor %vm981_vm2, %vm982_vm0 }
 0xcee   :  { %v978_v48 = vsub.f32 1.0, %v977_v46 }
 0xcef   :  { %v1366_v47 = vmul.f32 %v5210_v40, %v1365_v45  ;;  %v1104_v45 = vpop.f32.mrf.mxu0 }
 0xcf0   :  { %v979_v60 = vmul.f32 %v5212_v44, %v978_v48  ;;  %v1105_v46 = vadd.f32 %v1104_v45, %v6131_v43 }
 0xcf1   :  { %v1367_v50 = vadd.f32 %v5210_v40, %v1366_v47 }
 0xcf2   :  { %v980_v63 = vadd.f32 %v5212_v44, %v979_v60  ;;  %v1146_v60 = vadd.f32 %v1145_v51, %v6136_v52 }
 0xcf3   :  { %v1371_v62 = vsel %vm1370_vm14, %v5210_v40, %v1367_v50 }
 0xcf4   :  { %v1376_v55 = vsel %vm1373_vm15, %v1375_v28, %v1371_v62  ;;  %v984_v58 = vsel %vm983_vm3, %v5212_v44, %v980_v63 }
 0xcf5   :  { %v989_v6 = vsel %vm986_vm4, %v988_v33, %v984_v58 }
 0xcf6   :  { %v1011_v18 = vmul.f32 %v989_v6, %v6035_v13 }
 0xd5e   :  { %v1382_v56 = vpop.permute.xlu1 %1381 }
 0xd5f   :  { %v6170_v41 = vadd.f32 %v1382_v56, %v1378_v25 }
 0xd61   :  { %5213 = vtanh.f32 %v6170_v41 }
 0xd62   :  { %5215 = vtanh.f32 %v971_v54 }
 0xd63   :  { %5217 = vpow2.f32 %v4908_v2 }
 0xd67   :  { %v5214_v8 = vpop.eup %5213 }
 0xd68   :  { %v1386_v10 = vmul.f32 %v5214_v8, %v1376_v55  ;;  %v5216_v1 = vpop.eup %5215 }
 0xd69   :  { %v1012_v49 = vmul.f32 %v5216_v1, %v989_v6  ;;  %v5218_v17 = vpop.eup %5217 }
 0xd6a   :  { %1388 = vrot.lane.b32.xlu2 %v1386_v10, %s5640_s18  ;;  %v995_v19 = vadd.f32 1.0, %v5218_v17 }
 0xd6c   :  { %5219 = vrcp.f32 %v995_v19  ;;  %v1007_v29 = vand.u32 2147483648, %v995_v19  ;;  %vm1001_vm1 = vweird.f32 %v995_v19  ;;  %v1005_v30 = vand.u32 2147483647, %v995_v19 }
 0xd6e   :  { %v1008_v39 = vor.u32 1.1754944e-38, %v1007_v29  ;;  %vm1006_vm7 = vcmp.eq.f32.partialorder %v1005_v30, 8.507059e+37 }
 0xd72   :  { %1014 = vrot.lane.b32.xlu2 %v1012_v49, %s5640_s18  ;;  %v5220_v20 = vpop.eup %5219 }
 0xd73   :  { %v997_v22 = vmul.f32 %v5220_v20, %v995_v19  ;;  %vm1002_vm5 = vweird.f32 %v5220_v20 }
 0xd74   :  { %vm1003_vm6 = vmor %vm1001_vm1, %vm1002_vm5 }
 0xd75   :  { %v998_v12 = vsub.f32 1.0, %v997_v22 }
 0xd77   :  { %v999_v15 = vmul.f32 %v5220_v20, %v998_v12 }
 0xd79   :  { %v1000_v27 = vadd.f32 %v5220_v20, %v999_v15 }
 0xd7b   :  { %v1004_v13 = vsel %vm1003_vm6, %v5220_v20, %v1000_v27 }
 0xd7c   :  { %v1009_v42 = vsel %vm1006_vm7, %v1008_v39, %v1004_v13 }
 0xdc4   :  { %v1389_v59 = vpop.permute.xlu2 %1388 }
 0xdc5   :  { %1391 = vst.msk [vmem:[#allocation3 + $0x8] sm:$0xff] %vm220_vm10, %v1389_v59  ;;  %4932 = vmatmul.msk.f32.vlgmr.msra.gmra.mxu2 %vm220_vm10, %v1389_v59  ;;  %4933 = vmatmul.msk.f32.vlgmr.msra.gmra.mxu3 %vm220_vm10, %v1389_v59 }
 0xdc6   :  { %1701 = vmatpush.msra.mxu2 %v6002_v3  ;;  %1721 = vmatpush.msra.mxu3 %v6004_v4 }
 0xdc8   :  { %1702 = vmatpush.msra.mxu2 %v6006_v5  ;;  %1722 = vmatpush.msra.mxu3 %v6010_v7 }
 0xdca   :  { %1703 = vmatpush.msra.mxu2 %v6012_v9  ;;  %1723 = vmatpush.msra.mxu3 %v6014_v11 }
 0xdcc   :  { %v1015_v24 = vpop.permute.xlu2 %1014  ;;  %1704 = vmatpush.msra.mxu2 %v6020_v14  ;;  %1724 = vmatpush.msra.mxu3 %v6022_v16 }
 0xdcd   :  { %v1017_v26 = vadd.f32 %v1015_v24, %v1011_v18 }
 0xdce   :  { %1705 = vmatpush.msra.mxu2 %v6039_v21  ;;  %1725 = vmatpush.msra.mxu3 %v6041_v31 }
 0xdcf   :  { %5221 = vtanh.f32 %v1017_v26 }
 0xdd0   :  { %1706 = vmatpush.msra.mxu2 %v6043_v32  ;;  %1726 = vmatpush.msra.mxu3 %v6047_v34 }
 0xdd2   :  { %1707 = vmatpush.msra.mxu2 %v6049_v35  ;;  %1727 = vmatpush.msra.mxu3 %v6051_v36 }
 0xdd4   :  { %1708 = vmatpush.msra.mxu2 %v6057_v37  ;;  %1728 = vmatpush.msra.mxu3 %v6059_v38 }
 0xdd5   :  { %v5222_v40 = vpop.eup %5221 }
 0xdd6   :  { %v1019_v44 = vmul.f32 %v5222_v40, %v1009_v42 }
 0xe48   :  { %v1413_v47 = vpop.f32.mrf.mxu2  ;;  %v1433_v53 = vpop.f32.mrf.mxu3 }
 0xe49   :  { %v1436_v25 = vadd.f32 %v1413_v47, %v1105_v46  ;;  %v1437_v62 = vadd.f32 %v1433_v53, %v1146_v60 }
 0xe4b   :  { %v4934_v56 = vmul.f32 -1.442695, %v1436_v25  ;;  %v4935_v1 = vmul.f32 -1.442695, %v1437_v62 }
 0xe4d   :  { %5223 = vpow2.f32 %v4934_v56 }
 0xe53   :  { %v5224_v48 = vpop.eup %5223 }
 0xe54   :  { %v1441_v50 = vadd.f32 1.0, %v5224_v48 }
 0xe56   :  { %5225 = vrcp.f32 %v1441_v50  ;;  %v1453_v63 = vand.u32 2147483648, %v1441_v50  ;;  %v1451_v55 = vand.u32 2147483647, %v1441_v50  ;;  %vm1447_vm9 = vweird.f32 %v1441_v50 }
 0xe57   :  { %5227 = vtanh.f32 %v1437_v62 }
 0xe58   :  { %v1454_v10 = vor.u32 1.1754944e-38, %v1453_v63  ;;  %vm1452_vm12 = vcmp.eq.f32.partialorder %v1451_v55, 8.507059e+37  ;;  %5229 = vpow2.f32 %v4935_v1 }
 0xe5c   :  { %v5226_v61 = vpop.eup %5225 }
 0xe5d   :  { %v1443_v54 = vmul.f32 %v5226_v61, %v1441_v50  ;;  %vm1448_vm8 = vweird.f32 %v5226_v61  ;;  %v5228_v58 = vpop.eup %5227 }
 0xe5e   :  { %vm1449_vm11 = vmor %vm1447_vm9, %vm1448_vm8  ;;  %v5230_v49 = vpop.eup %5229 }
 0xe5f   :  { %v1444_v28 = vsub.f32 1.0, %v1443_v54  ;;  %v1461_v2 = vadd.f32 1.0, %v5230_v49 }
 0xe61   :  { %v1445_v8 = vmul.f32 %v5226_v61, %v1444_v28  ;;  %5231 = vrcp.f32 %v1461_v2  ;;  %v1473_v24 = vand.u32 2147483648, %v1461_v2  ;;  %vm1467_vm14 = vweird.f32 %v1461_v2 }
 0xe62   :  { %v1471_v26 = vand.u32 2147483647, %v1461_v2 }
 0xe63   :  { %v1446_v57 = vadd.f32 %v5226_v61, %v1445_v8  ;;  %v1474_v29 = vor.u32 1.1754944e-38, %v1473_v24 }
 0xe64   :  { %vm1472_vm0 = vcmp.eq.f32.partialorder %v1471_v26, 8.507059e+37 }
 0xe65   :  { %v1450_v0 = vsel %vm1449_vm11, %v5226_v61, %v1446_v57 }
 0xe66   :  { %v1455_v33 = vsel %vm1452_vm12, %v1454_v10, %v1450_v0 }
 0xe67   :  { %v1478_v6 = vmul.f32 %v5228_v58, %v1455_v33  ;;  %v5232_v17 = vpop.eup %5231  ;;  %v1477_v59 = vmul.f32 %v1455_v33, %v6170_v41 }
 0xe68   :  { %v1463_v19 = vmul.f32 %v5232_v17, %v1461_v2  ;;  %vm1468_vm13 = vweird.f32 %v5232_v17 }
 0xe69   :  { %1480 = vrot.lane.b32.xlu0 %v1478_v6, %s5640_s18  ;;  %vm1469_vm15 = vmor %vm1467_vm14, %vm1468_vm13 }
 0xe6a   :  { %v1464_v20 = vsub.f32 1.0, %v1463_v19 }
 0xe6c   :  { %v1465_v22 = vmul.f32 %v5232_v17, %v1464_v20 }
 0xe6e   :  { %v1466_v18 = vadd.f32 %v5232_v17, %v1465_v22 }
 0xe70   :  { %v1470_v27 = vsel %vm1469_vm15, %v5232_v17, %v1466_v18 }
 0xe71   :  { %v1475_v13 = vsel %vm1472_vm0, %v1474_v29, %v1470_v27 }
 0xedb   :  { %v1481_v12 = vpop.permute.xlu0 %1480 }
 0xedc   :  { %v6202_v15 = vadd.f32 %v1481_v12, %v1477_v59 }
 0xede   :  { %5233 = vtanh.f32 %v6202_v15 }
 0xee4   :  { %v5234_v30 = vpop.eup %5233 }
 0xee5   :  { %v1485_v39 = vmul.f32 %v5234_v30, %v1475_v13 }
 0xee7   :  { %1487 = vrot.lane.b32.xlu1 %v1485_v39, %s5640_s18 }
 0xeef   :  { %1021 = vrot.lane.b32.xlu1 %v1019_v44, %s5640_s18 }
 0xf59   :  { %v1488_v41 = vpop.permute.xlu1 %1487 }
 0xf5a   :  { %1490 = vst.msk [vmem:[#allocation3 + $0x10] sm:$0xff] %vm220_vm10, %v1488_v41  ;;  %4936 = vmatmul.msk.f32.vlgmr.msrb.gmra.mxu2 %vm220_vm10, %v1488_v41  ;;  %4937 = vmatmul.msk.f32.vlgmr.msrb.gmra.mxu3 %vm220_vm10, %v1488_v41 }
 0xf5b   :  { %1899 = vmatpush.msrb.mxu2 %v6002_v3  ;;  %1919 = vmatpush.msrb.mxu3 %v6004_v4  ;;  %v1107_v4 = vpop.f32.mrf.mxu0 }
 0xf5d   :  { %1900 = vmatpush.msrb.mxu2 %v6006_v5  ;;  %1920 = vmatpush.msrb.mxu3 %v6010_v7  ;;  %v1108_v5 = vadd.f32 %v1107_v4, %v6131_v43 }
 0xf5f   :  { %1901 = vmatpush.msrb.mxu2 %v6012_v9  ;;  %1921 = vmatpush.msrb.mxu3 %v6014_v11 }
 0xf61   :  { %v1022_v40 = vpop.permute.xlu1 %1021  ;;  %1902 = vmatpush.msrb.mxu2 %v6020_v14  ;;  %1922 = vmatpush.msrb.mxu3 %v6022_v16 }
 0xf62   :  { %1025 = vst.msk [vmem:[#allocation3 + $0x38] sm:$0xff] %vm220_vm10, %v1022_v40 }
 0xf63   :  { %1903 = vmatpush.msrb.mxu2 %v6039_v21  ;;  %1923 = vmatpush.msrb.mxu3 %v6041_v31  ;;  %v1148_v21 = vpop.f32.mrf.mxu1  ;;  %v1110_v2 = vpop.f32.mrf.mxu0 }
 0xf64   :  { %v1111_v12 = vadd.f32 %v1110_v2, %v6131_v43 }
 0xf65   :  { %1904 = vmatpush.msrb.mxu2 %v6043_v32  ;;  %1924 = vmatpush.msrb.mxu3 %v6047_v34  ;;  %v1149_v32 = vadd.f32 %v1148_v21, %v6136_v52 }
 0xf67   :  { %1905 = vmatpush.msrb.mxu2 %v6049_v35  ;;  %1925 = vmatpush.msrb.mxu3 %v6051_v36 }
 0xf69   :  { %v1033_v3 = vld [vmem:[#allocation3 + $0x38] sm:$0xff]  ;;  %1906 = vmatpush.msrb.mxu2 %v6057_v37  ;;  %1926 = vmatpush.msrb.mxu3 %v6059_v38 }
 0xf6a   :  { %4917 = vmatmul.msk.f32.gmra.mxu0 %vm220_vm10, %v1033_v3  ;;  %4925 = vmatmul.msk.f32.gmra.mxu1 %vm220_vm10, %v1033_v3 }
 0xf6b   :  { %v6240_v17 = vpop.f32.mrf.mxu0  ;;  %v1151_v19 = vpop.f32.mrf.mxu1 }
 0xf6c   :  { %v1152_v39 = vadd.f32 %v1151_v19, %v6136_v52 }
 0xf73   :  { %v6242_v20 = vpop.f32.mrf.mxu0  ;;  %v6246_v59 = vpop.f32.mrf.mxu1 }
 0xf7b   :  { %v6249_v18 = vpop.f32.mrf.mxu1 }
 0xfdd   :  { %v1512_v7 = vpop.f32.mrf.mxu2  ;;  %v1532_v31 = vpop.f32.mrf.mxu3 }
 0xfde   :  { %v1535_v9 = vadd.f32 %v1512_v7, %v1108_v5  ;;  %v1536_v35 = vadd.f32 %v1532_v31, %v1149_v32 }
 0xfe0   :  { %v4938_v11 = vmul.f32 -1.442695, %v1535_v9  ;;  %v4939_v50 = vmul.f32 -1.442695, %v1536_v35 }
 0xfe2   :  { %5235 = vpow2.f32 %v4938_v11 }
 0xfe7   :  { %v6244_v22 = vpop.f32.mrf.mxu0  ;;  %v6251_v27 = vpop.f32.mrf.mxu1 }
 0xfe8   :  { %v5236_v14 = vpop.eup %5235 }
 0xfe9   :  { %v1540_v16 = vadd.f32 1.0, %v5236_v14 }
 0xfeb   :  { %5237 = vrcp.f32 %v1540_v16  ;;  %v1552_v38 = vand.u32 2147483648, %v1540_v16  ;;  %v1550_v44 = vand.u32 2147483647, %v1540_v16  ;;  %vm1546_vm3 = vweird.f32 %v1540_v16 }
 0xfec   :  { %5239 = vtanh.f32 %v1536_v35 }
 0xfed   :  { %v1553_v46 = vor.u32 1.1754944e-38, %v1552_v38  ;;  %vm1551_vm5 = vcmp.eq.f32.partialorder %v1550_v44, 8.507059e+37  ;;  %5241 = vpow2.f32 %v4939_v50 }
 0xff1   :  { %v5238_v34 = vpop.eup %5237 }
 0xff2   :  { %v1542_v36 = vmul.f32 %v5238_v34, %v1540_v16  ;;  %vm1547_vm2 = vweird.f32 %v5238_v34  ;;  %v5240_v25 = vpop.eup %5239 }
 0xff3   :  { %vm1548_vm4 = vmor %vm1546_vm3, %vm1547_vm2  ;;  %v5242_v51 = vpop.eup %5241 }
 0xff4   :  { %v1543_v37 = vsub.f32 1.0, %v1542_v36  ;;  %v1560_v53 = vadd.f32 1.0, %v5242_v51 }
 0xff6   :  { %v1544_v42 = vmul.f32 %v5238_v34, %v1543_v37  ;;  %5243 = vrcp.f32 %v1560_v53  ;;  %v1572_v57 = vand.u32 2147483648, %v1560_v53  ;;  %vm1566_vm6 = vweird.f32 %v1560_v53 }
 0xff7   :  { %v1570_v10 = vand.u32 2147483647, %v1560_v53 }
 0xff8   :  { %v1545_v45 = vadd.f32 %v5238_v34, %v1544_v42  ;;  %v1573_v58 = vor.u32 1.1754944e-38, %v1572_v57 }
 0xff9   :  { %vm1571_vm8 = vcmp.eq.f32.partialorder %v1570_v10, 8.507059e+37 }
 0xffa   :  { %v1549_v47 = vsel %vm1548_vm4, %v5238_v34, %v1545_v45 }
 0xffb   :  { %v1554_v56 = vsel %vm1551_vm5, %v1553_v46, %v1549_v47 }
 0xffc   :  { %v1577_v48 = vmul.f32 %v5240_v25, %v1554_v56  ;;  %v5244_v60 = vpop.eup %5243  ;;  %v1576_v28 = vmul.f32 %v1554_v56, %v6202_v15 }
 0xffd   :  { %v1562_v61 = vmul.f32 %v5244_v60, %v1560_v53  ;;  %vm1567_vm1 = vweird.f32 %v5244_v60 }
 0xffe   :  { %1579 = vrot.lane.b32.xlu0 %v1577_v48, %s5640_s18  ;;  %vm1568_vm7 = vmor %vm1566_vm6, %vm1567_vm1 }
 0xfff   :  { %v1563_v62 = vsub.f32 1.0, %v1562_v61 }
0x1001   :  { %v1564_v54 = vmul.f32 %v5244_v60, %v1563_v62 }
0x1003   :  { %v1565_v55 = vadd.f32 %v5244_v60, %v1564_v54  ;;  %v1114_v54 = vadd.f32 %v6240_v17, %v6131_v43 }
0x1005   :  { %v1569_v0 = vsel %vm1568_vm7, %v5244_v60, %v1565_v55 }
0x1006   :  { %v1574_v6 = vsel %vm1571_vm8, %v1573_v58, %v1569_v0  ;;  %v1155_v0 = vadd.f32 %v6246_v59, %v6136_v52 }
0x1070   :  { %v1580_v63 = vpop.permute.xlu0 %1579 }
0x1071   :  { %v6233_v8 = vadd.f32 %v1580_v63, %v1576_v28 }
0x1073   :  { %5245 = vtanh.f32 %v6233_v8 }
0x1079   :  { %v5246_v33 = vpop.eup %5245 }
0x107a   :  { %v1584_v1 = vmul.f32 %v5246_v33, %v1574_v6 }
0x107c   :  { %1586 = vrot.lane.b32.xlu2 %v1584_v1, %s5640_s18 }
0x10d6   :  { %v1587_v49 = vpop.permute.xlu2 %1586 }
0x10d7   :  { %1589 = vst.msk [vmem:[#allocation3 + $0x18] sm:$0xff] %vm220_vm10, %v1587_v49  ;;  %4940 = vmatmul.msk.f32.vlgmr.msra.gmra.mxu0 %vm220_vm10, %v1587_v49  ;;  %4941 = vmatmul.msk.f32.vlgmr.msra.gmra.mxu1 %vm220_vm10, %v1587_v49 }
0x1154   :  { %v1611_v15 = vpop.f32.mrf.mxu0  ;;  %v1631_v13 = vpop.f32.mrf.mxu1 }
0x1155   :  { %v1634_v24 = vadd.f32 %v1611_v15, %v1111_v12  ;;  %v1635_v40 = vadd.f32 %v1631_v13, %v1152_v39  ;;  %v2009_v39 = vld [vmem:[#allocation4 + $0xf0] sm:$0xff] }
0x1156   :  { %2050 = vmatpush.msra.mxu0 %v2009_v39 }
0x1157   :  { %v4942_v26 = vmul.f32 -1.442695, %v1634_v24  ;;  %v4943_v34 = vmul.f32 -1.442695, %v1635_v40 }
0x1159   :  { %5247 = vpow2.f32 %v4942_v26 }
0x115f   :  { %v5248_v29 = vpop.eup %5247 }
0x1160   :  { %v1639_v30 = vadd.f32 1.0, %v5248_v29 }
0x1162   :  { %5249 = vrcp.f32 %v1639_v30  ;;  %v1651_v5 = vand.u32 2147483648, %v1639_v30  ;;  %v1649_v9 = vand.u32 2147483647, %v1639_v30  ;;  %vm1645_vm11 = vweird.f32 %v1639_v30 }
0x1163   :  { %5251 = vtanh.f32 %v1635_v40  ;;  %v2007_v40 = vld [vmem:[#allocation4 + $0xe0] sm:$0xff] }
0x1164   :  { %v1652_v14 = vor.u32 1.1754944e-38, %v1651_v5  ;;  %vm1650_vm13 = vcmp.eq.f32.partialorder %v1649_v9, 8.507059e+37  ;;  %5253 = vpow2.f32 %v4943_v34  ;;  %v2006_v5 = vld [vmem:[#allocation4 + $0xd8] sm:$0xff]  ;;  %2051 = vmatpush.msra.mxu0 %v2007_v40  ;;  %v2004_v9 = vld [vmem:[#allocation4 + $0xc8] sm:$0xff] }
0x1168   :  { %v5250_v41 = vpop.eup %5249 }
0x1169   :  { %v1641_v3 = vmul.f32 %v5250_v41, %v1639_v30  ;;  %vm1646_vm9 = vweird.f32 %v5250_v41  ;;  %v5252_v21 = vpop.eup %5251 }
0x116a   :  { %vm1647_vm12 = vmor %vm1645_vm11, %vm1646_vm9  ;;  %v5254_v35 = vpop.eup %5253 }
0x116b   :  { %v1642_v4 = vsub.f32 1.0, %v1641_v3  ;;  %v1659_v36 = vadd.f32 1.0, %v5254_v35  ;;  %v2008_v3 = vld [vmem:[#allocation4 + $0xe8] sm:$0xff] }
0x116d   :  { %v1643_v7 = vmul.f32 %v5250_v41, %v1642_v4  ;;  %5255 = vrcp.f32 %v1659_v36  ;;  %v1671_v56 = vand.u32 2147483648, %v1659_v36  ;;  %vm1665_vm15 = vweird.f32 %v1659_v36  ;;  %v2005_v4 = vld [vmem:[#allocation4 + $0xd0] sm:$0xff] }
0x116e   :  { %v1669_v48 = vand.u32 2147483647, %v1659_v36  ;;  %2052 = vmatpush.msra.mxu0 %v2005_v4  ;;  %v6295_v4 = vld [vmem:[#allocation6 + $0x178] sm:$0xff] }
0x116f   :  { %v1644_v11 = vadd.f32 %v5250_v41, %v1643_v7  ;;  %v1672_v51 = vor.u32 1.1754944e-38, %v1671_v56  ;;  %v2003_v7 = vld [vmem:[#allocation4 + $0xc0] sm:$0xff] }
0x1170   :  { %vm1670_vm2 = vcmp.eq.f32.partialorder %v1669_v48, 8.507059e+37  ;;  %2053 = vmatpush.msra.mxu0 %v2003_v7  ;;  %v1999_v56 = vld [vmem:[#allocation4 + $0xa0] sm:$0xff]  ;;  %v2000_v48 = vld [vmem:[#allocation4 + $0xa8] sm:$0xff] }
0x1171   :  { %v1648_v16 = vsel %vm1647_vm12, %v5250_v41, %v1644_v11  ;;  %v2010_v41 = vld [vmem:[#allocation4 + $0xf8] sm:$0xff]  ;;  %v6301_v7 = vld [vmem:[#allocation6 + $0x168] sm:$0xff] }
0x1172   :  { %v1653_v31 = vsel %vm1650_vm13, %v1652_v14, %v1648_v16  ;;  %2091 = vmatpush.msra.mxu1 %v2010_v41 }
0x1173   :  { %v1676_v32 = vmul.f32 %v5252_v21, %v1653_v31  ;;  %v5256_v37 = vpop.eup %5255  ;;  %v1675_v45 = vmul.f32 %v1653_v31, %v6233_v8 }
0x1174   :  { %v1661_v38 = vmul.f32 %v5256_v37, %v1659_v36  ;;  %vm1666_vm14 = vweird.f32 %v5256_v37  ;;  %2092 = vmatpush.msra.mxu1 %v2008_v3  ;;  %v6293_v3 = vld [vmem:[#allocation6 + $0x170] sm:$0xff] }
0x1175   :  { %1678 = vrot.lane.b32.xlu0 %v1676_v32, %s5640_s18  ;;  %vm1667_vm0 = vmor %vm1665_vm15, %vm1666_vm14 }
0x1176   :  { %v1662_v42 = vsub.f32 1.0, %v1661_v38  ;;  %2093 = vmatpush.msra.mxu1 %v2006_v5  ;;  %v6297_v5 = vld [vmem:[#allocation6 + $0x160] sm:$0xff] }
0x1178   :  { %v1663_v44 = vmul.f32 %v5256_v37, %v1662_v42  ;;  %2094 = vmatpush.msra.mxu1 %v2004_v9  ;;  %v6303_v9 = vld [vmem:[#allocation6 + $0x150] sm:$0xff] }
0x117a   :  { %v1664_v25 = vadd.f32 %v5256_v37, %v1663_v44 }
0x117c   :  { %v1668_v50 = vsel %vm1667_vm0, %v5256_v37, %v1664_v25  ;;  %v2002_v25 = vld [vmem:[#allocation4 + $0xb8] sm:$0xff] }
0x117d   :  { %v1673_v60 = vsel %vm1670_vm2, %v1672_v51, %v1668_v50  ;;  %2095 = vmatpush.msra.mxu1 %v2002_v25  ;;  %v1997_v50 = vld [vmem:[#allocation4 + $0x90] sm:$0xff]  ;;  %v1998_v51 = vld [vmem:[#allocation4 + $0x98] sm:$0xff] }
0x117f   :  { %2096 = vmatpush.msra.mxu1 %v2000_v48 }
0x1181   :  { %2097 = vmatpush.msra.mxu1 %v1998_v51  ;;  %v6334_v51 = vld [vmem:[#allocation6 + $0x120] sm:$0xff] }
0x11e7   :  { %v1679_v46 = vpop.permute.xlu0 %1678 }
0x11e8   :  { %v6256_v47 = vadd.f32 %v1679_v46, %v1675_v45 }
0x11ea   :  { %5257 = vtanh.f32 %v6256_v47 }
0x11f0   :  { %v5258_v53 = vpop.eup %5257 }
0x11f1   :  { %v1683_v61 = vmul.f32 %v5258_v53, %v1673_v60  ;;  %v1995_v53 = vld [vmem:[#allocation4 + $0x80] sm:$0xff]  ;;  %v1996_v60 = vld [vmem:[#allocation4 + $0x88] sm:$0xff] }
0x11f2   :  { %2098 = vmatpush.msra.mxu1 %v1996_v60  ;;  %v6340_v60 = vld [vmem:[#allocation6 + $0x110] sm:$0xff] }
0x11f3   :  { %1685 = vrot.lane.b32.xlu1 %v1683_v61, %s5640_s18 }
0x1265   :  { %v1686_v62 = vpop.permute.xlu1 %1685 }
0x1266   :  { %1688 = vst.msk [vmem:[#allocation3 + $0x20] sm:$0xff] %vm220_vm10, %v1686_v62  ;;  %4944 = vmatmul.msk.f32.vlgmr.msra.gmra.mxu2 %vm220_vm10, %v1686_v62  ;;  %4945 = vmatmul.msk.f32.vlgmr.msra.gmra.mxu3 %vm220_vm10, %v1686_v62  ;;  %v1986_v62 = vld [vmem:[#allocation3] sm:$0xff] }
0x1267   :  { %2167 = vmatpush.msra.mxu2 %v6293_v3  ;;  %2187 = vmatpush.msra.mxu3 %v6295_v4 }
0x1269   :  { %2168 = vmatpush.msra.mxu2 %v6297_v5  ;;  %2188 = vmatpush.msra.mxu3 %v6301_v7 }
0x126b   :  { %2169 = vmatpush.msra.mxu2 %v6303_v9 }
0x12e9   :  { %v1710_v28 = vpop.f32.mrf.mxu2  ;;  %v1730_v10 = vpop.f32.mrf.mxu3 }
0x12ea   :  { %v1733_v63 = vadd.f32 %v1710_v28, %v1114_v54  ;;  %v1734_v33 = vadd.f32 %v1730_v10, %v1155_v0  ;;  %v1987_v54 = vld [vmem:[#allocation3 + $0x8] sm:$0xff]  ;;  %v1988_v28 = vld [vmem:[#allocation3 + $0x10] sm:$0xff] }
0x12ec   :  { %v4946_v8 = vmul.f32 -1.442695, %v1733_v63  ;;  %v4947_v59 = vmul.f32 -1.442695, %v1734_v33  ;;  %v1989_v63 = vld [vmem:[#allocation3 + $0x18] sm:$0xff] }
0x12ee   :  { %5259 = vpow2.f32 %v4946_v8  ;;  %v1990_v8 = vld [vmem:[#allocation3 + $0x20] sm:$0xff] }
0x12f4   :  { %v5260_v55 = vpop.eup %5259 }
0x12f5   :  { %v1738_v57 = vadd.f32 1.0, %v5260_v55 }
0x12f7   :  { %5261 = vrcp.f32 %v1738_v57  ;;  %v1750_v49 = vand.u32 2147483648, %v1738_v57  ;;  %v1748_v17 = vand.u32 2147483647, %v1738_v57  ;;  %vm1744_vm4 = vweird.f32 %v1738_v57 }
0x12f8   :  { %5263 = vtanh.f32 %v1734_v33 }
0x12f9   :  { %v1751_v12 = vor.u32 1.1754944e-38, %v1750_v49  ;;  %vm1749_vm1 = vcmp.eq.f32.partialorder %v1748_v17, 8.507059e+37  ;;  %5265 = vpow2.f32 %v4947_v59  ;;  %v1158_v49 = vadd.f32 %v6249_v18, %v6136_v52 }
0x12fd   :  { %v5262_v58 = vpop.eup %5261 }
0x12fe   :  { %v1740_v6 = vmul.f32 %v5262_v58, %v1738_v57  ;;  %vm1745_vm3 = vweird.f32 %v5262_v58  ;;  %v5264_v24 = vpop.eup %5263  ;;  %v1117_v57 = vadd.f32 %v6242_v20, %v6131_v43 }
0x12ff   :  { %vm1746_vm5 = vmor %vm1744_vm4, %vm1745_vm3  ;;  %v5266_v30 = vpop.eup %5265 }
0x1300   :  { %v1741_v1 = vsub.f32 1.0, %v1740_v6  ;;  %v1758_v13 = vadd.f32 1.0, %v5266_v30 }
0x1302   :  { %v1742_v2 = vmul.f32 %v5262_v58, %v1741_v1  ;;  %5267 = vrcp.f32 %v1758_v13  ;;  %v1770_v36 = vand.u32 2147483648, %v1758_v13  ;;  %vm1764_vm7 = vweird.f32 %v1758_v13 }
0x1303   :  { %v1768_v37 = vand.u32 2147483647, %v1758_v13 }
0x1304   :  { %v1743_v19 = vadd.f32 %v5262_v58, %v1742_v2  ;;  %v1771_v42 = vor.u32 1.1754944e-38, %v1770_v36 }
0x1305   :  { %vm1769_vm9 = vcmp.eq.f32.partialorder %v1768_v37, 8.507059e+37 }
0x1306   :  { %v1747_v15 = vsel %vm1746_vm5, %v5262_v58, %v1743_v19 }
0x1307   :  { %v1752_v26 = vsel %vm1749_vm1, %v1751_v12, %v1747_v15 }
0x1308   :  { %v1775_v29 = vmul.f32 %v5264_v24, %v1752_v26  ;;  %v5268_v11 = vpop.eup %5267  ;;  %v1774_v31 = vmul.f32 %v1752_v26, %v6256_v47  ;;  %v2001_v47 = vld [vmem:[#allocation4 + $0xb0] sm:$0xff] }
0x1309   :  { %v1760_v14 = vmul.f32 %v5268_v11, %v1758_v13  ;;  %vm1765_vm6 = vweird.f32 %v5268_v11  ;;  %2054 = vmatpush.msra.mxu0 %v2001_v47 }
0x130a   :  { %1777 = vrot.lane.b32.xlu2 %v1775_v29, %s5640_s18  ;;  %vm1766_vm8 = vmor %vm1764_vm7, %vm1765_vm6 }
0x130b   :  { %v1761_v16 = vsub.f32 1.0, %v1760_v14  ;;  %2055 = vmatpush.msra.mxu0 %v1999_v56  ;;  %v6311_v14 = vld [vmem:[#allocation6 + $0x140] sm:$0xff] }
0x130c   :  { %2170 = vmatpush.msra.mxu2 %v6311_v14 }
0x130d   :  { %v1762_v21 = vmul.f32 %v5268_v11, %v1761_v16  ;;  %2056 = vmatpush.msra.mxu0 %v1997_v50  ;;  %v6313_v16 = vld [vmem:[#allocation6 + $0x148] sm:$0xff]  ;;  %v6332_v50 = vld [vmem:[#allocation6 + $0x138] sm:$0xff] }
0x130f   :  { %v1763_v35 = vadd.f32 %v5268_v11, %v1762_v21  ;;  %2057 = vmatpush.msra.mxu0 %v1995_v53  ;;  %v6338_v53 = vld [vmem:[#allocation6 + $0x128] sm:$0xff] }
0x1311   :  { %v1767_v38 = vsel %vm1766_vm8, %v5268_v11, %v1763_v35  ;;  %v6305_v11 = vld [vmem:[#allocation6 + $0x158] sm:$0xff] }
0x1312   :  { %v1772_v45 = vsel %vm1769_vm9, %v1771_v42, %v1767_v38  ;;  %2189 = vmatpush.msra.mxu3 %v6305_v11 }
0x1314   :  { %2190 = vmatpush.msra.mxu3 %v6313_v16 }
0x1316   :  { %2191 = vmatpush.msra.mxu3 %v6332_v50 }
0x1318   :  { %2192 = vmatpush.msra.mxu3 %v6338_v53 }
0x1364   :  { %v1778_v32 = vpop.permute.xlu2 %1777 }
0x1365   :  { %v6269_v34 = vadd.f32 %v1778_v32, %v1774_v31 }
0x1367   :  { %5269 = vtanh.f32 %v6269_v34 }
0x136d   :  { %v5270_v44 = vpop.eup %5269 }
0x136e   :  { %v1782_v46 = vmul.f32 %v5270_v44, %v1772_v45 }
0x1370   :  { %1784 = vrot.lane.b32.xlu0 %v1782_v46, %s5640_s18 }
0x13e2   :  { %v1785_v61 = vpop.permute.xlu0 %1784 }
0x13e3   :  { %1787 = vst.msk [vmem:[#allocation3 + $0x28] sm:$0xff] %vm220_vm10, %v1785_v61  ;;  %4948 = vmatmul.msk.f32.vlgmr.msrb.gmra.mxu0 %vm220_vm10, %v1785_v61  ;;  %4949 = vmatmul.msk.f32.vlgmr.msrb.gmra.mxu1 %vm220_vm10, %v1785_v61  ;;  %v6342_v61 = vld [vmem:[#allocation6 + $0x118] sm:$0xff] }
0x13e4   :  { %2563 = vmatpush.msrb.mxu0 %v6293_v3  ;;  %2583 = vmatpush.msrb.mxu1 %v6295_v4 }
0x13e5   :  { %2193 = vmatpush.msra.mxu3 %v6342_v61 }
0x13e6   :  { %2564 = vmatpush.msrb.mxu0 %v6297_v5  ;;  %2584 = vmatpush.msrb.mxu1 %v6301_v7 }
0x13e8   :  { %2565 = vmatpush.msrb.mxu0 %v6303_v9  ;;  %2585 = vmatpush.msrb.mxu1 %v6305_v11 }
0x13ea   :  { %v1991_v55 = vld [vmem:[#allocation3 + $0x28] sm:$0xff]  ;;  %2566 = vmatpush.msrb.mxu0 %v6311_v14  ;;  %2586 = vmatpush.msrb.mxu1 %v6313_v16 }
0x13eb   :  { %4957 = vmatmul.msk.f32.vlgmr.msra.gmra.mxu0 %vm220_vm10, %v1986_v62  ;;  %4965 = vmatmul.msk.f32.vlgmr.msra.gmra.mxu1 %vm220_vm10, %v1986_v62  ;;  %v6348_v62 = vld [vmem:[#allocation6 + $0x100] sm:$0xff] }
0x13ec   :  { %2587 = vmatpush.msrb.mxu1 %v6332_v50 }
0x13ee   :  { %2588 = vmatpush.msrb.mxu1 %v6338_v53 }
0x13f0   :  { %2589 = vmatpush.msrb.mxu1 %v6342_v61 }
0x13f3   :  { %4958 = vmatmul.msk.f32.gmra.mxu0 %vm220_vm10, %v1987_v54  ;;  %4966 = vmatmul.msk.f32.gmra.mxu1 %vm220_vm10, %v1987_v54  ;;  %v6350_v54 = vld [vmem:[#allocation6 + $0x108] sm:$0xff] }
0x13f4   :  { %2194 = vmatpush.msra.mxu3 %v6350_v54  ;;  %2590 = vmatpush.msrb.mxu1 %v6350_v54 }
0x13f6   :  { %2781 = vmatpush.msra.mxu1 %v6295_v4 }
0x13f8   :  { %2782 = vmatpush.msra.mxu1 %v6301_v7 }
0x13fa   :  { %2783 = vmatpush.msra.mxu1 %v6305_v11 }
0x13fb   :  { %4959 = vmatmul.msk.f32.gmra.mxu0 %vm220_vm10, %v1988_v28  ;;  %4967 = vmatmul.msk.f32.gmra.mxu1 %vm220_vm10, %v1988_v28 }
0x13fc   :  { %2784 = vmatpush.msra.mxu1 %v6313_v16 }
0x13fe   :  { %2785 = vmatpush.msra.mxu1 %v6332_v50 }
0x1400   :  { %2786 = vmatpush.msra.mxu1 %v6338_v53 }
0x1402   :  { %2787 = vmatpush.msra.mxu1 %v6342_v61 }
0x1403   :  { %4960 = vmatmul.msk.f32.gmra.mxu0 %vm220_vm10, %v1989_v63  ;;  %4968 = vmatmul.msk.f32.gmra.mxu1 %vm220_vm10, %v1989_v63 }
0x1404   :  { %2788 = vmatpush.msra.mxu1 %v6350_v54 }
0x140b   :  { %4961 = vmatmul.msk.f32.gmra.mxu0 %vm220_vm10, %v1990_v8  ;;  %4969 = vmatmul.msk.f32.gmra.mxu1 %vm220_vm10, %v1990_v8  ;;  %v1120_v8 = vadd.f32 %v6244_v22, %v6131_v43 }
0x1413   :  { %4962 = vmatmul.msk.f32.gmra.mxu0 %vm220_vm10, %v1991_v55  ;;  %4970 = vmatmul.msk.f32.gmra.mxu1 %vm220_vm10, %v1991_v55 }
0x1460   :  { %v1809_v10 = vpop.f32.mrf.mxu0  ;;  %v1829_v1 = vpop.f32.mrf.mxu1 }
0x1461   :  { %v1832_v0 = vadd.f32 %v1809_v10, %v1117_v57  ;;  %v1833_v17 = vadd.f32 %v1829_v1, %v1158_v49  ;;  %v4956_v57 = vld [vmem:[%s7173_s4 + $0x4] sm:$0x3] }
0x1463   :  { %v4950_v58 = vmul.f32 -1.442695, %v1832_v0  ;;  %v4951_v18 = vmul.f32 -1.442695, %v1833_v17 }
0x1465   :  { %5271 = vpow2.f32 %v4950_v58  ;;  %v6422_v58 = vperm.slane %v4956_v57, 0 }
0x146b   :  { %v5272_v33 = vpop.eup %5271 }
0x146c   :  { %v1837_v6 = vadd.f32 1.0, %v5272_v33  ;;  %v2059_v33 = vpop.f32.mrf.mxu0 }
0x146e   :  { %5273 = vrcp.f32 %v1837_v6  ;;  %v1849_v15 = vand.u32 2147483648, %v1837_v6  ;;  %v1847_v20 = vand.u32 2147483647, %v1837_v6  ;;  %vm1843_vm12 = vweird.f32 %v1837_v6 }
0x146f   :  { %5275 = vtanh.f32 %v1833_v17 }
0x1470   :  { %v1850_v29 = vor.u32 1.1754944e-38, %v1849_v15  ;;  %vm1848_vm14 = vcmp.eq.f32.partialorder %v1847_v20, 8.507059e+37  ;;  %5277 = vpow2.f32 %v4951_v18 }
0x1474   :  { %v5274_v2 = vpop.eup %5273 }
0x1475   :  { %v1839_v19 = vmul.f32 %v5274_v2, %v1837_v6  ;;  %vm1844_vm11 = vweird.f32 %v5274_v2  ;;  %v5276_v30 = vpop.eup %5275  ;;  %v2060_v6 = vadd.f32 %v2059_v33, %v6422_v58 }
0x1476   :  { %vm1845_vm13 = vmor %vm1843_vm12, %vm1844_vm11  ;;  %v5278_v41 = vpop.eup %5277 }
0x1477   :  { %v1840_v12 = vsub.f32 1.0, %v1839_v19  ;;  %v1857_v40 = vadd.f32 1.0, %v5278_v41 }
0x1479   :  { %v1841_v24 = vmul.f32 %v5274_v2, %v1840_v12  ;;  %5279 = vrcp.f32 %v1857_v40  ;;  %v1869_v44 = vand.u32 2147483648, %v1857_v40  ;;  %vm1863_vm0 = vweird.f32 %v1857_v40 }
0x147a   :  { %v1867_v45 = vand.u32 2147483647, %v1857_v40  ;;  %v1161_v12 = vadd.f32 %v6251_v27, %v6136_v52 }
0x147b   :  { %v1842_v26 = vadd.f32 %v5274_v2, %v1841_v24  ;;  %v1870_v47 = vor.u32 1.1754944e-38, %v1869_v44 }
0x147c   :  { %vm1868_vm3 = vcmp.eq.f32.partialorder %v1867_v45, 8.507059e+37 }
0x147d   :  { %v1846_v59 = vsel %vm1845_vm13, %v5274_v2, %v1842_v26 }
0x147e   :  { %v1851_v13 = vsel %vm1848_vm14, %v1850_v29, %v1846_v59  ;;  %v6429_v59 = vperm.slane %v4956_v57, 1 }
0x147f   :  { %v1874_v39 = vmul.f32 %v5276_v30, %v1851_v13  ;;  %v5280_v21 = vpop.eup %5279  ;;  %v1873_v36 = vmul.f32 %v1851_v13, %v6269_v34  ;;  %v6330_v34 = vld [vmem:[#allocation6 + $0x130] sm:$0xff]  ;;  %v2100_v30 = vpop.f32.mrf.mxu1 }
0x1480   :  { %v1859_v31 = vmul.f32 %v5280_v21, %v1857_v40  ;;  %vm1864_vm15 = vweird.f32 %v5280_v21  ;;  %2171 = vmatpush.msra.mxu2 %v6330_v34  ;;  %2567 = vmatpush.msrb.mxu0 %v6330_v34  ;;  %v2101_v40 = vadd.f32 %v2100_v30, %v6429_v59 }
0x1481   :  { %1876 = vrot.lane.b32.xlu1 %v1874_v39, %s5640_s18  ;;  %vm1865_vm2 = vmor %vm1863_vm0, %vm1864_vm15 }
0x1482   :  { %v1860_v32 = vsub.f32 1.0, %v1859_v31  ;;  %2172 = vmatpush.msra.mxu2 %v6334_v51  ;;  %2568 = vmatpush.msrb.mxu0 %v6334_v51 }
0x1484   :  { %v1861_v35 = vmul.f32 %v5280_v21, %v1860_v32  ;;  %2173 = vmatpush.msra.mxu2 %v6340_v60  ;;  %2569 = vmatpush.msrb.mxu0 %v6340_v60 }
0x1486   :  { %v1862_v42 = vadd.f32 %v5280_v21, %v1861_v35  ;;  %2174 = vmatpush.msra.mxu2 %v6348_v62  ;;  %2570 = vmatpush.msrb.mxu0 %v6348_v62 }
0x1488   :  { %v1866_v46 = vsel %vm1865_vm2, %v5280_v21, %v1862_v42  ;;  %2761 = vmatpush.msra.mxu0 %v6293_v3 }
0x1489   :  { %v1871_v56 = vsel %vm1868_vm3, %v1870_v47, %v1866_v46 }
0x148a   :  { %2762 = vmatpush.msra.mxu0 %v6297_v5 }
0x148c   :  { %2763 = vmatpush.msra.mxu0 %v6303_v9 }
0x148e   :  { %2764 = vmatpush.msra.mxu0 %v6311_v14 }
0x1490   :  { %2765 = vmatpush.msra.mxu0 %v6330_v34 }
0x1492   :  { %2766 = vmatpush.msra.mxu0 %v6334_v51 }
0x1494   :  { %2767 = vmatpush.msra.mxu0 %v6340_v60 }
0x1496   :  { %2768 = vmatpush.msra.mxu0 %v6348_v62 }
0x14f3   :  { %v1877_v37 = vpop.permute.xlu1 %1876 }
0x14f4   :  { %v6326_v38 = vadd.f32 %v1877_v37, %v1873_v36 }
0x14f6   :  { %5281 = vtanh.f32 %v6326_v38 }
0x14fc   :  { %v5282_v25 = vpop.eup %5281 }
0x14fd   :  { %v1881_v48 = vmul.f32 %v5282_v25, %v1871_v56 }
0x14ff   :  { %1883 = vrot.lane.b32.xlu2 %v1881_v48, %s5640_s18 }
0x1559   :  { %v1884_v28 = vpop.permute.xlu2 %1883 }
0x155a   :  { %1886 = vst.msk [vmem:[#allocation3 + $0x30] sm:$0xff] %vm220_vm10, %v1884_v28  ;;  %4952 = vmatmul.msk.f32.vlgmr.msrb.gmra.mxu2 %vm220_vm10, %v1884_v28  ;;  %4953 = vmatmul.msk.f32.vlgmr.msrb.gmra.mxu3 %vm220_vm10, %v1884_v28 }
0x155b   :  { %2266 = vmatpush.msrb.mxu2 %v6293_v3  ;;  %2286 = vmatpush.msrb.mxu3 %v6295_v4 }
0x155d   :  { %2267 = vmatpush.msrb.mxu2 %v6297_v5  ;;  %2287 = vmatpush.msrb.mxu3 %v6301_v7 }
0x155f   :  { %2268 = vmatpush.msrb.mxu2 %v6303_v9  ;;  %2288 = vmatpush.msrb.mxu3 %v6305_v11 }
0x1561   :  { %v1992_v63 = vld [vmem:[#allocation3 + $0x30] sm:$0xff]  ;;  %2269 = vmatpush.msrb.mxu2 %v6311_v14  ;;  %2289 = vmatpush.msrb.mxu3 %v6313_v16 }
0x1562   :  { %4963 = vmatmul.msk.f32.gmra.mxu0 %vm220_vm10, %v1992_v63  ;;  %4971 = vmatmul.msk.f32.gmra.mxu1 %vm220_vm10, %v1992_v63 }
0x1563   :  { %2175 = vmatmul.f32.vlgmr.msra.gmra.mxu2 %v5639_v23  ;;  %2195 = vmatmul.f32.vlgmr.msra.gmra.mxu3 %v5639_v23 }
0x1564   :  { %2270 = vmatpush.msrb.mxu2 %v6330_v34  ;;  %2290 = vmatpush.msrb.mxu3 %v6332_v50 }
0x1566   :  { %2271 = vmatpush.msrb.mxu2 %v6334_v51  ;;  %2291 = vmatpush.msrb.mxu3 %v6338_v53 }
0x1568   :  { %2272 = vmatpush.msrb.mxu2 %v6340_v60  ;;  %2292 = vmatpush.msrb.mxu3 %v6342_v61 }
0x156a   :  { %2273 = vmatpush.msrb.mxu2 %v6348_v62  ;;  %2293 = vmatpush.msrb.mxu3 %v6350_v54 }
0x156c   :  { %2365 = vmatpush.msra.mxu2 %v6293_v3  ;;  %2385 = vmatpush.msra.mxu3 %v6295_v4 }
0x156e   :  { %2366 = vmatpush.msra.mxu2 %v6297_v5  ;;  %2386 = vmatpush.msra.mxu3 %v6301_v7 }
0x1570   :  { %2367 = vmatpush.msra.mxu2 %v6303_v9  ;;  %2387 = vmatpush.msra.mxu3 %v6305_v11 }
0x1572   :  { %2368 = vmatpush.msra.mxu2 %v6311_v14  ;;  %2388 = vmatpush.msra.mxu3 %v6313_v16 }
0x1574   :  { %2369 = vmatpush.msra.mxu2 %v6330_v34  ;;  %2389 = vmatpush.msra.mxu3 %v6332_v50 }
0x1576   :  { %2370 = vmatpush.msra.mxu2 %v6334_v51  ;;  %2390 = vmatpush.msra.mxu3 %v6338_v53 }
0x1578   :  { %2371 = vmatpush.msra.mxu2 %v6340_v60  ;;  %2391 = vmatpush.msra.mxu3 %v6342_v61 }
0x157a   :  { %2372 = vmatpush.msra.mxu2 %v6348_v62  ;;  %2392 = vmatpush.msra.mxu3 %v6350_v54 }
0x15dd   :  { %v1908_v55 = vpop.f32.mrf.mxu2  ;;  %v1928_v43 = vpop.f32.mrf.mxu3 }
0x15de   :  { %v1931_v10 = vadd.f32 %v1908_v55, %v1120_v8  ;;  %v6427_v20 = vadd.f32 %v1928_v43, %v1161_v12 }
0x15e0   :  { %v4954_v0 = vmul.f32 -1.442695, %v1931_v10 }
0x15e2   :  { %5283 = vpow2.f32 %v4954_v0 }
0x15e6   :  { %v2176_v1 = vpop.f32.mrf.mxu2  ;;  %v2196_v41 = vpop.f32.mrf.mxu3 }
0x15e7   :  { %v2199_v49 = vadd.f32 %v2176_v1, %v2060_v6  ;;  %v2200_v31 = vadd.f32 %v2196_v41, %v2101_v40 }
0x15e8   :  { %v5284_v2 = vpop.eup %5283 }
0x15e9   :  { %v1936_v17 = vadd.f32 1.0, %v5284_v2  ;;  %v4973_v19 = vmul.f32 -1.442695, %v2199_v49  ;;  %v4974_v55 = vmul.f32 -1.442695, %v2200_v31 }
0x15eb   :  { %5285 = vrcp.f32 %v1936_v17  ;;  %v1948_v13 = vand.u32 2147483648, %v1936_v17  ;;  %v1946_v18 = vand.u32 2147483647, %v1936_v17  ;;  %vm1942_vm5 = vweird.f32 %v1936_v17 }
0x15ec   :  { %5287 = vpow2.f32 %v4973_v19 }
0x15ed   :  { %v1949_v27 = vor.u32 1.1754944e-38, %v1948_v13  ;;  %vm1947_vm6 = vcmp.eq.f32.partialorder %v1946_v18, 8.507059e+37  ;;  %v2062_v13 = vpop.f32.mrf.mxu0 }
0x15f1   :  { %v5286_v22 = vpop.eup %5285 }
0x15f2   :  { %v1938_v15 = vmul.f32 %v5286_v22, %v1936_v17  ;;  %v5288_v24 = vpop.eup %5287  ;;  %vm1943_vm4 = vweird.f32 %v5286_v22 }
0x15f3   :  { %v2204_v26 = vadd.f32 1.0, %v5288_v24  ;;  %vm1944_vm1 = vmor %vm1942_vm5, %vm1943_vm4 }
0x15f4   :  { %v1939_v29 = vsub.f32 1.0, %v1938_v15 }
0x15f5   :  { %5289 = vrcp.f32 %v2204_v26  ;;  %v2216_v45 = vand.u32 2147483648, %v2204_v26  ;;  %v2214_v47 = vand.u32 2147483647, %v2204_v26  ;;  %vm2210_vm8 = vweird.f32 %v2204_v26 }
0x15f6   :  { %5291 = vtanh.f32 %v6427_v20  ;;  %v1940_v39 = vmul.f32 %v5286_v22, %v1939_v29 }
0x15f7   :  { %5293 = vtanh.f32 %v2200_v31  ;;  %v2217_v56 = vor.u32 1.1754944e-38, %v2216_v45  ;;  %vm2215_vm11 = vcmp.eq.f32.partialorder %v2214_v47, 8.507059e+37 }
0x15f8   :  { %v1941_v52 = vadd.f32 %v5286_v22, %v1940_v39  ;;  %5295 = vpow2.f32 %v4974_v55  ;;  %v2063_v39 = vadd.f32 %v2062_v13, %v6422_v58 }
0x15fa   :  { %v1945_v32 = vsel %vm1944_vm1, %v5286_v22, %v1941_v52 }
0x15fb   :  { %v5290_v21 = vpop.eup %5289  ;;  %v6433_v37 = vsel %vm1947_vm6, %v1949_v27, %v1945_v32 }
0x15fc   :  { %v5292_v35 = vpop.eup %5291  ;;  %v2206_v36 = vmul.f32 %v5290_v21, %v2204_v26  ;;  %vm2211_vm7 = vweird.f32 %v5290_v21 }
0x15fd   :  { %v6436_v42 = vmul.f32 %v5292_v35, %v6433_v37  ;;  %vm2212_vm9 = vmor %vm2210_vm8, %vm2211_vm7  ;;  %v5294_v28 = vpop.eup %5293 }
0x15fe   :  { %v2207_v44 = vsub.f32 1.0, %v2206_v36  ;;  %v5296_v57 = vpop.eup %5295 }
0x15ff   :  { %v2224_v10 = vadd.f32 1.0, %v5296_v57 }
0x1600   :  { %v2208_v46 = vmul.f32 %v5290_v21, %v2207_v44 }
0x1601   :  { %5297 = vrcp.f32 %v2224_v10  ;;  %v2236_v43 = vand.u32 2147483648, %v2224_v10  ;;  %vm2230_vm13 = vweird.f32 %v2224_v10  ;;  %v2234_v22 = vand.u32 2147483647, %v2224_v10 }
0x1602   :  { %v2209_v25 = vadd.f32 %v5290_v21, %v2208_v46 }
0x1603   :  { %v2237_v15 = vor.u32 1.1754944e-38, %v2236_v43  ;;  %vm2235_vm15 = vcmp.eq.f32.partialorder %v2234_v22, 8.507059e+37 }
0x1604   :  { %v2213_v48 = vsel %vm2212_vm9, %v5290_v21, %v2209_v25  ;;  %v2103_v21 = vpop.f32.mrf.mxu1 }
0x1605   :  { %v2218_v63 = vsel %vm2215_vm11, %v2217_v56, %v2213_v48  ;;  %v2104_v32 = vadd.f32 %v2103_v21, %v6429_v59 }
0x1606   :  { %v2241_v8 = vmul.f32 %v5294_v28, %v2218_v63  ;;  %v2240_v49 = vmul.f32 0.0, %v2218_v63 }
0x1607   :  { %v5298_v0 = vpop.eup %5297 }
0x1608   :  { %2243 = vrot.lane.b32.xlu0 %v2241_v8, %s5640_s18  ;;  %v2226_v33 = vmul.f32 %v5298_v0, %v2224_v10  ;;  %vm2231_vm12 = vweird.f32 %v5298_v0 }
0x1609   :  { %vm2232_vm14 = vmor %vm2230_vm13, %vm2231_vm12 }
0x160a   :  { %v2227_v6 = vsub.f32 1.0, %v2226_v33 }
0x160c   :  { %v2228_v1 = vmul.f32 %v5298_v0, %v2227_v6 }
0x160e   :  { %v2229_v19 = vadd.f32 %v5298_v0, %v2228_v1 }
0x1610   :  { %v2233_v12 = vsel %vm2232_vm14, %v5298_v0, %v2229_v19 }
0x1611   :  { %v2238_v26 = vsel %vm2235_vm15, %v2237_v15, %v2233_v12 }
0x167a   :  { %v2244_v2 = vpop.permute.xlu0 %2243 }
0x167b   :  { %v6439_v17 = vadd.f32 %v2244_v2, %v2240_v49 }
0x167d   :  { %5299 = vtanh.f32 %v6439_v17 }
0x1683   :  { %v5300_v24 = vpop.eup %5299 }
0x1684   :  { %v2248_v29 = vmul.f32 %v5300_v24, %v2238_v26 }
0x1686   :  { %2250 = vrot.lane.b32.xlu1 %v2248_v29, %s5640_s18 }
0x16f8   :  { %v2251_v30 = vpop.permute.xlu1 %2250 }
0x16f9   :  { %2253 = vst.msk [vmem:[#allocation3] sm:$0xff] %vm220_vm10, %v2251_v30  ;;  %4975 = vmatmul.msk.f32.vlgmr.msrb.gmra.mxu2 %vm220_vm10, %v2251_v30  ;;  %4976 = vmatmul.msk.f32.vlgmr.msrb.gmra.mxu3 %vm220_vm10, %v2251_v30 }
0x16fa   :  { %2464 = vmatpush.msrb.mxu2 %v6293_v3  ;;  %2484 = vmatpush.msrb.mxu3 %v6295_v4 }
0x16fc   :  { %2465 = vmatpush.msrb.mxu2 %v6297_v5  ;;  %2485 = vmatpush.msrb.mxu3 %v6301_v7 }
0x16fe   :  { %2466 = vmatpush.msrb.mxu2 %v6303_v9  ;;  %2486 = vmatpush.msrb.mxu3 %v6305_v11 }
0x1700   :  { %2467 = vmatpush.msrb.mxu2 %v6311_v14  ;;  %2487 = vmatpush.msrb.mxu3 %v6313_v16 }
0x1702   :  { %2468 = vmatpush.msrb.mxu2 %v6330_v34  ;;  %2488 = vmatpush.msrb.mxu3 %v6332_v50 }
0x1704   :  { %2469 = vmatpush.msrb.mxu2 %v6334_v51  ;;  %2489 = vmatpush.msrb.mxu3 %v6338_v53 }
0x1706   :  { %2470 = vmatpush.msrb.mxu2 %v6340_v60  ;;  %2490 = vmatpush.msrb.mxu3 %v6342_v61 }
0x1708   :  { %2471 = vmatpush.msrb.mxu2 %v6348_v62  ;;  %2491 = vmatpush.msrb.mxu3 %v6350_v54 }
0x177c   :  { %v2275_v18 = vpop.f32.mrf.mxu2  ;;  %v2295_v31 = vpop.f32.mrf.mxu3 }
0x177d   :  { %v2298_v41 = vadd.f32 %v2275_v18, %v2063_v39  ;;  %v2299_v36 = vadd.f32 %v2295_v31, %v2104_v32 }
0x177f   :  { %v4977_v40 = vmul.f32 -1.442695, %v2298_v41  ;;  %v4978_v57 = vmul.f32 -1.442695, %v2299_v36 }
0x1781   :  { %5301 = vpow2.f32 %v4977_v40 }
0x1787   :  { %v5302_v52 = vpop.eup %5301 }
0x1788   :  { %v2303_v27 = vadd.f32 1.0, %v5302_v52 }
0x178a   :  { %5303 = vrcp.f32 %v2303_v27  ;;  %v2315_v46 = vand.u32 2147483648, %v2303_v27  ;;  %v2313_v25 = vand.u32 2147483647, %v2303_v27  ;;  %vm2309_vm2 = vweird.f32 %v2303_v27 }
0x178b   :  { %5305 = vtanh.f32 %v2299_v36 }
0x178c   :  { %v2316_v48 = vor.u32 1.1754944e-38, %v2315_v46  ;;  %vm2314_vm4 = vcmp.eq.f32.partialorder %v2313_v25, 8.507059e+37  ;;  %5307 = vpow2.f32 %v4978_v57 }
0x1790   :  { %v5304_v35 = vpop.eup %5303 }
0x1791   :  { %v2305_v44 = vmul.f32 %v5304_v35, %v2303_v27  ;;  %vm2310_vm0 = vweird.f32 %v5304_v35  ;;  %v5306_v63 = vpop.eup %5305 }
0x1792   :  { %vm2311_vm3 = vmor %vm2309_vm2, %vm2310_vm0  ;;  %v5308_v10 = vpop.eup %5307 }
0x1793   :  { %v2306_v45 = vsub.f32 1.0, %v2305_v44  ;;  %v2323_v0 = vadd.f32 1.0, %v5308_v10 }
0x1795   :  { %v2307_v47 = vmul.f32 %v5304_v35, %v2306_v45  ;;  %5309 = vrcp.f32 %v2323_v0  ;;  %v2335_v12 = vand.u32 2147483648, %v2323_v0  ;;  %vm2329_vm1 = vweird.f32 %v2323_v0 }
0x1796   :  { %v2333_v15 = vand.u32 2147483647, %v2323_v0 }
0x1797   :  { %v2308_v56 = vadd.f32 %v5304_v35, %v2307_v47  ;;  %v2336_v26 = vor.u32 1.1754944e-38, %v2335_v12  ;;  %v2065_v47 = vpop.f32.mrf.mxu0 }
0x1798   :  { %vm2334_vm7 = vcmp.eq.f32.partialorder %v2333_v15, 8.507059e+37  ;;  %v2066_v25 = vadd.f32 %v2065_v47, %v6422_v58 }
0x1799   :  { %v2312_v28 = vsel %vm2311_vm3, %v5304_v35, %v2308_v56 }
0x179a   :  { %v2317_v8 = vsel %vm2314_vm4, %v2316_v48, %v2312_v28 }
0x179b   :  { %v2340_v55 = vmul.f32 %v5306_v63, %v2317_v8  ;;  %v5310_v33 = vpop.eup %5309  ;;  %v2339_v2 = vmul.f32 %v2317_v8, %v6439_v17  ;;  %v4955_v17 = vmul.f32 -1.442695, %v6427_v20 }
0x179c   :  { %v2325_v6 = vmul.f32 %v5310_v33, %v2323_v0  ;;  %vm2330_vm5 = vweird.f32 %v5310_v33 }
0x179d   :  { %2342 = vrot.lane.b32.xlu2 %v2340_v55, %s5640_s18  ;;  %vm2331_vm6 = vmor %vm2329_vm1, %vm2330_vm5  ;;  %v2106_v55 = vpop.f32.mrf.mxu1 }
0x179e   :  { %v2326_v1 = vsub.f32 1.0, %v2325_v6  ;;  %v2107_v10 = vadd.f32 %v2106_v55, %v6429_v59 }
0x17a0   :  { %v2327_v49 = vmul.f32 %v5310_v33, %v2326_v1 }
0x17a2   :  { %v2328_v22 = vadd.f32 %v5310_v33, %v2327_v49 }
0x17a4   :  { %v2332_v24 = vsel %vm2331_vm6, %v5310_v33, %v2328_v22 }
0x17a5   :  { %v2337_v30 = vsel %vm2334_vm7, %v2336_v26, %v2332_v24 }
0x17f7   :  { %v2343_v19 = vpop.permute.xlu2 %2342 }
0x17f8   :  { %v6466_v43 = vadd.f32 %v2343_v19, %v2339_v2 }
0x17fa   :  { %5311 = vtanh.f32 %v6466_v43 }
0x17fb   :  { %5313 = vpow2.f32 %v4955_v17 }
0x1800   :  { %v5312_v29 = vpop.eup %5311 }
0x1801   :  { %v2347_v13 = vmul.f32 %v5312_v29, %v2337_v30  ;;  %v5314_v39 = vpop.eup %5313 }
0x1802   :  { %v1956_v18 = vadd.f32 1.0, %v5314_v39 }
0x1803   :  { %2349 = vrot.lane.b32.xlu0 %v2347_v13, %s5640_s18 }
0x1804   :  { %5315 = vrcp.f32 %v1956_v18  ;;  %v1968_v35 = vand.u32 2147483648, %v1956_v18  ;;  %vm1962_vm9 = vweird.f32 %v1956_v18  ;;  %v1966_v36 = vand.u32 2147483647, %v1956_v18 }
0x1806   :  { %vm1967_vm12 = vcmp.eq.f32.partialorder %v1966_v36, 8.507059e+37 }
0x180a   :  { %v5316_v41 = vpop.eup %5315 }
0x180b   :  { %1975 = vrot.lane.b32.xlu0 %v6436_v42, %s5640_s18  ;;  %v1958_v40 = vmul.f32 %v5316_v41, %v1956_v18  ;;  %v1972_v42 = vmul.f32 %v6433_v37, %v6326_v38  ;;  %vm1963_vm8 = vweird.f32 %v5316_v41  ;;  %v1969_v37 = vor.u32 1.1754944e-38, %v1968_v35 }
0x180c   :  { %vm1964_vm11 = vmor %vm1962_vm9, %vm1963_vm8 }
0x180d   :  { %v1959_v27 = vsub.f32 1.0, %v1958_v40 }
0x180f   :  { %v1960_v20 = vmul.f32 %v5316_v41, %v1959_v27 }
0x1811   :  { %v1961_v32 = vadd.f32 %v5316_v41, %v1960_v20 }
0x1813   :  { %v1965_v38 = vsel %vm1964_vm11, %v5316_v41, %v1961_v32 }
0x1814   :  { %v1970_v45 = vsel %vm1967_vm12, %v1969_v37, %v1965_v38 }
0x1875   :  { %v2350_v52 = vpop.permute.xlu0 %2349 }
0x1876   :  { %2352 = vst.msk [vmem:[#allocation3 + $0x8] sm:$0xff] %vm220_vm10, %v2350_v52  ;;  %4979 = vmatmul.msk.f32.vlgmr.msra.gmra.mxu2 %vm220_vm10, %v2350_v52  ;;  %4980 = vmatmul.msk.f32.vlgmr.msra.gmra.mxu3 %vm220_vm10, %v2350_v52 }
0x1877   :  { %2662 = vmatpush.msra.mxu2 %v6293_v3  ;;  %2682 = vmatpush.msra.mxu3 %v6295_v4 }
0x1879   :  { %2663 = vmatpush.msra.mxu2 %v6297_v5  ;;  %2683 = vmatpush.msra.mxu3 %v6301_v7 }
0x187b   :  { %2664 = vmatpush.msra.mxu2 %v6303_v9  ;;  %2684 = vmatpush.msra.mxu3 %v6305_v11 }
0x187d   :  { %v1976_v21 = vpop.permute.xlu0 %1975  ;;  %2665 = vmatpush.msra.mxu2 %v6311_v14  ;;  %2685 = vmatpush.msra.mxu3 %v6313_v16 }
0x187e   :  { %v1978_v31 = vadd.f32 %v1976_v21, %v1972_v42 }
0x187f   :  { %2666 = vmatpush.msra.mxu2 %v6330_v34  ;;  %2686 = vmatpush.msra.mxu3 %v6332_v50 }
0x1880   :  { %5317 = vtanh.f32 %v1978_v31 }
0x1881   :  { %2667 = vmatpush.msra.mxu2 %v6334_v51  ;;  %2687 = vmatpush.msra.mxu3 %v6338_v53 }
0x1883   :  { %2668 = vmatpush.msra.mxu2 %v6340_v60  ;;  %2688 = vmatpush.msra.mxu3 %v6342_v61 }
0x1885   :  { %2669 = vmatpush.msra.mxu2 %v6348_v62  ;;  %2689 = vmatpush.msra.mxu3 %v6350_v54 }
0x1886   :  { %v5318_v44 = vpop.eup %5317 }
0x1887   :  { %v1980_v46 = vmul.f32 %v5318_v44, %v1970_v45 }
0x18f9   :  { %v2374_v56 = vpop.f32.mrf.mxu2  ;;  %v2394_v57 = vpop.f32.mrf.mxu3 }
0x18fa   :  { %v2397_v48 = vadd.f32 %v2374_v56, %v2066_v25  ;;  %v2398_v33 = vadd.f32 %v2394_v57, %v2107_v10 }
0x18fc   :  { %v4981_v28 = vmul.f32 -1.442695, %v2397_v48  ;;  %v4982_v30 = vmul.f32 -1.442695, %v2398_v33 }
0x18fe   :  { %5319 = vpow2.f32 %v4981_v28 }
0x1904   :  { %v5320_v63 = vpop.eup %5319 }
0x1905   :  { %v2402_v8 = vadd.f32 1.0, %v5320_v63 }
0x1907   :  { %5321 = vrcp.f32 %v2402_v8  ;;  %v2414_v49 = vand.u32 2147483648, %v2402_v8  ;;  %v2412_v19 = vand.u32 2147483647, %v2402_v8  ;;  %vm2408_vm14 = vweird.f32 %v2402_v8 }
0x1908   :  { %5323 = vtanh.f32 %v2398_v33 }
0x1909   :  { %v2415_v12 = vor.u32 1.1754944e-38, %v2414_v49  ;;  %vm2413_vm0 = vcmp.eq.f32.partialorder %v2412_v19, 8.507059e+37  ;;  %5325 = vpow2.f32 %v4982_v30 }
0x190d   :  { %v5322_v0 = vpop.eup %5321 }
0x190e   :  { %v2404_v6 = vmul.f32 %v5322_v0, %v2402_v8  ;;  %vm2409_vm13 = vweird.f32 %v5322_v0  ;;  %v5324_v24 = vpop.eup %5323 }
0x190f   :  { %vm2410_vm15 = vmor %vm2408_vm14, %vm2409_vm13  ;;  %v5326_v13 = vpop.eup %5325 }
0x1910   :  { %v2405_v1 = vsub.f32 1.0, %v2404_v6  ;;  %v2422_v17 = vadd.f32 1.0, %v5326_v13 }
0x1912   :  { %v2406_v2 = vmul.f32 %v5322_v0, %v2405_v1  ;;  %5327 = vrcp.f32 %v2422_v17  ;;  %v2434_v21 = vand.u32 2147483648, %v2422_v17  ;;  %vm2428_vm3 = vweird.f32 %v2422_v17 }
0x1913   :  { %v2432_v31 = vand.u32 2147483647, %v2422_v17 }
0x1914   :  { %v2407_v22 = vadd.f32 %v5322_v0, %v2406_v2  ;;  %v2435_v35 = vor.u32 1.1754944e-38, %v2434_v21 }
0x1915   :  { %vm2433_vm5 = vcmp.eq.f32.partialorder %v2432_v31, 8.507059e+37 }
0x1916   :  { %v2411_v15 = vsel %vm2410_vm15, %v5322_v0, %v2407_v22 }
0x1917   :  { %v2416_v26 = vsel %vm2413_vm0, %v2415_v12, %v2411_v15 }
0x1918   :  { %v2439_v29 = vmul.f32 %v5324_v24, %v2416_v26  ;;  %v5328_v39 = vpop.eup %5327  ;;  %v2438_v52 = vmul.f32 %v2416_v26, %v6466_v43 }
0x1919   :  { %v2424_v18 = vmul.f32 %v5328_v39, %v2422_v17  ;;  %vm2429_vm2 = vweird.f32 %v5328_v39 }
0x191a   :  { %2441 = vrot.lane.b32.xlu1 %v2439_v29, %s5640_s18  ;;  %vm2430_vm4 = vmor %vm2428_vm3, %vm2429_vm2 }
0x191b   :  { %v2425_v41 = vsub.f32 1.0, %v2424_v18 }
0x191d   :  { %v2426_v40 = vmul.f32 %v5328_v39, %v2425_v41 }
0x191f   :  { %v2427_v42 = vadd.f32 %v5328_v39, %v2426_v40 }
0x1921   :  { %v2431_v32 = vsel %vm2430_vm4, %v5328_v39, %v2427_v42 }
0x1922   :  { %v2436_v38 = vsel %vm2433_vm5, %v2435_v35, %v2431_v32 }
0x198c   :  { %v2442_v27 = vpop.permute.xlu1 %2441 }
0x198d   :  { %v6498_v20 = vadd.f32 %v2442_v27, %v2438_v52 }
0x198f   :  { %5329 = vtanh.f32 %v6498_v20 }
0x1995   :  { %v5330_v36 = vpop.eup %5329 }
0x1996   :  { %v2446_v37 = vmul.f32 %v5330_v36, %v2436_v38 }
0x1998   :  { %2448 = vrot.lane.b32.xlu2 %v2446_v37, %s5640_s18 }
0x19a0   :  { %1982 = vrot.lane.b32.xlu2 %v1980_v46, %s5640_s18 }
0x19f2   :  { %v2449_v43 = vpop.permute.xlu2 %2448 }
0x19f3   :  { %2451 = vst.msk [vmem:[#allocation3 + $0x10] sm:$0xff] %vm220_vm10, %v2449_v43  ;;  %4983 = vmatmul.msk.f32.vlgmr.msrb.gmra.mxu2 %vm220_vm10, %v2449_v43  ;;  %4984 = vmatmul.msk.f32.vlgmr.msrb.gmra.mxu3 %vm220_vm10, %v2449_v43 }
0x19f4   :  { %2860 = vmatpush.msrb.mxu2 %v6293_v3  ;;  %2880 = vmatpush.msrb.mxu3 %v6295_v4  ;;  %v2068_v4 = vpop.f32.mrf.mxu0 }
0x19f6   :  { %2861 = vmatpush.msrb.mxu2 %v6297_v5  ;;  %2881 = vmatpush.msrb.mxu3 %v6301_v7  ;;  %v2069_v5 = vadd.f32 %v2068_v4, %v6422_v58 }
0x19f8   :  { %2862 = vmatpush.msrb.mxu2 %v6303_v9  ;;  %2882 = vmatpush.msrb.mxu3 %v6305_v11 }
0x19fa   :  { %v1983_v44 = vpop.permute.xlu2 %1982  ;;  %2863 = vmatpush.msrb.mxu2 %v6311_v14  ;;  %2883 = vmatpush.msrb.mxu3 %v6313_v16 }
0x19fb   :  { %1985 = vst.msk [vmem:[#allocation3 + $0x38] sm:$0xff] %vm220_vm10, %v1983_v44 }
0x19fc   :  { %2864 = vmatpush.msrb.mxu2 %v6330_v34  ;;  %2884 = vmatpush.msrb.mxu3 %v6332_v50  ;;  %v2109_v34 = vpop.f32.mrf.mxu1  ;;  %v2071_v17 = vpop.f32.mrf.mxu0 }
0x19fd   :  { %v2072_v27 = vadd.f32 %v2071_v17, %v6422_v58 }
0x19fe   :  { %2865 = vmatpush.msrb.mxu2 %v6334_v51  ;;  %2885 = vmatpush.msrb.mxu3 %v6338_v53  ;;  %v2110_v51 = vadd.f32 %v2109_v34, %v6429_v59 }
0x1a00   :  { %2866 = vmatpush.msrb.mxu2 %v6340_v60  ;;  %2886 = vmatpush.msrb.mxu3 %v6342_v61 }
0x1a02   :  { %v1993_v3 = vld [vmem:[#allocation3 + $0x38] sm:$0xff]  ;;  %2867 = vmatpush.msrb.mxu2 %v6348_v62  ;;  %2887 = vmatpush.msrb.mxu3 %v6350_v54 }
0x1a03   :  { %4964 = vmatmul.msk.f32.gmra.mxu0 %vm220_vm10, %v1993_v3  ;;  %4972 = vmatmul.msk.f32.gmra.mxu1 %vm220_vm10, %v1993_v3 }
0x1a04   :  { %v6536_v39 = vpop.f32.mrf.mxu0  ;;  %v2112_v18 = vpop.f32.mrf.mxu1 }
0x1a05   :  { %v2113_v37 = vadd.f32 %v2112_v18, %v6429_v59 }
0x1a0c   :  { %v6538_v41 = vpop.f32.mrf.mxu0  ;;  %v6542_v52 = vpop.f32.mrf.mxu1 }
0x1a14   :  { %v6545_v42 = vpop.f32.mrf.mxu1 }
0x1a76   :  { %v2473_v7 = vpop.f32.mrf.mxu2  ;;  %v2493_v50 = vpop.f32.mrf.mxu3 }
0x1a77   :  { %v2496_v9 = vadd.f32 %v2473_v7, %v2069_v5  ;;  %v2497_v60 = vadd.f32 %v2493_v50, %v2110_v51 }
0x1a79   :  { %v4985_v11 = vmul.f32 -1.442695, %v2496_v9  ;;  %v4986_v8 = vmul.f32 -1.442695, %v2497_v60 }
0x1a7b   :  { %5331 = vpow2.f32 %v4985_v11 }
0x1a80   :  { %v6540_v40 = vpop.f32.mrf.mxu0  ;;  %v6547_v32 = vpop.f32.mrf.mxu1 }
0x1a81   :  { %v5332_v14 = vpop.eup %5331 }
0x1a82   :  { %v2501_v16 = vadd.f32 1.0, %v5332_v14 }
0x1a84   :  { %5333 = vrcp.f32 %v2501_v16  ;;  %v2513_v54 = vand.u32 2147483648, %v2501_v16  ;;  %v2511_v46 = vand.u32 2147483647, %v2501_v16  ;;  %vm2507_vm6 = vweird.f32 %v2501_v16 }
0x1a85   :  { %5335 = vtanh.f32 %v2497_v60 }
0x1a86   :  { %v2514_v25 = vor.u32 1.1754944e-38, %v2513_v54  ;;  %vm2512_vm8 = vcmp.eq.f32.partialorder %v2511_v46, 8.507059e+37  ;;  %5337 = vpow2.f32 %v4986_v8 }
0x1a8a   :  { %v5334_v53 = vpop.eup %5333 }
0x1a8b   :  { %v2503_v61 = vmul.f32 %v5334_v53, %v2501_v16  ;;  %vm2508_vm1 = vweird.f32 %v5334_v53  ;;  %v5336_v48 = vpop.eup %5335 }
0x1a8c   :  { %vm2509_vm7 = vmor %vm2507_vm6, %vm2508_vm1  ;;  %v5338_v55 = vpop.eup %5337 }
0x1a8d   :  { %v2504_v62 = vsub.f32 1.0, %v2503_v61  ;;  %v2521_v57 = vadd.f32 1.0, %v5338_v55 }
0x1a8f   :  { %v2505_v45 = vmul.f32 %v5334_v53, %v2504_v62  ;;  %5339 = vrcp.f32 %v2521_v57  ;;  %v2533_v22 = vand.u32 2147483648, %v2521_v57  ;;  %vm2527_vm11 = vweird.f32 %v2521_v57 }
0x1a90   :  { %v2531_v12 = vand.u32 2147483647, %v2521_v57 }
0x1a91   :  { %v2506_v47 = vadd.f32 %v5334_v53, %v2505_v45  ;;  %v2534_v24 = vor.u32 1.1754944e-38, %v2533_v22 }
0x1a92   :  { %vm2532_vm13 = vcmp.eq.f32.partialorder %v2531_v12, 8.507059e+37 }
0x1a93   :  { %v2510_v56 = vsel %vm2509_vm7, %v5334_v53, %v2506_v47 }
0x1a94   :  { %v2515_v28 = vsel %vm2512_vm8, %v2514_v25, %v2510_v56 }
0x1a95   :  { %v2538_v63 = vmul.f32 %v5336_v48, %v2515_v28  ;;  %v5340_v10 = vpop.eup %5339  ;;  %v2537_v1 = vmul.f32 %v2515_v28, %v6498_v20 }
0x1a96   :  { %v2523_v0 = vmul.f32 %v5340_v10, %v2521_v57  ;;  %vm2528_vm9 = vweird.f32 %v5340_v10 }
0x1a97   :  { %2540 = vrot.lane.b32.xlu1 %v2538_v63, %s5640_s18  ;;  %vm2529_vm12 = vmor %vm2527_vm11, %vm2528_vm9 }
0x1a98   :  { %v2524_v33 = vsub.f32 1.0, %v2523_v0 }
0x1a9a   :  { %v2525_v6 = vmul.f32 %v5340_v10, %v2524_v33 }
0x1a9c   :  { %v2526_v19 = vadd.f32 %v5340_v10, %v2525_v6  ;;  %v2075_v6 = vadd.f32 %v6536_v39, %v6422_v58 }
0x1a9e   :  { %v2530_v15 = vsel %vm2529_vm12, %v5340_v10, %v2526_v19 }
0x1a9f   :  { %v2535_v29 = vsel %vm2532_vm13, %v2534_v24, %v2530_v15  ;;  %v2116_v15 = vadd.f32 %v6542_v52, %v6429_v59 }
0x1b09   :  { %v2541_v49 = vpop.permute.xlu1 %2540 }
0x1b0a   :  { %v6529_v2 = vadd.f32 %v2541_v49, %v2537_v1 }
0x1b0c   :  { %5341 = vtanh.f32 %v6529_v2 }
0x1b12   :  { %v5342_v26 = vpop.eup %5341 }
0x1b13   :  { %v2545_v30 = vmul.f32 %v5342_v26, %v2535_v29 }
0x1b15   :  { %2547 = vrot.lane.b32.xlu0 %v2545_v30, %s5640_s18 }
0x1b87   :  { %v2548_v13 = vpop.permute.xlu0 %2547 }
0x1b88   :  { %2550 = vst.msk [vmem:[#allocation3 + $0x18] sm:$0xff] %vm220_vm10, %v2548_v13  ;;  %4987 = vmatmul.msk.f32.vlgmr.msrb.gmra.mxu0 %vm220_vm10, %v2548_v13  ;;  %4988 = vmatmul.msk.f32.vlgmr.msrb.gmra.mxu1 %vm220_vm10, %v2548_v13 }
0x1c05   :  { %v2572_v20 = vpop.f32.mrf.mxu0  ;;  %v2592_v38 = vpop.f32.mrf.mxu1 }
0x1c06   :  { %v2595_v21 = vadd.f32 %v2572_v20, %v2072_v27  ;;  %v2596_v44 = vadd.f32 %v2592_v38, %v2113_v37  ;;  %v2970_v37 = vld [vmem:[#allocation4 + $0x170] sm:$0xff] }
0x1c07   :  { %3011 = vmatpush.msrb.mxu0 %v2970_v37 }
0x1c08   :  { %v4989_v31 = vmul.f32 -1.442695, %v2595_v21  ;;  %v4990_v53 = vmul.f32 -1.442695, %v2596_v44 }
0x1c0a   :  { %5343 = vpow2.f32 %v4989_v31 }
0x1c10   :  { %v5344_v35 = vpop.eup %5343 }
0x1c11   :  { %v2600_v36 = vadd.f32 1.0, %v5344_v35 }
0x1c13   :  { %5345 = vrcp.f32 %v2600_v36  ;;  %v2612_v5 = vand.u32 2147483648, %v2600_v36  ;;  %v2610_v9 = vand.u32 2147483647, %v2600_v36  ;;  %vm2606_vm15 = vweird.f32 %v2600_v36 }
0x1c14   :  { %5347 = vtanh.f32 %v2596_v44  ;;  %v2968_v44 = vld [vmem:[#allocation4 + $0x160] sm:$0xff] }
0x1c15   :  { %v2613_v14 = vor.u32 1.1754944e-38, %v2612_v5  ;;  %vm2611_vm2 = vcmp.eq.f32.partialorder %v2610_v9, 8.507059e+37  ;;  %5349 = vpow2.f32 %v4990_v53  ;;  %v2967_v5 = vld [vmem:[#allocation4 + $0x158] sm:$0xff]  ;;  %3012 = vmatpush.msrb.mxu0 %v2968_v44  ;;  %v2965_v9 = vld [vmem:[#allocation4 + $0x148] sm:$0xff] }
0x1c19   :  { %v5346_v43 = vpop.eup %5345 }
0x1c1a   :  { %v2602_v3 = vmul.f32 %v5346_v43, %v2600_v36  ;;  %vm2607_vm14 = vweird.f32 %v5346_v43  ;;  %v5348_v34 = vpop.eup %5347 }
0x1c1b   :  { %vm2608_vm0 = vmor %vm2606_vm15, %vm2607_vm14  ;;  %v5350_v60 = vpop.eup %5349 }
0x1c1c   :  { %v2603_v4 = vsub.f32 1.0, %v2602_v3  ;;  %v2620_v61 = vadd.f32 1.0, %v5350_v60  ;;  %v2969_v3 = vld [vmem:[#allocation4 + $0x168] sm:$0xff] }
0x1c1e   :  { %v2604_v7 = vmul.f32 %v5346_v43, %v2603_v4  ;;  %5351 = vrcp.f32 %v2620_v61  ;;  %v2632_v28 = vand.u32 2147483648, %v2620_v61  ;;  %vm2626_vm4 = vweird.f32 %v2620_v61  ;;  %v2966_v4 = vld [vmem:[#allocation4 + $0x150] sm:$0xff] }
0x1c1f   :  { %v2630_v63 = vand.u32 2147483647, %v2620_v61  ;;  %3013 = vmatpush.msrb.mxu0 %v2966_v4  ;;  %v6591_v4 = vld [vmem:[#allocation6 + $0x1f8] sm:$0xff] }
0x1c20   :  { %v2605_v11 = vadd.f32 %v5346_v43, %v2604_v7  ;;  %v2633_v55 = vor.u32 1.1754944e-38, %v2632_v28  ;;  %v2964_v7 = vld [vmem:[#allocation4 + $0x140] sm:$0xff] }
0x1c21   :  { %vm2631_vm1 = vcmp.eq.f32.partialorder %v2630_v63, 8.507059e+37  ;;  %3014 = vmatpush.msrb.mxu0 %v2964_v7  ;;  %v2960_v28 = vld [vmem:[#allocation4 + $0x120] sm:$0xff]  ;;  %v2961_v63 = vld [vmem:[#allocation4 + $0x128] sm:$0xff] }
0x1c22   :  { %v2609_v16 = vsel %vm2608_vm0, %v5346_v43, %v2605_v11  ;;  %v2971_v43 = vld [vmem:[#allocation4 + $0x178] sm:$0xff]  ;;  %v6597_v7 = vld [vmem:[#allocation6 + $0x1e8] sm:$0xff] }
0x1c23   :  { %v2614_v50 = vsel %vm2611_vm2, %v2613_v14, %v2609_v16  ;;  %3052 = vmatpush.msrb.mxu1 %v2971_v43 }
0x1c24   :  { %v2637_v51 = vmul.f32 %v5348_v34, %v2614_v50  ;;  %v5352_v62 = vpop.eup %5351  ;;  %v2636_v47 = vmul.f32 %v2614_v50, %v6529_v2 }
0x1c25   :  { %v2622_v54 = vmul.f32 %v5352_v62, %v2620_v61  ;;  %vm2627_vm3 = vweird.f32 %v5352_v62  ;;  %3053 = vmatpush.msrb.mxu1 %v2969_v3  ;;  %v6589_v3 = vld [vmem:[#allocation6 + $0x1f0] sm:$0xff] }
0x1c26   :  { %2639 = vrot.lane.b32.xlu1 %v2637_v51, %s5640_s18  ;;  %vm2628_vm5 = vmor %vm2626_vm4, %vm2627_vm3 }
0x1c27   :  { %v2623_v45 = vsub.f32 1.0, %v2622_v54  ;;  %3054 = vmatpush.msrb.mxu1 %v2967_v5  ;;  %v6593_v5 = vld [vmem:[#allocation6 + $0x1e0] sm:$0xff] }
0x1c29   :  { %v2624_v46 = vmul.f32 %v5352_v62, %v2623_v45  ;;  %3055 = vmatpush.msrb.mxu1 %v2965_v9  ;;  %v6599_v9 = vld [vmem:[#allocation6 + $0x1d0] sm:$0xff] }
0x1c2b   :  { %v2625_v48 = vadd.f32 %v5352_v62, %v2624_v46 }
0x1c2d   :  { %v2629_v8 = vsel %vm2628_vm5, %v5352_v62, %v2625_v48  ;;  %v2963_v48 = vld [vmem:[#allocation4 + $0x138] sm:$0xff] }
0x1c2e   :  { %v2634_v10 = vsel %vm2631_vm1, %v2633_v55, %v2629_v8  ;;  %3056 = vmatpush.msrb.mxu1 %v2963_v48  ;;  %v2958_v8 = vld [vmem:[#allocation4 + $0x110] sm:$0xff]  ;;  %v2959_v55 = vld [vmem:[#allocation4 + $0x118] sm:$0xff] }
0x1c30   :  { %3057 = vmatpush.msrb.mxu1 %v2961_v63 }
0x1c32   :  { %3058 = vmatpush.msrb.mxu1 %v2959_v55  ;;  %v6630_v55 = vld [vmem:[#allocation6 + $0x1a0] sm:$0xff] }
0x1c98   :  { %v2640_v25 = vpop.permute.xlu1 %2639 }
0x1c99   :  { %v6552_v56 = vadd.f32 %v2640_v25, %v2636_v47 }
0x1c9b   :  { %5353 = vtanh.f32 %v6552_v56 }
0x1ca1   :  { %v5354_v57 = vpop.eup %5353 }
0x1ca2   :  { %v2644_v0 = vmul.f32 %v5354_v57, %v2634_v10  ;;  %v2956_v57 = vld [vmem:[#allocation4 + $0x100] sm:$0xff]  ;;  %v2957_v10 = vld [vmem:[#allocation4 + $0x108] sm:$0xff] }
0x1ca3   :  { %3059 = vmatpush.msrb.mxu1 %v2957_v10  ;;  %v6636_v10 = vld [vmem:[#allocation6 + $0x190] sm:$0xff] }
0x1ca4   :  { %2646 = vrot.lane.b32.xlu2 %v2644_v0, %s5640_s18 }
0x1cfe   :  { %v2647_v33 = vpop.permute.xlu2 %2646 }
0x1cff   :  { %2649 = vst.msk [vmem:[#allocation3 + $0x20] sm:$0xff] %vm220_vm10, %v2647_v33  ;;  %4991 = vmatmul.msk.f32.vlgmr.msra.gmra.mxu2 %vm220_vm10, %v2647_v33  ;;  %4992 = vmatmul.msk.f32.vlgmr.msra.gmra.mxu3 %vm220_vm10, %v2647_v33  ;;  %v2947_v33 = vld [vmem:[#allocation3] sm:$0xff] }
0x1d00   :  { %3128 = vmatpush.msra.mxu2 %v6589_v3  ;;  %3148 = vmatpush.msra.mxu3 %v6591_v4 }
0x1d02   :  { %3129 = vmatpush.msra.mxu2 %v6593_v5  ;;  %3149 = vmatpush.msra.mxu3 %v6597_v7 }
0x1d04   :  { %3130 = vmatpush.msra.mxu2 %v6599_v9 }
0x1d82   :  { %v2671_v1 = vpop.f32.mrf.mxu2  ;;  %v2691_v12 = vpop.f32.mrf.mxu3 }
0x1d83   :  { %v2694_v49 = vadd.f32 %v2671_v1, %v2075_v6  ;;  %v2695_v26 = vadd.f32 %v2691_v12, %v2116_v15  ;;  %v2948_v6 = vld [vmem:[#allocation3 + $0x8] sm:$0xff]  ;;  %v2949_v1 = vld [vmem:[#allocation3 + $0x10] sm:$0xff] }
0x1d85   :  { %v4993_v2 = vmul.f32 -1.442695, %v2694_v49  ;;  %v4994_v52 = vmul.f32 -1.442695, %v2695_v26  ;;  %v2950_v49 = vld [vmem:[#allocation3 + $0x18] sm:$0xff] }
0x1d87   :  { %5355 = vpow2.f32 %v4993_v2  ;;  %v2951_v2 = vld [vmem:[#allocation3 + $0x20] sm:$0xff] }
0x1d8d   :  { %v5356_v19 = vpop.eup %5355 }
0x1d8e   :  { %v2699_v22 = vadd.f32 1.0, %v5356_v19 }
0x1d90   :  { %5357 = vrcp.f32 %v2699_v22  ;;  %v2711_v13 = vand.u32 2147483648, %v2699_v22  ;;  %v2709_v39 = vand.u32 2147483647, %v2699_v22  ;;  %vm2705_vm7 = vweird.f32 %v2699_v22 }
0x1d91   :  { %5359 = vtanh.f32 %v2695_v26 }
0x1d92   :  { %v2712_v27 = vor.u32 1.1754944e-38, %v2711_v13  ;;  %vm2710_vm9 = vcmp.eq.f32.partialorder %v2709_v39, 8.507059e+37  ;;  %5361 = vpow2.f32 %v4994_v52  ;;  %v2119_v13 = vadd.f32 %v6545_v42, %v6429_v59 }
0x1d96   :  { %v5358_v24 = vpop.eup %5357 }
0x1d97   :  { %v2701_v29 = vmul.f32 %v5358_v24, %v2699_v22  ;;  %vm2706_vm6 = vweird.f32 %v5358_v24  ;;  %v5360_v21 = vpop.eup %5359  ;;  %v2078_v22 = vadd.f32 %v6538_v41, %v6422_v58 }
0x1d98   :  { %vm2707_vm8 = vmor %vm2705_vm7, %vm2706_vm6  ;;  %v5362_v36 = vpop.eup %5361 }
0x1d99   :  { %v2702_v30 = vsub.f32 1.0, %v2701_v29  ;;  %v2719_v38 = vadd.f32 1.0, %v5362_v36 }
0x1d9b   :  { %v2703_v17 = vmul.f32 %v5358_v24, %v2702_v30  ;;  %5363 = vrcp.f32 %v2719_v38  ;;  %v2731_v61 = vand.u32 2147483648, %v2719_v38  ;;  %vm2725_vm12 = vweird.f32 %v2719_v38 }
0x1d9c   :  { %v2729_v62 = vand.u32 2147483647, %v2719_v38 }
0x1d9d   :  { %v2704_v18 = vadd.f32 %v5358_v24, %v2703_v17  ;;  %v2732_v45 = vor.u32 1.1754944e-38, %v2731_v61 }
0x1d9e   :  { %vm2730_vm14 = vcmp.eq.f32.partialorder %v2729_v62, 8.507059e+37 }
0x1d9f   :  { %v2708_v20 = vsel %vm2707_vm8, %v5358_v24, %v2704_v18 }
0x1da0   :  { %v2713_v31 = vsel %vm2710_vm9, %v2712_v27, %v2708_v20 }
0x1da1   :  { %v2736_v35 = vmul.f32 %v5360_v21, %v2713_v31  ;;  %v5364_v11 = vpop.eup %5363  ;;  %v2735_v50 = vmul.f32 %v2713_v31, %v6552_v56  ;;  %v2962_v56 = vld [vmem:[#allocation4 + $0x130] sm:$0xff] }
0x1da2   :  { %v2721_v14 = vmul.f32 %v5364_v11, %v2719_v38  ;;  %vm2726_vm11 = vweird.f32 %v5364_v11  ;;  %3015 = vmatpush.msrb.mxu0 %v2962_v56 }
0x1da3   :  { %2738 = vrot.lane.b32.xlu0 %v2736_v35, %s5640_s18  ;;  %vm2727_vm13 = vmor %vm2725_vm12, %vm2726_vm11 }
0x1da4   :  { %v2722_v16 = vsub.f32 1.0, %v2721_v14  ;;  %3016 = vmatpush.msrb.mxu0 %v2960_v28  ;;  %v6607_v14 = vld [vmem:[#allocation6 + $0x1c0] sm:$0xff] }
0x1da5   :  { %3131 = vmatpush.msra.mxu2 %v6607_v14 }
0x1da6   :  { %v2723_v34 = vmul.f32 %v5364_v11, %v2722_v16  ;;  %3017 = vmatpush.msrb.mxu0 %v2958_v8  ;;  %v6609_v16 = vld [vmem:[#allocation6 + $0x1c8] sm:$0xff]  ;;  %v6628_v8 = vld [vmem:[#allocation6 + $0x1b8] sm:$0xff] }
0x1da8   :  { %v2724_v60 = vadd.f32 %v5364_v11, %v2723_v34  ;;  %3018 = vmatpush.msrb.mxu0 %v2956_v57  ;;  %v6634_v57 = vld [vmem:[#allocation6 + $0x1a8] sm:$0xff] }
0x1daa   :  { %v2728_v54 = vsel %vm2727_vm13, %v5364_v11, %v2724_v60  ;;  %v6601_v11 = vld [vmem:[#allocation6 + $0x1d8] sm:$0xff] }
0x1dab   :  { %v2733_v47 = vsel %vm2730_vm14, %v2732_v45, %v2728_v54  ;;  %3150 = vmatpush.msra.mxu3 %v6601_v11 }
0x1dad   :  { %3151 = vmatpush.msra.mxu3 %v6609_v16 }
0x1daf   :  { %3152 = vmatpush.msra.mxu3 %v6628_v8 }
0x1db1   :  { %3153 = vmatpush.msra.mxu3 %v6634_v57 }
0x1e15   :  { %v2739_v51 = vpop.permute.xlu0 %2738 }
0x1e16   :  { %v6565_v53 = vadd.f32 %v2739_v51, %v2735_v50 }
0x1e18   :  { %5365 = vtanh.f32 %v6565_v53 }
0x1e1e   :  { %v5366_v46 = vpop.eup %5365 }
0x1e1f   :  { %v2743_v25 = vmul.f32 %v5366_v46, %v2733_v47 }
0x1e21   :  { %2745 = vrot.lane.b32.xlu1 %v2743_v25, %s5640_s18 }
0x1e93   :  { %v2746_v0 = vpop.permute.xlu1 %2745 }
0x1e94   :  { %2748 = vst.msk [vmem:[#allocation3 + $0x28] sm:$0xff] %vm220_vm10, %v2746_v0  ;;  %4995 = vmatmul.msk.f32.vlgmr.msra.gmra.mxu0 %vm220_vm10, %v2746_v0  ;;  %4996 = vmatmul.msk.f32.vlgmr.msra.gmra.mxu1 %vm220_vm10, %v2746_v0  ;;  %v6638_v0 = vld [vmem:[#allocation6 + $0x198] sm:$0xff] }
0x1e95   :  { %3524 = vmatpush.msra.mxu0 %v6589_v3  ;;  %3544 = vmatpush.msra.mxu1 %v6591_v4 }
0x1e96   :  { %3154 = vmatpush.msra.mxu3 %v6638_v0 }
0x1e97   :  { %3525 = vmatpush.msra.mxu0 %v6593_v5  ;;  %3545 = vmatpush.msra.mxu1 %v6597_v7 }
0x1e99   :  { %3526 = vmatpush.msra.mxu0 %v6599_v9  ;;  %3546 = vmatpush.msra.mxu1 %v6601_v11 }
0x1e9b   :  { %v2952_v19 = vld [vmem:[#allocation3 + $0x28] sm:$0xff]  ;;  %3527 = vmatpush.msra.mxu0 %v6607_v14  ;;  %3547 = vmatpush.msra.mxu1 %v6609_v16 }
0x1e9c   :  { %5004 = vmatmul.msk.f32.vlgmr.msrb.gmra.mxu0 %vm220_vm10, %v2947_v33  ;;  %5012 = vmatmul.msk.f32.vlgmr.msrb.gmra.mxu1 %vm220_vm10, %v2947_v33  ;;  %v6644_v33 = vld [vmem:[#allocation6 + $0x180] sm:$0xff] }
0x1e9d   :  { %3548 = vmatpush.msra.mxu1 %v6628_v8 }
0x1e9f   :  { %3549 = vmatpush.msra.mxu1 %v6634_v57 }
0x1ea1   :  { %3550 = vmatpush.msra.mxu1 %v6638_v0 }
0x1ea4   :  { %5005 = vmatmul.msk.f32.gmra.mxu0 %vm220_vm10, %v2948_v6  ;;  %5013 = vmatmul.msk.f32.gmra.mxu1 %vm220_vm10, %v2948_v6  ;;  %v6646_v6 = vld [vmem:[#allocation6 + $0x188] sm:$0xff] }
0x1ea5   :  { %3155 = vmatpush.msra.mxu3 %v6646_v6  ;;  %3551 = vmatpush.msra.mxu1 %v6646_v6 }
0x1ea7   :  { %3742 = vmatpush.msrb.mxu1 %v6591_v4 }
0x1ea9   :  { %3743 = vmatpush.msrb.mxu1 %v6597_v7 }
0x1eab   :  { %3744 = vmatpush.msrb.mxu1 %v6601_v11 }
0x1eac   :  { %5006 = vmatmul.msk.f32.gmra.mxu0 %vm220_vm10, %v2949_v1  ;;  %5014 = vmatmul.msk.f32.gmra.mxu1 %vm220_vm10, %v2949_v1 }
0x1ead   :  { %3745 = vmatpush.msrb.mxu1 %v6609_v16 }
0x1eaf   :  { %3746 = vmatpush.msrb.mxu1 %v6628_v8 }
0x1eb1   :  { %3747 = vmatpush.msrb.mxu1 %v6634_v57 }
0x1eb3   :  { %3748 = vmatpush.msrb.mxu1 %v6638_v0 }
0x1eb4   :  { %5007 = vmatmul.msk.f32.gmra.mxu0 %vm220_vm10, %v2950_v49  ;;  %5015 = vmatmul.msk.f32.gmra.mxu1 %vm220_vm10, %v2950_v49 }
0x1eb5   :  { %3749 = vmatpush.msrb.mxu1 %v6646_v6 }
0x1ebc   :  { %5008 = vmatmul.msk.f32.gmra.mxu0 %vm220_vm10, %v2951_v2  ;;  %5016 = vmatmul.msk.f32.gmra.mxu1 %vm220_vm10, %v2951_v2  ;;  %v2081_v2 = vadd.f32 %v6540_v40, %v6422_v58 }
0x1ec4   :  { %5009 = vmatmul.msk.f32.gmra.mxu0 %vm220_vm10, %v2952_v19  ;;  %5017 = vmatmul.msk.f32.gmra.mxu1 %vm220_vm10, %v2952_v19 }
0x1f11   :  { %v2770_v12 = vpop.f32.mrf.mxu0  ;;  %v2790_v30 = vpop.f32.mrf.mxu1 }
0x1f12   :  { %v2793_v15 = vadd.f32 %v2770_v12, %v2078_v22  ;;  %v2794_v39 = vadd.f32 %v2790_v30, %v2119_v13  ;;  %v5003_v22 = vld [vmem:[%s7173_s4 + $0x6] sm:$0x3] }
0x1f14   :  { %v4997_v24 = vmul.f32 -1.442695, %v2793_v15  ;;  %v4998_v42 = vmul.f32 -1.442695, %v2794_v39 }
0x1f16   :  { %5367 = vpow2.f32 %v4997_v24  ;;  %v6718_v24 = vperm.slane %v5003_v22, 0 }
0x1f1c   :  { %v5368_v26 = vpop.eup %5367 }
0x1f1d   :  { %v2798_v29 = vadd.f32 1.0, %v5368_v26  ;;  %v3020_v26 = vpop.f32.mrf.mxu0 }
0x1f1f   :  { %5369 = vrcp.f32 %v2798_v29  ;;  %v2810_v20 = vand.u32 2147483648, %v2798_v29  ;;  %v2808_v41 = vand.u32 2147483647, %v2798_v29  ;;  %vm2804_vm0 = vweird.f32 %v2798_v29 }
0x1f20   :  { %5371 = vtanh.f32 %v2794_v39 }
0x1f21   :  { %v2811_v35 = vor.u32 1.1754944e-38, %v2810_v20  ;;  %vm2809_vm3 = vcmp.eq.f32.partialorder %v2808_v41, 8.507059e+37  ;;  %5373 = vpow2.f32 %v4998_v42 }
0x1f25   :  { %v5370_v17 = vpop.eup %5369 }
0x1f26   :  { %v2800_v18 = vmul.f32 %v5370_v17, %v2798_v29  ;;  %vm2805_vm15 = vweird.f32 %v5370_v17  ;;  %v5372_v36 = vpop.eup %5371  ;;  %v3021_v29 = vadd.f32 %v3020_v26, %v6718_v24 }
0x1f27   :  { %vm2806_vm2 = vmor %vm2804_vm0, %vm2805_vm15  ;;  %v5374_v43 = vpop.eup %5373 }
0x1f28   :  { %v2801_v27 = vsub.f32 1.0, %v2800_v18  ;;  %v2818_v44 = vadd.f32 1.0, %v5374_v43 }
0x1f2a   :  { %v2802_v21 = vmul.f32 %v5370_v17, %v2801_v27  ;;  %5375 = vrcp.f32 %v2818_v44  ;;  %v2830_v46 = vand.u32 2147483648, %v2818_v44  ;;  %vm2824_vm5 = vweird.f32 %v2818_v44 }
0x1f2b   :  { %v2828_v47 = vand.u32 2147483647, %v2818_v44  ;;  %v2122_v27 = vadd.f32 %v6547_v32, %v6429_v59 }
0x1f2c   :  { %v2803_v31 = vadd.f32 %v5370_v17, %v2802_v21  ;;  %v2831_v56 = vor.u32 1.1754944e-38, %v2830_v46 }
0x1f2d   :  { %vm2829_vm6 = vcmp.eq.f32.partialorder %v2828_v47, 8.507059e+37 }
0x1f2e   :  { %v2807_v52 = vsel %vm2806_vm2, %v5370_v17, %v2803_v31 }
0x1f2f   :  { %v2812_v38 = vsel %vm2809_vm3, %v2811_v35, %v2807_v52  ;;  %v6725_v52 = vperm.slane %v5003_v22, 1 }
0x1f30   :  { %v2835_v37 = vmul.f32 %v5372_v36, %v2812_v38  ;;  %v5376_v34 = vpop.eup %5375  ;;  %v2834_v61 = vmul.f32 %v2812_v38, %v6565_v53  ;;  %v6626_v53 = vld [vmem:[#allocation6 + $0x1b0] sm:$0xff]  ;;  %v3061_v36 = vpop.f32.mrf.mxu1 }
0x1f31   :  { %v2820_v50 = vmul.f32 %v5376_v34, %v2818_v44  ;;  %vm2825_vm4 = vweird.f32 %v5376_v34  ;;  %3132 = vmatpush.msra.mxu2 %v6626_v53  ;;  %3528 = vmatpush.msra.mxu0 %v6626_v53  ;;  %v3062_v44 = vadd.f32 %v3061_v36, %v6725_v52 }
0x1f32   :  { %2837 = vrot.lane.b32.xlu2 %v2835_v37, %s5640_s18  ;;  %vm2826_vm1 = vmor %vm2824_vm5, %vm2825_vm4 }
0x1f33   :  { %v2821_v51 = vsub.f32 1.0, %v2820_v50  ;;  %3133 = vmatpush.msra.mxu2 %v6630_v55  ;;  %3529 = vmatpush.msra.mxu0 %v6630_v55 }
0x1f35   :  { %v2822_v60 = vmul.f32 %v5376_v34, %v2821_v51  ;;  %3134 = vmatpush.msra.mxu2 %v6636_v10  ;;  %3530 = vmatpush.msra.mxu0 %v6636_v10 }
0x1f37   :  { %v2823_v45 = vadd.f32 %v5376_v34, %v2822_v60  ;;  %3135 = vmatpush.msra.mxu2 %v6644_v33  ;;  %3531 = vmatpush.msra.mxu0 %v6644_v33 }
0x1f39   :  { %v2827_v25 = vsel %vm2826_vm1, %v5376_v34, %v2823_v45  ;;  %3722 = vmatpush.msrb.mxu0 %v6589_v3 }
0x1f3a   :  { %v2832_v28 = vsel %vm2829_vm6, %v2831_v56, %v2827_v25 }
0x1f3b   :  { %3723 = vmatpush.msrb.mxu0 %v6593_v5 }
0x1f3d   :  { %3724 = vmatpush.msrb.mxu0 %v6599_v9 }
0x1f3f   :  { %3725 = vmatpush.msrb.mxu0 %v6607_v14 }
0x1f41   :  { %3726 = vmatpush.msrb.mxu0 %v6626_v53 }
0x1f43   :  { %3727 = vmatpush.msrb.mxu0 %v6630_v55 }
0x1f45   :  { %3728 = vmatpush.msrb.mxu0 %v6636_v10 }
0x1f47   :  { %3729 = vmatpush.msrb.mxu0 %v6644_v33 }
0x1f8c   :  { %v2838_v62 = vpop.permute.xlu2 %2837 }
0x1f8d   :  { %v6622_v54 = vadd.f32 %v2838_v62, %v2834_v61 }
0x1f8f   :  { %5377 = vtanh.f32 %v6622_v54 }
0x1f95   :  { %v5378_v48 = vpop.eup %5377 }
0x1f96   :  { %v2842_v63 = vmul.f32 %v5378_v48, %v2832_v28 }
0x1f98   :  { %2844 = vrot.lane.b32.xlu0 %v2842_v63, %s5640_s18 }
0x200a   :  { %v2845_v1 = vpop.permute.xlu0 %2844 }
0x200b   :  { %2847 = vst.msk [vmem:[#allocation3 + $0x30] sm:$0xff] %vm220_vm10, %v2845_v1  ;;  %4999 = vmatmul.msk.f32.vlgmr.msrb.gmra.mxu2 %vm220_vm10, %v2845_v1  ;;  %5000 = vmatmul.msk.f32.vlgmr.msrb.gmra.mxu3 %vm220_vm10, %v2845_v1 }
0x200c   :  { %3227 = vmatpush.msrb.mxu2 %v6589_v3  ;;  %3247 = vmatpush.msrb.mxu3 %v6591_v4 }
0x200e   :  { %3228 = vmatpush.msrb.mxu2 %v6593_v5  ;;  %3248 = vmatpush.msrb.mxu3 %v6597_v7 }
0x2010   :  { %3229 = vmatpush.msrb.mxu2 %v6599_v9  ;;  %3249 = vmatpush.msrb.mxu3 %v6601_v11 }
0x2012   :  { %v2953_v49 = vld [vmem:[#allocation3 + $0x30] sm:$0xff]  ;;  %3230 = vmatpush.msrb.mxu2 %v6607_v14  ;;  %3250 = vmatpush.msrb.mxu3 %v6609_v16 }
0x2013   :  { %5010 = vmatmul.msk.f32.gmra.mxu0 %vm220_vm10, %v2953_v49  ;;  %5018 = vmatmul.msk.f32.gmra.mxu1 %vm220_vm10, %v2953_v49 }
0x2014   :  { %3136 = vmatmul.f32.vlgmr.msra.gmra.mxu2 %v5639_v23  ;;  %3156 = vmatmul.f32.vlgmr.msra.gmra.mxu3 %v5639_v23 }
0x2015   :  { %3231 = vmatpush.msrb.mxu2 %v6626_v53  ;;  %3251 = vmatpush.msrb.mxu3 %v6628_v8 }
0x2017   :  { %3232 = vmatpush.msrb.mxu2 %v6630_v55  ;;  %3252 = vmatpush.msrb.mxu3 %v6634_v57 }
0x2019   :  { %3233 = vmatpush.msrb.mxu2 %v6636_v10  ;;  %3253 = vmatpush.msrb.mxu3 %v6638_v0 }
0x201b   :  { %3234 = vmatpush.msrb.mxu2 %v6644_v33  ;;  %3254 = vmatpush.msrb.mxu3 %v6646_v6 }
0x201d   :  { %3326 = vmatpush.msra.mxu2 %v6589_v3  ;;  %3346 = vmatpush.msra.mxu3 %v6591_v4 }
0x201f   :  { %3327 = vmatpush.msra.mxu2 %v6593_v5  ;;  %3347 = vmatpush.msra.mxu3 %v6597_v7 }
0x2021   :  { %3328 = vmatpush.msra.mxu2 %v6599_v9  ;;  %3348 = vmatpush.msra.mxu3 %v6601_v11 }
0x2023   :  { %3329 = vmatpush.msra.mxu2 %v6607_v14  ;;  %3349 = vmatpush.msra.mxu3 %v6609_v16 }
0x2025   :  { %3330 = vmatpush.msra.mxu2 %v6626_v53  ;;  %3350 = vmatpush.msra.mxu3 %v6628_v8 }
0x2027   :  { %3331 = vmatpush.msra.mxu2 %v6630_v55  ;;  %3351 = vmatpush.msra.mxu3 %v6634_v57 }
0x2029   :  { %3332 = vmatpush.msra.mxu2 %v6636_v10  ;;  %3352 = vmatpush.msra.mxu3 %v6638_v0 }
0x202b   :  { %3333 = vmatpush.msra.mxu2 %v6644_v33  ;;  %3353 = vmatpush.msra.mxu3 %v6646_v6 }
0x208e   :  { %v2869_v19 = vpop.f32.mrf.mxu2  ;;  %v2889_v58 = vpop.f32.mrf.mxu3 }
0x208f   :  { %v2892_v12 = vadd.f32 %v2869_v19, %v2081_v2  ;;  %v6723_v41 = vadd.f32 %v2889_v58, %v2122_v27 }
0x2091   :  { %v5001_v15 = vmul.f32 -1.442695, %v2892_v12 }
0x2093   :  { %5379 = vpow2.f32 %v5001_v15 }
0x2097   :  { %v3137_v30 = vpop.f32.mrf.mxu2  ;;  %v3157_v43 = vpop.f32.mrf.mxu3 }
0x2098   :  { %v3160_v13 = vadd.f32 %v3137_v30, %v3021_v29  ;;  %v3161_v50 = vadd.f32 %v3157_v43, %v3062_v44 }
0x2099   :  { %v5380_v17 = vpop.eup %5379 }
0x209a   :  { %v2897_v39 = vadd.f32 1.0, %v5380_v17  ;;  %v5020_v18 = vmul.f32 -1.442695, %v3160_v13  ;;  %v5021_v19 = vmul.f32 -1.442695, %v3161_v50 }
0x209c   :  { %5381 = vrcp.f32 %v2897_v39  ;;  %v2909_v38 = vand.u32 2147483648, %v2897_v39  ;;  %v2907_v42 = vand.u32 2147483647, %v2897_v39  ;;  %vm2903_vm8 = vweird.f32 %v2897_v39 }
0x209d   :  { %5383 = vpow2.f32 %v5020_v18 }
0x209e   :  { %v2910_v32 = vor.u32 1.1754944e-38, %v2909_v38  ;;  %vm2908_vm11 = vcmp.eq.f32.partialorder %v2907_v42, 8.507059e+37  ;;  %v3023_v38 = vpop.f32.mrf.mxu0 }
0x20a2   :  { %v5382_v40 = vpop.eup %5381 }
0x20a3   :  { %v2899_v20 = vmul.f32 %v5382_v40, %v2897_v39  ;;  %v5384_v21 = vpop.eup %5383  ;;  %vm2904_vm7 = vweird.f32 %v5382_v40 }
0x20a4   :  { %v3165_v31 = vadd.f32 1.0, %v5384_v21  ;;  %vm2905_vm9 = vmor %vm2903_vm8, %vm2904_vm7 }
0x20a5   :  { %v2900_v35 = vsub.f32 1.0, %v2899_v20 }
0x20a6   :  { %5385 = vrcp.f32 %v3165_v31  ;;  %v3177_v47 = vand.u32 2147483648, %v3165_v31  ;;  %v3175_v56 = vand.u32 2147483647, %v3165_v31  ;;  %vm3171_vm13 = vweird.f32 %v3165_v31 }
0x20a7   :  { %5387 = vtanh.f32 %v6723_v41  ;;  %v2901_v37 = vmul.f32 %v5382_v40, %v2900_v35 }
0x20a8   :  { %5389 = vtanh.f32 %v3161_v50  ;;  %v3178_v28 = vor.u32 1.1754944e-38, %v3177_v47  ;;  %vm3176_vm15 = vcmp.eq.f32.partialorder %v3175_v56, 8.507059e+37 }
0x20a9   :  { %v2902_v59 = vadd.f32 %v5382_v40, %v2901_v37  ;;  %5391 = vpow2.f32 %v5021_v19  ;;  %v3024_v37 = vadd.f32 %v3023_v38, %v6718_v24 }
0x20ab   :  { %v2906_v51 = vsel %vm2905_vm9, %v5382_v40, %v2902_v59 }
0x20ac   :  { %v5386_v34 = vpop.eup %5385  ;;  %v6729_v62 = vsel %vm2908_vm11, %v2910_v32, %v2906_v51 }
0x20ad   :  { %v5388_v60 = vpop.eup %5387  ;;  %v3167_v61 = vmul.f32 %v5386_v34, %v3165_v31  ;;  %vm3172_vm12 = vweird.f32 %v5386_v34 }
0x20ae   :  { %v6732_v45 = vmul.f32 %v5388_v60, %v6729_v62  ;;  %vm3173_vm14 = vmor %vm3171_vm13, %vm3172_vm12  ;;  %v5390_v1 = vpop.eup %5389 }
0x20af   :  { %v3168_v46 = vsub.f32 1.0, %v3167_v61  ;;  %v5392_v22 = vpop.eup %5391 }
0x20b0   :  { %v3185_v12 = vadd.f32 1.0, %v5392_v22 }
0x20b1   :  { %v3169_v25 = vmul.f32 %v5386_v34, %v3168_v46 }
0x20b2   :  { %5393 = vrcp.f32 %v3185_v12  ;;  %v3197_v58 = vand.u32 2147483648, %v3185_v12  ;;  %vm3191_vm2 = vweird.f32 %v3185_v12  ;;  %v3195_v40 = vand.u32 2147483647, %v3185_v12 }
0x20b3   :  { %v3170_v48 = vadd.f32 %v5386_v34, %v3169_v25 }
0x20b4   :  { %v3198_v20 = vor.u32 1.1754944e-38, %v3197_v58  ;;  %vm3196_vm4 = vcmp.eq.f32.partialorder %v3195_v40, 8.507059e+37 }
0x20b5   :  { %v3174_v63 = vsel %vm3173_vm14, %v5386_v34, %v3170_v48  ;;  %v3064_v34 = vpop.f32.mrf.mxu1 }
0x20b6   :  { %v3179_v49 = vsel %vm3176_vm15, %v3178_v28, %v3174_v63  ;;  %v3065_v51 = vadd.f32 %v3064_v34, %v6725_v52 }
0x20b7   :  { %v3202_v2 = vmul.f32 %v5390_v1, %v3179_v49  ;;  %v3201_v13 = vmul.f32 0.0, %v3179_v49 }
0x20b8   :  { %v5394_v15 = vpop.eup %5393 }
0x20b9   :  { %3204 = vrot.lane.b32.xlu1 %v3202_v2, %s5640_s18  ;;  %v3187_v26 = vmul.f32 %v5394_v15, %v3185_v12  ;;  %vm3192_vm0 = vweird.f32 %v5394_v15 }
0x20ba   :  { %vm3193_vm3 = vmor %vm3191_vm2, %vm3192_vm0 }
0x20bb   :  { %v3188_v29 = vsub.f32 1.0, %v3187_v26 }
0x20bd   :  { %v3189_v30 = vmul.f32 %v5394_v15, %v3188_v29 }
0x20bf   :  { %v3190_v18 = vadd.f32 %v5394_v15, %v3189_v30 }
0x20c1   :  { %v3194_v27 = vsel %vm3193_vm3, %v5394_v15, %v3190_v18 }
0x20c2   :  { %v3199_v31 = vsel %vm3196_vm4, %v3198_v20, %v3194_v27 }
0x212b   :  { %v3205_v17 = vpop.permute.xlu1 %3204 }
0x212c   :  { %v6735_v39 = vadd.f32 %v3205_v17, %v3201_v13 }
0x212e   :  { %5395 = vtanh.f32 %v6735_v39 }
0x2134   :  { %v5396_v21 = vpop.eup %5395 }
0x2135   :  { %v3209_v35 = vmul.f32 %v5396_v21, %v3199_v31 }
0x2137   :  { %3211 = vrot.lane.b32.xlu2 %v3209_v35, %s5640_s18 }
0x2191   :  { %v3212_v36 = vpop.permute.xlu2 %3211 }
0x2192   :  { %3214 = vst.msk [vmem:[#allocation3] sm:$0xff] %vm220_vm10, %v3212_v36  ;;  %5022 = vmatmul.msk.f32.vlgmr.msrb.gmra.mxu2 %vm220_vm10, %v3212_v36  ;;  %5023 = vmatmul.msk.f32.vlgmr.msrb.gmra.mxu3 %vm220_vm10, %v3212_v36 }
0x2193   :  { %3425 = vmatpush.msrb.mxu2 %v6589_v3  ;;  %3445 = vmatpush.msrb.mxu3 %v6591_v4 }
0x2195   :  { %3426 = vmatpush.msrb.mxu2 %v6593_v5  ;;  %3446 = vmatpush.msrb.mxu3 %v6597_v7 }
0x2197   :  { %3427 = vmatpush.msrb.mxu2 %v6599_v9  ;;  %3447 = vmatpush.msrb.mxu3 %v6601_v11 }
0x2199   :  { %3428 = vmatpush.msrb.mxu2 %v6607_v14  ;;  %3448 = vmatpush.msrb.mxu3 %v6609_v16 }
0x219b   :  { %3429 = vmatpush.msrb.mxu2 %v6626_v53  ;;  %3449 = vmatpush.msrb.mxu3 %v6628_v8 }
0x219d   :  { %3430 = vmatpush.msrb.mxu2 %v6630_v55  ;;  %3450 = vmatpush.msrb.mxu3 %v6634_v57 }
0x219f   :  { %3431 = vmatpush.msrb.mxu2 %v6636_v10  ;;  %3451 = vmatpush.msrb.mxu3 %v6638_v0 }
0x21a1   :  { %3432 = vmatpush.msrb.mxu2 %v6644_v33  ;;  %3452 = vmatpush.msrb.mxu3 %v6646_v6 }
0x2215   :  { %v3236_v42 = vpop.f32.mrf.mxu2  ;;  %v3256_v50 = vpop.f32.mrf.mxu3 }
0x2216   :  { %v3259_v43 = vadd.f32 %v3236_v42, %v3024_v37  ;;  %v3260_v61 = vadd.f32 %v3256_v50, %v3065_v51 }
0x2218   :  { %v5024_v44 = vmul.f32 -1.442695, %v3259_v43  ;;  %v5025_v22 = vmul.f32 -1.442695, %v3260_v61 }
0x221a   :  { %5397 = vpow2.f32 %v5024_v44 }
0x2220   :  { %v5398_v59 = vpop.eup %5397 }
0x2221   :  { %v3264_v32 = vadd.f32 1.0, %v5398_v59 }
0x2223   :  { %5399 = vrcp.f32 %v3264_v32  ;;  %v3276_v25 = vand.u32 2147483648, %v3264_v32  ;;  %v3274_v48 = vand.u32 2147483647, %v3264_v32  ;;  %vm3270_vm1 = vweird.f32 %v3264_v32 }
0x2224   :  { %5401 = vtanh.f32 %v3260_v61 }
0x2225   :  { %v3277_v63 = vor.u32 1.1754944e-38, %v3276_v25  ;;  %vm3275_vm7 = vcmp.eq.f32.partialorder %v3274_v48, 8.507059e+37  ;;  %5403 = vpow2.f32 %v5025_v22 }
0x2229   :  { %v5400_v60 = vpop.eup %5399 }
0x222a   :  { %v3266_v46 = vmul.f32 %v5400_v60, %v3264_v32  ;;  %vm3271_vm5 = vweird.f32 %v5400_v60  ;;  %v5402_v49 = vpop.eup %5401 }
0x222b   :  { %vm3272_vm6 = vmor %vm3270_vm1, %vm3271_vm5  ;;  %v5404_v12 = vpop.eup %5403 }
0x222c   :  { %v3267_v47 = vsub.f32 1.0, %v3266_v46  ;;  %v3284_v15 = vadd.f32 1.0, %v5404_v12 }
0x222e   :  { %v3268_v56 = vmul.f32 %v5400_v60, %v3267_v47  ;;  %5405 = vrcp.f32 %v3284_v15  ;;  %v3296_v27 = vand.u32 2147483648, %v3284_v15  ;;  %vm3290_vm9 = vweird.f32 %v3284_v15 }
0x222f   :  { %v3294_v20 = vand.u32 2147483647, %v3284_v15 }
0x2230   :  { %v3269_v28 = vadd.f32 %v5400_v60, %v3268_v56  ;;  %v3297_v31 = vor.u32 1.1754944e-38, %v3296_v27  ;;  %v3026_v56 = vpop.f32.mrf.mxu0 }
0x2231   :  { %vm3295_vm12 = vcmp.eq.f32.partialorder %v3294_v20, 8.507059e+37  ;;  %v3027_v48 = vadd.f32 %v3026_v56, %v6718_v24 }
0x2232   :  { %v3273_v1 = vsel %vm3272_vm6, %v5400_v60, %v3269_v28 }
0x2233   :  { %v3278_v2 = vsel %vm3275_vm7, %v3277_v63, %v3273_v1 }
0x2234   :  { %v3301_v19 = vmul.f32 %v5402_v49, %v3278_v2  ;;  %v5406_v26 = vpop.eup %5405  ;;  %v3300_v17 = vmul.f32 %v3278_v2, %v6735_v39  ;;  %v5002_v39 = vmul.f32 -1.442695, %v6723_v41 }
0x2235   :  { %v3286_v29 = vmul.f32 %v5406_v26, %v3284_v15  ;;  %vm3291_vm8 = vweird.f32 %v5406_v26 }
0x2236   :  { %3303 = vrot.lane.b32.xlu0 %v3301_v19, %s5640_s18  ;;  %vm3292_vm11 = vmor %vm3290_vm9, %vm3291_vm8  ;;  %v3067_v19 = vpop.f32.mrf.mxu1 }
0x2237   :  { %v3287_v30 = vsub.f32 1.0, %v3286_v29  ;;  %v3068_v12 = vadd.f32 %v3067_v19, %v6725_v52 }
0x2239   :  { %v3288_v13 = vmul.f32 %v5406_v26, %v3287_v30 }
0x223b   :  { %v3289_v40 = vadd.f32 %v5406_v26, %v3288_v13 }
0x223d   :  { %v3293_v21 = vsel %vm3292_vm11, %v5406_v26, %v3289_v40 }
0x223e   :  { %v3298_v36 = vsel %vm3295_vm12, %v3297_v31, %v3293_v21 }
0x22a8   :  { %v3304_v18 = vpop.permute.xlu0 %3303 }
0x22a9   :  { %v6762_v58 = vadd.f32 %v3304_v18, %v3300_v17 }
0x22ab   :  { %5407 = vtanh.f32 %v6762_v58 }
0x22ac   :  { %5409 = vpow2.f32 %v5002_v39 }
0x22b1   :  { %v5408_v35 = vpop.eup %5407 }
0x22b2   :  { %v3308_v38 = vmul.f32 %v5408_v35, %v3298_v36  ;;  %v5410_v37 = vpop.eup %5409 }
0x22b3   :  { %v2917_v42 = vadd.f32 1.0, %v5410_v37 }
0x22b4   :  { %3310 = vrot.lane.b32.xlu1 %v3308_v38, %s5640_s18 }
0x22b5   :  { %5411 = vrcp.f32 %v2917_v42  ;;  %v2929_v60 = vand.u32 2147483648, %v2917_v42  ;;  %vm2923_vm14 = vweird.f32 %v2917_v42  ;;  %v2927_v61 = vand.u32 2147483647, %v2917_v42 }
0x22b7   :  { %vm2928_vm0 = vcmp.eq.f32.partialorder %v2927_v61, 8.507059e+37 }
0x22bb   :  { %v5412_v43 = vpop.eup %5411 }
0x22bc   :  { %2936 = vrot.lane.b32.xlu1 %v6732_v45, %s5640_s18  ;;  %v2919_v44 = vmul.f32 %v5412_v43, %v2917_v42  ;;  %v2933_v45 = vmul.f32 %v6729_v62, %v6622_v54  ;;  %vm2924_vm13 = vweird.f32 %v5412_v43  ;;  %v2930_v62 = vor.u32 1.1754944e-38, %v2929_v60 }
0x22bd   :  { %vm2925_vm15 = vmor %vm2923_vm14, %vm2924_vm13 }
0x22be   :  { %v2920_v32 = vsub.f32 1.0, %v2919_v44 }
0x22c0   :  { %v2921_v41 = vmul.f32 %v5412_v43, %v2920_v32 }
0x22c2   :  { %v2922_v51 = vadd.f32 %v5412_v43, %v2921_v41 }
0x22c4   :  { %v2926_v54 = vsel %vm2925_vm15, %v5412_v43, %v2922_v51 }
0x22c5   :  { %v2931_v47 = vsel %vm2928_vm0, %v2930_v62, %v2926_v54 }
0x2326   :  { %v3311_v59 = vpop.permute.xlu1 %3310 }
0x2327   :  { %3313 = vst.msk [vmem:[#allocation3 + $0x8] sm:$0xff] %vm220_vm10, %v3311_v59  ;;  %5026 = vmatmul.msk.f32.vlgmr.msra.gmra.mxu2 %vm220_vm10, %v3311_v59  ;;  %5027 = vmatmul.msk.f32.vlgmr.msra.gmra.mxu3 %vm220_vm10, %v3311_v59 }
0x2328   :  { %3623 = vmatpush.msra.mxu2 %v6589_v3  ;;  %3643 = vmatpush.msra.mxu3 %v6591_v4 }
0x232a   :  { %3624 = vmatpush.msra.mxu2 %v6593_v5  ;;  %3644 = vmatpush.msra.mxu3 %v6597_v7 }
0x232c   :  { %3625 = vmatpush.msra.mxu2 %v6599_v9  ;;  %3645 = vmatpush.msra.mxu3 %v6601_v11 }
0x232e   :  { %v2937_v34 = vpop.permute.xlu1 %2936  ;;  %3626 = vmatpush.msra.mxu2 %v6607_v14  ;;  %3646 = vmatpush.msra.mxu3 %v6609_v16 }
0x232f   :  { %v2939_v50 = vadd.f32 %v2937_v34, %v2933_v45 }
0x2330   :  { %3627 = vmatpush.msra.mxu2 %v6626_v53  ;;  %3647 = vmatpush.msra.mxu3 %v6628_v8 }
0x2331   :  { %5413 = vtanh.f32 %v2939_v50 }
0x2332   :  { %3628 = vmatpush.msra.mxu2 %v6630_v55  ;;  %3648 = vmatpush.msra.mxu3 %v6634_v57 }
0x2334   :  { %3629 = vmatpush.msra.mxu2 %v6636_v10  ;;  %3649 = vmatpush.msra.mxu3 %v6638_v0 }
0x2336   :  { %3630 = vmatpush.msra.mxu2 %v6644_v33  ;;  %3650 = vmatpush.msra.mxu3 %v6646_v6 }
0x2337   :  { %v5414_v46 = vpop.eup %5413 }
0x2338   :  { %v2941_v25 = vmul.f32 %v5414_v46, %v2931_v47 }
0x23aa   :  { %v3335_v28 = vpop.f32.mrf.mxu2  ;;  %v3355_v22 = vpop.f32.mrf.mxu3 }
0x23ab   :  { %v3358_v63 = vadd.f32 %v3335_v28, %v3027_v48  ;;  %v3359_v26 = vadd.f32 %v3355_v22, %v3068_v12 }
0x23ad   :  { %v5028_v1 = vmul.f32 -1.442695, %v3358_v63  ;;  %v5029_v36 = vmul.f32 -1.442695, %v3359_v26 }
0x23af   :  { %5415 = vpow2.f32 %v5028_v1 }
0x23b5   :  { %v5416_v49 = vpop.eup %5415 }
0x23b6   :  { %v3363_v2 = vadd.f32 1.0, %v5416_v49 }
0x23b8   :  { %5417 = vrcp.f32 %v3363_v2  ;;  %v3375_v13 = vand.u32 2147483648, %v3363_v2  ;;  %v3373_v18 = vand.u32 2147483647, %v3363_v2  ;;  %vm3369_vm3 = vweird.f32 %v3363_v2 }
0x23b9   :  { %5419 = vtanh.f32 %v3359_v26 }
0x23ba   :  { %v3376_v27 = vor.u32 1.1754944e-38, %v3375_v13  ;;  %vm3374_vm5 = vcmp.eq.f32.partialorder %v3373_v18, 8.507059e+37  ;;  %5421 = vpow2.f32 %v5029_v36 }
0x23be   :  { %v5418_v15 = vpop.eup %5417 }
0x23bf   :  { %v3365_v29 = vmul.f32 %v5418_v15, %v3363_v2  ;;  %vm3370_vm2 = vweird.f32 %v5418_v15  ;;  %v5420_v21 = vpop.eup %5419 }
0x23c0   :  { %vm3371_vm4 = vmor %vm3369_vm3, %vm3370_vm2  ;;  %v5422_v38 = vpop.eup %5421 }
0x23c1   :  { %v3366_v30 = vsub.f32 1.0, %v3365_v29  ;;  %v3383_v39 = vadd.f32 1.0, %v5422_v38 }
0x23c3   :  { %v3367_v17 = vmul.f32 %v5418_v15, %v3366_v30  ;;  %5423 = vrcp.f32 %v3383_v39  ;;  %v3395_v34 = vand.u32 2147483648, %v3383_v39  ;;  %vm3389_vm6 = vweird.f32 %v3383_v39 }
0x23c4   :  { %v3393_v50 = vand.u32 2147483647, %v3383_v39 }
0x23c5   :  { %v3368_v40 = vadd.f32 %v5418_v15, %v3367_v17  ;;  %v3396_v60 = vor.u32 1.1754944e-38, %v3395_v34 }
0x23c6   :  { %vm3394_vm8 = vcmp.eq.f32.partialorder %v3393_v50, 8.507059e+37 }
0x23c7   :  { %v3372_v20 = vsel %vm3371_vm4, %v5418_v15, %v3368_v40 }
0x23c8   :  { %v3377_v31 = vsel %vm3374_vm5, %v3376_v27, %v3372_v20 }
0x23c9   :  { %v3400_v35 = vmul.f32 %v5420_v21, %v3377_v31  ;;  %v5424_v37 = vpop.eup %5423  ;;  %v3399_v59 = vmul.f32 %v3377_v31, %v6762_v58 }
0x23ca   :  { %v3385_v42 = vmul.f32 %v5424_v37, %v3383_v39  ;;  %vm3390_vm1 = vweird.f32 %v5424_v37 }
0x23cb   :  { %3402 = vrot.lane.b32.xlu2 %v3400_v35, %s5640_s18  ;;  %vm3391_vm7 = vmor %vm3389_vm6, %vm3390_vm1 }
0x23cc   :  { %v3386_v43 = vsub.f32 1.0, %v3385_v42 }
0x23ce   :  { %v3387_v44 = vmul.f32 %v5424_v37, %v3386_v43 }
0x23d0   :  { %v3388_v45 = vadd.f32 %v5424_v37, %v3387_v44 }
0x23d2   :  { %v3392_v51 = vsel %vm3391_vm7, %v5424_v37, %v3388_v45 }
0x23d3   :  { %v3397_v54 = vsel %vm3394_vm8, %v3396_v60, %v3392_v51 }
0x2425   :  { %v3403_v32 = vpop.permute.xlu2 %3402 }
0x2426   :  { %v6794_v41 = vadd.f32 %v3403_v32, %v3399_v59 }
0x2428   :  { %5425 = vtanh.f32 %v6794_v41 }
0x242e   :  { %v5426_v61 = vpop.eup %5425 }
0x242f   :  { %v3407_v62 = vmul.f32 %v5426_v61, %v3397_v54 }
0x2431   :  { %3409 = vrot.lane.b32.xlu0 %v3407_v62, %s5640_s18 }
0x2439   :  { %2943 = vrot.lane.b32.xlu0 %v2941_v25, %s5640_s18 }
0x24a3   :  { %v3410_v58 = vpop.permute.xlu0 %3409 }
0x24a4   :  { %3412 = vst.msk [vmem:[#allocation3 + $0x10] sm:$0xff] %vm220_vm10, %v3410_v58  ;;  %5030 = vmatmul.msk.f32.vlgmr.msrb.gmra.mxu2 %vm220_vm10, %v3410_v58  ;;  %5031 = vmatmul.msk.f32.vlgmr.msrb.gmra.mxu3 %vm220_vm10, %v3410_v58 }
0x24a5   :  { %3821 = vmatpush.msrb.mxu2 %v6589_v3  ;;  %3841 = vmatpush.msrb.mxu3 %v6591_v4  ;;  %v3029_v4 = vpop.f32.mrf.mxu0 }
0x24a7   :  { %3822 = vmatpush.msrb.mxu2 %v6593_v5  ;;  %3842 = vmatpush.msrb.mxu3 %v6597_v7  ;;  %v3030_v5 = vadd.f32 %v3029_v4, %v6718_v24 }
0x24a9   :  { %3823 = vmatpush.msrb.mxu2 %v6599_v9  ;;  %3843 = vmatpush.msrb.mxu3 %v6601_v11 }
0x24ab   :  { %v2944_v46 = vpop.permute.xlu0 %2943  ;;  %3824 = vmatpush.msrb.mxu2 %v6607_v14  ;;  %3844 = vmatpush.msrb.mxu3 %v6609_v16 }
0x24ac   :  { %2946 = vst.msk [vmem:[#allocation3 + $0x38] sm:$0xff] %vm220_vm10, %v2944_v46 }
0x24ad   :  { %3825 = vmatpush.msrb.mxu2 %v6626_v53  ;;  %3845 = vmatpush.msrb.mxu3 %v6628_v8  ;;  %v3070_v53 = vpop.f32.mrf.mxu1  ;;  %v3032_v39 = vpop.f32.mrf.mxu0 }
0x24ae   :  { %v3033_v32 = vadd.f32 %v3032_v39, %v6718_v24 }
0x24af   :  { %3826 = vmatpush.msrb.mxu2 %v6630_v55  ;;  %3846 = vmatpush.msrb.mxu3 %v6634_v57  ;;  %v3071_v55 = vadd.f32 %v3070_v53, %v6725_v52 }
0x24b1   :  { %3827 = vmatpush.msrb.mxu2 %v6636_v10  ;;  %3847 = vmatpush.msrb.mxu3 %v6638_v0 }
0x24b3   :  { %v2954_v3 = vld [vmem:[#allocation3 + $0x38] sm:$0xff]  ;;  %3828 = vmatpush.msrb.mxu2 %v6644_v33  ;;  %3848 = vmatpush.msrb.mxu3 %v6646_v6 }
0x24b4   :  { %5011 = vmatmul.msk.f32.gmra.mxu0 %vm220_vm10, %v2954_v3  ;;  %5019 = vmatmul.msk.f32.gmra.mxu1 %vm220_vm10, %v2954_v3 }
0x24b5   :  { %v6832_v37 = vpop.f32.mrf.mxu0  ;;  %v3073_v42 = vpop.f32.mrf.mxu1 }
0x24b6   :  { %v3074_v62 = vadd.f32 %v3073_v42, %v6725_v52 }
0x24bd   :  { %v6834_v43 = vpop.f32.mrf.mxu0  ;;  %v6838_v59 = vpop.f32.mrf.mxu1 }
0x24c5   :  { %v6841_v45 = vpop.f32.mrf.mxu1 }
0x2527   :  { %v3434_v7 = vpop.f32.mrf.mxu2  ;;  %v3454_v8 = vpop.f32.mrf.mxu3 }
0x2528   :  { %v3457_v9 = vadd.f32 %v3434_v7, %v3030_v5  ;;  %v3458_v10 = vadd.f32 %v3454_v8, %v3071_v55 }
0x252a   :  { %v5032_v11 = vmul.f32 -1.442695, %v3457_v9  ;;  %v5033_v2 = vmul.f32 -1.442695, %v3458_v10 }
0x252c   :  { %5427 = vpow2.f32 %v5032_v11 }
0x2531   :  { %v6836_v44 = vpop.f32.mrf.mxu0  ;;  %v6843_v51 = vpop.f32.mrf.mxu1 }
0x2532   :  { %v5428_v14 = vpop.eup %5427 }
0x2533   :  { %v3462_v16 = vadd.f32 1.0, %v5428_v14 }
0x2535   :  { %5429 = vrcp.f32 %v3462_v16  ;;  %v3474_v6 = vand.u32 2147483648, %v3462_v16  ;;  %v3472_v25 = vand.u32 2147483647, %v3462_v16  ;;  %vm3468_vm11 = vweird.f32 %v3462_v16 }
0x2536   :  { %5431 = vtanh.f32 %v3458_v10 }
0x2537   :  { %v3475_v48 = vor.u32 1.1754944e-38, %v3474_v6  ;;  %vm3473_vm13 = vcmp.eq.f32.partialorder %v3472_v25, 8.507059e+37  ;;  %5433 = vpow2.f32 %v5033_v2 }
0x253b   :  { %v5430_v57 = vpop.eup %5429 }
0x253c   :  { %v3464_v0 = vmul.f32 %v5430_v57, %v3462_v16  ;;  %vm3469_vm9 = vweird.f32 %v5430_v57  ;;  %v5432_v63 = vpop.eup %5431 }
0x253d   :  { %vm3470_vm12 = vmor %vm3468_vm11, %vm3469_vm9  ;;  %v5434_v19 = vpop.eup %5433 }
0x253e   :  { %v3465_v33 = vsub.f32 1.0, %v3464_v0  ;;  %v3482_v22 = vadd.f32 1.0, %v5434_v19 }
0x2540   :  { %v3466_v47 = vmul.f32 %v5430_v57, %v3465_v33  ;;  %5435 = vrcp.f32 %v3482_v22  ;;  %v3494_v40 = vand.u32 2147483648, %v3482_v22  ;;  %vm3488_vm15 = vweird.f32 %v3482_v22 }
0x2541   :  { %v3492_v27 = vand.u32 2147483647, %v3482_v22 }
0x2542   :  { %v3467_v56 = vadd.f32 %v5430_v57, %v3466_v47  ;;  %v3495_v21 = vor.u32 1.1754944e-38, %v3494_v40 }
0x2543   :  { %vm3493_vm2 = vcmp.eq.f32.partialorder %v3492_v27, 8.507059e+37 }
0x2544   :  { %v3471_v28 = vsel %vm3470_vm12, %v5430_v57, %v3467_v56 }
0x2545   :  { %v3476_v1 = vsel %vm3473_vm13, %v3475_v48, %v3471_v28 }
0x2546   :  { %v3499_v49 = vmul.f32 %v5432_v63, %v3476_v1  ;;  %v5436_v12 = vpop.eup %5435  ;;  %v3498_v30 = vmul.f32 %v3476_v1, %v6794_v41 }
0x2547   :  { %v3484_v15 = vmul.f32 %v5436_v12, %v3482_v22  ;;  %vm3489_vm14 = vweird.f32 %v5436_v12 }
0x2548   :  { %3501 = vrot.lane.b32.xlu2 %v3499_v49, %s5640_s18  ;;  %vm3490_vm0 = vmor %vm3488_vm15, %vm3489_vm14 }
0x2549   :  { %v3485_v26 = vsub.f32 1.0, %v3484_v15 }
0x254b   :  { %v3486_v29 = vmul.f32 %v5436_v12, %v3485_v26 }
0x254d   :  { %v3487_v18 = vadd.f32 %v5436_v12, %v3486_v29  ;;  %v3036_v29 = vadd.f32 %v6832_v37, %v6718_v24 }
0x254f   :  { %v3491_v20 = vsel %vm3490_vm0, %v5436_v12, %v3487_v18 }
0x2550   :  { %v3496_v35 = vsel %vm3493_vm2, %v3495_v21, %v3491_v20  ;;  %v3077_v20 = vadd.f32 %v6838_v59, %v6725_v52 }
0x25a2   :  { %v3502_v13 = vpop.permute.xlu2 %3501 }
0x25a3   :  { %v6825_v17 = vadd.f32 %v3502_v13, %v3498_v30 }
0x25a5   :  { %5437 = vtanh.f32 %v6825_v17 }
0x25ab   :  { %v5438_v31 = vpop.eup %5437 }
0x25ac   :  { %v3506_v36 = vmul.f32 %v5438_v31, %v3496_v35 }
0x25ae   :  { %3508 = vrot.lane.b32.xlu1 %v3506_v36, %s5640_s18 }
0x2620   :  { %v3509_v38 = vpop.permute.xlu1 %3508 }
0x2621   :  { %3511 = vst.msk [vmem:[#allocation3 + $0x18] sm:$0xff] %vm220_vm10, %v3509_v38  ;;  %5034 = vmatmul.msk.f32.vlgmr.msra.gmra.mxu0 %vm220_vm10, %v3509_v38  ;;  %5035 = vmatmul.msk.f32.vlgmr.msra.gmra.mxu1 %vm220_vm10, %v3509_v38 }
0x269e   :  { %v3533_v41 = vpop.f32.mrf.mxu0  ;;  %v3553_v54 = vpop.f32.mrf.mxu1 }
0x269f   :  { %v3556_v34 = vadd.f32 %v3533_v41, %v3033_v32  ;;  %v3557_v46 = vadd.f32 %v3553_v54, %v3074_v62  ;;  %v3931_v62 = vld [vmem:[#allocation4 + $0x1f0] sm:$0xff] }
0x26a0   :  { %3972 = vmatpush.msra.mxu0 %v3931_v62 }
0x26a1   :  { %v5036_v50 = vmul.f32 -1.442695, %v3556_v34  ;;  %v5037_v57 = vmul.f32 -1.442695, %v3557_v46 }
0x26a3   :  { %5439 = vpow2.f32 %v5036_v50 }
0x26a9   :  { %v5440_v60 = vpop.eup %5439 }
0x26aa   :  { %v3561_v61 = vadd.f32 1.0, %v5440_v60 }
0x26ac   :  { %5441 = vrcp.f32 %v3561_v61  ;;  %v3573_v5 = vand.u32 2147483648, %v3561_v61  ;;  %v3571_v9 = vand.u32 2147483647, %v3561_v61  ;;  %vm3567_vm4 = vweird.f32 %v3561_v61 }
0x26ad   :  { %5443 = vtanh.f32 %v3557_v46  ;;  %v3929_v46 = vld [vmem:[#allocation4 + $0x1e0] sm:$0xff] }
0x26ae   :  { %v3574_v14 = vor.u32 1.1754944e-38, %v3573_v5  ;;  %vm3572_vm1 = vcmp.eq.f32.partialorder %v3571_v9, 8.507059e+37  ;;  %5445 = vpow2.f32 %v5037_v57  ;;  %v3928_v5 = vld [vmem:[#allocation4 + $0x1d8] sm:$0xff]  ;;  %3973 = vmatpush.msra.mxu0 %v3929_v46  ;;  %v3926_v9 = vld [vmem:[#allocation4 + $0x1c8] sm:$0xff] }
0x26b2   :  { %v5442_v58 = vpop.eup %5441 }
0x26b3   :  { %v3563_v3 = vmul.f32 %v5442_v58, %v3561_v61  ;;  %vm3568_vm3 = vweird.f32 %v5442_v58  ;;  %v5444_v53 = vpop.eup %5443 }
0x26b4   :  { %vm3569_vm5 = vmor %vm3567_vm4, %vm3568_vm3  ;;  %v5446_v10 = vpop.eup %5445 }
0x26b5   :  { %v3564_v4 = vsub.f32 1.0, %v3563_v3  ;;  %v3581_v0 = vadd.f32 1.0, %v5446_v10  ;;  %v3930_v3 = vld [vmem:[#allocation4 + $0x1e8] sm:$0xff] }
0x26b7   :  { %v3565_v7 = vmul.f32 %v5442_v58, %v3564_v4  ;;  %5447 = vrcp.f32 %v3581_v0  ;;  %v3593_v1 = vand.u32 2147483648, %v3581_v0  ;;  %vm3587_vm7 = vweird.f32 %v3581_v0  ;;  %v3927_v4 = vld [vmem:[#allocation4 + $0x1d0] sm:$0xff] }
0x26b8   :  { %v3591_v49 = vand.u32 2147483647, %v3581_v0  ;;  %3974 = vmatpush.msra.mxu0 %v3927_v4  ;;  %v6887_v4 = vld [vmem:[#allocation6 + $0x278] sm:$0xff] }
0x26b9   :  { %v3566_v11 = vadd.f32 %v5442_v58, %v3565_v7  ;;  %v3594_v19 = vor.u32 1.1754944e-38, %v3593_v1  ;;  %v3925_v7 = vld [vmem:[#allocation4 + $0x1c0] sm:$0xff] }
0x26ba   :  { %vm3592_vm9 = vcmp.eq.f32.partialorder %v3591_v49, 8.507059e+37  ;;  %3975 = vmatpush.msra.mxu0 %v3925_v7  ;;  %v3921_v1 = vld [vmem:[#allocation4 + $0x1a0] sm:$0xff]  ;;  %v3922_v49 = vld [vmem:[#allocation4 + $0x1a8] sm:$0xff] }
0x26bb   :  { %v3570_v16 = vsel %vm3569_vm5, %v5442_v58, %v3566_v11  ;;  %v3932_v58 = vld [vmem:[#allocation4 + $0x1f8] sm:$0xff]  ;;  %v6893_v7 = vld [vmem:[#allocation6 + $0x268] sm:$0xff] }
0x26bc   :  { %v3575_v8 = vsel %vm3572_vm1, %v3574_v14, %v3570_v16  ;;  %4013 = vmatpush.msra.mxu1 %v3932_v58 }
0x26bd   :  { %v3598_v55 = vmul.f32 %v5444_v53, %v3575_v8  ;;  %v5448_v33 = vpop.eup %5447  ;;  %v3597_v56 = vmul.f32 %v3575_v8, %v6825_v17 }
0x26be   :  { %v3583_v6 = vmul.f32 %v5448_v33, %v3581_v0  ;;  %vm3588_vm6 = vweird.f32 %v5448_v33  ;;  %4014 = vmatpush.msra.mxu1 %v3930_v3  ;;  %v6885_v3 = vld [vmem:[#allocation6 + $0x270] sm:$0xff] }
0x26bf   :  { %3600 = vrot.lane.b32.xlu2 %v3598_v55, %s5640_s18  ;;  %vm3589_vm8 = vmor %vm3587_vm7, %vm3588_vm6 }
0x26c0   :  { %v3584_v47 = vsub.f32 1.0, %v3583_v6  ;;  %4015 = vmatpush.msra.mxu1 %v3928_v5  ;;  %v6889_v5 = vld [vmem:[#allocation6 + $0x260] sm:$0xff] }
0x26c2   :  { %v3585_v25 = vmul.f32 %v5448_v33, %v3584_v47  ;;  %4016 = vmatpush.msra.mxu1 %v3926_v9  ;;  %v6895_v9 = vld [vmem:[#allocation6 + $0x250] sm:$0xff] }
0x26c4   :  { %v3586_v63 = vadd.f32 %v5448_v33, %v3585_v25 }
0x26c6   :  { %v3590_v2 = vsel %vm3589_vm8, %v5448_v33, %v3586_v63  ;;  %v3924_v63 = vld [vmem:[#allocation4 + $0x1b8] sm:$0xff] }
0x26c7   :  { %v3595_v12 = vsel %vm3592_vm9, %v3594_v19, %v3590_v2  ;;  %4017 = vmatpush.msra.mxu1 %v3924_v63  ;;  %v3919_v2 = vld [vmem:[#allocation4 + $0x190] sm:$0xff]  ;;  %v3920_v19 = vld [vmem:[#allocation4 + $0x198] sm:$0xff] }
0x26c9   :  { %4018 = vmatpush.msra.mxu1 %v3922_v49 }
0x26cb   :  { %4019 = vmatpush.msra.mxu1 %v3920_v19  ;;  %v6926_v19 = vld [vmem:[#allocation6 + $0x220] sm:$0xff] }
0x2719   :  { %v3601_v48 = vpop.permute.xlu2 %3600 }
0x271a   :  { %v6848_v28 = vadd.f32 %v3601_v48, %v3597_v56 }
0x271c   :  { %5449 = vtanh.f32 %v6848_v28 }
0x2722   :  { %v5450_v22 = vpop.eup %5449 }
0x2723   :  { %v3605_v15 = vmul.f32 %v5450_v22, %v3595_v12  ;;  %v3917_v22 = vld [vmem:[#allocation4 + $0x180] sm:$0xff]  ;;  %v3918_v12 = vld [vmem:[#allocation4 + $0x188] sm:$0xff] }
0x2724   :  { %4020 = vmatpush.msra.mxu1 %v3918_v12  ;;  %v6932_v12 = vld [vmem:[#allocation6 + $0x210] sm:$0xff] }
0x2725   :  { %3607 = vrot.lane.b32.xlu0 %v3605_v15, %s5640_s18 }
0x2797   :  { %v3608_v26 = vpop.permute.xlu0 %3607 }
0x2798   :  { %3610 = vst.msk [vmem:[#allocation3 + $0x20] sm:$0xff] %vm220_vm10, %v3608_v26  ;;  %5038 = vmatmul.msk.f32.vlgmr.msra.gmra.mxu2 %vm220_vm10, %v3608_v26  ;;  %5039 = vmatmul.msk.f32.vlgmr.msra.gmra.mxu3 %vm220_vm10, %v3608_v26  ;;  %v3908_v26 = vld [vmem:[#allocation3] sm:$0xff] }
0x2799   :  { %4089 = vmatpush.msra.mxu2 %v6885_v3  ;;  %4109 = vmatpush.msra.mxu3 %v6887_v4 }
0x279b   :  { %4090 = vmatpush.msra.mxu2 %v6889_v5  ;;  %4110 = vmatpush.msra.mxu3 %v6893_v7 }
0x279d   :  { %4091 = vmatpush.msra.mxu2 %v6895_v9 }
0x281b   :  { %v3632_v30 = vpop.f32.mrf.mxu2  ;;  %v3652_v27 = vpop.f32.mrf.mxu3 }
0x281c   :  { %v3655_v13 = vadd.f32 %v3632_v30, %v3036_v29  ;;  %v3656_v31 = vadd.f32 %v3652_v27, %v3077_v20  ;;  %v3909_v29 = vld [vmem:[#allocation3 + $0x8] sm:$0xff]  ;;  %v3910_v30 = vld [vmem:[#allocation3 + $0x10] sm:$0xff] }
0x281e   :  { %v5040_v17 = vmul.f32 -1.442695, %v3655_v13  ;;  %v5041_v59 = vmul.f32 -1.442695, %v3656_v31  ;;  %v3911_v13 = vld [vmem:[#allocation3 + $0x18] sm:$0xff] }
0x2820   :  { %5451 = vpow2.f32 %v5040_v17  ;;  %v3912_v17 = vld [vmem:[#allocation3 + $0x20] sm:$0xff] }
0x2826   :  { %v5452_v18 = vpop.eup %5451 }
0x2827   :  { %v3660_v40 = vadd.f32 1.0, %v5452_v18 }
0x2829   :  { %5453 = vrcp.f32 %v3660_v40  ;;  %v3672_v38 = vand.u32 2147483648, %v3660_v40  ;;  %v3670_v37 = vand.u32 2147483647, %v3660_v40  ;;  %vm3666_vm12 = vweird.f32 %v3660_v40 }
0x282a   :  { %5455 = vtanh.f32 %v3656_v31 }
0x282b   :  { %v3673_v32 = vor.u32 1.1754944e-38, %v3672_v38  ;;  %vm3671_vm14 = vcmp.eq.f32.partialorder %v3670_v37, 8.507059e+37  ;;  %5457 = vpow2.f32 %v5041_v59  ;;  %v3080_v38 = vadd.f32 %v6841_v45, %v6725_v52 }
0x282f   :  { %v5454_v21 = vpop.eup %5453 }
0x2830   :  { %v3662_v35 = vmul.f32 %v5454_v21, %v3660_v40  ;;  %vm3667_vm11 = vweird.f32 %v5454_v21  ;;  %v5456_v34 = vpop.eup %5455  ;;  %v3039_v40 = vadd.f32 %v6834_v43, %v6718_v24 }
0x2831   :  { %vm3668_vm13 = vmor %vm3666_vm12, %vm3667_vm11  ;;  %v5458_v61 = vpop.eup %5457 }
0x2832   :  { %v3663_v36 = vsub.f32 1.0, %v3662_v35  ;;  %v3680_v54 = vadd.f32 1.0, %v5458_v61 }
0x2834   :  { %v3664_v39 = vmul.f32 %v5454_v21, %v3663_v36  ;;  %5459 = vrcp.f32 %v3680_v54  ;;  %v3692_v0 = vand.u32 2147483648, %v3680_v54  ;;  %vm3686_vm0 = vweird.f32 %v3680_v54 }
0x2835   :  { %v3690_v33 = vand.u32 2147483647, %v3680_v54 }
0x2836   :  { %v3665_v42 = vadd.f32 %v5454_v21, %v3664_v39  ;;  %v3693_v47 = vor.u32 1.1754944e-38, %v3692_v0 }
0x2837   :  { %vm3691_vm3 = vcmp.eq.f32.partialorder %v3690_v33, 8.507059e+37 }
0x2838   :  { %v3669_v41 = vsel %vm3668_vm13, %v5454_v21, %v3665_v42 }
0x2839   :  { %v3674_v50 = vsel %vm3671_vm14, %v3673_v32, %v3669_v41 }
0x283a   :  { %v3697_v60 = vmul.f32 %v5456_v34, %v3674_v50  ;;  %v5460_v11 = vpop.eup %5459  ;;  %v3696_v8 = vmul.f32 %v3674_v50, %v6848_v28  ;;  %v3923_v28 = vld [vmem:[#allocation4 + $0x1b0] sm:$0xff] }
0x283b   :  { %v3682_v14 = vmul.f32 %v5460_v11, %v3680_v54  ;;  %vm3687_vm15 = vweird.f32 %v5460_v11  ;;  %3976 = vmatpush.msra.mxu0 %v3923_v28 }
0x283c   :  { %3699 = vrot.lane.b32.xlu1 %v3697_v60, %s5640_s18  ;;  %vm3688_vm2 = vmor %vm3686_vm0, %vm3687_vm15 }
0x283d   :  { %v3683_v16 = vsub.f32 1.0, %v3682_v14  ;;  %3977 = vmatpush.msra.mxu0 %v3921_v1  ;;  %v6903_v14 = vld [vmem:[#allocation6 + $0x240] sm:$0xff] }
0x283e   :  { %4092 = vmatpush.msra.mxu2 %v6903_v14 }
0x283f   :  { %v3684_v53 = vmul.f32 %v5460_v11, %v3683_v16  ;;  %3978 = vmatpush.msra.mxu0 %v3919_v2  ;;  %v6905_v16 = vld [vmem:[#allocation6 + $0x248] sm:$0xff]  ;;  %v6924_v2 = vld [vmem:[#allocation6 + $0x238] sm:$0xff] }
0x2841   :  { %v3685_v10 = vadd.f32 %v5460_v11, %v3684_v53  ;;  %3979 = vmatpush.msra.mxu0 %v3917_v22  ;;  %v6930_v22 = vld [vmem:[#allocation6 + $0x228] sm:$0xff] }
0x2843   :  { %v3689_v6 = vsel %vm3688_vm2, %v5460_v11, %v3685_v10  ;;  %v6897_v11 = vld [vmem:[#allocation6 + $0x258] sm:$0xff] }
0x2844   :  { %v3694_v56 = vsel %vm3691_vm3, %v3693_v47, %v3689_v6  ;;  %4111 = vmatpush.msra.mxu3 %v6897_v11 }
0x2846   :  { %4112 = vmatpush.msra.mxu3 %v6905_v16 }
0x2848   :  { %4113 = vmatpush.msra.mxu3 %v6924_v2 }
0x284a   :  { %4114 = vmatpush.msra.mxu3 %v6930_v22 }
0x28ae   :  { %v3700_v55 = vpop.permute.xlu1 %3699 }
0x28af   :  { %v6861_v57 = vadd.f32 %v3700_v55, %v3696_v8 }
0x28b1   :  { %5461 = vtanh.f32 %v6861_v57 }
0x28b7   :  { %v5462_v25 = vpop.eup %5461 }
0x28b8   :  { %v3704_v48 = vmul.f32 %v5462_v25, %v3694_v56 }
0x28ba   :  { %3706 = vrot.lane.b32.xlu2 %v3704_v48, %s5640_s18 }
0x2914   :  { %v3707_v15 = vpop.permute.xlu2 %3706 }
0x2915   :  { %3709 = vst.msk [vmem:[#allocation3 + $0x28] sm:$0xff] %vm220_vm10, %v3707_v15  ;;  %5042 = vmatmul.msk.f32.vlgmr.msrb.gmra.mxu0 %vm220_vm10, %v3707_v15  ;;  %5043 = vmatmul.msk.f32.vlgmr.msrb.gmra.mxu1 %vm220_vm10, %v3707_v15  ;;  %v6934_v15 = vld [vmem:[#allocation6 + $0x218] sm:$0xff] }
0x2916   :  { %4477 = vmatpush.msrb.mxu0 %v6885_v3  ;;  %4497 = vmatpush.msrb.mxu1 %v6887_v4 }
0x2917   :  { %4115 = vmatpush.msra.mxu3 %v6934_v15 }
0x2918   :  { %4478 = vmatpush.msrb.mxu0 %v6889_v5  ;;  %4498 = vmatpush.msrb.mxu1 %v6893_v7 }
0x291a   :  { %4479 = vmatpush.msrb.mxu0 %v6895_v9  ;;  %4499 = vmatpush.msrb.mxu1 %v6897_v11 }
0x291c   :  { %v3913_v18 = vld [vmem:[#allocation3 + $0x28] sm:$0xff]  ;;  %4480 = vmatpush.msrb.mxu0 %v6903_v14  ;;  %4500 = vmatpush.msrb.mxu1 %v6905_v16 }
0x291d   :  { %5051 = vmatmul.msk.f32.vlgmr.msra.gmra.mxu0 %vm220_vm10, %v3908_v26  ;;  %5059 = vmatmul.msk.f32.vlgmr.msra.gmra.mxu1 %vm220_vm10, %v3908_v26  ;;  %v6940_v26 = vld [vmem:[#allocation6 + $0x200] sm:$0xff] }
0x291e   :  { %4501 = vmatpush.msrb.mxu1 %v6924_v2 }
0x2920   :  { %4502 = vmatpush.msrb.mxu1 %v6930_v22 }
0x2922   :  { %4503 = vmatpush.msrb.mxu1 %v6934_v15 }
0x2925   :  { %5052 = vmatmul.msk.f32.gmra.mxu0 %vm220_vm10, %v3909_v29  ;;  %5060 = vmatmul.msk.f32.gmra.mxu1 %vm220_vm10, %v3909_v29  ;;  %v6942_v29 = vld [vmem:[#allocation6 + $0x208] sm:$0xff] }
0x2926   :  { %4116 = vmatpush.msra.mxu3 %v6942_v29  ;;  %4504 = vmatpush.msrb.mxu1 %v6942_v29 }
0x2928   :  { %4691 = vmatpush.msra.mxu1 %v6887_v4 }
0x292a   :  { %4692 = vmatpush.msra.mxu1 %v6893_v7 }
0x292c   :  { %4693 = vmatpush.msra.mxu1 %v6897_v11 }
0x292d   :  { %5053 = vmatmul.msk.f32.gmra.mxu0 %vm220_vm10, %v3910_v30  ;;  %5061 = vmatmul.msk.f32.gmra.mxu1 %vm220_vm10, %v3910_v30 }
0x292e   :  { %4694 = vmatpush.msra.mxu1 %v6905_v16 }
0x2930   :  { %4695 = vmatpush.msra.mxu1 %v6924_v2 }
0x2932   :  { %4696 = vmatpush.msra.mxu1 %v6930_v22 }
0x2934   :  { %4697 = vmatpush.msra.mxu1 %v6934_v15 }
0x2935   :  { %5054 = vmatmul.msk.f32.gmra.mxu0 %vm220_vm10, %v3911_v13  ;;  %5062 = vmatmul.msk.f32.gmra.mxu1 %vm220_vm10, %v3911_v13 }
0x2936   :  { %4698 = vmatpush.msra.mxu1 %v6942_v29 }
0x293d   :  { %5055 = vmatmul.msk.f32.gmra.mxu0 %vm220_vm10, %v3912_v17  ;;  %5063 = vmatmul.msk.f32.gmra.mxu1 %vm220_vm10, %v3912_v17 }
0x2945   :  { %5056 = vmatmul.msk.f32.gmra.mxu0 %vm220_vm10, %v3913_v18  ;;  %5064 = vmatmul.msk.f32.gmra.mxu1 %vm220_vm10, %v3913_v18  ;;  %v5050_v18 = vld [vmem:[%s7173_s4 + $0x8] sm:$0x3] }
0x2992   :  { %v3731_v27 = vpop.f32.mrf.mxu0  ;;  %v3751_v36 = vpop.f32.mrf.mxu1 }
0x2993   :  { %v3754_v20 = vadd.f32 %v3731_v27, %v3039_v40  ;;  %v3755_v37 = vadd.f32 %v3751_v36, %v3080_v38 }
0x2995   :  { %v5044_v21 = vmul.f32 -1.442695, %v3754_v20  ;;  %v5045_v45 = vmul.f32 -1.442695, %v3755_v37  ;;  %v7014_v20 = vperm.slane %v5050_v18, 0 }
0x2997   :  { %5463 = vpow2.f32 %v5044_v21 }
0x299a   :  { %v3981_v21 = vpop.f32.mrf.mxu0 }
0x299d   :  { %v5464_v31 = vpop.eup %5463 }
0x299e   :  { %v3759_v35 = vadd.f32 1.0, %v5464_v31  ;;  %v3982_v31 = vadd.f32 %v3981_v21, %v7014_v20 }
0x29a0   :  { %5465 = vrcp.f32 %v3759_v35  ;;  %v3771_v41 = vand.u32 2147483648, %v3759_v35  ;;  %v3769_v43 = vand.u32 2147483647, %v3759_v35  ;;  %vm3765_vm5 = vweird.f32 %v3759_v35 }
0x29a1   :  { %5467 = vtanh.f32 %v3755_v37 }
0x29a2   :  { %v3772_v60 = vor.u32 1.1754944e-38, %v3771_v41  ;;  %vm3770_vm6 = vcmp.eq.f32.partialorder %v3769_v43, 8.507059e+37  ;;  %5469 = vpow2.f32 %v5045_v45 }
0x29a6   :  { %v5466_v39 = vpop.eup %5465 }
0x29a7   :  { %v3761_v42 = vmul.f32 %v5466_v39, %v3759_v35  ;;  %vm3766_vm4 = vweird.f32 %v5466_v39  ;;  %v5468_v61 = vpop.eup %5467 }
0x29a8   :  { %vm3767_vm1 = vmor %vm3765_vm5, %vm3766_vm4  ;;  %v5470_v58 = vpop.eup %5469 }
0x29a9   :  { %v3762_v32 = vsub.f32 1.0, %v3761_v42  ;;  %v3779_v46 = vadd.f32 1.0, %v5470_v58  ;;  %v3083_v42 = vadd.f32 %v6843_v51, %v6725_v52 }
0x29ab   :  { %v3763_v34 = vmul.f32 %v5466_v39, %v3762_v32  ;;  %5471 = vrcp.f32 %v3779_v46  ;;  %v3791_v25 = vand.u32 2147483648, %v3779_v46  ;;  %vm3785_vm8 = vweird.f32 %v3779_v46 }
0x29ac   :  { %v3789_v56 = vand.u32 2147483647, %v3779_v46 }
0x29ad   :  { %v3764_v50 = vadd.f32 %v5466_v39, %v3763_v34  ;;  %v3792_v28 = vor.u32 1.1754944e-38, %v3791_v25 }
0x29ae   :  { %vm3790_vm11 = vcmp.eq.f32.partialorder %v3789_v56, 8.507059e+37 }
0x29af   :  { %v3768_v59 = vsel %vm3767_vm1, %v5466_v39, %v3764_v50 }
0x29b0   :  { %v3773_v54 = vsel %vm3770_vm6, %v3772_v60, %v3768_v59  ;;  %v7021_v60 = vperm.slane %v5050_v18, 1  ;;  %v4022_v59 = vpop.f32.mrf.mxu1 }
0x29b1   :  { %v3796_v62 = vmul.f32 %v5468_v61, %v3773_v54  ;;  %v5472_v53 = vpop.eup %5471  ;;  %v3795_v0 = vmul.f32 %v3773_v54, %v6861_v57  ;;  %v6922_v57 = vld [vmem:[#allocation6 + $0x230] sm:$0xff] }
0x29b2   :  { %v3781_v8 = vmul.f32 %v5472_v53, %v3779_v46  ;;  %vm3786_vm7 = vweird.f32 %v5472_v53  ;;  %4093 = vmatpush.msra.mxu2 %v6922_v57  ;;  %4481 = vmatpush.msrb.mxu0 %v6922_v57  ;;  %v4023_v58 = vadd.f32 %v4022_v59, %v7021_v60  ;;  %v3984_v59 = vpop.f32.mrf.mxu0 }
0x29b3   :  { %3798 = vrot.lane.b32.xlu0 %v3796_v62, %s5640_s18  ;;  %vm3787_vm9 = vmor %vm3785_vm8, %vm3786_vm7 }
0x29b4   :  { %v3782_v55 = vsub.f32 1.0, %v3781_v8  ;;  %4094 = vmatpush.msra.mxu2 %v6926_v19  ;;  %4482 = vmatpush.msrb.mxu0 %v6926_v19 }
0x29b6   :  { %v3783_v10 = vmul.f32 %v5472_v53, %v3782_v55  ;;  %4095 = vmatpush.msra.mxu2 %v6932_v12  ;;  %4483 = vmatpush.msrb.mxu0 %v6932_v12 }
0x29b8   :  { %v3784_v47 = vadd.f32 %v5472_v53, %v3783_v10  ;;  %4096 = vmatpush.msra.mxu2 %v6940_v26  ;;  %4484 = vmatpush.msrb.mxu0 %v6940_v26 }
0x29ba   :  { %v3788_v48 = vsel %vm3787_vm9, %v5472_v53, %v3784_v47  ;;  %4671 = vmatpush.msra.mxu0 %v6885_v3 }
0x29bb   :  { %v3793_v1 = vsel %vm3790_vm11, %v3792_v28, %v3788_v48 }
0x29bc   :  { %4672 = vmatpush.msra.mxu0 %v6889_v5 }
0x29be   :  { %4673 = vmatpush.msra.mxu0 %v6895_v9 }
0x29c0   :  { %4674 = vmatpush.msra.mxu0 %v6903_v14 }
0x29c2   :  { %4675 = vmatpush.msra.mxu0 %v6922_v57 }
0x29c4   :  { %4676 = vmatpush.msra.mxu0 %v6926_v19 }
0x29c6   :  { %4677 = vmatpush.msra.mxu0 %v6932_v12 }
0x29c8   :  { %4678 = vmatpush.msra.mxu0 %v6940_v26 }
0x2a25   :  { %v3799_v33 = vpop.permute.xlu0 %3798 }
0x2a26   :  { %v6918_v6 = vadd.f32 %v3799_v33, %v3795_v0 }
0x2a28   :  { %5473 = vtanh.f32 %v6918_v6 }
0x2a2e   :  { %v5474_v63 = vpop.eup %5473 }
0x2a2f   :  { %v3803_v49 = vmul.f32 %v5474_v63, %v3793_v1 }
0x2a31   :  { %3805 = vrot.lane.b32.xlu1 %v3803_v49, %s5640_s18 }
0x2aa3   :  { %v3806_v30 = vpop.permute.xlu1 %3805 }
0x2aa4   :  { %3808 = vst.msk [vmem:[#allocation3 + $0x30] sm:$0xff] %vm220_vm10, %v3806_v30  ;;  %5046 = vmatmul.msk.f32.vlgmr.msrb.gmra.mxu2 %vm220_vm10, %v3806_v30  ;;  %5047 = vmatmul.msk.f32.vlgmr.msrb.gmra.mxu3 %vm220_vm10, %v3806_v30 }
0x2aa5   :  { %4186 = vmatpush.msrb.mxu2 %v6885_v3  ;;  %4206 = vmatpush.msrb.mxu3 %v6887_v4 }
0x2aa7   :  { %4187 = vmatpush.msrb.mxu2 %v6889_v5  ;;  %4207 = vmatpush.msrb.mxu3 %v6893_v7 }
0x2aa9   :  { %4188 = vmatpush.msrb.mxu2 %v6895_v9  ;;  %4208 = vmatpush.msrb.mxu3 %v6897_v11 }
0x2aab   :  { %v3914_v13 = vld [vmem:[#allocation3 + $0x30] sm:$0xff]  ;;  %4189 = vmatpush.msrb.mxu2 %v6903_v14  ;;  %4209 = vmatpush.msrb.mxu3 %v6905_v16 }
0x2aac   :  { %5057 = vmatmul.msk.f32.gmra.mxu0 %vm220_vm10, %v3914_v13  ;;  %5065 = vmatmul.msk.f32.gmra.mxu1 %vm220_vm10, %v3914_v13 }
0x2aad   :  { %4097 = vmatmul.f32.vlgmr.msra.gmra.mxu2 %v5639_v23  ;;  %4117 = vmatmul.f32.vlgmr.msra.gmra.mxu3 %v5639_v23  ;;  %v3042_v23 = vadd.f32 %v6836_v44, %v6718_v24 }
0x2aae   :  { %4190 = vmatpush.msrb.mxu2 %v6922_v57  ;;  %4210 = vmatpush.msrb.mxu3 %v6924_v2 }
0x2ab0   :  { %4191 = vmatpush.msrb.mxu2 %v6926_v19  ;;  %4211 = vmatpush.msrb.mxu3 %v6930_v22 }
0x2ab2   :  { %4192 = vmatpush.msrb.mxu2 %v6932_v12  ;;  %4212 = vmatpush.msrb.mxu3 %v6934_v15 }
0x2ab4   :  { %4193 = vmatpush.msrb.mxu2 %v6940_v26  ;;  %4213 = vmatpush.msrb.mxu3 %v6942_v29 }
0x2ab6   :  { %4283 = vmatpush.msra.mxu2 %v6885_v3  ;;  %4303 = vmatpush.msra.mxu3 %v6887_v4 }
0x2ab8   :  { %4284 = vmatpush.msra.mxu2 %v6889_v5  ;;  %4304 = vmatpush.msra.mxu3 %v6893_v7 }
0x2aba   :  { %4285 = vmatpush.msra.mxu2 %v6895_v9  ;;  %4305 = vmatpush.msra.mxu3 %v6897_v11 }
0x2abc   :  { %4286 = vmatpush.msra.mxu2 %v6903_v14  ;;  %4306 = vmatpush.msra.mxu3 %v6905_v16 }
0x2abe   :  { %4287 = vmatpush.msra.mxu2 %v6922_v57  ;;  %4307 = vmatpush.msra.mxu3 %v6924_v2 }
0x2ac0   :  { %4288 = vmatpush.msra.mxu2 %v6926_v19  ;;  %4308 = vmatpush.msra.mxu3 %v6930_v22 }
0x2ac2   :  { %4289 = vmatpush.msra.mxu2 %v6932_v12  ;;  %4309 = vmatpush.msra.mxu3 %v6934_v15 }
0x2ac4   :  { %4290 = vmatpush.msra.mxu2 %v6940_v26  ;;  %4310 = vmatpush.msra.mxu3 %v6942_v29 }
0x2b27   :  { %v3830_v17 = vpop.f32.mrf.mxu2  ;;  %v3850_v24 = vpop.f32.mrf.mxu3 }
0x2b28   :  { %v3853_v40 = vadd.f32 %v3830_v17, %v3042_v23  ;;  %v7019_v34 = vadd.f32 %v3850_v24, %v3083_v42 }
0x2b2a   :  { %v5048_v27 = vmul.f32 -1.442695, %v3853_v40 }
0x2b2c   :  { %5475 = vpow2.f32 %v5048_v27 }
0x2b30   :  { %v4098_v35 = vpop.f32.mrf.mxu2  ;;  %v4118_v45 = vpop.f32.mrf.mxu3 }
0x2b31   :  { %v4121_v36 = vadd.f32 %v4098_v35, %v3982_v31  ;;  %v4122_v53 = vadd.f32 %v4118_v45, %v4023_v58 }
0x2b32   :  { %v5476_v38 = vpop.eup %5475 }
0x2b33   :  { %v3858_v39 = vadd.f32 1.0, %v5476_v38  ;;  %v5067_v37 = vmul.f32 -1.442695, %v4121_v36  ;;  %v5068_v23 = vmul.f32 -1.442695, %v4122_v53 }
0x2b35   :  { %5477 = vrcp.f32 %v3858_v39  ;;  %v3870_v61 = vand.u32 2147483648, %v3858_v39  ;;  %v3868_v62 = vand.u32 2147483647, %v3858_v39  ;;  %vm3864_vm13 = vweird.f32 %v3858_v39 }
0x2b36   :  { %5479 = vpow2.f32 %v5067_v37 }
0x2b37   :  { %v3871_v51 = vor.u32 1.1754944e-38, %v3870_v61  ;;  %vm3869_vm15 = vcmp.eq.f32.partialorder %v3868_v62, 8.507059e+37  ;;  %v3985_v61 = vadd.f32 %v3984_v59, %v7014_v20 }
0x2b3b   :  { %v5478_v44 = vpop.eup %5477 }
0x2b3c   :  { %v3860_v32 = vmul.f32 %v5478_v44, %v3858_v39  ;;  %v5480_v41 = vpop.eup %5479  ;;  %vm3865_vm12 = vweird.f32 %v5478_v44 }
0x2b3d   :  { %v4126_v43 = vadd.f32 1.0, %v5480_v41  ;;  %vm3866_vm14 = vmor %vm3864_vm13, %vm3865_vm12 }
0x2b3e   :  { %v3861_v50 = vsub.f32 1.0, %v3860_v32 }
0x2b3f   :  { %5481 = vrcp.f32 %v4126_v43  ;;  %v4138_v25 = vand.u32 2147483648, %v4126_v43  ;;  %v4136_v48 = vand.u32 2147483647, %v4126_v43  ;;  %vm4132_vm2 = vweird.f32 %v4126_v43 }
0x2b40   :  { %5483 = vtanh.f32 %v7019_v34  ;;  %v3862_v54 = vmul.f32 %v5478_v44, %v3861_v50 }
0x2b41   :  { %5485 = vtanh.f32 %v4122_v53  ;;  %v4139_v63 = vor.u32 1.1754944e-38, %v4138_v25  ;;  %vm4137_vm4 = vcmp.eq.f32.partialorder %v4136_v48, 8.507059e+37 }
0x2b42   :  { %v3863_v52 = vadd.f32 %v5478_v44, %v3862_v54  ;;  %5487 = vpow2.f32 %v5068_v23 }
0x2b44   :  { %v3867_v8 = vsel %vm3866_vm14, %v5478_v44, %v3863_v52 }
0x2b45   :  { %v5482_v46 = vpop.eup %5481  ;;  %v7025_v0 = vsel %vm3869_vm15, %v3871_v51, %v3867_v8  ;;  %v4025_v51 = vpop.f32.mrf.mxu1 }
0x2b46   :  { %v5484_v55 = vpop.eup %5483  ;;  %v4128_v10 = vmul.f32 %v5482_v46, %v4126_v43  ;;  %vm4133_vm0 = vweird.f32 %v5482_v46  ;;  %v4026_v53 = vadd.f32 %v4025_v51, %v7021_v60 }
0x2b47   :  { %v7028_v33 = vmul.f32 %v5484_v55, %v7025_v0  ;;  %vm4134_vm3 = vmor %vm4132_vm2, %vm4133_vm0  ;;  %v5486_v49 = vpop.eup %5485 }
0x2b48   :  { %v4129_v47 = vsub.f32 1.0, %v4128_v10  ;;  %v5488_v17 = vpop.eup %5487 }
0x2b49   :  { %v4146_v18 = vadd.f32 1.0, %v5488_v17 }
0x2b4a   :  { %v4130_v56 = vmul.f32 %v5482_v46, %v4129_v47 }
0x2b4b   :  { %5489 = vrcp.f32 %v4146_v18  ;;  %v4158_v37 = vand.u32 2147483648, %v4146_v18  ;;  %vm4152_vm1 = vweird.f32 %v4146_v18  ;;  %v4156_v24 = vand.u32 2147483647, %v4146_v18 }
0x2b4c   :  { %v4131_v28 = vadd.f32 %v5482_v46, %v4130_v56 }
0x2b4d   :  { %v4159_v42 = vor.u32 1.1754944e-38, %v4158_v37  ;;  %vm4157_vm7 = vcmp.eq.f32.partialorder %v4156_v24, 8.507059e+37 }
0x2b4e   :  { %v4135_v1 = vsel %vm4134_vm3, %v5482_v46, %v4131_v28 }
0x2b4f   :  { %v4140_v30 = vsel %vm4137_vm4, %v4139_v63, %v4135_v1 }
0x2b50   :  { %v4163_v13 = vmul.f32 %v5486_v49, %v4140_v30  ;;  %v4162_v35 = vmul.f32 0.0, %v4140_v30 }
0x2b51   :  { %v5490_v40 = vpop.eup %5489 }
0x2b52   :  { %4165 = vrot.lane.b32.xlu2 %v4163_v13, %s5640_s18  ;;  %v4148_v27 = vmul.f32 %v5490_v40, %v4146_v18  ;;  %vm4153_vm5 = vweird.f32 %v5490_v40 }
0x2b53   :  { %vm4154_vm6 = vmor %vm4152_vm1, %vm4153_vm5 }
0x2b54   :  { %v4149_v21 = vsub.f32 1.0, %v4148_v27 }
0x2b56   :  { %v4150_v31 = vmul.f32 %v5490_v40, %v4149_v21 }
0x2b58   :  { %v4151_v39 = vadd.f32 %v5490_v40, %v4150_v31 }
0x2b5a   :  { %v4155_v44 = vsel %vm4154_vm6, %v5490_v40, %v4151_v39 }
0x2b5b   :  { %v4160_v41 = vsel %vm4157_vm7, %v4159_v42, %v4155_v44 }
0x2bac   :  { %v4166_v36 = vpop.permute.xlu2 %4165 }
0x2bad   :  { %v7031_v38 = vadd.f32 %v4166_v36, %v4162_v35 }
0x2baf   :  { %5491 = vtanh.f32 %v7031_v38 }
0x2bb5   :  { %v5492_v32 = vpop.eup %5491 }
0x2bb6   :  { %v4170_v43 = vmul.f32 %v5492_v32, %v4160_v41 }
0x2bb8   :  { %4174 = vrot.lane.b32.xlu0 %v4170_v43, %s5640_s18 }
0x2c2a   :  { %v4175_v50 = vpop.permute.xlu0 %4174 }
0x2c2b   :  { %5069 = vmatmul.msk.f32.vlgmr.msrb.gmra.mxu2 %vm220_vm10, %v4175_v50  ;;  %5070 = vmatmul.msk.f32.vlgmr.msrb.gmra.mxu3 %vm220_vm10, %v4175_v50 }
0x2c2c   :  { %4380 = vmatpush.msrb.mxu2 %v6885_v3  ;;  %4400 = vmatpush.msrb.mxu3 %v6887_v4 }
0x2c2e   :  { %4381 = vmatpush.msrb.mxu2 %v6889_v5  ;;  %4401 = vmatpush.msrb.mxu3 %v6893_v7 }
0x2c30   :  { %4382 = vmatpush.msrb.mxu2 %v6895_v9  ;;  %4402 = vmatpush.msrb.mxu3 %v6897_v11 }
0x2c32   :  { %4383 = vmatpush.msrb.mxu2 %v6903_v14  ;;  %4403 = vmatpush.msrb.mxu3 %v6905_v16 }
0x2c34   :  { %4384 = vmatpush.msrb.mxu2 %v6922_v57  ;;  %4404 = vmatpush.msrb.mxu3 %v6924_v2 }
0x2c36   :  { %4385 = vmatpush.msrb.mxu2 %v6926_v19  ;;  %4405 = vmatpush.msrb.mxu3 %v6930_v22 }
0x2c38   :  { %4386 = vmatpush.msrb.mxu2 %v6932_v12  ;;  %4406 = vmatpush.msrb.mxu3 %v6934_v15 }
0x2c3a   :  { %4387 = vmatpush.msrb.mxu2 %v6940_v26  ;;  %4407 = vmatpush.msrb.mxu3 %v6942_v29 }
0x2cae   :  { %v4195_v54 = vpop.f32.mrf.mxu2  ;;  %v4215_v46 = vpop.f32.mrf.mxu3 }
0x2caf   :  { %v4218_v62 = vadd.f32 %v4195_v54, %v3985_v61  ;;  %v4219_v55 = vadd.f32 %v4215_v46, %v4026_v53 }
0x2cb1   :  { %v5071_v45 = vmul.f32 -1.442695, %v4218_v62  ;;  %v5072_v23 = vmul.f32 -1.442695, %v4219_v55 }
0x2cb3   :  { %5493 = vpow2.f32 %v5071_v45 }
0x2cb9   :  { %v5494_v58 = vpop.eup %5493 }
0x2cba   :  { %v4223_v52 = vadd.f32 1.0, %v5494_v58 }
0x2cbc   :  { %5495 = vrcp.f32 %v4223_v52  ;;  %v4235_v25 = vand.u32 2147483648, %v4223_v52  ;;  %v4233_v48 = vand.u32 2147483647, %v4223_v52  ;;  %vm4229_vm9 = vweird.f32 %v4223_v52 }
0x2cbd   :  { %5497 = vtanh.f32 %v4219_v55 }
0x2cbe   :  { %v4236_v63 = vor.u32 1.1754944e-38, %v4235_v25  ;;  %vm4234_vm12 = vcmp.eq.f32.partialorder %v4233_v48, 8.507059e+37  ;;  %5499 = vpow2.f32 %v5072_v23  ;;  %v3987_v25 = vpop.f32.mrf.mxu0 }
0x2cc2   :  { %v5496_v8 = vpop.eup %5495 }
0x2cc3   :  { %v4225_v10 = vmul.f32 %v5496_v8, %v4223_v52  ;;  %vm4230_vm8 = vweird.f32 %v5496_v8  ;;  %v5498_v49 = vpop.eup %5497 }
0x2cc4   :  { %vm4231_vm11 = vmor %vm4229_vm9, %vm4230_vm8  ;;  %v5500_v17 = vpop.eup %5499 }
0x2cc5   :  { %v4226_v47 = vsub.f32 1.0, %v4225_v10  ;;  %v4243_v18 = vadd.f32 1.0, %v5500_v17 }
0x2cc7   :  { %v4227_v56 = vmul.f32 %v5496_v8, %v4226_v47  ;;  %5501 = vrcp.f32 %v4243_v18  ;;  %v4255_v24 = vand.u32 2147483648, %v4243_v18  ;;  %vm4249_vm14 = vweird.f32 %v4243_v18 }
0x2cc8   :  { %v4253_v44 = vand.u32 2147483647, %v4243_v18 }
0x2cc9   :  { %v4228_v28 = vadd.f32 %v5496_v8, %v4227_v56  ;;  %v4256_v32 = vor.u32 1.1754944e-38, %v4255_v24  ;;  %v3988_v56 = vadd.f32 %v3987_v25, %v7014_v20 }
0x2cca   :  { %vm4254_vm0 = vcmp.eq.f32.partialorder %v4253_v44, 8.507059e+37 }
0x2ccb   :  { %v4232_v1 = vsel %vm4231_vm11, %v5496_v8, %v4228_v28 }
0x2ccc   :  { %v4237_v30 = vsel %vm4234_vm12, %v4236_v63, %v4232_v1 }
0x2ccd   :  { %v4260_v13 = vmul.f32 %v5498_v49, %v4237_v30  ;;  %v5502_v40 = vpop.eup %5501  ;;  %v4259_v35 = vmul.f32 %v4237_v30, %v7031_v38  ;;  %v5049_v38 = vmul.f32 -1.442695, %v7019_v34  ;;  %v4028_v30 = vpop.f32.mrf.mxu1 }
0x2cce   :  { %v4245_v27 = vmul.f32 %v5502_v40, %v4243_v18  ;;  %vm4250_vm13 = vweird.f32 %v5502_v40  ;;  %v4029_v23 = vadd.f32 %v4028_v30, %v7021_v60 }
0x2ccf   :  { %4262 = vrot.lane.b32.xlu1 %v4260_v13, %s5640_s18  ;;  %vm4251_vm15 = vmor %vm4249_vm14, %vm4250_vm13 }
0x2cd0   :  { %v4246_v21 = vsub.f32 1.0, %v4245_v27 }
0x2cd2   :  { %v4247_v31 = vmul.f32 %v5502_v40, %v4246_v21 }
0x2cd4   :  { %v4248_v37 = vadd.f32 %v5502_v40, %v4247_v31 }
0x2cd6   :  { %v4252_v42 = vsel %vm4251_vm15, %v5502_v40, %v4248_v37 }
0x2cd7   :  { %v4257_v43 = vsel %vm4254_vm0, %v4256_v32, %v4252_v42 }
0x2d41   :  { %v4263_v36 = vpop.permute.xlu1 %4262 }
0x2d42   :  { %v7057_v39 = vadd.f32 %v4263_v36, %v4259_v35 }
0x2d44   :  { %5503 = vtanh.f32 %v7057_v39 }
0x2d45   :  { %5505 = vpow2.f32 %v5049_v38 }
0x2d4a   :  { %v5504_v41 = vpop.eup %5503 }
0x2d4b   :  { %v4267_v50 = vmul.f32 %v5504_v41, %v4257_v43  ;;  %v5506_v59 = vpop.eup %5505 }
0x2d4c   :  { %v3878_v61 = vadd.f32 1.0, %v5506_v59 }
0x2d4d   :  { %4271 = vrot.lane.b32.xlu2 %v4267_v50, %s5640_s18 }
0x2d4e   :  { %5507 = vrcp.f32 %v3878_v61  ;;  %v3890_v53 = vand.u32 2147483648, %v3878_v61  ;;  %vm3884_vm3 = vweird.f32 %v3878_v61  ;;  %v3888_v8 = vand.u32 2147483647, %v3878_v61 }
0x2d50   :  { %vm3889_vm5 = vcmp.eq.f32.partialorder %v3888_v8, 8.507059e+37 }
0x2d54   :  { %v5508_v54 = vpop.eup %5507 }
0x2d55   :  { %3897 = vrot.lane.b32.xlu2 %v7028_v33, %s5640_s18  ;;  %v3880_v62 = vmul.f32 %v5508_v54, %v3878_v61  ;;  %v3894_v33 = vmul.f32 %v7025_v0, %v6918_v6  ;;  %vm3885_vm2 = vweird.f32 %v5508_v54  ;;  %v3891_v0 = vor.u32 1.1754944e-38, %v3890_v53 }
0x2d56   :  { %vm3886_vm4 = vmor %vm3884_vm3, %vm3885_vm2 }
0x2d57   :  { %v3881_v58 = vsub.f32 1.0, %v3880_v62 }
0x2d59   :  { %v3882_v34 = vmul.f32 %v5508_v54, %v3881_v58 }
0x2d5b   :  { %v3883_v46 = vadd.f32 %v5508_v54, %v3882_v34 }
0x2d5d   :  { %v3887_v6 = vsel %vm3886_vm4, %v5508_v54, %v3883_v46 }
0x2d5e   :  { %v3892_v10 = vsel %vm3889_vm5, %v3891_v0, %v3887_v6 }
0x2da7   :  { %v4272_v45 = vpop.permute.xlu2 %4271 }
0x2da8   :  { %5073 = vmatmul.msk.f32.vlgmr.msra.gmra.mxu2 %vm220_vm10, %v4272_v45  ;;  %5074 = vmatmul.msk.f32.vlgmr.msra.gmra.mxu3 %vm220_vm10, %v4272_v45 }
0x2da9   :  { %4574 = vmatpush.msra.mxu2 %v6885_v3  ;;  %4594 = vmatpush.msra.mxu3 %v6887_v4 }
0x2dab   :  { %4575 = vmatpush.msra.mxu2 %v6889_v5  ;;  %4595 = vmatpush.msra.mxu3 %v6893_v7 }
0x2dad   :  { %4576 = vmatpush.msra.mxu2 %v6895_v9  ;;  %4596 = vmatpush.msra.mxu3 %v6897_v11 }
0x2daf   :  { %v3898_v52 = vpop.permute.xlu2 %3897  ;;  %4577 = vmatpush.msra.mxu2 %v6903_v14  ;;  %4597 = vmatpush.msra.mxu3 %v6905_v16 }
0x2db0   :  { %v3900_v51 = vadd.f32 %v3898_v52, %v3894_v33 }
0x2db1   :  { %4578 = vmatpush.msra.mxu2 %v6922_v57  ;;  %4598 = vmatpush.msra.mxu3 %v6924_v2 }
0x2db2   :  { %5509 = vtanh.f32 %v3900_v51 }
0x2db3   :  { %4579 = vmatpush.msra.mxu2 %v6926_v19  ;;  %4599 = vmatpush.msra.mxu3 %v6930_v22 }
0x2db5   :  { %4580 = vmatpush.msra.mxu2 %v6932_v12  ;;  %4600 = vmatpush.msra.mxu3 %v6934_v15 }
0x2db7   :  { %4581 = vmatpush.msra.mxu2 %v6940_v26  ;;  %4601 = vmatpush.msra.mxu3 %v6942_v29 }
0x2db8   :  { %v5510_v55 = vpop.eup %5509 }
0x2db9   :  { %v3902_v47 = vmul.f32 %v5510_v55, %v3892_v10 }
0x2e2b   :  { %v4292_v48 = vpop.f32.mrf.mxu2  ;;  %v4312_v13 = vpop.f32.mrf.mxu3 }
0x2e2c   :  { %v4315_v28 = vadd.f32 %v4292_v48, %v3988_v56  ;;  %v4316_v18 = vadd.f32 %v4312_v13, %v4029_v23 }
0x2e2e   :  { %v5075_v63 = vmul.f32 -1.442695, %v4315_v28  ;;  %v5076_v41 = vmul.f32 -1.442695, %v4316_v18 }
0x2e30   :  { %5511 = vpow2.f32 %v5075_v63 }
0x2e36   :  { %v5512_v1 = vpop.eup %5511 }
0x2e37   :  { %v4320_v49 = vadd.f32 1.0, %v5512_v1 }
0x2e39   :  { %5513 = vrcp.f32 %v4320_v49  ;;  %v4332_v21 = vand.u32 2147483648, %v4320_v49  ;;  %v4330_v35 = vand.u32 2147483647, %v4320_v49  ;;  %vm4326_vm6 = vweird.f32 %v4320_v49 }
0x2e3a   :  { %5515 = vtanh.f32 %v4316_v18 }
0x2e3b   :  { %v4333_v37 = vor.u32 1.1754944e-38, %v4332_v21  ;;  %vm4331_vm8 = vcmp.eq.f32.partialorder %v4330_v35, 8.507059e+37  ;;  %5517 = vpow2.f32 %v5076_v41 }
0x2e3f   :  { %v5514_v17 = vpop.eup %5513 }
0x2e40   :  { %v4322_v40 = vmul.f32 %v5514_v17, %v4320_v49  ;;  %vm4327_vm1 = vweird.f32 %v5514_v17  ;;  %v5516_v44 = vpop.eup %5515 }
0x2e41   :  { %vm4328_vm7 = vmor %vm4326_vm6, %vm4327_vm1  ;;  %v5518_v43 = vpop.eup %5517 }
0x2e42   :  { %v4323_v27 = vsub.f32 1.0, %v4322_v40  ;;  %v4340_v50 = vadd.f32 1.0, %v5518_v43 }
0x2e44   :  { %v4324_v31 = vmul.f32 %v5514_v17, %v4323_v27  ;;  %5519 = vrcp.f32 %v4340_v50  ;;  %v4352_v33 = vand.u32 2147483648, %v4340_v50  ;;  %vm4346_vm11 = vweird.f32 %v4340_v50 }
0x2e45   :  { %v4350_v52 = vand.u32 2147483647, %v4340_v50 }
0x2e46   :  { %v4325_v36 = vadd.f32 %v5514_v17, %v4324_v31  ;;  %v4353_v46 = vor.u32 1.1754944e-38, %v4352_v33 }
0x2e47   :  { %vm4351_vm13 = vcmp.eq.f32.partialorder %v4350_v52, 8.507059e+37 }
0x2e48   :  { %v4329_v24 = vsel %vm4328_vm7, %v5514_v17, %v4325_v36 }
0x2e49   :  { %v4334_v42 = vsel %vm4331_vm8, %v4333_v37, %v4329_v24 }
0x2e4a   :  { %v4357_v32 = vmul.f32 %v5516_v44, %v4334_v42  ;;  %v5520_v38 = vpop.eup %5519  ;;  %v4356_v62 = vmul.f32 %v4334_v42, %v7057_v39 }
0x2e4b   :  { %v4342_v59 = vmul.f32 %v5520_v38, %v4340_v50  ;;  %vm4347_vm9 = vweird.f32 %v5520_v38 }
0x2e4c   :  { %4359 = vrot.lane.b32.xlu0 %v4357_v32, %s5640_s18  ;;  %vm4348_vm12 = vmor %vm4346_vm11, %vm4347_vm9 }
0x2e4d   :  { %v4343_v61 = vsub.f32 1.0, %v4342_v59 }
0x2e4f   :  { %v4344_v54 = vmul.f32 %v5520_v38, %v4343_v61 }
0x2e51   :  { %v4345_v34 = vadd.f32 %v5520_v38, %v4344_v54 }
0x2e53   :  { %v4349_v51 = vsel %vm4348_vm12, %v5520_v38, %v4345_v34 }
0x2e54   :  { %v4354_v8 = vsel %vm4351_vm13, %v4353_v46, %v4349_v51 }
0x2ebe   :  { %v4360_v45 = vpop.permute.xlu0 %4359 }
0x2ebf   :  { %v7088_v58 = vadd.f32 %v4360_v45, %v4356_v62 }
0x2ec1   :  { %5521 = vtanh.f32 %v7088_v58 }
0x2ec7   :  { %v5522_v53 = vpop.eup %5521 }
0x2ec8   :  { %v4364_v6 = vmul.f32 %v5522_v53, %v4354_v8 }
0x2eca   :  { %4368 = vrot.lane.b32.xlu1 %v4364_v6, %s5640_s18 }
0x2ed2   :  { %3904 = vrot.lane.b32.xlu1 %v3902_v47, %s5640_s18 }
0x2f3c   :  { %v4369_v39 = vpop.permute.xlu1 %4368 }
0x2f3d   :  { %5077 = vmatmul.msk.f32.vlgmr.msrb.gmra.mxu2 %vm220_vm10, %v4369_v39  ;;  %5078 = vmatmul.msk.f32.vlgmr.msrb.gmra.mxu3 %vm220_vm10, %v4369_v39 }
0x2f3e   :  { %4768 = vmatpush.msrb.mxu2 %v6885_v3  ;;  %4788 = vmatpush.msrb.mxu3 %v6887_v4  ;;  %v3990_v4 = vpop.f32.mrf.mxu0 }
0x2f40   :  { %4769 = vmatpush.msrb.mxu2 %v6889_v5  ;;  %4789 = vmatpush.msrb.mxu3 %v6893_v7  ;;  %v3991_v5 = vadd.f32 %v3990_v4, %v7014_v20 }
0x2f42   :  { %4770 = vmatpush.msrb.mxu2 %v6895_v9  ;;  %4790 = vmatpush.msrb.mxu3 %v6897_v11 }
0x2f44   :  { %v3905_v0 = vpop.permute.xlu1 %3904  ;;  %4771 = vmatpush.msrb.mxu2 %v6903_v14  ;;  %4791 = vmatpush.msrb.mxu3 %v6905_v16 }
0x2f45   :  { %3907 = vst.msk [vmem:[#allocation3 + $0x38] sm:$0xff] %vm220_vm10, %v3905_v0 }
0x2f46   :  { %4772 = vmatpush.msrb.mxu2 %v6922_v57  ;;  %4792 = vmatpush.msrb.mxu3 %v6924_v2  ;;  %v4031_v57 = vpop.f32.mrf.mxu1  ;;  %v3993_v43 = vpop.f32.mrf.mxu0 }
0x2f47   :  { %v3994_v62 = vadd.f32 %v3993_v43, %v7014_v20 }
0x2f48   :  { %4773 = vmatpush.msrb.mxu2 %v6926_v19  ;;  %4793 = vmatpush.msrb.mxu3 %v6930_v22  ;;  %v4032_v19 = vadd.f32 %v4031_v57, %v7021_v60 }
0x2f4a   :  { %4774 = vmatpush.msrb.mxu2 %v6932_v12  ;;  %4794 = vmatpush.msrb.mxu3 %v6934_v15 }
0x2f4c   :  { %v3915_v3 = vld [vmem:[#allocation3 + $0x38] sm:$0xff]  ;;  %4775 = vmatpush.msrb.mxu2 %v6940_v26  ;;  %4795 = vmatpush.msrb.mxu3 %v6942_v29 }
0x2f4d   :  { %5058 = vmatmul.msk.f32.gmra.mxu0 %vm220_vm10, %v3915_v3  ;;  %5066 = vmatmul.msk.f32.gmra.mxu1 %vm220_vm10, %v3915_v3 }
0x2f4e   :  { %v7124_v50 = vpop.f32.mrf.mxu0  ;;  %v4034_v38 = vpop.f32.mrf.mxu1 }
0x2f4f   :  { %v4035_v8 = vadd.f32 %v4034_v38, %v7021_v60 }
0x2f56   :  { %v7126_v59 = vpop.f32.mrf.mxu0  ;;  %v7130_v54 = vpop.f32.mrf.mxu1 }
0x2fc0   :  { %v4389_v7 = vpop.f32.mrf.mxu2  ;;  %v4409_v2 = vpop.f32.mrf.mxu3 }
0x2fc1   :  { %v4412_v9 = vadd.f32 %v4389_v7, %v3991_v5  ;;  %v4413_v12 = vadd.f32 %v4409_v2, %v4032_v19 }
0x2fc3   :  { %v5079_v11 = vmul.f32 -1.442695, %v4412_v9  ;;  %v5080_v1 = vmul.f32 -1.442695, %v4413_v12 }
0x2fc5   :  { %5523 = vpow2.f32 %v5079_v11 }
0x2fca   :  { %v7128_v61 = vpop.f32.mrf.mxu0 }
0x2fcb   :  { %v5524_v14 = vpop.eup %5523 }
0x2fcc   :  { %v4417_v16 = vadd.f32 1.0, %v5524_v14 }
0x2fce   :  { %5525 = vrcp.f32 %v4417_v16  ;;  %v4429_v29 = vand.u32 2147483648, %v4417_v16  ;;  %v4427_v10 = vand.u32 2147483647, %v4417_v16  ;;  %vm4423_vm15 = vweird.f32 %v4417_v16 }
0x2fcf   :  { %5527 = vtanh.f32 %v4413_v12 }
0x2fd0   :  { %v4430_v25 = vor.u32 1.1754944e-38, %v4429_v29  ;;  %vm4428_vm2 = vcmp.eq.f32.partialorder %v4427_v10, 8.507059e+37  ;;  %5529 = vpow2.f32 %v5080_v1 }
0x2fd4   :  { %v5526_v22 = vpop.eup %5525 }
0x2fd5   :  { %v4419_v15 = vmul.f32 %v5526_v22, %v4417_v16  ;;  %vm4424_vm14 = vweird.f32 %v5526_v22  ;;  %v5528_v48 = vpop.eup %5527 }
0x2fd6   :  { %vm4425_vm0 = vmor %vm4423_vm15, %vm4424_vm14  ;;  %v5530_v49 = vpop.eup %5529 }
0x2fd7   :  { %v4420_v26 = vsub.f32 1.0, %v4419_v15  ;;  %v4437_v30 = vadd.f32 1.0, %v5530_v49 }
0x2fd9   :  { %v4421_v55 = vmul.f32 %v5526_v22, %v4420_v26  ;;  %5531 = vrcp.f32 %v4437_v30  ;;  %v4449_v35 = vand.u32 2147483648, %v4437_v30  ;;  %vm4443_vm4 = vweird.f32 %v4437_v30 }
0x2fda   :  { %v4447_v36 = vand.u32 2147483647, %v4437_v30 }
0x2fdb   :  { %v4422_v47 = vadd.f32 %v5526_v22, %v4421_v55  ;;  %v4450_v24 = vor.u32 1.1754944e-38, %v4449_v35 }
0x2fdc   :  { %vm4448_vm1 = vcmp.eq.f32.partialorder %v4447_v36, 8.507059e+37  ;;  %v4038_v36 = vadd.f32 %v7130_v54, %v7021_v60 }
0x2fdd   :  { %v4426_v56 = vsel %vm4425_vm0, %v5526_v22, %v4422_v47 }
0x2fde   :  { %v4431_v28 = vsel %vm4428_vm2, %v4430_v25, %v4426_v56 }
0x2fdf   :  { %v4454_v63 = vmul.f32 %v5528_v48, %v4431_v28  ;;  %v5532_v13 = vpop.eup %5531  ;;  %v4453_v40 = vmul.f32 %v4431_v28, %v7088_v58  ;;  %v7133_v58 = vpop.f32.mrf.mxu1 }
0x2fe0   :  { %v4439_v23 = vmul.f32 %v5532_v13, %v4437_v30  ;;  %vm4444_vm3 = vweird.f32 %v5532_v13 }
0x2fe1   :  { %4456 = vrot.lane.b32.xlu0 %v4454_v63, %s5640_s18  ;;  %vm4445_vm5 = vmor %vm4443_vm4, %vm4444_vm3 }
0x2fe2   :  { %v4440_v17 = vsub.f32 1.0, %v4439_v23 }
0x2fe4   :  { %v4441_v18 = vmul.f32 %v5532_v13, %v4440_v17  ;;  %v3997_v17 = vadd.f32 %v7124_v50, %v7014_v20 }
0x2fe6   :  { %v4442_v31 = vadd.f32 %v5532_v13, %v4441_v18 }
0x2fe7   :  { %v7135_v52 = vpop.f32.mrf.mxu1 }
0x2fe8   :  { %v4446_v37 = vsel %vm4445_vm5, %v5532_v13, %v4442_v31 }
0x2fe9   :  { %v4451_v42 = vsel %vm4448_vm1, %v4450_v24, %v4446_v37 }
0x3053   :  { %v4457_v27 = vpop.permute.xlu0 %4456 }
0x3054   :  { %v7118_v21 = vadd.f32 %v4457_v27, %v4453_v40 }
0x3056   :  { %5533 = vtanh.f32 %v7118_v21 }
0x305c   :  { %v5534_v44 = vpop.eup %5533 }
0x305d   :  { %v4461_v32 = vmul.f32 %v5534_v44, %v4451_v42 }
0x305f   :  { %4465 = vrot.lane.b32.xlu2 %v4461_v32, %s5640_s18 }
0x30b9   :  { %v4466_v41 = vpop.permute.xlu2 %4465 }
0x30ba   :  { %5081 = vmatmul.msk.f32.vlgmr.msrb.gmra.mxu0 %vm220_vm10, %v4466_v41  ;;  %5082 = vmatmul.msk.f32.vlgmr.msrb.gmra.mxu1 %vm220_vm10, %v4466_v41 }
0x3137   :  { %v4486_v45 = vpop.f32.mrf.mxu0  ;;  %v4506_v53 = vpop.f32.mrf.mxu1 }
0x3138   :  { %v4509_v34 = vadd.f32 %v4486_v45, %v3994_v62  ;;  %v4510_v39 = vadd.f32 %v4506_v53, %v4035_v8 }
0x313a   :  { %v5083_v33 = vmul.f32 -1.442695, %v4509_v34  ;;  %v5084_v19 = vmul.f32 -1.442695, %v4510_v39 }
0x313c   :  { %5535 = vpow2.f32 %v5083_v33 }
0x3142   :  { %v5536_v51 = vpop.eup %5535 }
0x3143   :  { %v4514_v46 = vadd.f32 1.0, %v5536_v51 }
0x3145   :  { %5537 = vrcp.f32 %v4514_v46  ;;  %v4526_v4 = vand.u32 2147483648, %v4514_v46  ;;  %v4524_v7 = vand.u32 2147483647, %v4514_v46  ;;  %vm4520_vm7 = vweird.f32 %v4514_v46 }
0x3146   :  { %5539 = vtanh.f32 %v4510_v39 }
0x3147   :  { %v4527_v11 = vor.u32 1.1754944e-38, %v4526_v4  ;;  %vm4525_vm9 = vcmp.eq.f32.partialorder %v4524_v7, 8.507059e+37  ;;  %5541 = vpow2.f32 %v5084_v19 }
0x314b   :  { %v5538_v6 = vpop.eup %5537 }
0x314c   :  { %v4516_v0 = vmul.f32 %v5538_v6, %v4514_v46  ;;  %vm4521_vm6 = vweird.f32 %v5538_v6  ;;  %v5540_v16 = vpop.eup %5539 }
0x314d   :  { %vm4522_vm8 = vmor %vm4520_vm7, %vm4521_vm6  ;;  %v5542_v22 = vpop.eup %5541 }
0x314e   :  { %v4517_v3 = vsub.f32 1.0, %v4516_v0  ;;  %v4534_v12 = vadd.f32 1.0, %v5542_v22  ;;  %v4000_v22 = vadd.f32 %v7126_v59, %v7014_v20 }
0x3150   :  { %v4518_v5 = vmul.f32 %v5538_v6, %v4517_v3  ;;  %5543 = vrcp.f32 %v4534_v12  ;;  %v4546_v48 = vand.u32 2147483648, %v4534_v12  ;;  %vm4540_vm12 = vweird.f32 %v4534_v12 }
0x3151   :  { %v4544_v28 = vand.u32 2147483647, %v4534_v12 }
0x3152   :  { %v4519_v9 = vadd.f32 %v5538_v6, %v4518_v5  ;;  %v4547_v1 = vor.u32 1.1754944e-38, %v4546_v48 }
0x3153   :  { %vm4545_vm14 = vcmp.eq.f32.partialorder %v4544_v28, 8.507059e+37 }
0x3154   :  { %v4523_v14 = vsel %vm4522_vm8, %v5538_v6, %v4519_v9 }
0x3155   :  { %v4528_v57 = vsel %vm4525_vm9, %v4527_v11, %v4523_v14 }
0x3156   :  { %v4551_v2 = vmul.f32 %v5540_v16, %v4528_v57  ;;  %v5544_v15 = vpop.eup %5543  ;;  %v4550_v10 = vmul.f32 %v4528_v57, %v7118_v21 }
0x3157   :  { %v4536_v26 = vmul.f32 %v5544_v15, %v4534_v12  ;;  %vm4541_vm11 = vweird.f32 %v5544_v15 }
0x3158   :  { %4553 = vrot.lane.b32.xlu0 %v4551_v2, %s5640_s18  ;;  %vm4542_vm13 = vmor %vm4540_vm12, %vm4541_vm11 }
0x3159   :  { %v4537_v29 = vsub.f32 1.0, %v4536_v26 }
0x315b   :  { %v4538_v55 = vmul.f32 %v5544_v15, %v4537_v29 }
0x315d   :  { %v4539_v56 = vadd.f32 %v5544_v15, %v4538_v55 }
0x315f   :  { %v4543_v63 = vsel %vm4542_vm13, %v5544_v15, %v4539_v56 }
0x3160   :  { %v4548_v30 = vsel %vm4545_vm14, %v4547_v1, %v4543_v63 }
0x31ca   :  { %v4554_v47 = vpop.permute.xlu0 %4553 }
0x31cb   :  { %v4556_v25 = vadd.f32 %v4554_v47, %v4550_v10  ;;  %v4041_v47 = vadd.f32 %v7133_v58, %v7021_v60 }
0x31cd   :  { %5545 = vtanh.f32 %v4556_v25 }
0x31d3   :  { %v5546_v49 = vpop.eup %5545 }
0x31d4   :  { %v4558_v13 = vmul.f32 %v5546_v49, %v4548_v30 }
0x31d6   :  { %4562 = vrot.lane.b32.xlu1 %v4558_v13, %s5640_s18 }
0x3248   :  { %v4563_v23 = vpop.permute.xlu1 %4562 }
0x3249   :  { %5085 = vmatmul.msk.f32.vlgmr.msra.gmra.mxu2 %vm220_vm10, %v4563_v23  ;;  %5086 = vmatmul.msk.f32.vlgmr.msra.gmra.mxu3 %vm220_vm10, %v4563_v23 }
0x32cc   :  { %v4583_v18 = vpop.f32.mrf.mxu2  ;;  %v4603_v35 = vpop.f32.mrf.mxu3 }
0x32cd   :  { %v4606_v40 = vadd.f32 %v4583_v18, %v3997_v17  ;;  %v4607_v24 = vadd.f32 %v4603_v35, %v4038_v36 }
0x32cf   :  { %v5087_v27 = vmul.f32 -1.442695, %v4606_v40  ;;  %v5088_v54 = vmul.f32 -1.442695, %v4607_v24 }
0x32d1   :  { %5547 = vpow2.f32 %v5087_v27 }
0x32d7   :  { %v5548_v21 = vpop.eup %5547 }
0x32d8   :  { %v4611_v31 = vadd.f32 1.0, %v5548_v21 }
0x32da   :  { %5549 = vrcp.f32 %v4611_v31  ;;  %v4623_v32 = vand.u32 2147483648, %v4611_v31  ;;  %v4621_v43 = vand.u32 2147483647, %v4611_v31  ;;  %vm4617_vm0 = vweird.f32 %v4611_v31 }
0x32db   :  { %5551 = vtanh.f32 %v4607_v24 }
0x32dc   :  { %v4624_v38 = vor.u32 1.1754944e-38, %v4623_v32  ;;  %vm4622_vm3 = vcmp.eq.f32.partialorder %v4621_v43, 8.507059e+37  ;;  %5553 = vpow2.f32 %v5088_v54 }
0x32e0   :  { %v5550_v37 = vpop.eup %5549 }
0x32e1   :  { %v4613_v44 = vmul.f32 %v5550_v37, %v4611_v31  ;;  %vm4618_vm15 = vweird.f32 %v5550_v37  ;;  %v5552_v45 = vpop.eup %5551 }
0x32e2   :  { %vm4619_vm2 = vmor %vm4617_vm0, %vm4618_vm15  ;;  %v5554_v51 = vpop.eup %5553 }
0x32e3   :  { %v4614_v42 = vsub.f32 1.0, %v4613_v44  ;;  %v4631_v46 = vadd.f32 1.0, %v5554_v51 }
0x32e5   :  { %v4615_v41 = vmul.f32 %v5550_v37, %v4614_v42  ;;  %5555 = vrcp.f32 %v4631_v46  ;;  %v4643_v7 = vand.u32 2147483648, %v4631_v46  ;;  %vm4637_vm5 = vweird.f32 %v4631_v46 }
0x32e6   :  { %v4641_v9 = vand.u32 2147483647, %v4631_v46 }
0x32e7   :  { %v4616_v50 = vadd.f32 %v5550_v37, %v4615_v41  ;;  %v4644_v14 = vor.u32 1.1754944e-38, %v4643_v7 }
0x32e8   :  { %vm4642_vm6 = vcmp.eq.f32.partialorder %v4641_v9, 8.507059e+37 }
0x32e9   :  { %v4620_v62 = vsel %vm4619_vm2, %v5550_v37, %v4616_v50 }
0x32ea   :  { %v4625_v34 = vsel %vm4622_vm3, %v4624_v38, %v4620_v62 }
0x32eb   :  { %v4648_v33 = vmul.f32 %v5552_v45, %v4625_v34  ;;  %v5556_v53 = vpop.eup %5555  ;;  %v4647_v0 = vmul.f32 %v4625_v34, %v4556_v25 }
0x32ec   :  { %v4633_v8 = vmul.f32 %v5556_v53, %v4631_v46  ;;  %vm4638_vm4 = vweird.f32 %v5556_v53 }
0x32ed   :  { %4650 = vrot.lane.b32.xlu2 %v4648_v33, %s5640_s18  ;;  %vm4639_vm1 = vmor %vm4637_vm5, %vm4638_vm4  ;;  %v4003_v33 = vadd.f32 %v7128_v61, %v7014_v20 }
0x32ee   :  { %v4634_v6 = vsub.f32 1.0, %v4633_v8 }
0x32f0   :  { %v4635_v39 = vmul.f32 %v5556_v53, %v4634_v6 }
0x32f2   :  { %v4636_v5 = vadd.f32 %v5556_v53, %v4635_v39  ;;  %v4044_v39 = vadd.f32 %v7135_v52, %v7021_v60 }
0x32f4   :  { %v4640_v11 = vsel %vm4639_vm1, %v5556_v53, %v4636_v5 }
0x32f5   :  { %v4645_v57 = vsel %vm4642_vm6, %v4644_v14, %v4640_v11 }
0x3347   :  { %v4651_v3 = vpop.permute.xlu2 %4650 }
0x3348   :  { %v4653_v4 = vadd.f32 %v4651_v3, %v4647_v0 }
0x334a   :  { %5557 = vtanh.f32 %v4653_v4 }
0x3350   :  { %v5558_v16 = vpop.eup %5557 }
0x3351   :  { %v4655_v2 = vmul.f32 %v5558_v16, %v4645_v57 }
0x3353   :  { %4659 = vrot.lane.b32.xlu0 %v4655_v2, %s5640_s18 }
0x33c5   :  { %v4660_v19 = vpop.permute.xlu0 %4659 }
0x33c6   :  { %5089 = vmatmul.msk.f32.vlgmr.msra.gmra.mxu0 %vm220_vm10, %v4660_v19  ;;  %5090 = vmatmul.msk.f32.vlgmr.msra.gmra.mxu1 %vm220_vm10, %v4660_v19 }
0x3443   :  { %v4680_v12 = vpop.f32.mrf.mxu0  ;;  %v4700_v10 = vpop.f32.mrf.mxu1 }
0x3444   :  { %v4703_v15 = vadd.f32 %v4680_v12, %v4000_v22  ;;  %v4704_v56 = vadd.f32 %v4700_v10, %v4041_v47 }
0x3446   :  { %v5091_v26 = vmul.f32 -1.442695, %v4703_v15  ;;  %v5092_v58 = vmul.f32 -1.442695, %v4704_v56 }
0x3448   :  { %5559 = vpow2.f32 %v5091_v26 }
0x344e   :  { %v5560_v29 = vpop.eup %5559 }
0x344f   :  { %v4708_v55 = vadd.f32 1.0, %v5560_v29 }
0x3451   :  { %5561 = vrcp.f32 %v4708_v55  ;;  %v4720_v63 = vand.u32 2147483648, %v4708_v55  ;;  %v4718_v59 = vand.u32 2147483647, %v4708_v55  ;;  %vm4714_vm8 = vweird.f32 %v4708_v55 }
0x3452   :  { %5563 = vtanh.f32 %v4704_v56 }
0x3453   :  { %v4721_v30 = vor.u32 1.1754944e-38, %v4720_v63  ;;  %vm4719_vm11 = vcmp.eq.f32.partialorder %v4718_v59, 8.507059e+37  ;;  %5565 = vpow2.f32 %v5092_v58 }
0x3457   :  { %v5562_v25 = vpop.eup %5561 }
0x3458   :  { %v4710_v48 = vmul.f32 %v5562_v25, %v4708_v55  ;;  %vm4715_vm7 = vweird.f32 %v5562_v25  ;;  %v5564_v23 = vpop.eup %5563 }
0x3459   :  { %vm4716_vm9 = vmor %vm4714_vm8, %vm4715_vm7  ;;  %v5566_v40 = vpop.eup %5565 }
0x345a   :  { %v4711_v28 = vsub.f32 1.0, %v4710_v48  ;;  %v4728_v27 = vadd.f32 1.0, %v5566_v40 }
0x345c   :  { %v4712_v1 = vmul.f32 %v5562_v25, %v4711_v28  ;;  %5567 = vrcp.f32 %v4728_v27  ;;  %v4740_v32 = vand.u32 2147483648, %v4728_v27  ;;  %vm4734_vm13 = vweird.f32 %v4728_v27 }
0x345d   :  { %v4738_v41 = vand.u32 2147483647, %v4728_v27 }
0x345e   :  { %v4713_v49 = vadd.f32 %v5562_v25, %v4712_v1  ;;  %v4741_v50 = vor.u32 1.1754944e-38, %v4740_v32 }
0x345f   :  { %vm4739_vm15 = vcmp.eq.f32.partialorder %v4738_v41, 8.507059e+37 }
0x3460   :  { %v4717_v13 = vsel %vm4716_vm9, %v5562_v25, %v4713_v49 }
0x3461   :  { %v4722_v17 = vsel %vm4719_vm11, %v4721_v30, %v4717_v13 }
0x3462   :  { %v4745_v18 = vmul.f32 %v5564_v23, %v4722_v17  ;;  %v5568_v21 = vpop.eup %5567  ;;  %v4744_v37 = vmul.f32 %v4722_v17, %v4653_v4 }
0x3463   :  { %v4730_v31 = vmul.f32 %v5568_v21, %v4728_v27  ;;  %vm4735_vm12 = vweird.f32 %v5568_v21 }
0x3464   :  { %4747 = vrot.lane.b32.xlu1 %v4745_v18, %s5640_s18  ;;  %vm4736_vm14 = vmor %vm4734_vm13, %vm4735_vm12 }
0x3465   :  { %v4731_v35 = vsub.f32 1.0, %v4730_v31 }
0x3467   :  { %v4732_v36 = vmul.f32 %v5568_v21, %v4731_v35 }
0x3469   :  { %v4733_v42 = vadd.f32 %v5568_v21, %v4732_v36 }
0x346b   :  { %v4737_v43 = vsel %vm4736_vm14, %v5568_v21, %v4733_v42 }
0x346c   :  { %v4742_v62 = vsel %vm4739_vm15, %v4741_v50, %v4737_v43 }
0x34d6   :  { %v4748_v24 = vpop.permute.xlu1 %4747 }
0x34d7   :  { %v4750_v44 = vadd.f32 %v4748_v24, %v4744_v37 }
0x34d9   :  { %5569 = vtanh.f32 %v4750_v44 }
0x34df   :  { %v5570_v38 = vpop.eup %5569 }
0x34e0   :  { %v4752_v45 = vmul.f32 %v5570_v38, %v4742_v62 }
0x34e2   :  { %4756 = vrot.lane.b32.xlu2 %v4752_v45, %s5640_s18 }
0x353c   :  { %v4757_v34 = vpop.permute.xlu2 %4756 }
0x353d   :  { %5093 = vmatmul.msk.f32.vlgmr.msrb.gmra.mxu2 %vm220_vm10, %v4757_v34  ;;  %5094 = vmatmul.msk.f32.vlgmr.msrb.gmra.mxu3 %vm220_vm10, %v4757_v34 }
0x35c0   :  { %v4777_v54 = vpop.f32.mrf.mxu2  ;;  %v4797_v6 = vpop.f32.mrf.mxu3 }
0x35c1   :  { %v4800_v51 = vadd.f32 %v4777_v54, %v4003_v33  ;;  %v4801_v3 = vadd.f32 %v4797_v6, %v4044_v39 }
0x35c3   :  { %v5095_v46 = vmul.f32 -1.442695, %v4800_v51  ;;  %v5096_v60 = vmul.f32 -1.442695, %v4801_v3 }
0x35c5   :  { %5571 = vpow2.f32 %v5095_v46 }
0x35cb   :  { %v5572_v53 = vpop.eup %5571 }
0x35cc   :  { %v4805_v8 = vadd.f32 1.0, %v5572_v53 }
0x35ce   :  { %5573 = vrcp.f32 %v4805_v8  ;;  %v4817_v7 = vand.u32 2147483648, %v4805_v8  ;;  %v4815_v20 = vand.u32 2147483647, %v4805_v8  ;;  %vm4811_vm2 = vweird.f32 %v4805_v8 }
0x35cf   :  { %5575 = vtanh.f32 %v4801_v3 }
0x35d0   :  { %v4818_v11 = vor.u32 1.1754944e-38, %v4817_v7  ;;  %vm4816_vm4 = vcmp.eq.f32.partialorder %v4815_v20, 8.507059e+37  ;;  %5577 = vpow2.f32 %v5096_v60 }
0x35d4   :  { %v5574_v0 = vpop.eup %5573 }
0x35d5   :  { %v4807_v4 = vmul.f32 %v5574_v0, %v4805_v8  ;;  %vm4812_vm0 = vweird.f32 %v5574_v0  ;;  %v5576_v16 = vpop.eup %5575 }
0x35d6   :  { %vm4813_vm3 = vmor %vm4811_vm2, %vm4812_vm0  ;;  %v5578_v52 = vpop.eup %5577 }
0x35d7   :  { %v4808_v5 = vsub.f32 1.0, %v4807_v4  ;;  %v4825_v19 = vadd.f32 1.0, %v5578_v52 }
0x35d9   :  { %v4809_v9 = vmul.f32 %v5574_v0, %v4808_v5  ;;  %5579 = vrcp.f32 %v4825_v19  ;;  %v4837_v25 = vand.u32 2147483648, %v4825_v19  ;;  %vm4831_vm1 = vweird.f32 %v4825_v19 }
0x35da   :  { %v4835_v56 = vand.u32 2147483647, %v4825_v19 }
0x35db   :  { %v4810_v61 = vadd.f32 %v5574_v0, %v4809_v9  ;;  %v4838_v28 = vor.u32 1.1754944e-38, %v4837_v25 }
0x35dc   :  { %vm4836_vm7 = vcmp.eq.f32.partialorder %v4835_v56, 8.507059e+37 }
0x35dd   :  { %v4814_v14 = vsel %vm4813_vm3, %v5574_v0, %v4810_v61 }
0x35de   :  { %v4819_v57 = vsel %vm4816_vm4, %v4818_v11, %v4814_v14 }
0x35df   :  { %v4842_v2 = vmul.f32 %v5576_v16, %v4819_v57  ;;  %v5580_v22 = vpop.eup %5579  ;;  %v4841_v29 = vmul.f32 %v4819_v57, %v4750_v44 }
0x35e0   :  { %v4827_v12 = vmul.f32 %v5580_v22, %v4825_v19  ;;  %vm4832_vm5 = vweird.f32 %v5580_v22 }
0x35e1   :  { %4844 = vrot.lane.b32.xlu0 %v4842_v2, %s5640_s18  ;;  %vm4833_vm6 = vmor %vm4831_vm1, %vm4832_vm5 }
0x35e2   :  { %v4828_v15 = vsub.f32 1.0, %v4827_v12 }
0x35e4   :  { %v4829_v26 = vmul.f32 %v5580_v22, %v4828_v15 }
0x35e6   :  { %v4830_v47 = vadd.f32 %v5580_v22, %v4829_v26 }
0x35e8   :  { %v4834_v48 = vsel %vm4833_vm6, %v5580_v22, %v4830_v47 }
0x35e9   :  { %v4839_v1 = vsel %vm4836_vm7, %v4838_v28, %v4834_v48 }
0x3653   :  { %v4845_v55 = vpop.permute.xlu0 %4844 }
0x3654   :  { %v4847_v10 = vadd.f32 %v4845_v55, %v4841_v29 }
0x3656   :  { %5581 = vtanh.f32 %v4847_v10 }
0x365c   :  { %v5582_v63 = vpop.eup %5581 }
0x365d   :  { %v4849_v59 = vmul.f32 %v5582_v63, %v4839_v1 }
0x365f   :  { %4851 = vrot.lane.b32.xlu1 %v4849_v59, %s5640_s18 }
0x36d1   :  { %v4852_v49 = vpop.permute.xlu1 %4851 }
0x36d2   :  { %4854 = vst.msk [vmem:[%s7174_s5] sm:$0xff] %vm220_vm10, %v4852_v49 }
0x36d3   :  { %4859 = vsyncpa [#allocation5], 1 }
0x36d4   :  { %4860 = vsyncpa [#allocation7], 1 }

</bundles_post_ra>
